<compile_context>
chip_gen: v7x
topology: tpu7x:2x2x1
jax: 0.10.0
libtpu: 0.0.40
codegen_flags: <defaults>
</compile_context>

<pallas_src>
import math

import jax
import jax.numpy as jnp
from jax.experimental import pallas as pl
from jax.experimental.pallas import tpu as pltpu


# -----------------------------------------------------------------------------
# Fused kernel: 3 x LSTM layer (hoisted input projection + unrolled recurrence)
# followed by BN -> ReLU -> Linear -> BN -> ReLU -> Linear(last step only).
# Runs once (no grid); all weights and activations live in VMEM.
# -----------------------------------------------------------------------------
def _fused_dynamics_kernel(x_ref,                       # (T*B, D_in) time-major
                           wih0_ref, whh0_ref, b0_ref,  # layer 0
                           wih1_ref, whh1_ref, b1_ref,  # layer 1
                           wih2_ref, whh2_ref, b2_ref,  # layer 2
                           h0_ref, c0_ref,              # (L, B, H) initial states
                           g1_ref, be1_ref,             # BN1 gamma/beta (1, H)
                           lw1_ref, lb1_ref,            # Linear1 (H, LIN), (1, LIN)
                           g2_ref, be2_ref,             # BN2 gamma/beta (1, LIN)
                           lw2_ref, lb2_ref,            # Linear2 (LIN, OUT_PAD), (1, OUT_PAD)
                           out_ref, hT_ref, cT_ref,     # outputs
                           gx_scr, y_scr, h2_scr):      # VMEM scratch
    f32 = jnp.float32
    B = h0_ref.shape[1]
    H = h0_ref.shape[2]
    N = y_scr.shape[0]
    T = N // B

    def run_layer(layer, x_flat, wih_ref, whh_ref, bias_ref):
        # (1) Hoisted input projection: one (T*B, D_in) x (D_in, 4H) MXU call for
        #     the whole sequence, with the combined bias folded in.
        gx_scr[...] = (jnp.dot(x_flat, wih_ref[...],
                               preferred_element_type=f32) + bias_ref[...])
        whh = whh_ref[...]
        h = h0_ref[layer].astype(f32)
        c = c0_ref[layer].astype(f32)
        # (2) Recurrence: only h @ W_hh + elementwise gates on the sequential
        #     critical path.  T is small and static -> full unroll.
        for t in range(T):
            gates = gx_scr[t * B:(t + 1) * B, :] + jnp.dot(
                h, whh, preferred_element_type=f32)          # (B, 4H)
            i_g = jax.nn.sigmoid(gates[:, 0 * H:1 * H])
            f_g = jax.nn.sigmoid(gates[:, 1 * H:2 * H])
            g_g = jnp.tanh(gates[:, 2 * H:3 * H])
            o_g = jax.nn.sigmoid(gates[:, 3 * H:4 * H])
            c = f_g * c + i_g * g_g
            h = o_g * jnp.tanh(c)
            y_scr[t * B:(t + 1) * B, :] = h
        # Final per-layer states, written unconditionally before kernel exit.
        hT_ref[layer] = h.astype(hT_ref.dtype)
        cT_ref[layer] = c.astype(cT_ref.dtype)

    # Layer 0 consumes the raw input; layers 1/2 consume the previous layer's
    # full hidden sequence (loaded from y_scr before it is overwritten).
    run_layer(0, x_ref[...].astype(f32), wih0_ref, whh0_ref, b0_ref)
    run_layer(1, y_scr[...], wih1_ref, whh1_ref, b1_ref)
    run_layer(2, y_scr[...], wih2_ref, whh2_ref, b2_ref)

    # ----------------------- head (train-mode BatchNorm) ----------------------
    eps = 1e-5
    xh = y_scr[...]                                           # (T*B, H) f32
    mean1 = jnp.mean(xh, axis=0, keepdims=True)
    var1 = jnp.mean(jnp.square(xh - mean1), axis=0, keepdims=True)   # biased var
    xh = (xh - mean1) * jax.lax.rsqrt(var1 + eps) * g1_ref[...] + be1_ref[...]
    xh = jnp.maximum(xh, 0.0)
    xh = jnp.dot(xh, lw1_ref[...], preferred_element_type=f32) + lb1_ref[...]
    mean2 = jnp.mean(xh, axis=0, keepdims=True)
    var2 = jnp.mean(jnp.square(xh - mean2), axis=0, keepdims=True)
    xh = (xh - mean2) * jax.lax.rsqrt(var2 + eps) * g2_ref[...] + be2_ref[...]
    h2_scr[...] = jnp.maximum(xh, 0.0)

    # BN statistics needed every (b, t) row, but only the last timestep's B rows
    # feed the final Linear and the output (== x[:, -1, :] in the PyTorch module).
    x_last = h2_scr[(T - 1) * B:T * B, :]                     # (B, LIN)
    out = jnp.dot(x_last, lw2_ref[...], preferred_element_type=f32) + lb2_ref[...]
    out_ref[...] = out.astype(out_ref.dtype)                  # (B, OUT_PAD) lane-dense


# -----------------------------------------------------------------------------
# Wrapper (mirrors DynamicsModelRNN.forward)
# -----------------------------------------------------------------------------
def dynamics_model_forward(params, x, hidden, cell):
    """x: (B, T, 62); hidden, cell: (L, B, H).  Returns (out (B, 6), hidden, cell)."""
    B, T, D = x.shape
    L, _, H = hidden.shape
    assert L == 3, "kernel is specialized for rnn_layers == 3"
    head = params["head"]
    LIN = head["w1"].shape[1]
    OUT = head["w2"].shape[1]
    OUT_PAD = -(-OUT // 128) * 128          # lane-dense output width
    N = T * B

    # Time-major flatten so each timestep is a contiguous B-row slab.
    x_tm = jnp.transpose(x, (1, 0, 2)).reshape(N, D)
    # Zero-pad the final Linear to a lane-dense width; sliced back below.
    w2p = jnp.pad(head["w2"], ((0, 0), (0, OUT_PAD - OUT)))
    b2p = jnp.pad(head["b2"], ((0, 0), (0, OUT_PAD - OUT)))

    l0, l1, l2 = params["lstm"]
    operands = (x_tm,
                l0["w_ih"], l0["w_hh"], l0["bias"],
                l1["w_ih"], l1["w_hh"], l1["bias"],
                l2["w_ih"], l2["w_hh"], l2["bias"],
                hidden, cell,
                head["bn1_gamma"], head["bn1_beta"], head["w1"], head["b1"],
                head["bn2_gamma"], head["bn2_beta"], w2p, b2p)

    out_shape = (jax.ShapeDtypeStruct((B, OUT_PAD), jnp.float32),
                 jax.ShapeDtypeStruct((L, B, H), jnp.float32),
                 jax.ShapeDtypeStruct((L, B, H), jnp.float32))

    # Advisory cost estimate for the XLA scheduler.
    flops = 0
    d_in = D
    for _ in range(L):
        flops += 2 * N * d_in * 4 * H          # hoisted input projection
        flops += T * 2 * B * H * 4 * H         # recurrent h @ W_hh
        flops += 16 * N * H                    # gate elementwise
        d_in = H
    flops += 2 * N * H * LIN + 2 * B * LIN * OUT_PAD + 20 * N * (H + LIN)
    transcendentals = L * N * 5 * H            # sigmoid/tanh per gate + tanh(c)
    bytes_accessed = int(sum(int(a.size) * a.dtype.itemsize for a in operands)
                         + sum(4 * math.prod(s.shape) for s in out_shape))

    vmem_spec = pl.BlockSpec(memory_space=pltpu.MemorySpace.VMEM)
    out_pad, h_out, c_out = pl.pallas_call(
        _fused_dynamics_kernel,
        out_shape=out_shape,
        in_specs=[vmem_spec] * len(operands),
        out_specs=[vmem_spec] * len(out_shape),
        scratch_shapes=[
            pltpu.VMEM((N, 4 * H), jnp.float32),   # gx: hoisted input projection
            pltpu.VMEM((N, H), jnp.float32),       # per-layer hidden sequence
            pltpu.VMEM((N, LIN), jnp.float32),     # head post-BN2/ReLU activations
        ],
        cost_estimate=pl.CostEstimate(flops=int(flops),
                                      transcendentals=int(transcendentals),
                                      bytes_accessed=bytes_accessed),
    )(*operands)
    return out_pad[:, :OUT], h_out, c_out


# -----------------------------------------------------------------------------
# Deterministic parameter initialization (shapes follow the module __init__,
# hidden size scaled down for the small demo run).
# -----------------------------------------------------------------------------
def init_params(key, input_size, hidden, layers, lin, out):
    params = {"lstm": [], "head": {}}
    k_lstm = 1.0 / jnp.sqrt(jnp.float32(hidden))
    keys = jax.random.split(key, 4 * layers + 4)
    ki = 0
    for l in range(layers):
        d_in = input_size if l == 0 else hidden
        w_ih = jax.random.uniform(keys[ki], (d_in, 4 * hidden), jnp.float32,
                                  -k_lstm, k_lstm); ki += 1
        w_hh = jax.random.uniform(keys[ki], (hidden, 4 * hidden), jnp.float32,
                                  -k_lstm, k_lstm); ki += 1
        b_ih = jax.random.uniform(keys[ki], (4 * hidden,), jnp.float32,
                                  -k_lstm, k_lstm); ki += 1
        b_hh = jax.random.uniform(keys[ki], (4 * hidden,), jnp.float32,
                                  -k_lstm, k_lstm); ki += 1
        params["lstm"].append({
            "w_ih": w_ih, "w_hh": w_hh,
            "bias": (b_ih + b_hh).reshape(1, 4 * hidden),
        })

    k1 = 1.0 / jnp.sqrt(jnp.float32(hidden))
    k2 = 1.0 / jnp.sqrt(jnp.float32(lin))
    params["head"] = {
        "bn1_gamma": jnp.ones((1, hidden), jnp.float32),
        "bn1_beta": jnp.zeros((1, hidden), jnp.float32),
        "w1": jax.random.uniform(keys[ki], (hidden, lin), jnp.float32, -k1, k1),
        "b1": jax.random.uniform(keys[ki + 1], (1, lin), jnp.float32, -k1, k1),
        "bn2_gamma": jnp.ones((1, lin), jnp.float32),
        "bn2_beta": jnp.zeros((1, lin), jnp.float32),
        "w2": jax.random.uniform(keys[ki + 2], (lin, out), jnp.float32, -k2, k2),
        "b2": jax.random.uniform(keys[ki + 3], (1, out), jnp.float32, -k2, k2),
    }
    return params


if __name__ == "__main__":
    # Module shapes: input feature = 62, sequence_length = 12, 3 LSTM layers,
    # output = 6.  rnn_hidden scaled 1024 -> 128 (linear kept at 512) for a
    # small, fast demo run.
    B, T = 2, 12
    INPUT, HID, LAYERS, LIN, OUT = 62, 128, 3, 512, 6

    key = jax.random.PRNGKey(0)
    kx, kp = jax.random.split(key)
    params = init_params(kp, INPUT, HID, LAYERS, LIN, OUT)

    x = jax.random.normal(kx, (B, T, INPUT), jnp.float32)
    hidden = jnp.zeros((LAYERS, B, HID), jnp.float32)
    cell = jnp.zeros((LAYERS, B, HID), jnp.float32)

    fwd = jax.jit(dynamics_model_forward)
    out, h_out, c_out = fwd(params, x, hidden, cell)
    jax.block_until_ready((out, h_out, c_out))

    assert out.shape == (B, OUT)
    assert h_out.shape == (LAYERS, B, HID) and c_out.shape == (LAYERS, B, HID)
    assert bool(jnp.all(jnp.isfinite(out)))
    assert bool(jnp.all(jnp.isfinite(h_out))) and bool(jnp.all(jnp.isfinite(c_out)))
    print("KERNEL_OK")
</pallas_src>

<mosaic_0001>
module attributes {stable_mosaic.version = 11 : i64} {
  func.func @_fused_dynamics_kernel(%arg0: memref<24x62xf32, #tpu.memory_space<vmem>>, %arg1: memref<62x512xf32, #tpu.memory_space<vmem>>, %arg2: memref<128x512xf32, #tpu.memory_space<vmem>>, %arg3: memref<1x512xf32, #tpu.memory_space<vmem>>, %arg4: memref<128x512xf32, #tpu.memory_space<vmem>>, %arg5: memref<128x512xf32, #tpu.memory_space<vmem>>, %arg6: memref<1x512xf32, #tpu.memory_space<vmem>>, %arg7: memref<128x512xf32, #tpu.memory_space<vmem>>, %arg8: memref<128x512xf32, #tpu.memory_space<vmem>>, %arg9: memref<1x512xf32, #tpu.memory_space<vmem>>, %arg10: memref<3x2x128xf32, #tpu.memory_space<vmem>>, %arg11: memref<3x2x128xf32, #tpu.memory_space<vmem>>, %arg12: memref<1x128xf32, #tpu.memory_space<vmem>>, %arg13: memref<1x128xf32, #tpu.memory_space<vmem>>, %arg14: memref<128x512xf32, #tpu.memory_space<vmem>>, %arg15: memref<1x512xf32, #tpu.memory_space<vmem>>, %arg16: memref<1x512xf32, #tpu.memory_space<vmem>>, %arg17: memref<1x512xf32, #tpu.memory_space<vmem>>, %arg18: memref<512x128xf32, #tpu.memory_space<vmem>>, %arg19: memref<1x128xf32, #tpu.memory_space<vmem>>, %arg20: memref<2x128xf32, #tpu.memory_space<vmem>>, %arg21: memref<3x2x128xf32, #tpu.memory_space<vmem>>, %arg22: memref<3x2x128xf32, #tpu.memory_space<vmem>>, %arg23: memref<24x512xf32, #tpu.memory_space<vmem>>, %arg24: memref<24x128xf32, #tpu.memory_space<vmem>>, %arg25: memref<24x512xf32, #tpu.memory_space<vmem>>) attributes {dimension_semantics = [], scalar_prefetch = 0 : i64, scratch_operands = 3 : i64, tpu.core_type = #tpu.core_type<tc>} {
    %c0 = arith.constant 0 : index
    %c0_0 = arith.constant 0 : index
    %0 = vector.load %arg0[%c0, %c0_0] : memref<24x62xf32, #tpu.memory_space<vmem>>, vector<24x62xf32>
    %c0_1 = arith.constant 0 : index
    %c0_2 = arith.constant 0 : index
    %1 = vector.load %arg1[%c0_1, %c0_2] : memref<62x512xf32, #tpu.memory_space<vmem>>, vector<62x512xf32>
    %cst = arith.constant dense<0.000000e+00> : vector<24x512xf32>
    %2 = tpu.matmul %0, %1, %cst {dimension_numbers = #tpu.dot_dimension_numbers<[1], [0], [0], [1], [0, 0, 1, 1], [], []>} : vector<24x62xf32>, vector<62x512xf32>, vector<24x512xf32> -> vector<24x512xf32>
    %c0_3 = arith.constant 0 : index
    %c0_4 = arith.constant 0 : index
    %3 = vector.load %arg3[%c0_3, %c0_4] : memref<1x512xf32, #tpu.memory_space<vmem>>, vector<1x512xf32>
    %4 = vector.broadcast %3 : vector<1x512xf32> to vector<24x512xf32>
    %5 = arith.addf %2, %4 : vector<24x512xf32>
    %c0_5 = arith.constant 0 : index
    %c0_6 = arith.constant 0 : index
    %6 = vector.load %arg23[%c0_5, %c0_6] : memref<24x512xf32, #tpu.memory_space<vmem>>, vector<24x512xf32>
    tpu.vector_store %arg23[%c0_5, %c0_6], %5 {strides = array<i32>} : memref<24x512xf32, #tpu.memory_space<vmem>>, vector<24x512xf32>,
    %c0_7 = arith.constant 0 : index
    %c0_8 = arith.constant 0 : index
    %7 = vector.load %arg2[%c0_7, %c0_8] : memref<128x512xf32, #tpu.memory_space<vmem>>, vector<128x512xf32>
    %c0_9 = arith.constant 0 : index
    %c0_10 = arith.constant 0 : index
    %c0_11 = arith.constant 0 : index
    %8 = vector.load %arg10[%c0_9, %c0_10, %c0_11] : memref<3x2x128xf32, #tpu.memory_space<vmem>>, vector<1x2x128xf32>
    %9 = vector.shape_cast %8 : vector<1x2x128xf32> to vector<2x128xf32>
    %c0_12 = arith.constant 0 : index
    %c0_13 = arith.constant 0 : index
    %c0_14 = arith.constant 0 : index
    %10 = vector.load %arg11[%c0_12, %c0_13, %c0_14] : memref<3x2x128xf32, #tpu.memory_space<vmem>>, vector<1x2x128xf32>
    %11 = vector.shape_cast %10 : vector<1x2x128xf32> to vector<2x128xf32>
    %c0_15 = arith.constant 0 : index
    %c0_16 = arith.constant 0 : index
    %12 = vector.load %arg23[%c0_15, %c0_16] : memref<24x512xf32, #tpu.memory_space<vmem>>, vector<2x512xf32>
    %cst_17 = arith.constant dense<0.000000e+00> : vector<2x512xf32>
    %13 = tpu.matmul %9, %7, %cst_17 {dimension_numbers = #tpu.dot_dimension_numbers<[1], [0], [0], [1], [0, 0, 1, 1], [], []>} : vector<2x128xf32>, vector<128x512xf32>, vector<2x512xf32> -> vector<2x512xf32>
    %14 = arith.addf %12, %13 : vector<2x512xf32>
    %15 = vector.extract_strided_slice %14 {offsets = [0, 0], sizes = [2, 128], strides = [1, 1]} : vector<2x512xf32> to vector<2x128xf32>
    %16 = arith.negf %15 : vector<2x128xf32>
    %17 = math.exp %16 : vector<2x128xf32>
    %cst_18 = arith.constant 1.000000e+00 : f32
    %18 = vector.broadcast %cst_18 : f32 to vector<2x128xf32>
    %19 = arith.addf %18, %17 : vector<2x128xf32>
    %20 = arith.divf %18, %19 : vector<2x128xf32>
    %21 = vector.extract_strided_slice %14 {offsets = [0, 128], sizes = [2, 128], strides = [1, 1]} : vector<2x512xf32> to vector<2x128xf32>
    %22 = arith.negf %21 : vector<2x128xf32>
    %23 = math.exp %22 : vector<2x128xf32>
    %cst_19 = arith.constant 1.000000e+00 : f32
    %24 = vector.broadcast %cst_19 : f32 to vector<2x128xf32>
    %25 = arith.addf %24, %23 : vector<2x128xf32>
    %26 = arith.divf %24, %25 : vector<2x128xf32>
    %27 = vector.extract_strided_slice %14 {offsets = [0, 256], sizes = [2, 128], strides = [1, 1]} : vector<2x512xf32> to vector<2x128xf32>
    %28 = math.tanh %27 : vector<2x128xf32>
    %29 = vector.extract_strided_slice %14 {offsets = [0, 384], sizes = [2, 128], strides = [1, 1]} : vector<2x512xf32> to vector<2x128xf32>
    %30 = arith.negf %29 : vector<2x128xf32>
    %31 = math.exp %30 : vector<2x128xf32>
    %cst_20 = arith.constant 1.000000e+00 : f32
    %32 = vector.broadcast %cst_20 : f32 to vector<2x128xf32>
    %33 = arith.addf %32, %31 : vector<2x128xf32>
    %34 = arith.divf %32, %33 : vector<2x128xf32>
    %35 = arith.mulf %26, %11 : vector<2x128xf32>
    %36 = arith.mulf %20, %28 : vector<2x128xf32>
    %37 = arith.addf %35, %36 : vector<2x128xf32>
    %38 = math.tanh %37 : vector<2x128xf32>
    %39 = arith.mulf %34, %38 : vector<2x128xf32>
    %c0_21 = arith.constant 0 : index
    %c0_22 = arith.constant 0 : index
    %40 = vector.load %arg24[%c0_21, %c0_22] : memref<24x128xf32, #tpu.memory_space<vmem>>, vector<2x128xf32>
    tpu.vector_store %arg24[%c0_21, %c0_22], %39 {strides = array<i32>} : memref<24x128xf32, #tpu.memory_space<vmem>>, vector<2x128xf32>,
    %c2 = arith.constant 2 : index
    %c0_23 = arith.constant 0 : index
    %41 = vector.load %arg23[%c2, %c0_23] : memref<24x512xf32, #tpu.memory_space<vmem>>, vector<2x512xf32>
    %cst_24 = arith.constant dense<0.000000e+00> : vector<2x512xf32>
    %42 = tpu.matmul %39, %7, %cst_24 {dimension_numbers = #tpu.dot_dimension_numbers<[1], [0], [0], [1], [0, 0, 1, 1], [], []>} : vector<2x128xf32>, vector<128x512xf32>, vector<2x512xf32> -> vector<2x512xf32>
    %43 = arith.addf %41, %42 : vector<2x512xf32>
    %44 = vector.extract_strided_slice %43 {offsets = [0, 0], sizes = [2, 128], strides = [1, 1]} : vector<2x512xf32> to vector<2x128xf32>
    %45 = arith.negf %44 : vector<2x128xf32>
    %46 = math.exp %45 : vector<2x128xf32>
    %cst_25 = arith.constant 1.000000e+00 : f32
    %47 = vector.broadcast %cst_25 : f32 to vector<2x128xf32>
    %48 = arith.addf %47, %46 : vector<2x128xf32>
    %49 = arith.divf %47, %48 : vector<2x128xf32>
    %50 = vector.extract_strided_slice %43 {offsets = [0, 128], sizes = [2, 128], strides = [1, 1]} : vector<2x512xf32> to vector<2x128xf32>
    %51 = arith.negf %50 : vector<2x128xf32>
    %52 = math.exp %51 : vector<2x128xf32>
    %cst_26 = arith.constant 1.000000e+00 : f32
    %53 = vector.broadcast %cst_26 : f32 to vector<2x128xf32>
    %54 = arith.addf %53, %52 : vector<2x128xf32>
    %55 = arith.divf %53, %54 : vector<2x128xf32>
    %56 = vector.extract_strided_slice %43 {offsets = [0, 256], sizes = [2, 128], strides = [1, 1]} : vector<2x512xf32> to vector<2x128xf32>
    %57 = math.tanh %56 : vector<2x128xf32>
    %58 = vector.extract_strided_slice %43 {offsets = [0, 384], sizes = [2, 128], strides = [1, 1]} : vector<2x512xf32> to vector<2x128xf32>
    %59 = arith.negf %58 : vector<2x128xf32>
    %60 = math.exp %59 : vector<2x128xf32>
    %cst_27 = arith.constant 1.000000e+00 : f32
    %61 = vector.broadcast %cst_27 : f32 to vector<2x128xf32>
    %62 = arith.addf %61, %60 : vector<2x128xf32>
    %63 = arith.divf %61, %62 : vector<2x128xf32>
    %64 = arith.mulf %55, %37 : vector<2x128xf32>
    %65 = arith.mulf %49, %57 : vector<2x128xf32>
    %66 = arith.addf %64, %65 : vector<2x128xf32>
    %67 = math.tanh %66 : vector<2x128xf32>
    %68 = arith.mulf %63, %67 : vector<2x128xf32>
    %c2_28 = arith.constant 2 : index
    %c0_29 = arith.constant 0 : index
    %69 = vector.load %arg24[%c2_28, %c0_29] : memref<24x128xf32, #tpu.memory_space<vmem>>, vector<2x128xf32>
    tpu.vector_store %arg24[%c2_28, %c0_29], %68 {strides = array<i32>} : memref<24x128xf32, #tpu.memory_space<vmem>>, vector<2x128xf32>,
    %c4 = arith.constant 4 : index
    %c0_30 = arith.constant 0 : index
    %70 = vector.load %arg23[%c4, %c0_30] : memref<24x512xf32, #tpu.memory_space<vmem>>, vector<2x512xf32>
    %cst_31 = arith.constant dense<0.000000e+00> : vector<2x512xf32>
    %71 = tpu.matmul %68, %7, %cst_31 {dimension_numbers = #tpu.dot_dimension_numbers<[1], [0], [0], [1], [0, 0, 1, 1], [], []>} : vector<2x128xf32>, vector<128x512xf32>, vector<2x512xf32> -> vector<2x512xf32>
    %72 = arith.addf %70, %71 : vector<2x512xf32>
    %73 = vector.extract_strided_slice %72 {offsets = [0, 0], sizes = [2, 128], strides = [1, 1]} : vector<2x512xf32> to vector<2x128xf32>
    %74 = arith.negf %73 : vector<2x128xf32>
    %75 = math.exp %74 : vector<2x128xf32>
    %cst_32 = arith.constant 1.000000e+00 : f32
    %76 = vector.broadcast %cst_32 : f32 to vector<2x128xf32>
    %77 = arith.addf %76, %75 : vector<2x128xf32>
    %78 = arith.divf %76, %77 : vector<2x128xf32>
    %79 = vector.extract_strided_slice %72 {offsets = [0, 128], sizes = [2, 128], strides = [1, 1]} : vector<2x512xf32> to vector<2x128xf32>
    %80 = arith.negf %79 : vector<2x128xf32>
    %81 = math.exp %80 : vector<2x128xf32>
    %cst_33 = arith.constant 1.000000e+00 : f32
    %82 = vector.broadcast %cst_33 : f32 to vector<2x128xf32>
    %83 = arith.addf %82, %81 : vector<2x128xf32>
    %84 = arith.divf %82, %83 : vector<2x128xf32>
    %85 = vector.extract_strided_slice %72 {offsets = [0, 256], sizes = [2, 128], strides = [1, 1]} : vector<2x512xf32> to vector<2x128xf32>
    %86 = math.tanh %85 : vector<2x128xf32>
    %87 = vector.extract_strided_slice %72 {offsets = [0, 384], sizes = [2, 128], strides = [1, 1]} : vector<2x512xf32> to vector<2x128xf32>
    %88 = arith.negf %87 : vector<2x128xf32>
    %89 = math.exp %88 : vector<2x128xf32>
    %cst_34 = arith.constant 1.000000e+00 : f32
    %90 = vector.broadcast %cst_34 : f32 to vector<2x128xf32>
    %91 = arith.addf %90, %89 : vector<2x128xf32>
    %92 = arith.divf %90, %91 : vector<2x128xf32>
    %93 = arith.mulf %84, %66 : vector<2x128xf32>
    %94 = arith.mulf %78, %86 : vector<2x128xf32>
    %95 = arith.addf %93, %94 : vector<2x128xf32>
    %96 = math.tanh %95 : vector<2x128xf32>
    %97 = arith.mulf %92, %96 : vector<2x128xf32>
    %c4_35 = arith.constant 4 : index
    %c0_36 = arith.constant 0 : index
    %98 = vector.load %arg24[%c4_35, %c0_36] : memref<24x128xf32, #tpu.memory_space<vmem>>, vector<2x128xf32>
    tpu.vector_store %arg24[%c4_35, %c0_36], %97 {strides = array<i32>} : memref<24x128xf32, #tpu.memory_space<vmem>>, vector<2x128xf32>,
    %c6 = arith.constant 6 : index
    %c0_37 = arith.constant 0 : index
    %99 = vector.load %arg23[%c6, %c0_37] : memref<24x512xf32, #tpu.memory_space<vmem>>, vector<2x512xf32>
    %cst_38 = arith.constant dense<0.000000e+00> : vector<2x512xf32>
    %100 = tpu.matmul %97, %7, %cst_38 {dimension_numbers = #tpu.dot_dimension_numbers<[1], [0], [0], [1], [0, 0, 1, 1], [], []>} : vector<2x128xf32>, vector<128x512xf32>, vector<2x512xf32> -> vector<2x512xf32>
    %101 = arith.addf %99, %100 : vector<2x512xf32>
    %102 = vector.extract_strided_slice %101 {offsets = [0, 0], sizes = [2, 128], strides = [1, 1]} : vector<2x512xf32> to vector<2x128xf32>
    %103 = arith.negf %102 : vector<2x128xf32>
    %104 = math.exp %103 : vector<2x128xf32>
    %cst_39 = arith.constant 1.000000e+00 : f32
    %105 = vector.broadcast %cst_39 : f32 to vector<2x128xf32>
    %106 = arith.addf %105, %104 : vector<2x128xf32>
    %107 = arith.divf %105, %106 : vector<2x128xf32>
    %108 = vector.extract_strided_slice %101 {offsets = [0, 128], sizes = [2, 128], strides = [1, 1]} : vector<2x512xf32> to vector<2x128xf32>
    %109 = arith.negf %108 : vector<2x128xf32>
    %110 = math.exp %109 : vector<2x128xf32>
    %cst_40 = arith.constant 1.000000e+00 : f32
    %111 = vector.broadcast %cst_40 : f32 to vector<2x128xf32>
    %112 = arith.addf %111, %110 : vector<2x128xf32>
    %113 = arith.divf %111, %112 : vector<2x128xf32>
    %114 = vector.extract_strided_slice %101 {offsets = [0, 256], sizes = [2, 128], strides = [1, 1]} : vector<2x512xf32> to vector<2x128xf32>
    %115 = math.tanh %114 : vector<2x128xf32>
    %116 = vector.extract_strided_slice %101 {offsets = [0, 384], sizes = [2, 128], strides = [1, 1]} : vector<2x512xf32> to vector<2x128xf32>
    %117 = arith.negf %116 : vector<2x128xf32>
    %118 = math.exp %117 : vector<2x128xf32>
    %cst_41 = arith.constant 1.000000e+00 : f32
    %119 = vector.broadcast %cst_41 : f32 to vector<2x128xf32>
    %120 = arith.addf %119, %118 : vector<2x128xf32>
    %121 = arith.divf %119, %120 : vector<2x128xf32>
    %122 = arith.mulf %113, %95 : vector<2x128xf32>
    %123 = arith.mulf %107, %115 : vector<2x128xf32>
    %124 = arith.addf %122, %123 : vector<2x128xf32>
    %125 = math.tanh %124 : vector<2x128xf32>
    %126 = arith.mulf %121, %125 : vector<2x128xf32>
    %c6_42 = arith.constant 6 : index
    %c0_43 = arith.constant 0 : index
    %127 = vector.load %arg24[%c6_42, %c0_43] : memref<24x128xf32, #tpu.memory_space<vmem>>, vector<2x128xf32>
    tpu.vector_store %arg24[%c6_42, %c0_43], %126 {strides = array<i32>} : memref<24x128xf32, #tpu.memory_space<vmem>>, vector<2x128xf32>,
    %c8 = arith.constant 8 : index
    %c0_44 = arith.constant 0 : index
    %128 = vector.load %arg23[%c8, %c0_44] : memref<24x512xf32, #tpu.memory_space<vmem>>, vector<2x512xf32>
    %cst_45 = arith.constant dense<0.000000e+00> : vector<2x512xf32>
    %129 = tpu.matmul %126, %7, %cst_45 {dimension_numbers = #tpu.dot_dimension_numbers<[1], [0], [0], [1], [0, 0, 1, 1], [], []>} : vector<2x128xf32>, vector<128x512xf32>, vector<2x512xf32> -> vector<2x512xf32>
    %130 = arith.addf %128, %129 : vector<2x512xf32>
    %131 = vector.extract_strided_slice %130 {offsets = [0, 0], sizes = [2, 128], strides = [1, 1]} : vector<2x512xf32> to vector<2x128xf32>
    %132 = arith.negf %131 : vector<2x128xf32>
    %133 = math.exp %132 : vector<2x128xf32>
    %cst_46 = arith.constant 1.000000e+00 : f32
    %134 = vector.broadcast %cst_46 : f32 to vector<2x128xf32>
    %135 = arith.addf %134, %133 : vector<2x128xf32>
    %136 = arith.divf %134, %135 : vector<2x128xf32>
    %137 = vector.extract_strided_slice %130 {offsets = [0, 128], sizes = [2, 128], strides = [1, 1]} : vector<2x512xf32> to vector<2x128xf32>
    %138 = arith.negf %137 : vector<2x128xf32>
    %139 = math.exp %138 : vector<2x128xf32>
    %cst_47 = arith.constant 1.000000e+00 : f32
    %140 = vector.broadcast %cst_47 : f32 to vector<2x128xf32>
    %141 = arith.addf %140, %139 : vector<2x128xf32>
    %142 = arith.divf %140, %141 : vector<2x128xf32>
    %143 = vector.extract_strided_slice %130 {offsets = [0, 256], sizes = [2, 128], strides = [1, 1]} : vector<2x512xf32> to vector<2x128xf32>
    %144 = math.tanh %143 : vector<2x128xf32>
    %145 = vector.extract_strided_slice %130 {offsets = [0, 384], sizes = [2, 128], strides = [1, 1]} : vector<2x512xf32> to vector<2x128xf32>
    %146 = arith.negf %145 : vector<2x128xf32>
    %147 = math.exp %146 : vector<2x128xf32>
    %cst_48 = arith.constant 1.000000e+00 : f32
    %148 = vector.broadcast %cst_48 : f32 to vector<2x128xf32>
    %149 = arith.addf %148, %147 : vector<2x128xf32>
    %150 = arith.divf %148, %149 : vector<2x128xf32>
    %151 = arith.mulf %142, %124 : vector<2x128xf32>
    %152 = arith.mulf %136, %144 : vector<2x128xf32>
    %153 = arith.addf %151, %152 : vector<2x128xf32>
    %154 = math.tanh %153 : vector<2x128xf32>
    %155 = arith.mulf %150, %154 : vector<2x128xf32>
    %c8_49 = arith.constant 8 : index
    %c0_50 = arith.constant 0 : index
    %156 = vector.load %arg24[%c8_49, %c0_50] : memref<24x128xf32, #tpu.memory_space<vmem>>, vector<2x128xf32>
    tpu.vector_store %arg24[%c8_49, %c0_50], %155 {strides = array<i32>} : memref<24x128xf32, #tpu.memory_space<vmem>>, vector<2x128xf32>,
    %c10 = arith.constant 10 : index
    %c0_51 = arith.constant 0 : index
    %157 = vector.load %arg23[%c10, %c0_51] : memref<24x512xf32, #tpu.memory_space<vmem>>, vector<2x512xf32>
    %cst_52 = arith.constant dense<0.000000e+00> : vector<2x512xf32>
    %158 = tpu.matmul %155, %7, %cst_52 {dimension_numbers = #tpu.dot_dimension_numbers<[1], [0], [0], [1], [0, 0, 1, 1], [], []>} : vector<2x128xf32>, vector<128x512xf32>, vector<2x512xf32> -> vector<2x512xf32>
    %159 = arith.addf %157, %158 : vector<2x512xf32>
    %160 = vector.extract_strided_slice %159 {offsets = [0, 0], sizes = [2, 128], strides = [1, 1]} : vector<2x512xf32> to vector<2x128xf32>
    %161 = arith.negf %160 : vector<2x128xf32>
    %162 = math.exp %161 : vector<2x128xf32>
    %cst_53 = arith.constant 1.000000e+00 : f32
    %163 = vector.broadcast %cst_53 : f32 to vector<2x128xf32>
    %164 = arith.addf %163, %162 : vector<2x128xf32>
    %165 = arith.divf %163, %164 : vector<2x128xf32>
    %166 = vector.extract_strided_slice %159 {offsets = [0, 128], sizes = [2, 128], strides = [1, 1]} : vector<2x512xf32> to vector<2x128xf32>
    %167 = arith.negf %166 : vector<2x128xf32>
    %168 = math.exp %167 : vector<2x128xf32>
    %cst_54 = arith.constant 1.000000e+00 : f32
    %169 = vector.broadcast %cst_54 : f32 to vector<2x128xf32>
    %170 = arith.addf %169, %168 : vector<2x128xf32>
    %171 = arith.divf %169, %170 : vector<2x128xf32>
    %172 = vector.extract_strided_slice %159 {offsets = [0, 256], sizes = [2, 128], strides = [1, 1]} : vector<2x512xf32> to vector<2x128xf32>
    %173 = math.tanh %172 : vector<2x128xf32>
    %174 = vector.extract_strided_slice %159 {offsets = [0, 384], sizes = [2, 128], strides = [1, 1]} : vector<2x512xf32> to vector<2x128xf32>
    %175 = arith.negf %174 : vector<2x128xf32>
    %176 = math.exp %175 : vector<2x128xf32>
    %cst_55 = arith.constant 1.000000e+00 : f32
    %177 = vector.broadcast %cst_55 : f32 to vector<2x128xf32>
    %178 = arith.addf %177, %176 : vector<2x128xf32>
    %179 = arith.divf %177, %178 : vector<2x128xf32>
    %180 = arith.mulf %171, %153 : vector<2x128xf32>
    %181 = arith.mulf %165, %173 : vector<2x128xf32>
    %182 = arith.addf %180, %181 : vector<2x128xf32>
    %183 = math.tanh %182 : vector<2x128xf32>
    %184 = arith.mulf %179, %183 : vector<2x128xf32>
    %c10_56 = arith.constant 10 : index
    %c0_57 = arith.constant 0 : index
    %185 = vector.load %arg24[%c10_56, %c0_57] : memref<24x128xf32, #tpu.memory_space<vmem>>, vector<2x128xf32>
    tpu.vector_store %arg24[%c10_56, %c0_57], %184 {strides = array<i32>} : memref<24x128xf32, #tpu.memory_space<vmem>>, vector<2x128xf32>,
    %c12 = arith.constant 12 : index
    %c0_58 = arith.constant 0 : index
    %186 = vector.load %arg23[%c12, %c0_58] : memref<24x512xf32, #tpu.memory_space<vmem>>, vector<2x512xf32>
    %cst_59 = arith.constant dense<0.000000e+00> : vector<2x512xf32>
    %187 = tpu.matmul %184, %7, %cst_59 {dimension_numbers = #tpu.dot_dimension_numbers<[1], [0], [0], [1], [0, 0, 1, 1], [], []>} : vector<2x128xf32>, vector<128x512xf32>, vector<2x512xf32> -> vector<2x512xf32>
    %188 = arith.addf %186, %187 : vector<2x512xf32>
    %189 = vector.extract_strided_slice %188 {offsets = [0, 0], sizes = [2, 128], strides = [1, 1]} : vector<2x512xf32> to vector<2x128xf32>
    %190 = arith.negf %189 : vector<2x128xf32>
    %191 = math.exp %190 : vector<2x128xf32>
    %cst_60 = arith.constant 1.000000e+00 : f32
    %192 = vector.broadcast %cst_60 : f32 to vector<2x128xf32>
    %193 = arith.addf %192, %191 : vector<2x128xf32>
    %194 = arith.divf %192, %193 : vector<2x128xf32>
    %195 = vector.extract_strided_slice %188 {offsets = [0, 128], sizes = [2, 128], strides = [1, 1]} : vector<2x512xf32> to vector<2x128xf32>
    %196 = arith.negf %195 : vector<2x128xf32>
    %197 = math.exp %196 : vector<2x128xf32>
    %cst_61 = arith.constant 1.000000e+00 : f32
    %198 = vector.broadcast %cst_61 : f32 to vector<2x128xf32>
    %199 = arith.addf %198, %197 : vector<2x128xf32>
    %200 = arith.divf %198, %199 : vector<2x128xf32>
    %201 = vector.extract_strided_slice %188 {offsets = [0, 256], sizes = [2, 128], strides = [1, 1]} : vector<2x512xf32> to vector<2x128xf32>
    %202 = math.tanh %201 : vector<2x128xf32>
    %203 = vector.extract_strided_slice %188 {offsets = [0, 384], sizes = [2, 128], strides = [1, 1]} : vector<2x512xf32> to vector<2x128xf32>
    %204 = arith.negf %203 : vector<2x128xf32>
    %205 = math.exp %204 : vector<2x128xf32>
    %cst_62 = arith.constant 1.000000e+00 : f32
    %206 = vector.broadcast %cst_62 : f32 to vector<2x128xf32>
    %207 = arith.addf %206, %205 : vector<2x128xf32>
    %208 = arith.divf %206, %207 : vector<2x128xf32>
    %209 = arith.mulf %200, %182 : vector<2x128xf32>
    %210 = arith.mulf %194, %202 : vector<2x128xf32>
    %211 = arith.addf %209, %210 : vector<2x128xf32>
    %212 = math.tanh %211 : vector<2x128xf32>
    %213 = arith.mulf %208, %212 : vector<2x128xf32>
    %c12_63 = arith.constant 12 : index
    %c0_64 = arith.constant 0 : index
    %214 = vector.load %arg24[%c12_63, %c0_64] : memref<24x128xf32, #tpu.memory_space<vmem>>, vector<2x128xf32>
    tpu.vector_store %arg24[%c12_63, %c0_64], %213 {strides = array<i32>} : memref<24x128xf32, #tpu.memory_space<vmem>>, vector<2x128xf32>,
    %c14 = arith.constant 14 : index
    %c0_65 = arith.constant 0 : index
    %215 = vector.load %arg23[%c14, %c0_65] : memref<24x512xf32, #tpu.memory_space<vmem>>, vector<2x512xf32>
    %cst_66 = arith.constant dense<0.000000e+00> : vector<2x512xf32>
    %216 = tpu.matmul %213, %7, %cst_66 {dimension_numbers = #tpu.dot_dimension_numbers<[1], [0], [0], [1], [0, 0, 1, 1], [], []>} : vector<2x128xf32>, vector<128x512xf32>, vector<2x512xf32> -> vector<2x512xf32>
    %217 = arith.addf %215, %216 : vector<2x512xf32>
    %218 = vector.extract_strided_slice %217 {offsets = [0, 0], sizes = [2, 128], strides = [1, 1]} : vector<2x512xf32> to vector<2x128xf32>
    %219 = arith.negf %218 : vector<2x128xf32>
    %220 = math.exp %219 : vector<2x128xf32>
    %cst_67 = arith.constant 1.000000e+00 : f32
    %221 = vector.broadcast %cst_67 : f32 to vector<2x128xf32>
    %222 = arith.addf %221, %220 : vector<2x128xf32>
    %223 = arith.divf %221, %222 : vector<2x128xf32>
    %224 = vector.extract_strided_slice %217 {offsets = [0, 128], sizes = [2, 128], strides = [1, 1]} : vector<2x512xf32> to vector<2x128xf32>
    %225 = arith.negf %224 : vector<2x128xf32>
    %226 = math.exp %225 : vector<2x128xf32>
    %cst_68 = arith.constant 1.000000e+00 : f32
    %227 = vector.broadcast %cst_68 : f32 to vector<2x128xf32>
    %228 = arith.addf %227, %226 : vector<2x128xf32>
    %229 = arith.divf %227, %228 : vector<2x128xf32>
    %230 = vector.extract_strided_slice %217 {offsets = [0, 256], sizes = [2, 128], strides = [1, 1]} : vector<2x512xf32> to vector<2x128xf32>
    %231 = math.tanh %230 : vector<2x128xf32>
    %232 = vector.extract_strided_slice %217 {offsets = [0, 384], sizes = [2, 128], strides = [1, 1]} : vector<2x512xf32> to vector<2x128xf32>
    %233 = arith.negf %232 : vector<2x128xf32>
    %234 = math.exp %233 : vector<2x128xf32>
    %cst_69 = arith.constant 1.000000e+00 : f32
    %235 = vector.broadcast %cst_69 : f32 to vector<2x128xf32>
    %236 = arith.addf %235, %234 : vector<2x128xf32>
    %237 = arith.divf %235, %236 : vector<2x128xf32>
    %238 = arith.mulf %229, %211 : vector<2x128xf32>
    %239 = arith.mulf %223, %231 : vector<2x128xf32>
    %240 = arith.addf %238, %239 : vector<2x128xf32>
    %241 = math.tanh %240 : vector<2x128xf32>
    %242 = arith.mulf %237, %241 : vector<2x128xf32>
    %c14_70 = arith.constant 14 : index
    %c0_71 = arith.constant 0 : index
    %243 = vector.load %arg24[%c14_70, %c0_71] : memref<24x128xf32, #tpu.memory_space<vmem>>, vector<2x128xf32>
    tpu.vector_store %arg24[%c14_70, %c0_71], %242 {strides = array<i32>} : memref<24x128xf32, #tpu.memory_space<vmem>>, vector<2x128xf32>,
    %c16 = arith.constant 16 : index
    %c0_72 = arith.constant 0 : index
    %244 = vector.load %arg23[%c16, %c0_72] : memref<24x512xf32, #tpu.memory_space<vmem>>, vector<2x512xf32>
    %cst_73 = arith.constant dense<0.000000e+00> : vector<2x512xf32>
    %245 = tpu.matmul %242, %7, %cst_73 {dimension_numbers = #tpu.dot_dimension_numbers<[1], [0], [0], [1], [0, 0, 1, 1], [], []>} : vector<2x128xf32>, vector<128x512xf32>, vector<2x512xf32> -> vector<2x512xf32>
    %246 = arith.addf %244, %245 : vector<2x512xf32>
    %247 = vector.extract_strided_slice %246 {offsets = [0, 0], sizes = [2, 128], strides = [1, 1]} : vector<2x512xf32> to vector<2x128xf32>
    %248 = arith.negf %247 : vector<2x128xf32>
    %249 = math.exp %248 : vector<2x128xf32>
    %cst_74 = arith.constant 1.000000e+00 : f32
    %250 = vector.broadcast %cst_74 : f32 to vector<2x128xf32>
    %251 = arith.addf %250, %249 : vector<2x128xf32>
    %252 = arith.divf %250, %251 : vector<2x128xf32>
    %253 = vector.extract_strided_slice %246 {offsets = [0, 128], sizes = [2, 128], strides = [1, 1]} : vector<2x512xf32> to vector<2x128xf32>
    %254 = arith.negf %253 : vector<2x128xf32>
    %255 = math.exp %254 : vector<2x128xf32>
    %cst_75 = arith.constant 1.000000e+00 : f32
    %256 = vector.broadcast %cst_75 : f32 to vector<2x128xf32>
    %257 = arith.addf %256, %255 : vector<2x128xf32>
    %258 = arith.divf %256, %257 : vector<2x128xf32>
    %259 = vector.extract_strided_slice %246 {offsets = [0, 256], sizes = [2, 128], strides = [1, 1]} : vector<2x512xf32> to vector<2x128xf32>
    %260 = math.tanh %259 : vector<2x128xf32>
    %261 = vector.extract_strided_slice %246 {offsets = [0, 384], sizes = [2, 128], strides = [1, 1]} : vector<2x512xf32> to vector<2x128xf32>
    %262 = arith.negf %261 : vector<2x128xf32>
    %263 = math.exp %262 : vector<2x128xf32>
    %cst_76 = arith.constant 1.000000e+00 : f32
    %264 = vector.broadcast %cst_76 : f32 to vector<2x128xf32>
    %265 = arith.addf %264, %263 : vector<2x128xf32>
    %266 = arith.divf %264, %265 : vector<2x128xf32>
    %267 = arith.mulf %258, %240 : vector<2x128xf32>
    %268 = arith.mulf %252, %260 : vector<2x128xf32>
    %269 = arith.addf %267, %268 : vector<2x128xf32>
    %270 = math.tanh %269 : vector<2x128xf32>
    %271 = arith.mulf %266, %270 : vector<2x128xf32>
    %c16_77 = arith.constant 16 : index
    %c0_78 = arith.constant 0 : index
    %272 = vector.load %arg24[%c16_77, %c0_78] : memref<24x128xf32, #tpu.memory_space<vmem>>, vector<2x128xf32>
    tpu.vector_store %arg24[%c16_77, %c0_78], %271 {strides = array<i32>} : memref<24x128xf32, #tpu.memory_space<vmem>>, vector<2x128xf32>,
    %c18 = arith.constant 18 : index
    %c0_79 = arith.constant 0 : index
    %273 = vector.load %arg23[%c18, %c0_79] : memref<24x512xf32, #tpu.memory_space<vmem>>, vector<2x512xf32>
    %cst_80 = arith.constant dense<0.000000e+00> : vector<2x512xf32>
    %274 = tpu.matmul %271, %7, %cst_80 {dimension_numbers = #tpu.dot_dimension_numbers<[1], [0], [0], [1], [0, 0, 1, 1], [], []>} : vector<2x128xf32>, vector<128x512xf32>, vector<2x512xf32> -> vector<2x512xf32>
    %275 = arith.addf %273, %274 : vector<2x512xf32>
    %276 = vector.extract_strided_slice %275 {offsets = [0, 0], sizes = [2, 128], strides = [1, 1]} : vector<2x512xf32> to vector<2x128xf32>
    %277 = arith.negf %276 : vector<2x128xf32>
    %278 = math.exp %277 : vector<2x128xf32>
    %cst_81 = arith.constant 1.000000e+00 : f32
    %279 = vector.broadcast %cst_81 : f32 to vector<2x128xf32>
    %280 = arith.addf %279, %278 : vector<2x128xf32>
    %281 = arith.divf %279, %280 : vector<2x128xf32>
    %282 = vector.extract_strided_slice %275 {offsets = [0, 128], sizes = [2, 128], strides = [1, 1]} : vector<2x512xf32> to vector<2x128xf32>
    %283 = arith.negf %282 : vector<2x128xf32>
    %284 = math.exp %283 : vector<2x128xf32>
    %cst_82 = arith.constant 1.000000e+00 : f32
    %285 = vector.broadcast %cst_82 : f32 to vector<2x128xf32>
    %286 = arith.addf %285, %284 : vector<2x128xf32>
    %287 = arith.divf %285, %286 : vector<2x128xf32>
    %288 = vector.extract_strided_slice %275 {offsets = [0, 256], sizes = [2, 128], strides = [1, 1]} : vector<2x512xf32> to vector<2x128xf32>
    %289 = math.tanh %288 : vector<2x128xf32>
    %290 = vector.extract_strided_slice %275 {offsets = [0, 384], sizes = [2, 128], strides = [1, 1]} : vector<2x512xf32> to vector<2x128xf32>
    %291 = arith.negf %290 : vector<2x128xf32>
    %292 = math.exp %291 : vector<2x128xf32>
    %cst_83 = arith.constant 1.000000e+00 : f32
    %293 = vector.broadcast %cst_83 : f32 to vector<2x128xf32>
    %294 = arith.addf %293, %292 : vector<2x128xf32>
    %295 = arith.divf %293, %294 : vector<2x128xf32>
    %296 = arith.mulf %287, %269 : vector<2x128xf32>
    %297 = arith.mulf %281, %289 : vector<2x128xf32>
    %298 = arith.addf %296, %297 : vector<2x128xf32>
    %299 = math.tanh %298 : vector<2x128xf32>
    %300 = arith.mulf %295, %299 : vector<2x128xf32>
    %c18_84 = arith.constant 18 : index
    %c0_85 = arith.constant 0 : index
    %301 = vector.load %arg24[%c18_84, %c0_85] : memref<24x128xf32, #tpu.memory_space<vmem>>, vector<2x128xf32>
    tpu.vector_store %arg24[%c18_84, %c0_85], %300 {strides = array<i32>} : memref<24x128xf32, #tpu.memory_space<vmem>>, vector<2x128xf32>,
    %c20 = arith.constant 20 : index
    %c0_86 = arith.constant 0 : index
    %302 = vector.load %arg23[%c20, %c0_86] : memref<24x512xf32, #tpu.memory_space<vmem>>, vector<2x512xf32>
    %cst_87 = arith.constant dense<0.000000e+00> : vector<2x512xf32>
    %303 = tpu.matmul %300, %7, %cst_87 {dimension_numbers = #tpu.dot_dimension_numbers<[1], [0], [0], [1], [0, 0, 1, 1], [], []>} : vector<2x128xf32>, vector<128x512xf32>, vector<2x512xf32> -> vector<2x512xf32>
    %304 = arith.addf %302, %303 : vector<2x512xf32>
    %305 = vector.extract_strided_slice %304 {offsets = [0, 0], sizes = [2, 128], strides = [1, 1]} : vector<2x512xf32> to vector<2x128xf32>
    %306 = arith.negf %305 : vector<2x128xf32>
    %307 = math.exp %306 : vector<2x128xf32>
    %cst_88 = arith.constant 1.000000e+00 : f32
    %308 = vector.broadcast %cst_88 : f32 to vector<2x128xf32>
    %309 = arith.addf %308, %307 : vector<2x128xf32>
    %310 = arith.divf %308, %309 : vector<2x128xf32>
    %311 = vector.extract_strided_slice %304 {offsets = [0, 128], sizes = [2, 128], strides = [1, 1]} : vector<2x512xf32> to vector<2x128xf32>
    %312 = arith.negf %311 : vector<2x128xf32>
    %313 = math.exp %312 : vector<2x128xf32>
    %cst_89 = arith.constant 1.000000e+00 : f32
    %314 = vector.broadcast %cst_89 : f32 to vector<2x128xf32>
    %315 = arith.addf %314, %313 : vector<2x128xf32>
    %316 = arith.divf %314, %315 : vector<2x128xf32>
    %317 = vector.extract_strided_slice %304 {offsets = [0, 256], sizes = [2, 128], strides = [1, 1]} : vector<2x512xf32> to vector<2x128xf32>
    %318 = math.tanh %317 : vector<2x128xf32>
    %319 = vector.extract_strided_slice %304 {offsets = [0, 384], sizes = [2, 128], strides = [1, 1]} : vector<2x512xf32> to vector<2x128xf32>
    %320 = arith.negf %319 : vector<2x128xf32>
    %321 = math.exp %320 : vector<2x128xf32>
    %cst_90 = arith.constant 1.000000e+00 : f32
    %322 = vector.broadcast %cst_90 : f32 to vector<2x128xf32>
    %323 = arith.addf %322, %321 : vector<2x128xf32>
    %324 = arith.divf %322, %323 : vector<2x128xf32>
    %325 = arith.mulf %316, %298 : vector<2x128xf32>
    %326 = arith.mulf %310, %318 : vector<2x128xf32>
    %327 = arith.addf %325, %326 : vector<2x128xf32>
    %328 = math.tanh %327 : vector<2x128xf32>
    %329 = arith.mulf %324, %328 : vector<2x128xf32>
    %c20_91 = arith.constant 20 : index
    %c0_92 = arith.constant 0 : index
    %330 = vector.load %arg24[%c20_91, %c0_92] : memref<24x128xf32, #tpu.memory_space<vmem>>, vector<2x128xf32>
    tpu.vector_store %arg24[%c20_91, %c0_92], %329 {strides = array<i32>} : memref<24x128xf32, #tpu.memory_space<vmem>>, vector<2x128xf32>,
    %c22 = arith.constant 22 : index
    %c0_93 = arith.constant 0 : index
    %331 = vector.load %arg23[%c22, %c0_93] : memref<24x512xf32, #tpu.memory_space<vmem>>, vector<2x512xf32>
    %cst_94 = arith.constant dense<0.000000e+00> : vector<2x512xf32>
    %332 = tpu.matmul %329, %7, %cst_94 {dimension_numbers = #tpu.dot_dimension_numbers<[1], [0], [0], [1], [0, 0, 1, 1], [], []>} : vector<2x128xf32>, vector<128x512xf32>, vector<2x512xf32> -> vector<2x512xf32>
    %333 = arith.addf %331, %332 : vector<2x512xf32>
    %334 = vector.extract_strided_slice %333 {offsets = [0, 0], sizes = [2, 128], strides = [1, 1]} : vector<2x512xf32> to vector<2x128xf32>
    %335 = arith.negf %334 : vector<2x128xf32>
    %336 = math.exp %335 : vector<2x128xf32>
    %cst_95 = arith.constant 1.000000e+00 : f32
    %337 = vector.broadcast %cst_95 : f32 to vector<2x128xf32>
    %338 = arith.addf %337, %336 : vector<2x128xf32>
    %339 = arith.divf %337, %338 : vector<2x128xf32>
    %340 = vector.extract_strided_slice %333 {offsets = [0, 128], sizes = [2, 128], strides = [1, 1]} : vector<2x512xf32> to vector<2x128xf32>
    %341 = arith.negf %340 : vector<2x128xf32>
    %342 = math.exp %341 : vector<2x128xf32>
    %cst_96 = arith.constant 1.000000e+00 : f32
    %343 = vector.broadcast %cst_96 : f32 to vector<2x128xf32>
    %344 = arith.addf %343, %342 : vector<2x128xf32>
    %345 = arith.divf %343, %344 : vector<2x128xf32>
    %346 = vector.extract_strided_slice %333 {offsets = [0, 256], sizes = [2, 128], strides = [1, 1]} : vector<2x512xf32> to vector<2x128xf32>
    %347 = math.tanh %346 : vector<2x128xf32>
    %348 = vector.extract_strided_slice %333 {offsets = [0, 384], sizes = [2, 128], strides = [1, 1]} : vector<2x512xf32> to vector<2x128xf32>
    %349 = arith.negf %348 : vector<2x128xf32>
    %350 = math.exp %349 : vector<2x128xf32>
    %cst_97 = arith.constant 1.000000e+00 : f32
    %351 = vector.broadcast %cst_97 : f32 to vector<2x128xf32>
    %352 = arith.addf %351, %350 : vector<2x128xf32>
    %353 = arith.divf %351, %352 : vector<2x128xf32>
    %354 = arith.mulf %345, %327 : vector<2x128xf32>
    %355 = arith.mulf %339, %347 : vector<2x128xf32>
    %356 = arith.addf %354, %355 : vector<2x128xf32>
    %357 = math.tanh %356 : vector<2x128xf32>
    %358 = arith.mulf %353, %357 : vector<2x128xf32>
    %c22_98 = arith.constant 22 : index
    %c0_99 = arith.constant 0 : index
    %359 = vector.load %arg24[%c22_98, %c0_99] : memref<24x128xf32, #tpu.memory_space<vmem>>, vector<2x128xf32>
    tpu.vector_store %arg24[%c22_98, %c0_99], %358 {strides = array<i32>} : memref<24x128xf32, #tpu.memory_space<vmem>>, vector<2x128xf32>,
    %c0_100 = arith.constant 0 : index
    %c0_101 = arith.constant 0 : index
    %c0_102 = arith.constant 0 : index
    %360 = vector.load %arg21[%c0_100, %c0_101, %c0_102] : memref<3x2x128xf32, #tpu.memory_space<vmem>>, vector<1x2x128xf32>
    %361 = vector.shape_cast %360 : vector<1x2x128xf32> to vector<2x128xf32>
    %362 = vector.shape_cast %358 : vector<2x128xf32> to vector<1x2x128xf32>
    tpu.vector_store %arg21[%c0_100, %c0_101, %c0_102], %362 {strides = array<i32>} : memref<3x2x128xf32, #tpu.memory_space<vmem>>, vector<1x2x128xf32>,
    %c0_103 = arith.constant 0 : index
    %c0_104 = arith.constant 0 : index
    %c0_105 = arith.constant 0 : index
    %363 = vector.load %arg22[%c0_103, %c0_104, %c0_105] : memref<3x2x128xf32, #tpu.memory_space<vmem>>, vector<1x2x128xf32>
    %364 = vector.shape_cast %363 : vector<1x2x128xf32> to vector<2x128xf32>
    %365 = vector.shape_cast %356 : vector<2x128xf32> to vector<1x2x128xf32>
    tpu.vector_store %arg22[%c0_103, %c0_104, %c0_105], %365 {strides = array<i32>} : memref<3x2x128xf32, #tpu.memory_space<vmem>>, vector<1x2x128xf32>,
    %c0_106 = arith.constant 0 : index
    %c0_107 = arith.constant 0 : index
    %366 = vector.load %arg24[%c0_106, %c0_107] : memref<24x128xf32, #tpu.memory_space<vmem>>, vector<24x128xf32>
    %c0_108 = arith.constant 0 : index
    %c0_109 = arith.constant 0 : index
    %367 = vector.load %arg4[%c0_108, %c0_109] : memref<128x512xf32, #tpu.memory_space<vmem>>, vector<128x512xf32>
    %cst_110 = arith.constant dense<0.000000e+00> : vector<24x512xf32>
    %368 = tpu.matmul %366, %367, %cst_110 {dimension_numbers = #tpu.dot_dimension_numbers<[1], [0], [0], [1], [0, 0, 1, 1], [], []>} : vector<24x128xf32>, vector<128x512xf32>, vector<24x512xf32> -> vector<24x512xf32>
    %c0_111 = arith.constant 0 : index
    %c0_112 = arith.constant 0 : index
    %369 = vector.load %arg6[%c0_111, %c0_112] : memref<1x512xf32, #tpu.memory_space<vmem>>, vector<1x512xf32>
    %370 = vector.broadcast %369 : vector<1x512xf32> to vector<24x512xf32>
    %371 = arith.addf %368, %370 : vector<24x512xf32>
    %c0_113 = arith.constant 0 : index
    %c0_114 = arith.constant 0 : index
    %372 = vector.load %arg23[%c0_113, %c0_114] : memref<24x512xf32, #tpu.memory_space<vmem>>, vector<24x512xf32>
    tpu.vector_store %arg23[%c0_113, %c0_114], %371 {strides = array<i32>} : memref<24x512xf32, #tpu.memory_space<vmem>>, vector<24x512xf32>,
    %c0_115 = arith.constant 0 : index
    %c0_116 = arith.constant 0 : index
    %373 = vector.load %arg5[%c0_115, %c0_116] : memref<128x512xf32, #tpu.memory_space<vmem>>, vector<128x512xf32>
    %c1 = arith.constant 1 : index
    %c0_117 = arith.constant 0 : index
    %c0_118 = arith.constant 0 : index
    %374 = vector.load %arg10[%c1, %c0_117, %c0_118] : memref<3x2x128xf32, #tpu.memory_space<vmem>>, vector<1x2x128xf32>
    %375 = vector.shape_cast %374 : vector<1x2x128xf32> to vector<2x128xf32>
    %c1_119 = arith.constant 1 : index
    %c0_120 = arith.constant 0 : index
    %c0_121 = arith.constant 0 : index
    %376 = vector.load %arg11[%c1_119, %c0_120, %c0_121] : memref<3x2x128xf32, #tpu.memory_space<vmem>>, vector<1x2x128xf32>
    %377 = vector.shape_cast %376 : vector<1x2x128xf32> to vector<2x128xf32>
    %c0_122 = arith.constant 0 : index
    %c0_123 = arith.constant 0 : index
    %378 = vector.load %arg23[%c0_122, %c0_123] : memref<24x512xf32, #tpu.memory_space<vmem>>, vector<2x512xf32>
    %cst_124 = arith.constant dense<0.000000e+00> : vector<2x512xf32>
    %379 = tpu.matmul %375, %373, %cst_124 {dimension_numbers = #tpu.dot_dimension_numbers<[1], [0], [0], [1], [0, 0, 1, 1], [], []>} : vector<2x128xf32>, vector<128x512xf32>, vector<2x512xf32> -> vector<2x512xf32>
    %380 = arith.addf %378, %379 : vector<2x512xf32>
    %381 = vector.extract_strided_slice %380 {offsets = [0, 0], sizes = [2, 128], strides = [1, 1]} : vector<2x512xf32> to vector<2x128xf32>
    %382 = arith.negf %381 : vector<2x128xf32>
    %383 = math.exp %382 : vector<2x128xf32>
    %cst_125 = arith.constant 1.000000e+00 : f32
    %384 = vector.broadcast %cst_125 : f32 to vector<2x128xf32>
    %385 = arith.addf %384, %383 : vector<2x128xf32>
    %386 = arith.divf %384, %385 : vector<2x128xf32>
    %387 = vector.extract_strided_slice %380 {offsets = [0, 128], sizes = [2, 128], strides = [1, 1]} : vector<2x512xf32> to vector<2x128xf32>
    %388 = arith.negf %387 : vector<2x128xf32>
    %389 = math.exp %388 : vector<2x128xf32>
    %cst_126 = arith.constant 1.000000e+00 : f32
    %390 = vector.broadcast %cst_126 : f32 to vector<2x128xf32>
    %391 = arith.addf %390, %389 : vector<2x128xf32>
    %392 = arith.divf %390, %391 : vector<2x128xf32>
    %393 = vector.extract_strided_slice %380 {offsets = [0, 256], sizes = [2, 128], strides = [1, 1]} : vector<2x512xf32> to vector<2x128xf32>
    %394 = math.tanh %393 : vector<2x128xf32>
    %395 = vector.extract_strided_slice %380 {offsets = [0, 384], sizes = [2, 128], strides = [1, 1]} : vector<2x512xf32> to vector<2x128xf32>
    %396 = arith.negf %395 : vector<2x128xf32>
    %397 = math.exp %396 : vector<2x128xf32>
    %cst_127 = arith.constant 1.000000e+00 : f32
    %398 = vector.broadcast %cst_127 : f32 to vector<2x128xf32>
    %399 = arith.addf %398, %397 : vector<2x128xf32>
    %400 = arith.divf %398, %399 : vector<2x128xf32>
    %401 = arith.mulf %392, %377 : vector<2x128xf32>
    %402 = arith.mulf %386, %394 : vector<2x128xf32>
    %403 = arith.addf %401, %402 : vector<2x128xf32>
    %404 = math.tanh %403 : vector<2x128xf32>
    %405 = arith.mulf %400, %404 : vector<2x128xf32>
    %c0_128 = arith.constant 0 : index
    %c0_129 = arith.constant 0 : index
    %406 = vector.load %arg24[%c0_128, %c0_129] : memref<24x128xf32, #tpu.memory_space<vmem>>, vector<2x128xf32>
    tpu.vector_store %arg24[%c0_128, %c0_129], %405 {strides = array<i32>} : memref<24x128xf32, #tpu.memory_space<vmem>>, vector<2x128xf32>,
    %c2_130 = arith.constant 2 : index
    %c0_131 = arith.constant 0 : index
    %407 = vector.load %arg23[%c2_130, %c0_131] : memref<24x512xf32, #tpu.memory_space<vmem>>, vector<2x512xf32>
    %cst_132 = arith.constant dense<0.000000e+00> : vector<2x512xf32>
    %408 = tpu.matmul %405, %373, %cst_132 {dimension_numbers = #tpu.dot_dimension_numbers<[1], [0], [0], [1], [0, 0, 1, 1], [], []>} : vector<2x128xf32>, vector<128x512xf32>, vector<2x512xf32> -> vector<2x512xf32>
    %409 = arith.addf %407, %408 : vector<2x512xf32>
    %410 = vector.extract_strided_slice %409 {offsets = [0, 0], sizes = [2, 128], strides = [1, 1]} : vector<2x512xf32> to vector<2x128xf32>
    %411 = arith.negf %410 : vector<2x128xf32>
    %412 = math.exp %411 : vector<2x128xf32>
    %cst_133 = arith.constant 1.000000e+00 : f32
    %413 = vector.broadcast %cst_133 : f32 to vector<2x128xf32>
    %414 = arith.addf %413, %412 : vector<2x128xf32>
    %415 = arith.divf %413, %414 : vector<2x128xf32>
    %416 = vector.extract_strided_slice %409 {offsets = [0, 128], sizes = [2, 128], strides = [1, 1]} : vector<2x512xf32> to vector<2x128xf32>
    %417 = arith.negf %416 : vector<2x128xf32>
    %418 = math.exp %417 : vector<2x128xf32>
    %cst_134 = arith.constant 1.000000e+00 : f32
    %419 = vector.broadcast %cst_134 : f32 to vector<2x128xf32>
    %420 = arith.addf %419, %418 : vector<2x128xf32>
    %421 = arith.divf %419, %420 : vector<2x128xf32>
    %422 = vector.extract_strided_slice %409 {offsets = [0, 256], sizes = [2, 128], strides = [1, 1]} : vector<2x512xf32> to vector<2x128xf32>
    %423 = math.tanh %422 : vector<2x128xf32>
    %424 = vector.extract_strided_slice %409 {offsets = [0, 384], sizes = [2, 128], strides = [1, 1]} : vector<2x512xf32> to vector<2x128xf32>
    %425 = arith.negf %424 : vector<2x128xf32>
    %426 = math.exp %425 : vector<2x128xf32>
    %cst_135 = arith.constant 1.000000e+00 : f32
    %427 = vector.broadcast %cst_135 : f32 to vector<2x128xf32>
    %428 = arith.addf %427, %426 : vector<2x128xf32>
    %429 = arith.divf %427, %428 : vector<2x128xf32>
    %430 = arith.mulf %421, %403 : vector<2x128xf32>
    %431 = arith.mulf %415, %423 : vector<2x128xf32>
    %432 = arith.addf %430, %431 : vector<2x128xf32>
    %433 = math.tanh %432 : vector<2x128xf32>
    %434 = arith.mulf %429, %433 : vector<2x128xf32>
    %c2_136 = arith.constant 2 : index
    %c0_137 = arith.constant 0 : index
    %435 = vector.load %arg24[%c2_136, %c0_137] : memref<24x128xf32, #tpu.memory_space<vmem>>, vector<2x128xf32>
    tpu.vector_store %arg24[%c2_136, %c0_137], %434 {strides = array<i32>} : memref<24x128xf32, #tpu.memory_space<vmem>>, vector<2x128xf32>,
    %c4_138 = arith.constant 4 : index
    %c0_139 = arith.constant 0 : index
    %436 = vector.load %arg23[%c4_138, %c0_139] : memref<24x512xf32, #tpu.memory_space<vmem>>, vector<2x512xf32>
    %cst_140 = arith.constant dense<0.000000e+00> : vector<2x512xf32>
    %437 = tpu.matmul %434, %373, %cst_140 {dimension_numbers = #tpu.dot_dimension_numbers<[1], [0], [0], [1], [0, 0, 1, 1], [], []>} : vector<2x128xf32>, vector<128x512xf32>, vector<2x512xf32> -> vector<2x512xf32>
    %438 = arith.addf %436, %437 : vector<2x512xf32>
    %439 = vector.extract_strided_slice %438 {offsets = [0, 0], sizes = [2, 128], strides = [1, 1]} : vector<2x512xf32> to vector<2x128xf32>
    %440 = arith.negf %439 : vector<2x128xf32>
    %441 = math.exp %440 : vector<2x128xf32>
    %cst_141 = arith.constant 1.000000e+00 : f32
    %442 = vector.broadcast %cst_141 : f32 to vector<2x128xf32>
    %443 = arith.addf %442, %441 : vector<2x128xf32>
    %444 = arith.divf %442, %443 : vector<2x128xf32>
    %445 = vector.extract_strided_slice %438 {offsets = [0, 128], sizes = [2, 128], strides = [1, 1]} : vector<2x512xf32> to vector<2x128xf32>
    %446 = arith.negf %445 : vector<2x128xf32>
    %447 = math.exp %446 : vector<2x128xf32>
    %cst_142 = arith.constant 1.000000e+00 : f32
    %448 = vector.broadcast %cst_142 : f32 to vector<2x128xf32>
    %449 = arith.addf %448, %447 : vector<2x128xf32>
    %450 = arith.divf %448, %449 : vector<2x128xf32>
    %451 = vector.extract_strided_slice %438 {offsets = [0, 256], sizes = [2, 128], strides = [1, 1]} : vector<2x512xf32> to vector<2x128xf32>
    %452 = math.tanh %451 : vector<2x128xf32>
    %453 = vector.extract_strided_slice %438 {offsets = [0, 384], sizes = [2, 128], strides = [1, 1]} : vector<2x512xf32> to vector<2x128xf32>
    %454 = arith.negf %453 : vector<2x128xf32>
    %455 = math.exp %454 : vector<2x128xf32>
    %cst_143 = arith.constant 1.000000e+00 : f32
    %456 = vector.broadcast %cst_143 : f32 to vector<2x128xf32>
    %457 = arith.addf %456, %455 : vector<2x128xf32>
    %458 = arith.divf %456, %457 : vector<2x128xf32>
    %459 = arith.mulf %450, %432 : vector<2x128xf32>
    %460 = arith.mulf %444, %452 : vector<2x128xf32>
    %461 = arith.addf %459, %460 : vector<2x128xf32>
    %462 = math.tanh %461 : vector<2x128xf32>
    %463 = arith.mulf %458, %462 : vector<2x128xf32>
    %c4_144 = arith.constant 4 : index
    %c0_145 = arith.constant 0 : index
    %464 = vector.load %arg24[%c4_144, %c0_145] : memref<24x128xf32, #tpu.memory_space<vmem>>, vector<2x128xf32>
    tpu.vector_store %arg24[%c4_144, %c0_145], %463 {strides = array<i32>} : memref<24x128xf32, #tpu.memory_space<vmem>>, vector<2x128xf32>,
    %c6_146 = arith.constant 6 : index
    %c0_147 = arith.constant 0 : index
    %465 = vector.load %arg23[%c6_146, %c0_147] : memref<24x512xf32, #tpu.memory_space<vmem>>, vector<2x512xf32>
    %cst_148 = arith.constant dense<0.000000e+00> : vector<2x512xf32>
    %466 = tpu.matmul %463, %373, %cst_148 {dimension_numbers = #tpu.dot_dimension_numbers<[1], [0], [0], [1], [0, 0, 1, 1], [], []>} : vector<2x128xf32>, vector<128x512xf32>, vector<2x512xf32> -> vector<2x512xf32>
    %467 = arith.addf %465, %466 : vector<2x512xf32>
    %468 = vector.extract_strided_slice %467 {offsets = [0, 0], sizes = [2, 128], strides = [1, 1]} : vector<2x512xf32> to vector<2x128xf32>
    %469 = arith.negf %468 : vector<2x128xf32>
    %470 = math.exp %469 : vector<2x128xf32>
    %cst_149 = arith.constant 1.000000e+00 : f32
    %471 = vector.broadcast %cst_149 : f32 to vector<2x128xf32>
    %472 = arith.addf %471, %470 : vector<2x128xf32>
    %473 = arith.divf %471, %472 : vector<2x128xf32>
    %474 = vector.extract_strided_slice %467 {offsets = [0, 128], sizes = [2, 128], strides = [1, 1]} : vector<2x512xf32> to vector<2x128xf32>
    %475 = arith.negf %474 : vector<2x128xf32>
    %476 = math.exp %475 : vector<2x128xf32>
    %cst_150 = arith.constant 1.000000e+00 : f32
    %477 = vector.broadcast %cst_150 : f32 to vector<2x128xf32>
    %478 = arith.addf %477, %476 : vector<2x128xf32>
    %479 = arith.divf %477, %478 : vector<2x128xf32>
    %480 = vector.extract_strided_slice %467 {offsets = [0, 256], sizes = [2, 128], strides = [1, 1]} : vector<2x512xf32> to vector<2x128xf32>
    %481 = math.tanh %480 : vector<2x128xf32>
    %482 = vector.extract_strided_slice %467 {offsets = [0, 384], sizes = [2, 128], strides = [1, 1]} : vector<2x512xf32> to vector<2x128xf32>
    %483 = arith.negf %482 : vector<2x128xf32>
    %484 = math.exp %483 : vector<2x128xf32>
    %cst_151 = arith.constant 1.000000e+00 : f32
    %485 = vector.broadcast %cst_151 : f32 to vector<2x128xf32>
    %486 = arith.addf %485, %484 : vector<2x128xf32>
    %487 = arith.divf %485, %486 : vector<2x128xf32>
    %488 = arith.mulf %479, %461 : vector<2x128xf32>
    %489 = arith.mulf %473, %481 : vector<2x128xf32>
    %490 = arith.addf %488, %489 : vector<2x128xf32>
    %491 = math.tanh %490 : vector<2x128xf32>
    %492 = arith.mulf %487, %491 : vector<2x128xf32>
    %c6_152 = arith.constant 6 : index
    %c0_153 = arith.constant 0 : index
    %493 = vector.load %arg24[%c6_152, %c0_153] : memref<24x128xf32, #tpu.memory_space<vmem>>, vector<2x128xf32>
    tpu.vector_store %arg24[%c6_152, %c0_153], %492 {strides = array<i32>} : memref<24x128xf32, #tpu.memory_space<vmem>>, vector<2x128xf32>,
    %c8_154 = arith.constant 8 : index
    %c0_155 = arith.constant 0 : index
    %494 = vector.load %arg23[%c8_154, %c0_155] : memref<24x512xf32, #tpu.memory_space<vmem>>, vector<2x512xf32>
    %cst_156 = arith.constant dense<0.000000e+00> : vector<2x512xf32>
    %495 = tpu.matmul %492, %373, %cst_156 {dimension_numbers = #tpu.dot_dimension_numbers<[1], [0], [0], [1], [0, 0, 1, 1], [], []>} : vector<2x128xf32>, vector<128x512xf32>, vector<2x512xf32> -> vector<2x512xf32>
    %496 = arith.addf %494, %495 : vector<2x512xf32>
    %497 = vector.extract_strided_slice %496 {offsets = [0, 0], sizes = [2, 128], strides = [1, 1]} : vector<2x512xf32> to vector<2x128xf32>
    %498 = arith.negf %497 : vector<2x128xf32>
    %499 = math.exp %498 : vector<2x128xf32>
    %cst_157 = arith.constant 1.000000e+00 : f32
    %500 = vector.broadcast %cst_157 : f32 to vector<2x128xf32>
    %501 = arith.addf %500, %499 : vector<2x128xf32>
    %502 = arith.divf %500, %501 : vector<2x128xf32>
    %503 = vector.extract_strided_slice %496 {offsets = [0, 128], sizes = [2, 128], strides = [1, 1]} : vector<2x512xf32> to vector<2x128xf32>
    %504 = arith.negf %503 : vector<2x128xf32>
    %505 = math.exp %504 : vector<2x128xf32>
    %cst_158 = arith.constant 1.000000e+00 : f32
    %506 = vector.broadcast %cst_158 : f32 to vector<2x128xf32>
    %507 = arith.addf %506, %505 : vector<2x128xf32>
    %508 = arith.divf %506, %507 : vector<2x128xf32>
    %509 = vector.extract_strided_slice %496 {offsets = [0, 256], sizes = [2, 128], strides = [1, 1]} : vector<2x512xf32> to vector<2x128xf32>
    %510 = math.tanh %509 : vector<2x128xf32>
    %511 = vector.extract_strided_slice %496 {offsets = [0, 384], sizes = [2, 128], strides = [1, 1]} : vector<2x512xf32> to vector<2x128xf32>
    %512 = arith.negf %511 : vector<2x128xf32>
    %513 = math.exp %512 : vector<2x128xf32>
    %cst_159 = arith.constant 1.000000e+00 : f32
    %514 = vector.broadcast %cst_159 : f32 to vector<2x128xf32>
    %515 = arith.addf %514, %513 : vector<2x128xf32>
    %516 = arith.divf %514, %515 : vector<2x128xf32>
    %517 = arith.mulf %508, %490 : vector<2x128xf32>
    %518 = arith.mulf %502, %510 : vector<2x128xf32>
    %519 = arith.addf %517, %518 : vector<2x128xf32>
    %520 = math.tanh %519 : vector<2x128xf32>
    %521 = arith.mulf %516, %520 : vector<2x128xf32>
    %c8_160 = arith.constant 8 : index
    %c0_161 = arith.constant 0 : index
    %522 = vector.load %arg24[%c8_160, %c0_161] : memref<24x128xf32, #tpu.memory_space<vmem>>, vector<2x128xf32>
    tpu.vector_store %arg24[%c8_160, %c0_161], %521 {strides = array<i32>} : memref<24x128xf32, #tpu.memory_space<vmem>>, vector<2x128xf32>,
    %c10_162 = arith.constant 10 : index
    %c0_163 = arith.constant 0 : index
    %523 = vector.load %arg23[%c10_162, %c0_163] : memref<24x512xf32, #tpu.memory_space<vmem>>, vector<2x512xf32>
    %cst_164 = arith.constant dense<0.000000e+00> : vector<2x512xf32>
    %524 = tpu.matmul %521, %373, %cst_164 {dimension_numbers = #tpu.dot_dimension_numbers<[1], [0], [0], [1], [0, 0, 1, 1], [], []>} : vector<2x128xf32>, vector<128x512xf32>, vector<2x512xf32> -> vector<2x512xf32>
    %525 = arith.addf %523, %524 : vector<2x512xf32>
    %526 = vector.extract_strided_slice %525 {offsets = [0, 0], sizes = [2, 128], strides = [1, 1]} : vector<2x512xf32> to vector<2x128xf32>
    %527 = arith.negf %526 : vector<2x128xf32>
    %528 = math.exp %527 : vector<2x128xf32>
    %cst_165 = arith.constant 1.000000e+00 : f32
    %529 = vector.broadcast %cst_165 : f32 to vector<2x128xf32>
    %530 = arith.addf %529, %528 : vector<2x128xf32>
    %531 = arith.divf %529, %530 : vector<2x128xf32>
    %532 = vector.extract_strided_slice %525 {offsets = [0, 128], sizes = [2, 128], strides = [1, 1]} : vector<2x512xf32> to vector<2x128xf32>
    %533 = arith.negf %532 : vector<2x128xf32>
    %534 = math.exp %533 : vector<2x128xf32>
    %cst_166 = arith.constant 1.000000e+00 : f32
    %535 = vector.broadcast %cst_166 : f32 to vector<2x128xf32>
    %536 = arith.addf %535, %534 : vector<2x128xf32>
    %537 = arith.divf %535, %536 : vector<2x128xf32>
    %538 = vector.extract_strided_slice %525 {offsets = [0, 256], sizes = [2, 128], strides = [1, 1]} : vector<2x512xf32> to vector<2x128xf32>
    %539 = math.tanh %538 : vector<2x128xf32>
    %540 = vector.extract_strided_slice %525 {offsets = [0, 384], sizes = [2, 128], strides = [1, 1]} : vector<2x512xf32> to vector<2x128xf32>
    %541 = arith.negf %540 : vector<2x128xf32>
    %542 = math.exp %541 : vector<2x128xf32>
    %cst_167 = arith.constant 1.000000e+00 : f32
    %543 = vector.broadcast %cst_167 : f32 to vector<2x128xf32>
    %544 = arith.addf %543, %542 : vector<2x128xf32>
    %545 = arith.divf %543, %544 : vector<2x128xf32>
    %546 = arith.mulf %537, %519 : vector<2x128xf32>
    %547 = arith.mulf %531, %539 : vector<2x128xf32>
    %548 = arith.addf %546, %547 : vector<2x128xf32>
    %549 = math.tanh %548 : vector<2x128xf32>
    %550 = arith.mulf %545, %549 : vector<2x128xf32>
    %c10_168 = arith.constant 10 : index
    %c0_169 = arith.constant 0 : index
    %551 = vector.load %arg24[%c10_168, %c0_169] : memref<24x128xf32, #tpu.memory_space<vmem>>, vector<2x128xf32>
    tpu.vector_store %arg24[%c10_168, %c0_169], %550 {strides = array<i32>} : memref<24x128xf32, #tpu.memory_space<vmem>>, vector<2x128xf32>,
    %c12_170 = arith.constant 12 : index
    %c0_171 = arith.constant 0 : index
    %552 = vector.load %arg23[%c12_170, %c0_171] : memref<24x512xf32, #tpu.memory_space<vmem>>, vector<2x512xf32>
    %cst_172 = arith.constant dense<0.000000e+00> : vector<2x512xf32>
    %553 = tpu.matmul %550, %373, %cst_172 {dimension_numbers = #tpu.dot_dimension_numbers<[1], [0], [0], [1], [0, 0, 1, 1], [], []>} : vector<2x128xf32>, vector<128x512xf32>, vector<2x512xf32> -> vector<2x512xf32>
    %554 = arith.addf %552, %553 : vector<2x512xf32>
    %555 = vector.extract_strided_slice %554 {offsets = [0, 0], sizes = [2, 128], strides = [1, 1]} : vector<2x512xf32> to vector<2x128xf32>
    %556 = arith.negf %555 : vector<2x128xf32>
    %557 = math.exp %556 : vector<2x128xf32>
    %cst_173 = arith.constant 1.000000e+00 : f32
    %558 = vector.broadcast %cst_173 : f32 to vector<2x128xf32>
    %559 = arith.addf %558, %557 : vector<2x128xf32>
    %560 = arith.divf %558, %559 : vector<2x128xf32>
    %561 = vector.extract_strided_slice %554 {offsets = [0, 128], sizes = [2, 128], strides = [1, 1]} : vector<2x512xf32> to vector<2x128xf32>
    %562 = arith.negf %561 : vector<2x128xf32>
    %563 = math.exp %562 : vector<2x128xf32>
    %cst_174 = arith.constant 1.000000e+00 : f32
    %564 = vector.broadcast %cst_174 : f32 to vector<2x128xf32>
    %565 = arith.addf %564, %563 : vector<2x128xf32>
    %566 = arith.divf %564, %565 : vector<2x128xf32>
    %567 = vector.extract_strided_slice %554 {offsets = [0, 256], sizes = [2, 128], strides = [1, 1]} : vector<2x512xf32> to vector<2x128xf32>
    %568 = math.tanh %567 : vector<2x128xf32>
    %569 = vector.extract_strided_slice %554 {offsets = [0, 384], sizes = [2, 128], strides = [1, 1]} : vector<2x512xf32> to vector<2x128xf32>
    %570 = arith.negf %569 : vector<2x128xf32>
    %571 = math.exp %570 : vector<2x128xf32>
    %cst_175 = arith.constant 1.000000e+00 : f32
    %572 = vector.broadcast %cst_175 : f32 to vector<2x128xf32>
    %573 = arith.addf %572, %571 : vector<2x128xf32>
    %574 = arith.divf %572, %573 : vector<2x128xf32>
    %575 = arith.mulf %566, %548 : vector<2x128xf32>
    %576 = arith.mulf %560, %568 : vector<2x128xf32>
    %577 = arith.addf %575, %576 : vector<2x128xf32>
    %578 = math.tanh %577 : vector<2x128xf32>
    %579 = arith.mulf %574, %578 : vector<2x128xf32>
    %c12_176 = arith.constant 12 : index
    %c0_177 = arith.constant 0 : index
    %580 = vector.load %arg24[%c12_176, %c0_177] : memref<24x128xf32, #tpu.memory_space<vmem>>, vector<2x128xf32>
    tpu.vector_store %arg24[%c12_176, %c0_177], %579 {strides = array<i32>} : memref<24x128xf32, #tpu.memory_space<vmem>>, vector<2x128xf32>,
    %c14_178 = arith.constant 14 : index
    %c0_179 = arith.constant 0 : index
    %581 = vector.load %arg23[%c14_178, %c0_179] : memref<24x512xf32, #tpu.memory_space<vmem>>, vector<2x512xf32>
    %cst_180 = arith.constant dense<0.000000e+00> : vector<2x512xf32>
    %582 = tpu.matmul %579, %373, %cst_180 {dimension_numbers = #tpu.dot_dimension_numbers<[1], [0], [0], [1], [0, 0, 1, 1], [], []>} : vector<2x128xf32>, vector<128x512xf32>, vector<2x512xf32> -> vector<2x512xf32>
    %583 = arith.addf %581, %582 : vector<2x512xf32>
    %584 = vector.extract_strided_slice %583 {offsets = [0, 0], sizes = [2, 128], strides = [1, 1]} : vector<2x512xf32> to vector<2x128xf32>
    %585 = arith.negf %584 : vector<2x128xf32>
    %586 = math.exp %585 : vector<2x128xf32>
    %cst_181 = arith.constant 1.000000e+00 : f32
    %587 = vector.broadcast %cst_181 : f32 to vector<2x128xf32>
    %588 = arith.addf %587, %586 : vector<2x128xf32>
    %589 = arith.divf %587, %588 : vector<2x128xf32>
    %590 = vector.extract_strided_slice %583 {offsets = [0, 128], sizes = [2, 128], strides = [1, 1]} : vector<2x512xf32> to vector<2x128xf32>
    %591 = arith.negf %590 : vector<2x128xf32>
    %592 = math.exp %591 : vector<2x128xf32>
    %cst_182 = arith.constant 1.000000e+00 : f32
    %593 = vector.broadcast %cst_182 : f32 to vector<2x128xf32>
    %594 = arith.addf %593, %592 : vector<2x128xf32>
    %595 = arith.divf %593, %594 : vector<2x128xf32>
    %596 = vector.extract_strided_slice %583 {offsets = [0, 256], sizes = [2, 128], strides = [1, 1]} : vector<2x512xf32> to vector<2x128xf32>
    %597 = math.tanh %596 : vector<2x128xf32>
    %598 = vector.extract_strided_slice %583 {offsets = [0, 384], sizes = [2, 128], strides = [1, 1]} : vector<2x512xf32> to vector<2x128xf32>
    %599 = arith.negf %598 : vector<2x128xf32>
    %600 = math.exp %599 : vector<2x128xf32>
    %cst_183 = arith.constant 1.000000e+00 : f32
    %601 = vector.broadcast %cst_183 : f32 to vector<2x128xf32>
    %602 = arith.addf %601, %600 : vector<2x128xf32>
    %603 = arith.divf %601, %602 : vector<2x128xf32>
    %604 = arith.mulf %595, %577 : vector<2x128xf32>
    %605 = arith.mulf %589, %597 : vector<2x128xf32>
    %606 = arith.addf %604, %605 : vector<2x128xf32>
    %607 = math.tanh %606 : vector<2x128xf32>
    %608 = arith.mulf %603, %607 : vector<2x128xf32>
    %c14_184 = arith.constant 14 : index
    %c0_185 = arith.constant 0 : index
    %609 = vector.load %arg24[%c14_184, %c0_185] : memref<24x128xf32, #tpu.memory_space<vmem>>, vector<2x128xf32>
    tpu.vector_store %arg24[%c14_184, %c0_185], %608 {strides = array<i32>} : memref<24x128xf32, #tpu.memory_space<vmem>>, vector<2x128xf32>,
    %c16_186 = arith.constant 16 : index
    %c0_187 = arith.constant 0 : index
    %610 = vector.load %arg23[%c16_186, %c0_187] : memref<24x512xf32, #tpu.memory_space<vmem>>, vector<2x512xf32>
    %cst_188 = arith.constant dense<0.000000e+00> : vector<2x512xf32>
    %611 = tpu.matmul %608, %373, %cst_188 {dimension_numbers = #tpu.dot_dimension_numbers<[1], [0], [0], [1], [0, 0, 1, 1], [], []>} : vector<2x128xf32>, vector<128x512xf32>, vector<2x512xf32> -> vector<2x512xf32>
    %612 = arith.addf %610, %611 : vector<2x512xf32>
    %613 = vector.extract_strided_slice %612 {offsets = [0, 0], sizes = [2, 128], strides = [1, 1]} : vector<2x512xf32> to vector<2x128xf32>
    %614 = arith.negf %613 : vector<2x128xf32>
    %615 = math.exp %614 : vector<2x128xf32>
    %cst_189 = arith.constant 1.000000e+00 : f32
    %616 = vector.broadcast %cst_189 : f32 to vector<2x128xf32>
    %617 = arith.addf %616, %615 : vector<2x128xf32>
    %618 = arith.divf %616, %617 : vector<2x128xf32>
    %619 = vector.extract_strided_slice %612 {offsets = [0, 128], sizes = [2, 128], strides = [1, 1]} : vector<2x512xf32> to vector<2x128xf32>
    %620 = arith.negf %619 : vector<2x128xf32>
    %621 = math.exp %620 : vector<2x128xf32>
    %cst_190 = arith.constant 1.000000e+00 : f32
    %622 = vector.broadcast %cst_190 : f32 to vector<2x128xf32>
    %623 = arith.addf %622, %621 : vector<2x128xf32>
    %624 = arith.divf %622, %623 : vector<2x128xf32>
    %625 = vector.extract_strided_slice %612 {offsets = [0, 256], sizes = [2, 128], strides = [1, 1]} : vector<2x512xf32> to vector<2x128xf32>
    %626 = math.tanh %625 : vector<2x128xf32>
    %627 = vector.extract_strided_slice %612 {offsets = [0, 384], sizes = [2, 128], strides = [1, 1]} : vector<2x512xf32> to vector<2x128xf32>
    %628 = arith.negf %627 : vector<2x128xf32>
    %629 = math.exp %628 : vector<2x128xf32>
    %cst_191 = arith.constant 1.000000e+00 : f32
    %630 = vector.broadcast %cst_191 : f32 to vector<2x128xf32>
    %631 = arith.addf %630, %629 : vector<2x128xf32>
    %632 = arith.divf %630, %631 : vector<2x128xf32>
    %633 = arith.mulf %624, %606 : vector<2x128xf32>
    %634 = arith.mulf %618, %626 : vector<2x128xf32>
    %635 = arith.addf %633, %634 : vector<2x128xf32>
    %636 = math.tanh %635 : vector<2x128xf32>
    %637 = arith.mulf %632, %636 : vector<2x128xf32>
    %c16_192 = arith.constant 16 : index
    %c0_193 = arith.constant 0 : index
    %638 = vector.load %arg24[%c16_192, %c0_193] : memref<24x128xf32, #tpu.memory_space<vmem>>, vector<2x128xf32>
    tpu.vector_store %arg24[%c16_192, %c0_193], %637 {strides = array<i32>} : memref<24x128xf32, #tpu.memory_space<vmem>>, vector<2x128xf32>,
    %c18_194 = arith.constant 18 : index
    %c0_195 = arith.constant 0 : index
    %639 = vector.load %arg23[%c18_194, %c0_195] : memref<24x512xf32, #tpu.memory_space<vmem>>, vector<2x512xf32>
    %cst_196 = arith.constant dense<0.000000e+00> : vector<2x512xf32>
    %640 = tpu.matmul %637, %373, %cst_196 {dimension_numbers = #tpu.dot_dimension_numbers<[1], [0], [0], [1], [0, 0, 1, 1], [], []>} : vector<2x128xf32>, vector<128x512xf32>, vector<2x512xf32> -> vector<2x512xf32>
    %641 = arith.addf %639, %640 : vector<2x512xf32>
    %642 = vector.extract_strided_slice %641 {offsets = [0, 0], sizes = [2, 128], strides = [1, 1]} : vector<2x512xf32> to vector<2x128xf32>
    %643 = arith.negf %642 : vector<2x128xf32>
    %644 = math.exp %643 : vector<2x128xf32>
    %cst_197 = arith.constant 1.000000e+00 : f32
    %645 = vector.broadcast %cst_197 : f32 to vector<2x128xf32>
    %646 = arith.addf %645, %644 : vector<2x128xf32>
    %647 = arith.divf %645, %646 : vector<2x128xf32>
    %648 = vector.extract_strided_slice %641 {offsets = [0, 128], sizes = [2, 128], strides = [1, 1]} : vector<2x512xf32> to vector<2x128xf32>
    %649 = arith.negf %648 : vector<2x128xf32>
    %650 = math.exp %649 : vector<2x128xf32>
    %cst_198 = arith.constant 1.000000e+00 : f32
    %651 = vector.broadcast %cst_198 : f32 to vector<2x128xf32>
    %652 = arith.addf %651, %650 : vector<2x128xf32>
    %653 = arith.divf %651, %652 : vector<2x128xf32>
    %654 = vector.extract_strided_slice %641 {offsets = [0, 256], sizes = [2, 128], strides = [1, 1]} : vector<2x512xf32> to vector<2x128xf32>
    %655 = math.tanh %654 : vector<2x128xf32>
    %656 = vector.extract_strided_slice %641 {offsets = [0, 384], sizes = [2, 128], strides = [1, 1]} : vector<2x512xf32> to vector<2x128xf32>
    %657 = arith.negf %656 : vector<2x128xf32>
    %658 = math.exp %657 : vector<2x128xf32>
    %cst_199 = arith.constant 1.000000e+00 : f32
    %659 = vector.broadcast %cst_199 : f32 to vector<2x128xf32>
    %660 = arith.addf %659, %658 : vector<2x128xf32>
    %661 = arith.divf %659, %660 : vector<2x128xf32>
    %662 = arith.mulf %653, %635 : vector<2x128xf32>
    %663 = arith.mulf %647, %655 : vector<2x128xf32>
    %664 = arith.addf %662, %663 : vector<2x128xf32>
    %665 = math.tanh %664 : vector<2x128xf32>
    %666 = arith.mulf %661, %665 : vector<2x128xf32>
    %c18_200 = arith.constant 18 : index
    %c0_201 = arith.constant 0 : index
    %667 = vector.load %arg24[%c18_200, %c0_201] : memref<24x128xf32, #tpu.memory_space<vmem>>, vector<2x128xf32>
    tpu.vector_store %arg24[%c18_200, %c0_201], %666 {strides = array<i32>} : memref<24x128xf32, #tpu.memory_space<vmem>>, vector<2x128xf32>,
    %c20_202 = arith.constant 20 : index
    %c0_203 = arith.constant 0 : index
    %668 = vector.load %arg23[%c20_202, %c0_203] : memref<24x512xf32, #tpu.memory_space<vmem>>, vector<2x512xf32>
    %cst_204 = arith.constant dense<0.000000e+00> : vector<2x512xf32>
    %669 = tpu.matmul %666, %373, %cst_204 {dimension_numbers = #tpu.dot_dimension_numbers<[1], [0], [0], [1], [0, 0, 1, 1], [], []>} : vector<2x128xf32>, vector<128x512xf32>, vector<2x512xf32> -> vector<2x512xf32>
    %670 = arith.addf %668, %669 : vector<2x512xf32>
    %671 = vector.extract_strided_slice %670 {offsets = [0, 0], sizes = [2, 128], strides = [1, 1]} : vector<2x512xf32> to vector<2x128xf32>
    %672 = arith.negf %671 : vector<2x128xf32>
    %673 = math.exp %672 : vector<2x128xf32>
    %cst_205 = arith.constant 1.000000e+00 : f32
    %674 = vector.broadcast %cst_205 : f32 to vector<2x128xf32>
    %675 = arith.addf %674, %673 : vector<2x128xf32>
    %676 = arith.divf %674, %675 : vector<2x128xf32>
    %677 = vector.extract_strided_slice %670 {offsets = [0, 128], sizes = [2, 128], strides = [1, 1]} : vector<2x512xf32> to vector<2x128xf32>
    %678 = arith.negf %677 : vector<2x128xf32>
    %679 = math.exp %678 : vector<2x128xf32>
    %cst_206 = arith.constant 1.000000e+00 : f32
    %680 = vector.broadcast %cst_206 : f32 to vector<2x128xf32>
    %681 = arith.addf %680, %679 : vector<2x128xf32>
    %682 = arith.divf %680, %681 : vector<2x128xf32>
    %683 = vector.extract_strided_slice %670 {offsets = [0, 256], sizes = [2, 128], strides = [1, 1]} : vector<2x512xf32> to vector<2x128xf32>
    %684 = math.tanh %683 : vector<2x128xf32>
    %685 = vector.extract_strided_slice %670 {offsets = [0, 384], sizes = [2, 128], strides = [1, 1]} : vector<2x512xf32> to vector<2x128xf32>
    %686 = arith.negf %685 : vector<2x128xf32>
    %687 = math.exp %686 : vector<2x128xf32>
    %cst_207 = arith.constant 1.000000e+00 : f32
    %688 = vector.broadcast %cst_207 : f32 to vector<2x128xf32>
    %689 = arith.addf %688, %687 : vector<2x128xf32>
    %690 = arith.divf %688, %689 : vector<2x128xf32>
    %691 = arith.mulf %682, %664 : vector<2x128xf32>
    %692 = arith.mulf %676, %684 : vector<2x128xf32>
    %693 = arith.addf %691, %692 : vector<2x128xf32>
    %694 = math.tanh %693 : vector<2x128xf32>
    %695 = arith.mulf %690, %694 : vector<2x128xf32>
    %c20_208 = arith.constant 20 : index
    %c0_209 = arith.constant 0 : index
    %696 = vector.load %arg24[%c20_208, %c0_209] : memref<24x128xf32, #tpu.memory_space<vmem>>, vector<2x128xf32>
    tpu.vector_store %arg24[%c20_208, %c0_209], %695 {strides = array<i32>} : memref<24x128xf32, #tpu.memory_space<vmem>>, vector<2x128xf32>,
    %c22_210 = arith.constant 22 : index
    %c0_211 = arith.constant 0 : index
    %697 = vector.load %arg23[%c22_210, %c0_211] : memref<24x512xf32, #tpu.memory_space<vmem>>, vector<2x512xf32>
    %cst_212 = arith.constant dense<0.000000e+00> : vector<2x512xf32>
    %698 = tpu.matmul %695, %373, %cst_212 {dimension_numbers = #tpu.dot_dimension_numbers<[1], [0], [0], [1], [0, 0, 1, 1], [], []>} : vector<2x128xf32>, vector<128x512xf32>, vector<2x512xf32> -> vector<2x512xf32>
    %699 = arith.addf %697, %698 : vector<2x512xf32>
    %700 = vector.extract_strided_slice %699 {offsets = [0, 0], sizes = [2, 128], strides = [1, 1]} : vector<2x512xf32> to vector<2x128xf32>
    %701 = arith.negf %700 : vector<2x128xf32>
    %702 = math.exp %701 : vector<2x128xf32>
    %cst_213 = arith.constant 1.000000e+00 : f32
    %703 = vector.broadcast %cst_213 : f32 to vector<2x128xf32>
    %704 = arith.addf %703, %702 : vector<2x128xf32>
    %705 = arith.divf %703, %704 : vector<2x128xf32>
    %706 = vector.extract_strided_slice %699 {offsets = [0, 128], sizes = [2, 128], strides = [1, 1]} : vector<2x512xf32> to vector<2x128xf32>
    %707 = arith.negf %706 : vector<2x128xf32>
    %708 = math.exp %707 : vector<2x128xf32>
    %cst_214 = arith.constant 1.000000e+00 : f32
    %709 = vector.broadcast %cst_214 : f32 to vector<2x128xf32>
    %710 = arith.addf %709, %708 : vector<2x128xf32>
    %711 = arith.divf %709, %710 : vector<2x128xf32>
    %712 = vector.extract_strided_slice %699 {offsets = [0, 256], sizes = [2, 128], strides = [1, 1]} : vector<2x512xf32> to vector<2x128xf32>
    %713 = math.tanh %712 : vector<2x128xf32>
    %714 = vector.extract_strided_slice %699 {offsets = [0, 384], sizes = [2, 128], strides = [1, 1]} : vector<2x512xf32> to vector<2x128xf32>
    %715 = arith.negf %714 : vector<2x128xf32>
    %716 = math.exp %715 : vector<2x128xf32>
    %cst_215 = arith.constant 1.000000e+00 : f32
    %717 = vector.broadcast %cst_215 : f32 to vector<2x128xf32>
    %718 = arith.addf %717, %716 : vector<2x128xf32>
    %719 = arith.divf %717, %718 : vector<2x128xf32>
    %720 = arith.mulf %711, %693 : vector<2x128xf32>
    %721 = arith.mulf %705, %713 : vector<2x128xf32>
    %722 = arith.addf %720, %721 : vector<2x128xf32>
    %723 = math.tanh %722 : vector<2x128xf32>
    %724 = arith.mulf %719, %723 : vector<2x128xf32>
    %c22_216 = arith.constant 22 : index
    %c0_217 = arith.constant 0 : index
    %725 = vector.load %arg24[%c22_216, %c0_217] : memref<24x128xf32, #tpu.memory_space<vmem>>, vector<2x128xf32>
    tpu.vector_store %arg24[%c22_216, %c0_217], %724 {strides = array<i32>} : memref<24x128xf32, #tpu.memory_space<vmem>>, vector<2x128xf32>,
    %c1_218 = arith.constant 1 : index
    %c0_219 = arith.constant 0 : index
    %c0_220 = arith.constant 0 : index
    %726 = vector.load %arg21[%c1_218, %c0_219, %c0_220] : memref<3x2x128xf32, #tpu.memory_space<vmem>>, vector<1x2x128xf32>
    %727 = vector.shape_cast %726 : vector<1x2x128xf32> to vector<2x128xf32>
    %728 = vector.shape_cast %724 : vector<2x128xf32> to vector<1x2x128xf32>
    tpu.vector_store %arg21[%c1_218, %c0_219, %c0_220], %728 {strides = array<i32>} : memref<3x2x128xf32, #tpu.memory_space<vmem>>, vector<1x2x128xf32>,
    %c1_221 = arith.constant 1 : index
    %c0_222 = arith.constant 0 : index
    %c0_223 = arith.constant 0 : index
    %729 = vector.load %arg22[%c1_221, %c0_222, %c0_223] : memref<3x2x128xf32, #tpu.memory_space<vmem>>, vector<1x2x128xf32>
    %730 = vector.shape_cast %729 : vector<1x2x128xf32> to vector<2x128xf32>
    %731 = vector.shape_cast %722 : vector<2x128xf32> to vector<1x2x128xf32>
    tpu.vector_store %arg22[%c1_221, %c0_222, %c0_223], %731 {strides = array<i32>} : memref<3x2x128xf32, #tpu.memory_space<vmem>>, vector<1x2x128xf32>,
    %c0_224 = arith.constant 0 : index
    %c0_225 = arith.constant 0 : index
    %732 = vector.load %arg24[%c0_224, %c0_225] : memref<24x128xf32, #tpu.memory_space<vmem>>, vector<24x128xf32>
    %c0_226 = arith.constant 0 : index
    %c0_227 = arith.constant 0 : index
    %733 = vector.load %arg7[%c0_226, %c0_227] : memref<128x512xf32, #tpu.memory_space<vmem>>, vector<128x512xf32>
    %cst_228 = arith.constant dense<0.000000e+00> : vector<24x512xf32>
    %734 = tpu.matmul %732, %733, %cst_228 {dimension_numbers = #tpu.dot_dimension_numbers<[1], [0], [0], [1], [0, 0, 1, 1], [], []>} : vector<24x128xf32>, vector<128x512xf32>, vector<24x512xf32> -> vector<24x512xf32>
    %c0_229 = arith.constant 0 : index
    %c0_230 = arith.constant 0 : index
    %735 = vector.load %arg9[%c0_229, %c0_230] : memref<1x512xf32, #tpu.memory_space<vmem>>, vector<1x512xf32>
    %736 = vector.broadcast %735 : vector<1x512xf32> to vector<24x512xf32>
    %737 = arith.addf %734, %736 : vector<24x512xf32>
    %c0_231 = arith.constant 0 : index
    %c0_232 = arith.constant 0 : index
    %738 = vector.load %arg23[%c0_231, %c0_232] : memref<24x512xf32, #tpu.memory_space<vmem>>, vector<24x512xf32>
    tpu.vector_store %arg23[%c0_231, %c0_232], %737 {strides = array<i32>} : memref<24x512xf32, #tpu.memory_space<vmem>>, vector<24x512xf32>,
    %c0_233 = arith.constant 0 : index
    %c0_234 = arith.constant 0 : index
    %739 = vector.load %arg8[%c0_233, %c0_234] : memref<128x512xf32, #tpu.memory_space<vmem>>, vector<128x512xf32>
    %c2_235 = arith.constant 2 : index
    %c0_236 = arith.constant 0 : index
    %c0_237 = arith.constant 0 : index
    %740 = vector.load %arg10[%c2_235, %c0_236, %c0_237] : memref<3x2x128xf32, #tpu.memory_space<vmem>>, vector<1x2x128xf32>
    %741 = vector.shape_cast %740 : vector<1x2x128xf32> to vector<2x128xf32>
    %c2_238 = arith.constant 2 : index
    %c0_239 = arith.constant 0 : index
    %c0_240 = arith.constant 0 : index
    %742 = vector.load %arg11[%c2_238, %c0_239, %c0_240] : memref<3x2x128xf32, #tpu.memory_space<vmem>>, vector<1x2x128xf32>
    %743 = vector.shape_cast %742 : vector<1x2x128xf32> to vector<2x128xf32>
    %c0_241 = arith.constant 0 : index
    %c0_242 = arith.constant 0 : index
    %744 = vector.load %arg23[%c0_241, %c0_242] : memref<24x512xf32, #tpu.memory_space<vmem>>, vector<2x512xf32>
    %cst_243 = arith.constant dense<0.000000e+00> : vector<2x512xf32>
    %745 = tpu.matmul %741, %739, %cst_243 {dimension_numbers = #tpu.dot_dimension_numbers<[1], [0], [0], [1], [0, 0, 1, 1], [], []>} : vector<2x128xf32>, vector<128x512xf32>, vector<2x512xf32> -> vector<2x512xf32>
    %746 = arith.addf %744, %745 : vector<2x512xf32>
    %747 = vector.extract_strided_slice %746 {offsets = [0, 0], sizes = [2, 128], strides = [1, 1]} : vector<2x512xf32> to vector<2x128xf32>
    %748 = arith.negf %747 : vector<2x128xf32>
    %749 = math.exp %748 : vector<2x128xf32>
    %cst_244 = arith.constant 1.000000e+00 : f32
    %750 = vector.broadcast %cst_244 : f32 to vector<2x128xf32>
    %751 = arith.addf %750, %749 : vector<2x128xf32>
    %752 = arith.divf %750, %751 : vector<2x128xf32>
    %753 = vector.extract_strided_slice %746 {offsets = [0, 128], sizes = [2, 128], strides = [1, 1]} : vector<2x512xf32> to vector<2x128xf32>
    %754 = arith.negf %753 : vector<2x128xf32>
    %755 = math.exp %754 : vector<2x128xf32>
    %cst_245 = arith.constant 1.000000e+00 : f32
    %756 = vector.broadcast %cst_245 : f32 to vector<2x128xf32>
    %757 = arith.addf %756, %755 : vector<2x128xf32>
    %758 = arith.divf %756, %757 : vector<2x128xf32>
    %759 = vector.extract_strided_slice %746 {offsets = [0, 256], sizes = [2, 128], strides = [1, 1]} : vector<2x512xf32> to vector<2x128xf32>
    %760 = math.tanh %759 : vector<2x128xf32>
    %761 = vector.extract_strided_slice %746 {offsets = [0, 384], sizes = [2, 128], strides = [1, 1]} : vector<2x512xf32> to vector<2x128xf32>
    %762 = arith.negf %761 : vector<2x128xf32>
    %763 = math.exp %762 : vector<2x128xf32>
    %cst_246 = arith.constant 1.000000e+00 : f32
    %764 = vector.broadcast %cst_246 : f32 to vector<2x128xf32>
    %765 = arith.addf %764, %763 : vector<2x128xf32>
    %766 = arith.divf %764, %765 : vector<2x128xf32>
    %767 = arith.mulf %758, %743 : vector<2x128xf32>
    %768 = arith.mulf %752, %760 : vector<2x128xf32>
    %769 = arith.addf %767, %768 : vector<2x128xf32>
    %770 = math.tanh %769 : vector<2x128xf32>
    %771 = arith.mulf %766, %770 : vector<2x128xf32>
    %c0_247 = arith.constant 0 : index
    %c0_248 = arith.constant 0 : index
    %772 = vector.load %arg24[%c0_247, %c0_248] : memref<24x128xf32, #tpu.memory_space<vmem>>, vector<2x128xf32>
    tpu.vector_store %arg24[%c0_247, %c0_248], %771 {strides = array<i32>} : memref<24x128xf32, #tpu.memory_space<vmem>>, vector<2x128xf32>,
    %c2_249 = arith.constant 2 : index
    %c0_250 = arith.constant 0 : index
    %773 = vector.load %arg23[%c2_249, %c0_250] : memref<24x512xf32, #tpu.memory_space<vmem>>, vector<2x512xf32>
    %cst_251 = arith.constant dense<0.000000e+00> : vector<2x512xf32>
    %774 = tpu.matmul %771, %739, %cst_251 {dimension_numbers = #tpu.dot_dimension_numbers<[1], [0], [0], [1], [0, 0, 1, 1], [], []>} : vector<2x128xf32>, vector<128x512xf32>, vector<2x512xf32> -> vector<2x512xf32>
    %775 = arith.addf %773, %774 : vector<2x512xf32>
    %776 = vector.extract_strided_slice %775 {offsets = [0, 0], sizes = [2, 128], strides = [1, 1]} : vector<2x512xf32> to vector<2x128xf32>
    %777 = arith.negf %776 : vector<2x128xf32>
    %778 = math.exp %777 : vector<2x128xf32>
    %cst_252 = arith.constant 1.000000e+00 : f32
    %779 = vector.broadcast %cst_252 : f32 to vector<2x128xf32>
    %780 = arith.addf %779, %778 : vector<2x128xf32>
    %781 = arith.divf %779, %780 : vector<2x128xf32>
    %782 = vector.extract_strided_slice %775 {offsets = [0, 128], sizes = [2, 128], strides = [1, 1]} : vector<2x512xf32> to vector<2x128xf32>
    %783 = arith.negf %782 : vector<2x128xf32>
    %784 = math.exp %783 : vector<2x128xf32>
    %cst_253 = arith.constant 1.000000e+00 : f32
    %785 = vector.broadcast %cst_253 : f32 to vector<2x128xf32>
    %786 = arith.addf %785, %784 : vector<2x128xf32>
    %787 = arith.divf %785, %786 : vector<2x128xf32>
    %788 = vector.extract_strided_slice %775 {offsets = [0, 256], sizes = [2, 128], strides = [1, 1]} : vector<2x512xf32> to vector<2x128xf32>
    %789 = math.tanh %788 : vector<2x128xf32>
    %790 = vector.extract_strided_slice %775 {offsets = [0, 384], sizes = [2, 128], strides = [1, 1]} : vector<2x512xf32> to vector<2x128xf32>
    %791 = arith.negf %790 : vector<2x128xf32>
    %792 = math.exp %791 : vector<2x128xf32>
    %cst_254 = arith.constant 1.000000e+00 : f32
    %793 = vector.broadcast %cst_254 : f32 to vector<2x128xf32>
    %794 = arith.addf %793, %792 : vector<2x128xf32>
    %795 = arith.divf %793, %794 : vector<2x128xf32>
    %796 = arith.mulf %787, %769 : vector<2x128xf32>
    %797 = arith.mulf %781, %789 : vector<2x128xf32>
    %798 = arith.addf %796, %797 : vector<2x128xf32>
    %799 = math.tanh %798 : vector<2x128xf32>
    %800 = arith.mulf %795, %799 : vector<2x128xf32>
    %c2_255 = arith.constant 2 : index
    %c0_256 = arith.constant 0 : index
    %801 = vector.load %arg24[%c2_255, %c0_256] : memref<24x128xf32, #tpu.memory_space<vmem>>, vector<2x128xf32>
    tpu.vector_store %arg24[%c2_255, %c0_256], %800 {strides = array<i32>} : memref<24x128xf32, #tpu.memory_space<vmem>>, vector<2x128xf32>,
    %c4_257 = arith.constant 4 : index
    %c0_258 = arith.constant 0 : index
    %802 = vector.load %arg23[%c4_257, %c0_258] : memref<24x512xf32, #tpu.memory_space<vmem>>, vector<2x512xf32>
    %cst_259 = arith.constant dense<0.000000e+00> : vector<2x512xf32>
    %803 = tpu.matmul %800, %739, %cst_259 {dimension_numbers = #tpu.dot_dimension_numbers<[1], [0], [0], [1], [0, 0, 1, 1], [], []>} : vector<2x128xf32>, vector<128x512xf32>, vector<2x512xf32> -> vector<2x512xf32>
    %804 = arith.addf %802, %803 : vector<2x512xf32>
    %805 = vector.extract_strided_slice %804 {offsets = [0, 0], sizes = [2, 128], strides = [1, 1]} : vector<2x512xf32> to vector<2x128xf32>
    %806 = arith.negf %805 : vector<2x128xf32>
    %807 = math.exp %806 : vector<2x128xf32>
    %cst_260 = arith.constant 1.000000e+00 : f32
    %808 = vector.broadcast %cst_260 : f32 to vector<2x128xf32>
    %809 = arith.addf %808, %807 : vector<2x128xf32>
    %810 = arith.divf %808, %809 : vector<2x128xf32>
    %811 = vector.extract_strided_slice %804 {offsets = [0, 128], sizes = [2, 128], strides = [1, 1]} : vector<2x512xf32> to vector<2x128xf32>
    %812 = arith.negf %811 : vector<2x128xf32>
    %813 = math.exp %812 : vector<2x128xf32>
    %cst_261 = arith.constant 1.000000e+00 : f32
    %814 = vector.broadcast %cst_261 : f32 to vector<2x128xf32>
    %815 = arith.addf %814, %813 : vector<2x128xf32>
    %816 = arith.divf %814, %815 : vector<2x128xf32>
    %817 = vector.extract_strided_slice %804 {offsets = [0, 256], sizes = [2, 128], strides = [1, 1]} : vector<2x512xf32> to vector<2x128xf32>
    %818 = math.tanh %817 : vector<2x128xf32>
    %819 = vector.extract_strided_slice %804 {offsets = [0, 384], sizes = [2, 128], strides = [1, 1]} : vector<2x512xf32> to vector<2x128xf32>
    %820 = arith.negf %819 : vector<2x128xf32>
    %821 = math.exp %820 : vector<2x128xf32>
    %cst_262 = arith.constant 1.000000e+00 : f32
    %822 = vector.broadcast %cst_262 : f32 to vector<2x128xf32>
    %823 = arith.addf %822, %821 : vector<2x128xf32>
    %824 = arith.divf %822, %823 : vector<2x128xf32>
    %825 = arith.mulf %816, %798 : vector<2x128xf32>
    %826 = arith.mulf %810, %818 : vector<2x128xf32>
    %827 = arith.addf %825, %826 : vector<2x128xf32>
    %828 = math.tanh %827 : vector<2x128xf32>
    %829 = arith.mulf %824, %828 : vector<2x128xf32>
    %c4_263 = arith.constant 4 : index
    %c0_264 = arith.constant 0 : index
    %830 = vector.load %arg24[%c4_263, %c0_264] : memref<24x128xf32, #tpu.memory_space<vmem>>, vector<2x128xf32>
    tpu.vector_store %arg24[%c4_263, %c0_264], %829 {strides = array<i32>} : memref<24x128xf32, #tpu.memory_space<vmem>>, vector<2x128xf32>,
    %c6_265 = arith.constant 6 : index
    %c0_266 = arith.constant 0 : index
    %831 = vector.load %arg23[%c6_265, %c0_266] : memref<24x512xf32, #tpu.memory_space<vmem>>, vector<2x512xf32>
    %cst_267 = arith.constant dense<0.000000e+00> : vector<2x512xf32>
    %832 = tpu.matmul %829, %739, %cst_267 {dimension_numbers = #tpu.dot_dimension_numbers<[1], [0], [0], [1], [0, 0, 1, 1], [], []>} : vector<2x128xf32>, vector<128x512xf32>, vector<2x512xf32> -> vector<2x512xf32>
    %833 = arith.addf %831, %832 : vector<2x512xf32>
    %834 = vector.extract_strided_slice %833 {offsets = [0, 0], sizes = [2, 128], strides = [1, 1]} : vector<2x512xf32> to vector<2x128xf32>
    %835 = arith.negf %834 : vector<2x128xf32>
    %836 = math.exp %835 : vector<2x128xf32>
    %cst_268 = arith.constant 1.000000e+00 : f32
    %837 = vector.broadcast %cst_268 : f32 to vector<2x128xf32>
    %838 = arith.addf %837, %836 : vector<2x128xf32>
    %839 = arith.divf %837, %838 : vector<2x128xf32>
    %840 = vector.extract_strided_slice %833 {offsets = [0, 128], sizes = [2, 128], strides = [1, 1]} : vector<2x512xf32> to vector<2x128xf32>
    %841 = arith.negf %840 : vector<2x128xf32>
    %842 = math.exp %841 : vector<2x128xf32>
    %cst_269 = arith.constant 1.000000e+00 : f32
    %843 = vector.broadcast %cst_269 : f32 to vector<2x128xf32>
    %844 = arith.addf %843, %842 : vector<2x128xf32>
    %845 = arith.divf %843, %844 : vector<2x128xf32>
    %846 = vector.extract_strided_slice %833 {offsets = [0, 256], sizes = [2, 128], strides = [1, 1]} : vector<2x512xf32> to vector<2x128xf32>
    %847 = math.tanh %846 : vector<2x128xf32>
    %848 = vector.extract_strided_slice %833 {offsets = [0, 384], sizes = [2, 128], strides = [1, 1]} : vector<2x512xf32> to vector<2x128xf32>
    %849 = arith.negf %848 : vector<2x128xf32>
    %850 = math.exp %849 : vector<2x128xf32>
    %cst_270 = arith.constant 1.000000e+00 : f32
    %851 = vector.broadcast %cst_270 : f32 to vector<2x128xf32>
    %852 = arith.addf %851, %850 : vector<2x128xf32>
    %853 = arith.divf %851, %852 : vector<2x128xf32>
    %854 = arith.mulf %845, %827 : vector<2x128xf32>
    %855 = arith.mulf %839, %847 : vector<2x128xf32>
    %856 = arith.addf %854, %855 : vector<2x128xf32>
    %857 = math.tanh %856 : vector<2x128xf32>
    %858 = arith.mulf %853, %857 : vector<2x128xf32>
    %c6_271 = arith.constant 6 : index
    %c0_272 = arith.constant 0 : index
    %859 = vector.load %arg24[%c6_271, %c0_272] : memref<24x128xf32, #tpu.memory_space<vmem>>, vector<2x128xf32>
    tpu.vector_store %arg24[%c6_271, %c0_272], %858 {strides = array<i32>} : memref<24x128xf32, #tpu.memory_space<vmem>>, vector<2x128xf32>,
    %c8_273 = arith.constant 8 : index
    %c0_274 = arith.constant 0 : index
    %860 = vector.load %arg23[%c8_273, %c0_274] : memref<24x512xf32, #tpu.memory_space<vmem>>, vector<2x512xf32>
    %cst_275 = arith.constant dense<0.000000e+00> : vector<2x512xf32>
    %861 = tpu.matmul %858, %739, %cst_275 {dimension_numbers = #tpu.dot_dimension_numbers<[1], [0], [0], [1], [0, 0, 1, 1], [], []>} : vector<2x128xf32>, vector<128x512xf32>, vector<2x512xf32> -> vector<2x512xf32>
    %862 = arith.addf %860, %861 : vector<2x512xf32>
    %863 = vector.extract_strided_slice %862 {offsets = [0, 0], sizes = [2, 128], strides = [1, 1]} : vector<2x512xf32> to vector<2x128xf32>
    %864 = arith.negf %863 : vector<2x128xf32>
    %865 = math.exp %864 : vector<2x128xf32>
    %cst_276 = arith.constant 1.000000e+00 : f32
    %866 = vector.broadcast %cst_276 : f32 to vector<2x128xf32>
    %867 = arith.addf %866, %865 : vector<2x128xf32>
    %868 = arith.divf %866, %867 : vector<2x128xf32>
    %869 = vector.extract_strided_slice %862 {offsets = [0, 128], sizes = [2, 128], strides = [1, 1]} : vector<2x512xf32> to vector<2x128xf32>
    %870 = arith.negf %869 : vector<2x128xf32>
    %871 = math.exp %870 : vector<2x128xf32>
    %cst_277 = arith.constant 1.000000e+00 : f32
    %872 = vector.broadcast %cst_277 : f32 to vector<2x128xf32>
    %873 = arith.addf %872, %871 : vector<2x128xf32>
    %874 = arith.divf %872, %873 : vector<2x128xf32>
    %875 = vector.extract_strided_slice %862 {offsets = [0, 256], sizes = [2, 128], strides = [1, 1]} : vector<2x512xf32> to vector<2x128xf32>
    %876 = math.tanh %875 : vector<2x128xf32>
    %877 = vector.extract_strided_slice %862 {offsets = [0, 384], sizes = [2, 128], strides = [1, 1]} : vector<2x512xf32> to vector<2x128xf32>
    %878 = arith.negf %877 : vector<2x128xf32>
    %879 = math.exp %878 : vector<2x128xf32>
    %cst_278 = arith.constant 1.000000e+00 : f32
    %880 = vector.broadcast %cst_278 : f32 to vector<2x128xf32>
    %881 = arith.addf %880, %879 : vector<2x128xf32>
    %882 = arith.divf %880, %881 : vector<2x128xf32>
    %883 = arith.mulf %874, %856 : vector<2x128xf32>
    %884 = arith.mulf %868, %876 : vector<2x128xf32>
    %885 = arith.addf %883, %884 : vector<2x128xf32>
    %886 = math.tanh %885 : vector<2x128xf32>
    %887 = arith.mulf %882, %886 : vector<2x128xf32>
    %c8_279 = arith.constant 8 : index
    %c0_280 = arith.constant 0 : index
    %888 = vector.load %arg24[%c8_279, %c0_280] : memref<24x128xf32, #tpu.memory_space<vmem>>, vector<2x128xf32>
    tpu.vector_store %arg24[%c8_279, %c0_280], %887 {strides = array<i32>} : memref<24x128xf32, #tpu.memory_space<vmem>>, vector<2x128xf32>,
    %c10_281 = arith.constant 10 : index
    %c0_282 = arith.constant 0 : index
    %889 = vector.load %arg23[%c10_281, %c0_282] : memref<24x512xf32, #tpu.memory_space<vmem>>, vector<2x512xf32>
    %cst_283 = arith.constant dense<0.000000e+00> : vector<2x512xf32>
    %890 = tpu.matmul %887, %739, %cst_283 {dimension_numbers = #tpu.dot_dimension_numbers<[1], [0], [0], [1], [0, 0, 1, 1], [], []>} : vector<2x128xf32>, vector<128x512xf32>, vector<2x512xf32> -> vector<2x512xf32>
    %891 = arith.addf %889, %890 : vector<2x512xf32>
    %892 = vector.extract_strided_slice %891 {offsets = [0, 0], sizes = [2, 128], strides = [1, 1]} : vector<2x512xf32> to vector<2x128xf32>
    %893 = arith.negf %892 : vector<2x128xf32>
    %894 = math.exp %893 : vector<2x128xf32>
    %cst_284 = arith.constant 1.000000e+00 : f32
    %895 = vector.broadcast %cst_284 : f32 to vector<2x128xf32>
    %896 = arith.addf %895, %894 : vector<2x128xf32>
    %897 = arith.divf %895, %896 : vector<2x128xf32>
    %898 = vector.extract_strided_slice %891 {offsets = [0, 128], sizes = [2, 128], strides = [1, 1]} : vector<2x512xf32> to vector<2x128xf32>
    %899 = arith.negf %898 : vector<2x128xf32>
    %900 = math.exp %899 : vector<2x128xf32>
    %cst_285 = arith.constant 1.000000e+00 : f32
    %901 = vector.broadcast %cst_285 : f32 to vector<2x128xf32>
    %902 = arith.addf %901, %900 : vector<2x128xf32>
    %903 = arith.divf %901, %902 : vector<2x128xf32>
    %904 = vector.extract_strided_slice %891 {offsets = [0, 256], sizes = [2, 128], strides = [1, 1]} : vector<2x512xf32> to vector<2x128xf32>
    %905 = math.tanh %904 : vector<2x128xf32>
    %906 = vector.extract_strided_slice %891 {offsets = [0, 384], sizes = [2, 128], strides = [1, 1]} : vector<2x512xf32> to vector<2x128xf32>
    %907 = arith.negf %906 : vector<2x128xf32>
    %908 = math.exp %907 : vector<2x128xf32>
    %cst_286 = arith.constant 1.000000e+00 : f32
    %909 = vector.broadcast %cst_286 : f32 to vector<2x128xf32>
    %910 = arith.addf %909, %908 : vector<2x128xf32>
    %911 = arith.divf %909, %910 : vector<2x128xf32>
    %912 = arith.mulf %903, %885 : vector<2x128xf32>
    %913 = arith.mulf %897, %905 : vector<2x128xf32>
    %914 = arith.addf %912, %913 : vector<2x128xf32>
    %915 = math.tanh %914 : vector<2x128xf32>
    %916 = arith.mulf %911, %915 : vector<2x128xf32>
    %c10_287 = arith.constant 10 : index
    %c0_288 = arith.constant 0 : index
    %917 = vector.load %arg24[%c10_287, %c0_288] : memref<24x128xf32, #tpu.memory_space<vmem>>, vector<2x128xf32>
    tpu.vector_store %arg24[%c10_287, %c0_288], %916 {strides = array<i32>} : memref<24x128xf32, #tpu.memory_space<vmem>>, vector<2x128xf32>,
    %c12_289 = arith.constant 12 : index
    %c0_290 = arith.constant 0 : index
    %918 = vector.load %arg23[%c12_289, %c0_290] : memref<24x512xf32, #tpu.memory_space<vmem>>, vector<2x512xf32>
    %cst_291 = arith.constant dense<0.000000e+00> : vector<2x512xf32>
    %919 = tpu.matmul %916, %739, %cst_291 {dimension_numbers = #tpu.dot_dimension_numbers<[1], [0], [0], [1], [0, 0, 1, 1], [], []>} : vector<2x128xf32>, vector<128x512xf32>, vector<2x512xf32> -> vector<2x512xf32>
    %920 = arith.addf %918, %919 : vector<2x512xf32>
    %921 = vector.extract_strided_slice %920 {offsets = [0, 0], sizes = [2, 128], strides = [1, 1]} : vector<2x512xf32> to vector<2x128xf32>
    %922 = arith.negf %921 : vector<2x128xf32>
    %923 = math.exp %922 : vector<2x128xf32>
    %cst_292 = arith.constant 1.000000e+00 : f32
    %924 = vector.broadcast %cst_292 : f32 to vector<2x128xf32>
    %925 = arith.addf %924, %923 : vector<2x128xf32>
    %926 = arith.divf %924, %925 : vector<2x128xf32>
    %927 = vector.extract_strided_slice %920 {offsets = [0, 128], sizes = [2, 128], strides = [1, 1]} : vector<2x512xf32> to vector<2x128xf32>
    %928 = arith.negf %927 : vector<2x128xf32>
    %929 = math.exp %928 : vector<2x128xf32>
    %cst_293 = arith.constant 1.000000e+00 : f32
    %930 = vector.broadcast %cst_293 : f32 to vector<2x128xf32>
    %931 = arith.addf %930, %929 : vector<2x128xf32>
    %932 = arith.divf %930, %931 : vector<2x128xf32>
    %933 = vector.extract_strided_slice %920 {offsets = [0, 256], sizes = [2, 128], strides = [1, 1]} : vector<2x512xf32> to vector<2x128xf32>
    %934 = math.tanh %933 : vector<2x128xf32>
    %935 = vector.extract_strided_slice %920 {offsets = [0, 384], sizes = [2, 128], strides = [1, 1]} : vector<2x512xf32> to vector<2x128xf32>
    %936 = arith.negf %935 : vector<2x128xf32>
    %937 = math.exp %936 : vector<2x128xf32>
    %cst_294 = arith.constant 1.000000e+00 : f32
    %938 = vector.broadcast %cst_294 : f32 to vector<2x128xf32>
    %939 = arith.addf %938, %937 : vector<2x128xf32>
    %940 = arith.divf %938, %939 : vector<2x128xf32>
    %941 = arith.mulf %932, %914 : vector<2x128xf32>
    %942 = arith.mulf %926, %934 : vector<2x128xf32>
    %943 = arith.addf %941, %942 : vector<2x128xf32>
    %944 = math.tanh %943 : vector<2x128xf32>
    %945 = arith.mulf %940, %944 : vector<2x128xf32>
    %c12_295 = arith.constant 12 : index
    %c0_296 = arith.constant 0 : index
    %946 = vector.load %arg24[%c12_295, %c0_296] : memref<24x128xf32, #tpu.memory_space<vmem>>, vector<2x128xf32>
    tpu.vector_store %arg24[%c12_295, %c0_296], %945 {strides = array<i32>} : memref<24x128xf32, #tpu.memory_space<vmem>>, vector<2x128xf32>,
    %c14_297 = arith.constant 14 : index
    %c0_298 = arith.constant 0 : index
    %947 = vector.load %arg23[%c14_297, %c0_298] : memref<24x512xf32, #tpu.memory_space<vmem>>, vector<2x512xf32>
    %cst_299 = arith.constant dense<0.000000e+00> : vector<2x512xf32>
    %948 = tpu.matmul %945, %739, %cst_299 {dimension_numbers = #tpu.dot_dimension_numbers<[1], [0], [0], [1], [0, 0, 1, 1], [], []>} : vector<2x128xf32>, vector<128x512xf32>, vector<2x512xf32> -> vector<2x512xf32>
    %949 = arith.addf %947, %948 : vector<2x512xf32>
    %950 = vector.extract_strided_slice %949 {offsets = [0, 0], sizes = [2, 128], strides = [1, 1]} : vector<2x512xf32> to vector<2x128xf32>
    %951 = arith.negf %950 : vector<2x128xf32>
    %952 = math.exp %951 : vector<2x128xf32>
    %cst_300 = arith.constant 1.000000e+00 : f32
    %953 = vector.broadcast %cst_300 : f32 to vector<2x128xf32>
    %954 = arith.addf %953, %952 : vector<2x128xf32>
    %955 = arith.divf %953, %954 : vector<2x128xf32>
    %956 = vector.extract_strided_slice %949 {offsets = [0, 128], sizes = [2, 128], strides = [1, 1]} : vector<2x512xf32> to vector<2x128xf32>
    %957 = arith.negf %956 : vector<2x128xf32>
    %958 = math.exp %957 : vector<2x128xf32>
    %cst_301 = arith.constant 1.000000e+00 : f32
    %959 = vector.broadcast %cst_301 : f32 to vector<2x128xf32>
    %960 = arith.addf %959, %958 : vector<2x128xf32>
    %961 = arith.divf %959, %960 : vector<2x128xf32>
    %962 = vector.extract_strided_slice %949 {offsets = [0, 256], sizes = [2, 128], strides = [1, 1]} : vector<2x512xf32> to vector<2x128xf32>
    %963 = math.tanh %962 : vector<2x128xf32>
    %964 = vector.extract_strided_slice %949 {offsets = [0, 384], sizes = [2, 128], strides = [1, 1]} : vector<2x512xf32> to vector<2x128xf32>
    %965 = arith.negf %964 : vector<2x128xf32>
    %966 = math.exp %965 : vector<2x128xf32>
    %cst_302 = arith.constant 1.000000e+00 : f32
    %967 = vector.broadcast %cst_302 : f32 to vector<2x128xf32>
    %968 = arith.addf %967, %966 : vector<2x128xf32>
    %969 = arith.divf %967, %968 : vector<2x128xf32>
    %970 = arith.mulf %961, %943 : vector<2x128xf32>
    %971 = arith.mulf %955, %963 : vector<2x128xf32>
    %972 = arith.addf %970, %971 : vector<2x128xf32>
    %973 = math.tanh %972 : vector<2x128xf32>
    %974 = arith.mulf %969, %973 : vector<2x128xf32>
    %c14_303 = arith.constant 14 : index
    %c0_304 = arith.constant 0 : index
    %975 = vector.load %arg24[%c14_303, %c0_304] : memref<24x128xf32, #tpu.memory_space<vmem>>, vector<2x128xf32>
    tpu.vector_store %arg24[%c14_303, %c0_304], %974 {strides = array<i32>} : memref<24x128xf32, #tpu.memory_space<vmem>>, vector<2x128xf32>,
    %c16_305 = arith.constant 16 : index
    %c0_306 = arith.constant 0 : index
    %976 = vector.load %arg23[%c16_305, %c0_306] : memref<24x512xf32, #tpu.memory_space<vmem>>, vector<2x512xf32>
    %cst_307 = arith.constant dense<0.000000e+00> : vector<2x512xf32>
    %977 = tpu.matmul %974, %739, %cst_307 {dimension_numbers = #tpu.dot_dimension_numbers<[1], [0], [0], [1], [0, 0, 1, 1], [], []>} : vector<2x128xf32>, vector<128x512xf32>, vector<2x512xf32> -> vector<2x512xf32>
    %978 = arith.addf %976, %977 : vector<2x512xf32>
    %979 = vector.extract_strided_slice %978 {offsets = [0, 0], sizes = [2, 128], strides = [1, 1]} : vector<2x512xf32> to vector<2x128xf32>
    %980 = arith.negf %979 : vector<2x128xf32>
    %981 = math.exp %980 : vector<2x128xf32>
    %cst_308 = arith.constant 1.000000e+00 : f32
    %982 = vector.broadcast %cst_308 : f32 to vector<2x128xf32>
    %983 = arith.addf %982, %981 : vector<2x128xf32>
    %984 = arith.divf %982, %983 : vector<2x128xf32>
    %985 = vector.extract_strided_slice %978 {offsets = [0, 128], sizes = [2, 128], strides = [1, 1]} : vector<2x512xf32> to vector<2x128xf32>
    %986 = arith.negf %985 : vector<2x128xf32>
    %987 = math.exp %986 : vector<2x128xf32>
    %cst_309 = arith.constant 1.000000e+00 : f32
    %988 = vector.broadcast %cst_309 : f32 to vector<2x128xf32>
    %989 = arith.addf %988, %987 : vector<2x128xf32>
    %990 = arith.divf %988, %989 : vector<2x128xf32>
    %991 = vector.extract_strided_slice %978 {offsets = [0, 256], sizes = [2, 128], strides = [1, 1]} : vector<2x512xf32> to vector<2x128xf32>
    %992 = math.tanh %991 : vector<2x128xf32>
    %993 = vector.extract_strided_slice %978 {offsets = [0, 384], sizes = [2, 128], strides = [1, 1]} : vector<2x512xf32> to vector<2x128xf32>
    %994 = arith.negf %993 : vector<2x128xf32>
    %995 = math.exp %994 : vector<2x128xf32>
    %cst_310 = arith.constant 1.000000e+00 : f32
    %996 = vector.broadcast %cst_310 : f32 to vector<2x128xf32>
    %997 = arith.addf %996, %995 : vector<2x128xf32>
    %998 = arith.divf %996, %997 : vector<2x128xf32>
    %999 = arith.mulf %990, %972 : vector<2x128xf32>
    %1000 = arith.mulf %984, %992 : vector<2x128xf32>
    %1001 = arith.addf %999, %1000 : vector<2x128xf32>
    %1002 = math.tanh %1001 : vector<2x128xf32>
    %1003 = arith.mulf %998, %1002 : vector<2x128xf32>
    %c16_311 = arith.constant 16 : index
    %c0_312 = arith.constant 0 : index
    %1004 = vector.load %arg24[%c16_311, %c0_312] : memref<24x128xf32, #tpu.memory_space<vmem>>, vector<2x128xf32>
    tpu.vector_store %arg24[%c16_311, %c0_312], %1003 {strides = array<i32>} : memref<24x128xf32, #tpu.memory_space<vmem>>, vector<2x128xf32>,
    %c18_313 = arith.constant 18 : index
    %c0_314 = arith.constant 0 : index
    %1005 = vector.load %arg23[%c18_313, %c0_314] : memref<24x512xf32, #tpu.memory_space<vmem>>, vector<2x512xf32>
    %cst_315 = arith.constant dense<0.000000e+00> : vector<2x512xf32>
    %1006 = tpu.matmul %1003, %739, %cst_315 {dimension_numbers = #tpu.dot_dimension_numbers<[1], [0], [0], [1], [0, 0, 1, 1], [], []>} : vector<2x128xf32>, vector<128x512xf32>, vector<2x512xf32> -> vector<2x512xf32>
    %1007 = arith.addf %1005, %1006 : vector<2x512xf32>
    %1008 = vector.extract_strided_slice %1007 {offsets = [0, 0], sizes = [2, 128], strides = [1, 1]} : vector<2x512xf32> to vector<2x128xf32>
    %1009 = arith.negf %1008 : vector<2x128xf32>
    %1010 = math.exp %1009 : vector<2x128xf32>
    %cst_316 = arith.constant 1.000000e+00 : f32
    %1011 = vector.broadcast %cst_316 : f32 to vector<2x128xf32>
    %1012 = arith.addf %1011, %1010 : vector<2x128xf32>
    %1013 = arith.divf %1011, %1012 : vector<2x128xf32>
    %1014 = vector.extract_strided_slice %1007 {offsets = [0, 128], sizes = [2, 128], strides = [1, 1]} : vector<2x512xf32> to vector<2x128xf32>
    %1015 = arith.negf %1014 : vector<2x128xf32>
    %1016 = math.exp %1015 : vector<2x128xf32>
    %cst_317 = arith.constant 1.000000e+00 : f32
    %1017 = vector.broadcast %cst_317 : f32 to vector<2x128xf32>
    %1018 = arith.addf %1017, %1016 : vector<2x128xf32>
    %1019 = arith.divf %1017, %1018 : vector<2x128xf32>
    %1020 = vector.extract_strided_slice %1007 {offsets = [0, 256], sizes = [2, 128], strides = [1, 1]} : vector<2x512xf32> to vector<2x128xf32>
    %1021 = math.tanh %1020 : vector<2x128xf32>
    %1022 = vector.extract_strided_slice %1007 {offsets = [0, 384], sizes = [2, 128], strides = [1, 1]} : vector<2x512xf32> to vector<2x128xf32>
    %1023 = arith.negf %1022 : vector<2x128xf32>
    %1024 = math.exp %1023 : vector<2x128xf32>
    %cst_318 = arith.constant 1.000000e+00 : f32
    %1025 = vector.broadcast %cst_318 : f32 to vector<2x128xf32>
    %1026 = arith.addf %1025, %1024 : vector<2x128xf32>
    %1027 = arith.divf %1025, %1026 : vector<2x128xf32>
    %1028 = arith.mulf %1019, %1001 : vector<2x128xf32>
    %1029 = arith.mulf %1013, %1021 : vector<2x128xf32>
    %1030 = arith.addf %1028, %1029 : vector<2x128xf32>
    %1031 = math.tanh %1030 : vector<2x128xf32>
    %1032 = arith.mulf %1027, %1031 : vector<2x128xf32>
    %c18_319 = arith.constant 18 : index
    %c0_320 = arith.constant 0 : index
    %1033 = vector.load %arg24[%c18_319, %c0_320] : memref<24x128xf32, #tpu.memory_space<vmem>>, vector<2x128xf32>
    tpu.vector_store %arg24[%c18_319, %c0_320], %1032 {strides = array<i32>} : memref<24x128xf32, #tpu.memory_space<vmem>>, vector<2x128xf32>,
    %c20_321 = arith.constant 20 : index
    %c0_322 = arith.constant 0 : index
    %1034 = vector.load %arg23[%c20_321, %c0_322] : memref<24x512xf32, #tpu.memory_space<vmem>>, vector<2x512xf32>
    %cst_323 = arith.constant dense<0.000000e+00> : vector<2x512xf32>
    %1035 = tpu.matmul %1032, %739, %cst_323 {dimension_numbers = #tpu.dot_dimension_numbers<[1], [0], [0], [1], [0, 0, 1, 1], [], []>} : vector<2x128xf32>, vector<128x512xf32>, vector<2x512xf32> -> vector<2x512xf32>
    %1036 = arith.addf %1034, %1035 : vector<2x512xf32>
    %1037 = vector.extract_strided_slice %1036 {offsets = [0, 0], sizes = [2, 128], strides = [1, 1]} : vector<2x512xf32> to vector<2x128xf32>
    %1038 = arith.negf %1037 : vector<2x128xf32>
    %1039 = math.exp %1038 : vector<2x128xf32>
    %cst_324 = arith.constant 1.000000e+00 : f32
    %1040 = vector.broadcast %cst_324 : f32 to vector<2x128xf32>
    %1041 = arith.addf %1040, %1039 : vector<2x128xf32>
    %1042 = arith.divf %1040, %1041 : vector<2x128xf32>
    %1043 = vector.extract_strided_slice %1036 {offsets = [0, 128], sizes = [2, 128], strides = [1, 1]} : vector<2x512xf32> to vector<2x128xf32>
    %1044 = arith.negf %1043 : vector<2x128xf32>
    %1045 = math.exp %1044 : vector<2x128xf32>
    %cst_325 = arith.constant 1.000000e+00 : f32
    %1046 = vector.broadcast %cst_325 : f32 to vector<2x128xf32>
    %1047 = arith.addf %1046, %1045 : vector<2x128xf32>
    %1048 = arith.divf %1046, %1047 : vector<2x128xf32>
    %1049 = vector.extract_strided_slice %1036 {offsets = [0, 256], sizes = [2, 128], strides = [1, 1]} : vector<2x512xf32> to vector<2x128xf32>
    %1050 = math.tanh %1049 : vector<2x128xf32>
    %1051 = vector.extract_strided_slice %1036 {offsets = [0, 384], sizes = [2, 128], strides = [1, 1]} : vector<2x512xf32> to vector<2x128xf32>
    %1052 = arith.negf %1051 : vector<2x128xf32>
    %1053 = math.exp %1052 : vector<2x128xf32>
    %cst_326 = arith.constant 1.000000e+00 : f32
    %1054 = vector.broadcast %cst_326 : f32 to vector<2x128xf32>
    %1055 = arith.addf %1054, %1053 : vector<2x128xf32>
    %1056 = arith.divf %1054, %1055 : vector<2x128xf32>
    %1057 = arith.mulf %1048, %1030 : vector<2x128xf32>
    %1058 = arith.mulf %1042, %1050 : vector<2x128xf32>
    %1059 = arith.addf %1057, %1058 : vector<2x128xf32>
    %1060 = math.tanh %1059 : vector<2x128xf32>
    %1061 = arith.mulf %1056, %1060 : vector<2x128xf32>
    %c20_327 = arith.constant 20 : index
    %c0_328 = arith.constant 0 : index
    %1062 = vector.load %arg24[%c20_327, %c0_328] : memref<24x128xf32, #tpu.memory_space<vmem>>, vector<2x128xf32>
    tpu.vector_store %arg24[%c20_327, %c0_328], %1061 {strides = array<i32>} : memref<24x128xf32, #tpu.memory_space<vmem>>, vector<2x128xf32>,
    %c22_329 = arith.constant 22 : index
    %c0_330 = arith.constant 0 : index
    %1063 = vector.load %arg23[%c22_329, %c0_330] : memref<24x512xf32, #tpu.memory_space<vmem>>, vector<2x512xf32>
    %cst_331 = arith.constant dense<0.000000e+00> : vector<2x512xf32>
    %1064 = tpu.matmul %1061, %739, %cst_331 {dimension_numbers = #tpu.dot_dimension_numbers<[1], [0], [0], [1], [0, 0, 1, 1], [], []>} : vector<2x128xf32>, vector<128x512xf32>, vector<2x512xf32> -> vector<2x512xf32>
    %1065 = arith.addf %1063, %1064 : vector<2x512xf32>
    %1066 = vector.extract_strided_slice %1065 {offsets = [0, 0], sizes = [2, 128], strides = [1, 1]} : vector<2x512xf32> to vector<2x128xf32>
    %1067 = arith.negf %1066 : vector<2x128xf32>
    %1068 = math.exp %1067 : vector<2x128xf32>
    %cst_332 = arith.constant 1.000000e+00 : f32
    %1069 = vector.broadcast %cst_332 : f32 to vector<2x128xf32>
    %1070 = arith.addf %1069, %1068 : vector<2x128xf32>
    %1071 = arith.divf %1069, %1070 : vector<2x128xf32>
    %1072 = vector.extract_strided_slice %1065 {offsets = [0, 128], sizes = [2, 128], strides = [1, 1]} : vector<2x512xf32> to vector<2x128xf32>
    %1073 = arith.negf %1072 : vector<2x128xf32>
    %1074 = math.exp %1073 : vector<2x128xf32>
    %cst_333 = arith.constant 1.000000e+00 : f32
    %1075 = vector.broadcast %cst_333 : f32 to vector<2x128xf32>
    %1076 = arith.addf %1075, %1074 : vector<2x128xf32>
    %1077 = arith.divf %1075, %1076 : vector<2x128xf32>
    %1078 = vector.extract_strided_slice %1065 {offsets = [0, 256], sizes = [2, 128], strides = [1, 1]} : vector<2x512xf32> to vector<2x128xf32>
    %1079 = math.tanh %1078 : vector<2x128xf32>
    %1080 = vector.extract_strided_slice %1065 {offsets = [0, 384], sizes = [2, 128], strides = [1, 1]} : vector<2x512xf32> to vector<2x128xf32>
    %1081 = arith.negf %1080 : vector<2x128xf32>
    %1082 = math.exp %1081 : vector<2x128xf32>
    %cst_334 = arith.constant 1.000000e+00 : f32
    %1083 = vector.broadcast %cst_334 : f32 to vector<2x128xf32>
    %1084 = arith.addf %1083, %1082 : vector<2x128xf32>
    %1085 = arith.divf %1083, %1084 : vector<2x128xf32>
    %1086 = arith.mulf %1077, %1059 : vector<2x128xf32>
    %1087 = arith.mulf %1071, %1079 : vector<2x128xf32>
    %1088 = arith.addf %1086, %1087 : vector<2x128xf32>
    %1089 = math.tanh %1088 : vector<2x128xf32>
    %1090 = arith.mulf %1085, %1089 : vector<2x128xf32>
    %c22_335 = arith.constant 22 : index
    %c0_336 = arith.constant 0 : index
    %1091 = vector.load %arg24[%c22_335, %c0_336] : memref<24x128xf32, #tpu.memory_space<vmem>>, vector<2x128xf32>
    tpu.vector_store %arg24[%c22_335, %c0_336], %1090 {strides = array<i32>} : memref<24x128xf32, #tpu.memory_space<vmem>>, vector<2x128xf32>,
    %c2_337 = arith.constant 2 : index
    %c0_338 = arith.constant 0 : index
    %c0_339 = arith.constant 0 : index
    %1092 = vector.load %arg21[%c2_337, %c0_338, %c0_339] : memref<3x2x128xf32, #tpu.memory_space<vmem>>, vector<1x2x128xf32>
    %1093 = vector.shape_cast %1092 : vector<1x2x128xf32> to vector<2x128xf32>
    %1094 = vector.shape_cast %1090 : vector<2x128xf32> to vector<1x2x128xf32>
    tpu.vector_store %arg21[%c2_337, %c0_338, %c0_339], %1094 {strides = array<i32>} : memref<3x2x128xf32, #tpu.memory_space<vmem>>, vector<1x2x128xf32>,
    %c2_340 = arith.constant 2 : index
    %c0_341 = arith.constant 0 : index
    %c0_342 = arith.constant 0 : index
    %1095 = vector.load %arg22[%c2_340, %c0_341, %c0_342] : memref<3x2x128xf32, #tpu.memory_space<vmem>>, vector<1x2x128xf32>
    %1096 = vector.shape_cast %1095 : vector<1x2x128xf32> to vector<2x128xf32>
    %1097 = vector.shape_cast %1088 : vector<2x128xf32> to vector<1x2x128xf32>
    tpu.vector_store %arg22[%c2_340, %c0_341, %c0_342], %1097 {strides = array<i32>} : memref<3x2x128xf32, #tpu.memory_space<vmem>>, vector<1x2x128xf32>,
    %c0_343 = arith.constant 0 : index
    %c0_344 = arith.constant 0 : index
    %1098 = vector.load %arg24[%c0_343, %c0_344] : memref<24x128xf32, #tpu.memory_space<vmem>>, vector<24x128xf32>
    %cst_345 = arith.constant dense<0.000000e+00> : vector<128xf32>
    %1099 = vector.multi_reduction <add>, %1098, %cst_345 [0] : vector<24x128xf32> to vector<128xf32>
    %1100 = vector.shape_cast %1099 : vector<128xf32> to vector<1x128xf32>
    %cst_346 = arith.constant 2.400000e+01 : f32
    %1101 = vector.broadcast %cst_346 : f32 to vector<1x128xf32>
    %1102 = arith.divf %1100, %1101 : vector<1x128xf32>
    %1103 = vector.broadcast %1102 : vector<1x128xf32> to vector<24x128xf32>
    %1104 = arith.subf %1098, %1103 : vector<24x128xf32>
    %1105 = arith.mulf %1104, %1104 : vector<24x128xf32>
    %cst_347 = arith.constant dense<0.000000e+00> : vector<128xf32>
    %1106 = vector.multi_reduction <add>, %1105, %cst_347 [0] : vector<24x128xf32> to vector<128xf32>
    %1107 = vector.shape_cast %1106 : vector<128xf32> to vector<1x128xf32>
    %cst_348 = arith.constant 2.400000e+01 : f32
    %1108 = vector.broadcast %cst_348 : f32 to vector<1x128xf32>
    %1109 = arith.divf %1107, %1108 : vector<1x128xf32>
    %1110 = vector.broadcast %1102 : vector<1x128xf32> to vector<24x128xf32>
    %1111 = arith.subf %1098, %1110 : vector<24x128xf32>
    %cst_349 = arith.constant 9.99999974E-6 : f32
    %1112 = vector.broadcast %cst_349 : f32 to vector<1x128xf32>
    %1113 = arith.addf %1109, %1112 : vector<1x128xf32>
    %1114 = math.rsqrt %1113 : vector<1x128xf32>
    %1115 = vector.broadcast %1114 : vector<1x128xf32> to vector<24x128xf32>
    %1116 = arith.mulf %1111, %1115 : vector<24x128xf32>
    %c0_350 = arith.constant 0 : index
    %c0_351 = arith.constant 0 : index
    %1117 = vector.load %arg12[%c0_350, %c0_351] : memref<1x128xf32, #tpu.memory_space<vmem>>, vector<1x128xf32>
    %1118 = vector.broadcast %1117 : vector<1x128xf32> to vector<24x128xf32>
    %1119 = arith.mulf %1116, %1118 : vector<24x128xf32>
    %c0_352 = arith.constant 0 : index
    %c0_353 = arith.constant 0 : index
    %1120 = vector.load %arg13[%c0_352, %c0_353] : memref<1x128xf32, #tpu.memory_space<vmem>>, vector<1x128xf32>
    %1121 = vector.broadcast %1120 : vector<1x128xf32> to vector<24x128xf32>
    %1122 = arith.addf %1119, %1121 : vector<24x128xf32>
    %cst_354 = arith.constant 0.000000e+00 : f32
    %1123 = vector.broadcast %cst_354 : f32 to vector<24x128xf32>
    %1124 = arith.maximumf %1122, %1123 : vector<24x128xf32>
    %c0_355 = arith.constant 0 : index
    %c0_356 = arith.constant 0 : index
    %1125 = vector.load %arg14[%c0_355, %c0_356] : memref<128x512xf32, #tpu.memory_space<vmem>>, vector<128x512xf32>
    %cst_357 = arith.constant dense<0.000000e+00> : vector<24x512xf32>
    %1126 = tpu.matmul %1124, %1125, %cst_357 {dimension_numbers = #tpu.dot_dimension_numbers<[1], [0], [0], [1], [0, 0, 1, 1], [], []>} : vector<24x128xf32>, vector<128x512xf32>, vector<24x512xf32> -> vector<24x512xf32>
    %c0_358 = arith.constant 0 : index
    %c0_359 = arith.constant 0 : index
    %1127 = vector.load %arg15[%c0_358, %c0_359] : memref<1x512xf32, #tpu.memory_space<vmem>>, vector<1x512xf32>
    %1128 = vector.broadcast %1127 : vector<1x512xf32> to vector<24x512xf32>
    %1129 = arith.addf %1126, %1128 : vector<24x512xf32>
    %cst_360 = arith.constant dense<0.000000e+00> : vector<512xf32>
    %1130 = vector.multi_reduction <add>, %1129, %cst_360 [0] : vector<24x512xf32> to vector<512xf32>
    %1131 = vector.shape_cast %1130 : vector<512xf32> to vector<1x512xf32>
    %cst_361 = arith.constant 2.400000e+01 : f32
    %1132 = vector.broadcast %cst_361 : f32 to vector<1x512xf32>
    %1133 = arith.divf %1131, %1132 : vector<1x512xf32>
    %1134 = vector.broadcast %1133 : vector<1x512xf32> to vector<24x512xf32>
    %1135 = arith.subf %1129, %1134 : vector<24x512xf32>
    %1136 = arith.mulf %1135, %1135 : vector<24x512xf32>
    %cst_362 = arith.constant dense<0.000000e+00> : vector<512xf32>
    %1137 = vector.multi_reduction <add>, %1136, %cst_362 [0] : vector<24x512xf32> to vector<512xf32>
    %1138 = vector.shape_cast %1137 : vector<512xf32> to vector<1x512xf32>
    %cst_363 = arith.constant 2.400000e+01 : f32
    %1139 = vector.broadcast %cst_363 : f32 to vector<1x512xf32>
    %1140 = arith.divf %1138, %1139 : vector<1x512xf32>
    %1141 = vector.broadcast %1133 : vector<1x512xf32> to vector<24x512xf32>
    %1142 = arith.subf %1129, %1141 : vector<24x512xf32>
    %cst_364 = arith.constant 9.99999974E-6 : f32
    %1143 = vector.broadcast %cst_364 : f32 to vector<1x512xf32>
    %1144 = arith.addf %1140, %1143 : vector<1x512xf32>
    %1145 = math.rsqrt %1144 : vector<1x512xf32>
    %1146 = vector.broadcast %1145 : vector<1x512xf32> to vector<24x512xf32>
    %1147 = arith.mulf %1142, %1146 : vector<24x512xf32>
    %c0_365 = arith.constant 0 : index
    %c0_366 = arith.constant 0 : index
    %1148 = vector.load %arg16[%c0_365, %c0_366] : memref<1x512xf32, #tpu.memory_space<vmem>>, vector<1x512xf32>
    %1149 = vector.broadcast %1148 : vector<1x512xf32> to vector<24x512xf32>
    %1150 = arith.mulf %1147, %1149 : vector<24x512xf32>
    %c0_367 = arith.constant 0 : index
    %c0_368 = arith.constant 0 : index
    %1151 = vector.load %arg17[%c0_367, %c0_368] : memref<1x512xf32, #tpu.memory_space<vmem>>, vector<1x512xf32>
    %1152 = vector.broadcast %1151 : vector<1x512xf32> to vector<24x512xf32>
    %1153 = arith.addf %1150, %1152 : vector<24x512xf32>
    %cst_369 = arith.constant 0.000000e+00 : f32
    %1154 = vector.broadcast %cst_369 : f32 to vector<24x512xf32>
    %1155 = arith.maximumf %1153, %1154 : vector<24x512xf32>
    %c0_370 = arith.constant 0 : index
    %c0_371 = arith.constant 0 : index
    %1156 = vector.load %arg25[%c0_370, %c0_371] : memref<24x512xf32, #tpu.memory_space<vmem>>, vector<24x512xf32>
    tpu.vector_store %arg25[%c0_370, %c0_371], %1155 {strides = array<i32>} : memref<24x512xf32, #tpu.memory_space<vmem>>, vector<24x512xf32>,
    %c22_372 = arith.constant 22 : index
    %c0_373 = arith.constant 0 : index
    %1157 = vector.load %arg25[%c22_372, %c0_373] : memref<24x512xf32, #tpu.memory_space<vmem>>, vector<2x512xf32>
    %c0_374 = arith.constant 0 : index
    %c0_375 = arith.constant 0 : index
    %1158 = vector.load %arg18[%c0_374, %c0_375] : memref<512x128xf32, #tpu.memory_space<vmem>>, vector<512x128xf32>
    %cst_376 = arith.constant dense<0.000000e+00> : vector<2x128xf32>
    %1159 = tpu.matmul %1157, %1158, %cst_376 {dimension_numbers = #tpu.dot_dimension_numbers<[1], [0], [0], [1], [0, 0, 1, 1], [], []>} : vector<2x512xf32>, vector<512x128xf32>, vector<2x128xf32> -> vector<2x128xf32>
    %c0_377 = arith.constant 0 : index
    %c0_378 = arith.constant 0 : index
    %1160 = vector.load %arg19[%c0_377, %c0_378] : memref<1x128xf32, #tpu.memory_space<vmem>>, vector<1x128xf32>
    %1161 = vector.broadcast %1160 : vector<1x128xf32> to vector<2x128xf32>
    %1162 = arith.addf %1159, %1161 : vector<2x128xf32>
    %c0_379 = arith.constant 0 : index
    %c0_380 = arith.constant 0 : index
    %1163 = vector.load %arg20[%c0_379, %c0_380] : memref<2x128xf32, #tpu.memory_space<vmem>>, vector<2x128xf32>
    tpu.vector_store %arg20[%c0_379, %c0_380], %1162 {strides = array<i32>} : memref<2x128xf32, #tpu.memory_space<vmem>>, vector<2x128xf32>,
    return
  }
}

</mosaic_0001>

<bundles_post_ra>
// kernel: dynamics_model_forward.1
= control target key start
LH: loop header
LB: loop body
LE: loop exit
PB: predicated region body
PF: predicated region fallthrough
CT: control target
= control target key end

     0   :  { %s15060_s0 = inlined_call_operand.vmem [shape: f32[24,62], index: 0, kind: input, shape index: {}]   ;;  %s15061_s1 = inlined_call_operand.hbm [shape: f32[62,512], index: 1, kind: input, shape index: {}]   ;;  %s15062_s2 = inlined_call_operand.vmem [shape: f32[128,512], index: 2, kind: input, shape index: {}]   ;;  %s15063_s3 = inlined_call_operand.vmem [shape: f32[1,512], index: 3, kind: input, shape index: {}]   ;;  %s15064_s4 = inlined_call_operand.vmem [shape: f32[128,512], index: 4, kind: input, shape index: {}]   ;;  %s15065_s5 = inlined_call_operand.vmem [shape: f32[128,512], index: 5, kind: input, shape index: {}]   ;;  %s15066_s6 = inlined_call_operand.vmem [shape: f32[1,512], index: 6, kind: input, shape index: {}]   ;;  %s15067_s7 = inlined_call_operand.hbm [shape: f32[128,512], index: 7, kind: input, shape index: {}]   ;;  %s15068_s8 = inlined_call_operand.hbm [shape: f32[128,512], index: 8, kind: input, shape index: {}]   ;;  %s15069_s9 = inlined_call_operand.hbm [shape: f32[1,512], index: 9, kind: input, shape index: {}]   ;;  %s15070_s10 = inlined_call_operand.vmem [shape: f32[3,2,128], index: 10, kind: input, shape index: {}]   ;;  %s15071_s11 = inlined_call_operand.vmem [shape: f32[3,2,128], index: 11, kind: input, shape index: {}]   ;;  %s15072_s12 = inlined_call_operand.vmem [shape: f32[1,128], index: 12, kind: input, shape index: {}]   ;;  %s15073_s13 = inlined_call_operand.vmem [shape: f32[1,128], index: 13, kind: input, shape index: {}]   ;;  %s15074_s14 = inlined_call_operand.hbm [shape: f32[128,512], index: 14, kind: input, shape index: {}]   ;;  %s15075_s15 = inlined_call_operand.vmem [shape: f32[1,512], index: 15, kind: input, shape index: {}]   ;;  %s15076_s16 = inlined_call_operand.vmem [shape: f32[1,512], index: 16, kind: input, shape index: {}]   ;;  %s15077_s17 = inlined_call_operand.vmem [shape: f32[1,512], index: 17, kind: input, shape index: {}]   ;;  %s15078_s18 = inlined_call_operand.vmem [shape: f32[512,128], index: 18, kind: input, shape index: {}]   ;;  %s15079_s19 = inlined_call_operand.vmem [shape: f32[1,128], index: 19, kind: input, shape index: {}]   ;;  %s15080_s20 = inlined_call_operand.hbm [shape: f32[2,128], index: 20, kind: output, shape index: {0}]   ;;  %s15081_s21 = inlined_call_operand.hbm [shape: f32[3,2,128], index: 21, kind: output, shape index: {1}]   ;;  %s15082_s22 = inlined_call_operand.hbm [shape: f32[3,2,128], index: 22, kind: output, shape index: {2}]  }
   0x1   :  { %15090 = sst [smem:[#allocation23_spill]] %s15060_s0 }
   0x2   :  { %15091 = sst [smem:[#allocation24_spill]] %s15061_s1 }
   0x3   :  { %15092 = sst [smem:[#allocation25_spill]] %s15062_s2 }
   0x4   :  { %15093 = sst [smem:[#allocation26_spill]] %s15063_s3 }
   0x5   :  { %15094 = sst [smem:[#allocation27_spill]] %s15064_s4 }
   0x6   :  { %15095 = sst [smem:[#allocation28_spill]] %s15065_s5 }
   0x7   :  { %15096 = sst [smem:[#allocation29_spill]] %s15066_s6 }
   0x8   :  { %28 = vsyncpa [#allocation6], 0 }
   0x9   :  { %29 = vsyncpa [#allocation9], 0 }
   0xa   :  { %30 = vsyncpa [#allocation12], 0 }
   0xb   :  { %31 = vsyncpa [#allocation7], 0 }
   0xc   :  { %32 = vsyncpa [#allocation16], 0  ;;  %s12303_s3 = smov [#allocation8]   ;;  %s12304_s29 = smov [#allocation11]  }
   0xd   :  { %s62_s28 = sshll.u32 %s12303_s3, 4  ;;  %s87_s30 = sshll.u32 %s12304_s29, 4  ;;  %s63_s28 = int_to_ptr.vmem [resolvable:$true] %s62_s28  ;;  %s88_s30 = int_to_ptr.vmem [resolvable:$true] %s87_s30 }
   0xe   :  { %s12117_s23 = scalar_lea.hbm %s15067_s7, 8192 }
   0xf   :  { %p12118_p0 = scmp.ne.s32.totalorder %s15067_s7, %s12117_s23  ;;  %p12121_p1 = scmp.lt.u32.totalorder %s12117_s23, %s15067_s7 }
  0x11   :  { %p12123_p2 = pnand %p12121_p1, %p12118_p0 }
  0x13   :  { %12126 = shalt.err (!%p12123_p2)
}
  0x14   :  { %s12127_s25 = scalar_lea.vmem %s63_s28, 8192  ;;  %p12132_p4 = scmp.lt.s32.totalorder %s63_s28, %s63_s28 }
  0x15   :  { %p12128_p3 = scmp.ne.s32.totalorder %s63_s28, %s12127_s25  ;;  %p12133_p5 = scmp.lt.s32.totalorder %s12127_s25, %s12127_s25 }
  0x17   :  { %p12134_p6 = por %p12133_p5, %p12132_p4 }
  0x19   :  { %p12135_p7 = pnand %p12134_p6, %p12128_p3 }
  0x1b   :  { %12138 = shalt.err (!%p12135_p7)
}
  0x1c   :  { %s15088_s26 = smov 512   ;;  %s12306_s2 = smov 32  }
  0x1d   :  { %68 = dma.hbm_to_vmem [thread:$0]  %s15067_s7, 8192, %s63_s28, [#allocation9], %s15088_s26, %s15088_s26, %s12306_s2  }
  0x1e   :  { %s12139_s0 = scalar_lea.hbm %s15069_s9, 64 }
  0x1f   :  { %p12140_p8 = scmp.ne.s32.totalorder %s15069_s9, %s12139_s0  ;;  %p12143_p9 = scmp.lt.u32.totalorder %s12139_s0, %s15069_s9 }
  0x21   :  { %p12145_p10 = pnand %p12143_p9, %p12140_p8 }
  0x23   :  { %12148 = shalt.err (!%p12145_p10)
}
  0x24   :  { %s12149_s6 = scalar_lea.vmem %s88_s30, 64  ;;  %p12154_p12 = scmp.lt.s32.totalorder %s88_s30, %s88_s30 }
  0x25   :  { %p12150_p11 = scmp.ne.s32.totalorder %s88_s30, %s12149_s6  ;;  %p12155_p13 = scmp.lt.s32.totalorder %s12149_s6, %s12149_s6 }
  0x27   :  { %p12156_p0 = por %p12155_p13, %p12154_p12 }
  0x29   :  { %p12157_p1 = pnand %p12156_p0, %p12150_p11 }
  0x2b   :  { %12160 = shalt.err (!%p12157_p1)
}
  0x2c   :  { %90 = dma.hbm_to_vmem [thread:$0]  %s15069_s9, 64, %s88_s30, [#allocation12]  }
  0x2d   :  { %s12307_s25 = smov [#allocation5]   ;;  %s12308_s3 = smov [#allocation10]  }
  0x2e   :  { %s40_s27 = sshll.u32 %s12307_s25, 4  ;;  %s74_s29 = sshll.u32 %s12308_s3, 4  ;;  %s41_s27 = int_to_ptr.vmem [resolvable:$true] %s40_s27  ;;  %s12458_s29 = int_to_ptr.vmem [resolvable:$true] %s74_s29 }
  0x2f   :  { %s15097_s23 = sld [smem:[#allocation24_spill]] }
  0x35   :  { %s12161_s1 = scalar_lea.hbm %s15097_s23, 4096 }
  0x36   :  { %p12162_p2 = scmp.ne.s32.totalorder %s15097_s23, %s12161_s1  ;;  %p12165_p3 = scmp.lt.u32.totalorder %s12161_s1, %s15097_s23 }
  0x38   :  { %p12167_p4 = pnand %p12165_p3, %p12162_p2 }
  0x3a   :  { %12170 = shalt.err (!%p12167_p4)
}
  0x3b   :  { %s12171_s9 = scalar_lea.vmem %s41_s27, 4096  ;;  %p12176_p6 = scmp.lt.s32.totalorder %s41_s27, %s41_s27 }
  0x3c   :  { %p12172_p5 = scmp.ne.s32.totalorder %s41_s27, %s12171_s9  ;;  %p12177_p7 = scmp.lt.s32.totalorder %s12171_s9, %s12171_s9 }
  0x3e   :  { %p12178_p8 = por %p12177_p7, %p12176_p6 }
  0x40   :  { %p12179_p9 = pnand %p12178_p8, %p12172_p5 }
  0x42   :  { %12182 = shalt.err (!%p12179_p9)
}
  0x43   :  { %s15098_s30 = smov 512   ;;  %s12183_s26 = scalar_lea.hbm %s15068_s8, 8192 }
  0x44   :  { %46 = dma.hbm_to_vmem [thread:$0]  %s15097_s23, 4096, %s41_s27, [#allocation6], %s15098_s30, %s15098_s30, %s12306_s2  }
  0x45   :  { %p12184_p10 = scmp.ne.s32.totalorder %s15068_s8, %s12183_s26  ;;  %p12187_p11 = scmp.lt.u32.totalorder %s12183_s26, %s15068_s8 }
  0x47   :  { %p12189_p12 = pnand %p12187_p11, %p12184_p10 }
  0x49   :  { %12192 = shalt.err (!%p12189_p12)
}
  0x4a   :  { %s12193_s24 = scalar_lea.vmem %s12458_s29, 8192  ;;  %p12198_p0 = scmp.lt.s32.totalorder %s12458_s29, %s12458_s29 }
  0x4b   :  { %p12194_p13 = scmp.ne.s32.totalorder %s12458_s29, %s12193_s24  ;;  %p12199_p1 = scmp.lt.s32.totalorder %s12193_s24, %s12193_s24 }
  0x4d   :  { %p12200_p2 = por %p12199_p1, %p12198_p0 }
  0x4f   :  { %p12201_p3 = pnand %p12200_p2, %p12194_p13 }
  0x51   :  { %12204 = shalt.err (!%p12201_p3)
}
  0x52   :  { %80 = dma.hbm_to_vmem [thread:$0]  %s15068_s8, 8192, %s12458_s29, [#allocation9], %s15098_s30, %s15098_s30, %s12306_s2  }
  0x53   :  { %s12309_s6 = smov [#allocation13]   ;;  %s12205_s25 = scalar_lea.hbm %s15074_s14, 8192 }
  0x54   :  { %s104_s9 = sshll.u32 %s12309_s6, 4  ;;  %p12206_p4 = scmp.ne.s32.totalorder %s15074_s14, %s12205_s25  ;;  %s105_s9 = int_to_ptr.vmem [resolvable:$true] %s104_s9 }
  0x55   :  { %p12209_p5 = scmp.lt.u32.totalorder %s12205_s25, %s15074_s14 }
  0x57   :  { %p12211_p6 = pnand %p12209_p5, %p12206_p4 }
  0x59   :  { %12214 = shalt.err (!%p12211_p6)
}
  0x5a   :  { %s12215_s1 = scalar_lea.vmem %s105_s9, 8192  ;;  %p12220_p8 = scmp.lt.s32.totalorder %s105_s9, %s105_s9 }
  0x5b   :  { %p12216_p7 = scmp.ne.s32.totalorder %s105_s9, %s12215_s1  ;;  %p12221_p9 = scmp.lt.s32.totalorder %s12215_s1, %s12215_s1 }
  0x5d   :  { %p12222_p10 = por %p12221_p9, %p12220_p8 }
  0x5f   :  { %p12223_p11 = pnand %p12222_p10, %p12216_p7 }
  0x61   :  { %12226 = shalt.err (!%p12223_p11)
}
  0x62   :  { %110 = dma.hbm_to_vmem [thread:$0]  %s15074_s14, 8192, %s105_s9, [#allocation12], %s15098_s30, %s15098_s30, %s12306_s2  }
  0x63   :  { %12293 = dma.done.wait [#allocation6], 4096  }
  0x64   :  { %12294 = vsyncadd [#allocation6], 4294963200 }
  0x65   :  { %12295 = dma.done.wait [#allocation9], 16384  }
  0x66   :  { %12296 = vsyncadd [#allocation9], 4294950912 }
  0x67   :  { %12297 = dma.done.wait [#allocation12], 8256  }
  0x68   :  { %12298 = vsyncadd [#allocation12], 4294959040  ;;  %v12310_v0 = vmov 0.0   ;;  %v140_v1 = vld [vmem:[#allocation5 + $0x8] sm:$0xff]  ;;  %v142_v3 = vld [vmem:[#allocation5 + $0x18] sm:$0xff]  ;;  %vm203_vm0 = vcmask 1045504  }
  0x69   :  { %280 = vmatprep.mubr.f32.mxu0 %v12310_v0  ;;  %363 = vmatprep.mubr.f32.mxu1 %v12310_v0  ;;  %v144_v2 = vld [vmem:[#allocation5 + $0x28] sm:$0xff]  ;;  %v146_v5 = vld [vmem:[#allocation5 + $0x38] sm:$0xff]  ;;  %v139_v6 = vld [vmem:[#allocation5] sm:$0xff]  ;;  %vm12311_vm1 = vmmov 1   ;;  %s15101_s5 = sld [smem:[#allocation25_spill]]  ;;  %s15102_s25 = sld [smem:[#allocation23_spill]] }
  0x6a   :  { %v8922_v4 = vpack.c.bf16 %v144_v2, %v140_v1  ;;  %v143_v7 = vld [vmem:[#allocation5 + $0x20] sm:$0xff]  ;;  %v8940_v8 = vpack.c.bf16 %v146_v5, %v142_v3  ;;  %v141_v10 = vld [vmem:[#allocation5 + $0x10] sm:$0xff]  ;;  %v148_v12 = vld [vmem:[#allocation5 + $0x48] sm:$0xff]  ;;  %vm193_vm3 = vcmask 506880   ;;  %s15103_s6 = sld [smem:[#allocation26_spill]]  ;;  %s15104_s26 = sld [smem:[#allocation27_spill]] }
  0x6b   :  { %v8924_v9 = vpack.c.bf16 %v143_v7, %v139_v6  ;;  %v145_v11 = vld [vmem:[#allocation5 + $0x30] sm:$0xff]  ;;  %v152_v14 = vld [vmem:[#allocation5 + $0x68] sm:$0xff]  ;;  %v150_v15 = vld [vmem:[#allocation5 + $0x58] sm:$0xff]  ;;  %s15105_s24 = sld [smem:[#allocation28_spill]]  ;;  %s15106_s4 = sld [smem:[#allocation29_spill]] }
  0x6c   :  { %8923 = vmatprep.subr.bf16.mxu0 %v8922_v4  ;;  %v8942_v13 = vpack.c.bf16 %v145_v11, %v141_v10  ;;  %v154_v16 = vld [vmem:[#allocation5 + $0x78] sm:$0xff]  ;;  %8941 = vmatprep.subr.bf16.mxu1 %v8940_v8  ;;  %v8926_v17 = vpack.c.bf16 %v152_v14, %v148_v12  ;;  %v147_v19 = vld [vmem:[#allocation5 + $0x40] sm:$0xff]  ;;  %v149_v21 = vld [vmem:[#allocation5 + $0x50] sm:$0xff] }
  0x6d   :  { %8925 = vmatpush1.bf16.msra.mxu0 %v8924_v9  ;;  %v8944_v18 = vpack.c.bf16 %v154_v16, %v150_v15  ;;  %v151_v20 = vld [vmem:[#allocation5 + $0x60] sm:$0xff]  ;;  %v153_v23 = vld [vmem:[#allocation5 + $0x70] sm:$0xff]  ;;  %v156_v24 = vld [vmem:[#allocation5 + $0x88] sm:$0xff] }
  0x6e   :  { %8943 = vmatpush1.bf16.msra.mxu1 %v8942_v13  ;;  %v8928_v22 = vpack.c.bf16 %v151_v20, %v147_v19  ;;  %v160_v25 = vld [vmem:[#allocation5 + $0xa8] sm:$0xff]  ;;  %8927 = vmatprep.subr.bf16.mxu0 %v8926_v17  ;;  %v8946_v26 = vpack.c.bf16 %v153_v23, %v149_v21  ;;  %v158_v28 = vld [vmem:[#allocation5 + $0x98] sm:$0xff]  ;;  %v155_v30 = vld [vmem:[#allocation5 + $0x80] sm:$0xff] }
  0x6f   :  { %8945 = vmatprep.subr.bf16.mxu1 %v8944_v18  ;;  %v8930_v27 = vpack.c.bf16 %v160_v25, %v156_v24  ;;  %v162_v29 = vld [vmem:[#allocation5 + $0xb8] sm:$0xff]  ;;  %v159_v32 = vld [vmem:[#allocation5 + $0xa0] sm:$0xff]  ;;  %v157_v33 = vld [vmem:[#allocation5 + $0x90] sm:$0xff] }
  0x70   :  { %v8948_v31 = vpack.c.bf16 %v162_v29, %v158_v28  ;;  %v161_v34 = vld [vmem:[#allocation5 + $0xb0] sm:$0xff]  ;;  %v8932_v35 = vpack.c.bf16 %v159_v32, %v155_v30  ;;  %v164_v36 = vld [vmem:[#allocation5 + $0xc8] sm:$0xff]  ;;  %v166_v38 = vld [vmem:[#allocation5 + $0xd8] sm:$0xff] }
  0x71   :  { %8929 = vmatpush1.bf16.msra.mxu0 %v8928_v22  ;;  %v168_v37 = vld [vmem:[#allocation5 + $0xe8] sm:$0x3f]  ;;  %v8950_v39 = vpack.c.bf16 %v161_v34, %v157_v33  ;;  %v170_v41 = vld [vmem:[#allocation5 + $0xf8] sm:$0x3f]  ;;  %v163_v42 = vld [vmem:[#allocation5 + $0xc0] sm:$0xff] }
  0x72   :  { %8947 = vmatpush1.bf16.msra.mxu1 %v8946_v26  ;;  %8931 = vmatprep.subr.bf16.mxu0 %v8930_v27  ;;  %v8934_v40 = vpack.c.bf16 %v168_v37, %v164_v36  ;;  %v167_v43 = vld [vmem:[#allocation5 + $0xe0] sm:$0x3f]  ;;  %vm12513_vm2 = vmpackc.low %vm203_vm0, %vm12311_vm1  ;;  %v8952_v45 = vpack.c.bf16 %v170_v41, %v166_v38  ;;  %v165_v46 = vld [vmem:[#allocation5 + $0xd0] sm:$0xff] }
  0x73   :  { %8949 = vmatprep.subr.bf16.mxu1 %v8948_v31  ;;  %v169_v47 = vld [vmem:[#allocation5 + $0xf0] sm:$0x3f]  ;;  %v397_v50 = vld [vmem:[%s15101_s5 + $0x18] sm:$0xff]  ;;  %v8937_v51 = vpack.c.bf16 %v167_v43, %v163_v42  ;;  %v394_v55 = vld [vmem:[%s15101_s5] sm:$0xff] }
  0x74   :  { %v395_v48 = vld [vmem:[%s15101_s5 + $0x8] sm:$0xff]  ;;  %v401_v52 = vld [vmem:[%s15101_s5 + $0x38] sm:$0xff]  ;;  %v8955_v53 = vpack.c.bf16 %v169_v47, %v165_v46  ;;  %v398_v56 = vld [vmem:[%s15101_s5 + $0x20] sm:$0xff] }
  0x75   :  { %v399_v49 = vld [vmem:[%s15101_s5 + $0x28] sm:$0xff]  ;;  %8933 = vmatpush1.bf16.msra.mxu0 %v8932_v35  ;;  %v396_v57 = vld [vmem:[%s15101_s5 + $0x10] sm:$0xff]  ;;  %v12544_v58 = vpack.c.bf16 %v401_v52, %v397_v50  ;;  %v405_v62 = vld [vmem:[%s15101_s5 + $0x58] sm:$0xff]  ;;  %v12566_v2 = vpack.c.bf16 %v398_v56, %v394_v55 }
  0x76   :  { %8951 = vmatpush1.bf16.msra.mxu1 %v8950_v39  ;;  %8936 = vmatprep.subr.msk.bf16.mxu0 %vm12513_vm2, %v8934_v40  ;;  %v12531_v54 = vpack.c.bf16 %v399_v49, %v395_v48  ;;  %v400_v59 = vld [vmem:[%s15101_s5 + $0x30] sm:$0xff]  ;;  %v403_v60 = vld [vmem:[%s15101_s5 + $0x48] sm:$0xff]  ;;  %v409_v63 = vld [vmem:[%s15101_s5 + $0x78] sm:$0xff] }
  0x77   :  { %8954 = vmatprep.subr.msk.bf16.mxu1 %vm12513_vm2, %v8952_v45  ;;  %v407_v61 = vld [vmem:[%s15101_s5 + $0x68] sm:$0xff]  ;;  %v136_v1 = vld [vmem:[%s15102_s25] sm:$0xff]  ;;  %v12571_v3 = vpack.c.bf16 %v400_v59, %v396_v57  ;;  %v404_v7 = vld [vmem:[%s15101_s5 + $0x50] sm:$0xff]  ;;  %v12585_v8 = vpack.c.bf16 %v409_v63, %v405_v62 }
  0x78   :  { %v12573_v4 = vpack.c.bf16 %v407_v61, %v403_v60  ;;  %v402_v5 = vld [vmem:[%s15101_s5 + $0x40] sm:$0xff]  ;;  %v408_v9 = vld [vmem:[%s15101_s5 + $0x70] sm:$0xff]  ;;  %v411_v10 = vld [vmem:[%s15101_s5 + $0x88] sm:$0xff] }
  0x79   :  { %8939 = vmatpush1.bf16.msk.msra.mxu0 %vm12513_vm2, %v8937_v51  ;;  %v406_v6 = vld [vmem:[%s15101_s5 + $0x60] sm:$0xff]  ;;  %v415_v11 = vld [vmem:[%s15101_s5 + $0xa8] sm:$0xff]  ;;  %v413_v12 = vld [vmem:[%s15101_s5 + $0x98] sm:$0xff]  ;;  %v12609_v15 = vpack.c.bf16 %v408_v9, %v404_v7 }
  0x7a   :  { %8957 = vmatpush1.bf16.msk.msra.mxu1 %vm12513_vm2, %v8955_v53  ;;  %8959 = vmatprep.subr.bf16.mxu0 %v12531_v54  ;;  %v417_v13 = vld [vmem:[%s15101_s5 + $0xb8] sm:$0xff]  ;;  %v12605_v14 = vpack.c.bf16 %v406_v6, %v402_v5  ;;  %v12611_v16 = vpack.c.bf16 %v415_v11, %v411_v10  ;;  %v410_v17 = vld [vmem:[%s15101_s5 + $0x80] sm:$0xff]  ;;  %v412_v19 = vld [vmem:[%s15101_s5 + $0x90] sm:$0xff] }
  0x7b   :  { %8991 = vmatprep.subr.bf16.mxu1 %v12544_v58  ;;  %v414_v18 = vld [vmem:[%s15101_s5 + $0xa0] sm:$0xff]  ;;  %v12623_v20 = vpack.c.bf16 %v417_v13, %v413_v12  ;;  %v416_v21 = vld [vmem:[%s15101_s5 + $0xb0] sm:$0xff]  ;;  %v419_v22 = vld [vmem:[%s15101_s5 + $0xc8] sm:$0xff] }
  0x7c   :  { %8729 = vmatmul.mubr.msk.f32.vlgmr.msra.gmra.mrb[0].mxu0 %vm193_vm3, %v136_v1  ;;  %v423_v23 = vld [vmem:[%s15101_s5 + $0xe8] sm:$0xff]  ;;  %v421_v24 = vld [vmem:[%s15101_s5 + $0xd8] sm:$0xff]  ;;  %v12643_v26 = vpack.c.bf16 %v414_v18, %v410_v17  ;;  %v12647_v27 = vpack.c.bf16 %v416_v21, %v412_v19  ;;  %v418_v29 = vld [vmem:[%s15101_s5 + $0xc0] sm:$0xff] }
  0x7d   :  { %8734 = vmatmul.mubr.msk.f32.vlgmr.msra.gmra.mrb[0].mxu1 %vm193_vm3, %v136_v1  ;;  %8961 = vmatpush1.bf16.msra.mxu0 %v12566_v2  ;;  %v425_v25 = vld [vmem:[%s15101_s5 + $0xf8] sm:$0xff]  ;;  %v12649_v28 = vpack.c.bf16 %v423_v23, %v419_v22  ;;  %v422_v30 = vld [vmem:[%s15101_s5 + $0xe0] sm:$0xff]  ;;  %v420_v31 = vld [vmem:[%s15101_s5 + $0xd0] sm:$0xff] }
  0x7e   :  { %8993 = vmatpush1.bf16.msra.mxu1 %v12571_v3  ;;  %8963 = vmatprep.subr.bf16.mxu0 %v12573_v4  ;;  %v12661_v32 = vpack.c.bf16 %v425_v25, %v421_v24  ;;  %v424_v33 = vld [vmem:[%s15101_s5 + $0xf0] sm:$0xff]  ;;  %v427_v34 = vld [vmem:[%s15101_s5 + $0x108] sm:$0xff]  ;;  %v429_v36 = vld [vmem:[%s15101_s5 + $0x118] sm:$0xff]  ;;  %v12682_v39 = vpack.c.bf16 %v422_v30, %v418_v29 }
  0x7f   :  { %8995 = vmatprep.subr.bf16.mxu1 %v12585_v8  ;;  %286 = vmatprep.mubr.f32.mxu0 %v12310_v0  ;;  %v431_v35 = vld [vmem:[%s15101_s5 + $0x128] sm:$0xff]  ;;  %v433_v37 = vld [vmem:[%s15101_s5 + $0x138] sm:$0xff]  ;;  %v426_v40 = vld [vmem:[%s15101_s5 + $0x100] sm:$0xff]  ;;  %v12690_v41 = vpack.c.bf16 %v424_v33, %v420_v31 }
  0x80   :  { %369 = vmatprep.mubr.f32.mxu1 %v12310_v0  ;;  %v137_v38 = vld [vmem:[%s15102_s25 + $0x8] sm:$0xff]  ;;  %v12692_v42 = vpack.c.bf16 %v431_v35, %v427_v34  ;;  %v430_v43 = vld [vmem:[%s15101_s5 + $0x120] sm:$0xff]  ;;  %v428_v44 = vld [vmem:[%s15101_s5 + $0x110] sm:$0xff]  ;;  %v12704_v46 = vpack.c.bf16 %v433_v37, %v429_v36 }
  0x81   :  { %8965 = vmatpush1.bf16.msra.mxu0 %v12605_v14  ;;  %8735 = vmatmul.mubr.msk.f32.gmra.mrb[2].mxu1 %vm193_vm3, %v137_v38  ;;  %v432_v45 = vld [vmem:[%s15101_s5 + $0x130] sm:$0xff]  ;;  %v435_v47 = vld [vmem:[%s15101_s5 + $0x148] sm:$0xff]  ;;  %v437_v50 = vld [vmem:[%s15101_s5 + $0x158] sm:$0xff]  ;;  %v12725_v52 = vpack.c.bf16 %v430_v43, %v426_v40 }
  0x82   :  { %8997 = vmatpush1.bf16.msra.mxu1 %v12609_v15  ;;  %8967 = vmatprep.subr.bf16.mxu0 %v12611_v16  ;;  %v439_v48 = vld [vmem:[%s15101_s5 + $0x168] sm:$0xff]  ;;  %v138_v49 = vld [vmem:[%s15102_s25 + $0x10] sm:$0xff]  ;;  %v441_v51 = vld [vmem:[%s15101_s5 + $0x178] sm:$0xff]  ;;  %v12730_v53 = vpack.c.bf16 %v432_v45, %v428_v44 }
  0x83   :  { %8999 = vmatprep.subr.bf16.mxu1 %v12623_v20  ;;  %8730 = vmatmul.mubr.msk.f32.gmra.mrb[2].mxu0 %vm193_vm3, %v137_v38  ;;  %v12732_v55 = vpack.c.bf16 %v439_v48, %v435_v47  ;;  %v434_v56 = vld [vmem:[%s15101_s5 + $0x140] sm:$0xff]  ;;  %v436_v59 = vld [vmem:[%s15101_s5 + $0x150] sm:$0xff]  ;;  %v12744_v60 = vpack.c.bf16 %v441_v51, %v437_v50  ;;  %v443_v62 = vld [vmem:[%s15101_s5 + $0x188] sm:$0xff]  ;;  %v173_v38 = vlaneseq }
  0x84   :  { %292 = vmatprep.mubr.f32.mxu0 %v12310_v0  ;;  %375 = vmatprep.mubr.f32.mxu1 %v12310_v0  ;;  %v438_v57 = vld [vmem:[%s15101_s5 + $0x160] sm:$0xff]  ;;  %v440_v61 = vld [vmem:[%s15101_s5 + $0x170] sm:$0xff]  ;;  %v447_v63 = vld [vmem:[%s15101_s5 + $0x1a8] sm:$0xff] }
  0x85   :  { %8969 = vmatpush1.bf16.msra.mxu0 %v12643_v26  ;;  %8736 = vmatmul.mubr.msk.f32.gmra.mrb[4].mxu1 %vm193_vm3, %v138_v49  ;;  %v445_v1 = vld [vmem:[%s15101_s5 + $0x198] sm:$0xff]  ;;  %v12765_v6 = vpack.c.bf16 %v438_v57, %v434_v56  ;;  %v12769_v7 = vpack.c.bf16 %v440_v61, %v436_v59  ;;  %v12771_v9 = vpack.c.bf16 %v447_v63, %v443_v62  ;;  %v442_v10 = vld [vmem:[%s15101_s5 + $0x180] sm:$0xff]  ;;  %v444_v12 = vld [vmem:[%s15101_s5 + $0x190] sm:$0xff]  ;;  %v174_v40 = vshrl.u32 %v173_v38, 7 }
  0x86   :  { %9001 = vmatpush1.bf16.msra.mxu1 %v12647_v27  ;;  %8971 = vmatprep.subr.bf16.mxu0 %v12649_v28  ;;  %v449_v5 = vld [vmem:[%s15101_s5 + $0x1b8] sm:$0xff]  ;;  %v446_v11 = vld [vmem:[%s15101_s5 + $0x1a0] sm:$0xff]  ;;  %v448_v17 = vld [vmem:[%s15101_s5 + $0x1b0] sm:$0xff] }
  0x87   :  { %9003 = vmatprep.subr.bf16.mxu1 %v12661_v32  ;;  %8731 = vmatmul.mubr.msk.f32.gmra.mrb[4].mxu0 %vm193_vm3, %v138_v49  ;;  %v12783_v13 = vpack.c.bf16 %v449_v5, %v445_v1  ;;  %v451_v18 = vld [vmem:[%s15101_s5 + $0x1c8] sm:$0xff]  ;;  %v453_v21 = vld [vmem:[%s15101_s5 + $0x1d8] sm:$0xff]  ;;  %v12801_v23 = vpack.c.bf16 %v446_v11, %v442_v10  ;;  %v12805_v24 = vpack.c.bf16 %v448_v17, %v444_v12  ;;  %v450_v29 = vld [vmem:[%s15101_s5 + $0x1c0] sm:$0xff]  ;;  %v12873_v43 = vsub.s32 0, %v174_v40 }
  0x88   :  { %528 = vmatprep.mubr.f32.mxu0 %v12310_v0  ;;  %599 = vmatprep.mubr.f32.mxu1 %v12310_v0  ;;  %v455_v19 = vld [vmem:[%s15101_s5 + $0x1e8] sm:$0xff]  ;;  %v457_v22 = vld [vmem:[%s15101_s5 + $0x1f8] sm:$0xff]  ;;  %v454_v30 = vld [vmem:[%s15101_s5 + $0x1e0] sm:$0xff]  ;;  %v12878_v45 = vsub.s32 1, %v174_v40  ;;  %v12880_v47 = vsub.s32 2, %v174_v40  ;;  %v12882_v48 = vsub.s32 3, %v174_v40 }
  0x89   :  { %8973 = vmatpush1.bf16.msra.mxu0 %v12682_v39  ;;  %v12807_v25 = vpack.c.bf16 %v455_v19, %v451_v18  ;;  %v12816_v31 = vpack.c.bf16 %v457_v22, %v453_v21  ;;  %v452_v33 = vld [vmem:[%s15101_s5 + $0x1d0] sm:$0xff]  ;;  %v12825_v35 = vpack.c.bf16 %v454_v30, %v450_v29  ;;  %v458_v37 = vld [vmem:[%s15070_s10] sm:$0x3] }
  0x8a   :  { %9005 = vmatpush1.bf16.msra.mxu1 %v12690_v41  ;;  %8975 = vmatprep.subr.bf16.mxu0 %v12692_v42  ;;  %v456_v34 = vld [vmem:[%s15101_s5 + $0x1f0] sm:$0xff]  ;;  %v171_v44 = vld [vmem:[%s15103_s6] sm:$0xf] }
  0x8b   :  { %9007 = vmatprep.subr.bf16.mxu1 %v12704_v46  ;;  %v12829_v36 = vpack.c.bf16 %v456_v34, %v452_v33  ;;  %v176_v49 = vrot.slane %v171_v44, %v12873_v43  ;;  %v180_v50 = vrot.slane %v171_v44, %v12878_v45  ;;  %v184_v51 = vrot.slane %v171_v44, %v12880_v47 }
  0x8c   :  { %v188_v56 = vrot.slane %v171_v44, %v12882_v48 }
  0x8d   :  { %8977 = vmatpush1.bf16.msra.mxu0 %v12725_v52 }
  0x8e   :  { %9009 = vmatpush1.bf16.msra.mxu1 %v12730_v53  ;;  %8979 = vmatprep.subr.bf16.mxu0 %v12732_v55 }
  0x8f   :  { %9011 = vmatprep.subr.bf16.mxu1 %v12744_v60 }
  0x91   :  { %8981 = vmatpush1.bf16.msra.mxu0 %v12765_v6 }
  0x92   :  { %9013 = vmatpush1.bf16.msra.mxu1 %v12769_v7  ;;  %8983 = vmatprep.subr.bf16.mxu0 %v12771_v9 }
  0x93   :  { %9015 = vmatprep.subr.bf16.mxu1 %v12783_v13 }
  0x95   :  { %8985 = vmatpush1.bf16.msra.mxu0 %v12801_v23 }
  0x96   :  { %9017 = vmatpush1.bf16.msra.mxu1 %v12805_v24  ;;  %8987 = vmatprep.subr.bf16.mxu0 %v12807_v25 }
  0x97   :  { %9019 = vmatprep.subr.bf16.mxu1 %v12816_v31 }
  0x99   :  { %8989 = vmatpush1.bf16.msra.mxu0 %v12825_v35 }
  0x9a   :  { %9021 = vmatpush1.bf16.msra.mxu1 %v12829_v36  ;;  %9023 = vmatprep.subr.bf16.mxu0 %v12531_v54 }
  0x9b   :  { %9055 = vmatprep.subr.bf16.mxu1 %v12544_v58 }
  0x9c   :  { %529 = vmatmul.mubr.f32.vlgmr.msra.gmra.mrb[6].mxu0 %v458_v37 }
  0x9d   :  { %600 = vmatmul.mubr.f32.vlgmr.msra.gmra.mrb[6].mxu1 %v458_v37  ;;  %9025 = vmatpush1.bf16.msra.mxu0 %v12566_v2 }
  0x9e   :  { %9057 = vmatpush1.bf16.msra.mxu1 %v12571_v3  ;;  %9027 = vmatprep.subr.bf16.mxu0 %v12573_v4 }
  0x9f   :  { %9059 = vmatprep.subr.bf16.mxu1 %v12585_v8  ;;  %703 = vmatprep.mubr.f32.mxu0 %v12310_v0 }
  0xa0   :  { %774 = vmatprep.mubr.f32.mxu1 %v12310_v0 }
  0xa1   :  { %9029 = vmatpush1.bf16.msra.mxu0 %v12605_v14 }
  0xa2   :  { %9061 = vmatpush1.bf16.msra.mxu1 %v12609_v15  ;;  %9031 = vmatprep.subr.bf16.mxu0 %v12611_v16 }
  0xa3   :  { %9063 = vmatprep.subr.bf16.mxu1 %v12623_v20 }
  0xa5   :  { %9033 = vmatpush1.bf16.msra.mxu0 %v12643_v26 }
  0xa6   :  { %9065 = vmatpush1.bf16.msra.mxu1 %v12647_v27  ;;  %9035 = vmatprep.subr.bf16.mxu0 %v12649_v28 }
  0xa7   :  { %9067 = vmatprep.subr.bf16.mxu1 %v12661_v32 }
  0xa9   :  { %9037 = vmatpush1.bf16.msra.mxu0 %v12682_v39 }
  0xaa   :  { %9069 = vmatpush1.bf16.msra.mxu1 %v12690_v41  ;;  %9039 = vmatprep.subr.bf16.mxu0 %v12692_v42 }
  0xab   :  { %9071 = vmatprep.subr.bf16.mxu1 %v12704_v46 }
  0xad   :  { %9041 = vmatpush1.bf16.msra.mxu0 %v12725_v52 }
  0xae   :  { %9073 = vmatpush1.bf16.msra.mxu1 %v12730_v53  ;;  %9043 = vmatprep.subr.bf16.mxu0 %v12732_v55 }
  0xaf   :  { %9075 = vmatprep.subr.bf16.mxu1 %v12744_v60 }
  0xb1   :  { %9045 = vmatpush1.bf16.msra.mxu0 %v12765_v6 }
  0xb2   :  { %9077 = vmatpush1.bf16.msra.mxu1 %v12769_v7  ;;  %9047 = vmatprep.subr.bf16.mxu0 %v12771_v9 }
  0xb3   :  { %9079 = vmatprep.subr.bf16.mxu1 %v12783_v13 }
  0xb5   :  { %9049 = vmatpush1.bf16.msra.mxu0 %v12801_v23 }
  0xb6   :  { %9081 = vmatpush1.bf16.msra.mxu1 %v12805_v24  ;;  %9051 = vmatprep.subr.bf16.mxu0 %v12807_v25 }
  0xb7   :  { %9083 = vmatprep.subr.bf16.mxu1 %v12816_v31 }
  0xb9   :  { %9053 = vmatpush1.bf16.msra.mxu0 %v12825_v35 }
  0xba   :  { %9085 = vmatpush1.bf16.msra.mxu1 %v12829_v36  ;;  %9087 = vmatprep.subr.bf16.mxu0 %v12531_v54 }
  0xbb   :  { %9119 = vmatprep.subr.bf16.mxu1 %v12544_v58 }
 0x14f   :  { %v282_v57 = vpop.f32.mrb[0].mxu0 }
 0x150   :  { %v283_v59 = vadd.f32 %v282_v57, %v176_v49  ;;  %v284_v61 = vpop.f32.mrb[1].mxu0  ;;  %v365_v62 = vpop.f32.mrb[0].mxu1 }
 0x151   :  { %v285_v63 = vadd.f32 %v284_v61, %v180_v50  ;;  %v366_v1 = vadd.f32 %v365_v62, %v184_v51  ;;  %v367_v5 = vpop.f32.mrb[1].mxu1 }
 0x152   :  { %382 = vst [vmem:[#allocation2] sm:$0xff] %v283_v59  ;;  %v368_v10 = vadd.f32 %v367_v5, %v188_v56 }
 0x153   :  { %383 = vst [vmem:[#allocation2 + $0x8] sm:$0xff] %v285_v63  ;;  %384 = vst [vmem:[#allocation2 + $0x10] sm:$0xff] %v366_v1 }
 0x154   :  { %385 = vst [vmem:[#allocation2 + $0x18] sm:$0xff] %v368_v10  ;;  %v371_v11 = vpop.f32.mrb[2].mxu1 }
 0x155   :  { %v372_v12 = vadd.f32 %v371_v11, %v184_v51  ;;  %v373_v17 = vpop.f32.mrb[3].mxu1 }
 0x156   :  { %v288_v18 = vpop.f32.mrb[2].mxu0  ;;  %v374_v19 = vadd.f32 %v373_v17, %v188_v56 }
 0x157   :  { %v289_v21 = vadd.f32 %v288_v18, %v176_v49  ;;  %v290_v22 = vpop.f32.mrb[3].mxu0  ;;  %388 = vst [vmem:[#allocation2 + $0x30] sm:$0xff] %v372_v12 }
 0x158   :  { %v291_v29 = vadd.f32 %v290_v22, %v180_v50  ;;  %389 = vst [vmem:[#allocation2 + $0x38] sm:$0xff] %v374_v19  ;;  %v377_v30 = vpop.f32.mrb[4].mxu1 }
 0x159   :  { %386 = vst [vmem:[#allocation2 + $0x20] sm:$0xff] %v289_v21  ;;  %v378_v33 = vadd.f32 %v377_v30, %v184_v51  ;;  %v379_v34 = vpop.f32.mrb[5].mxu1  ;;  %v460_v59 = vld [vmem:[#allocation2] sm:$0x3] }
 0x15a   :  { %387 = vst [vmem:[#allocation2 + $0x28] sm:$0xff] %v291_v29  ;;  %v294_v37 = vpop.f32.mrb[4].mxu0  ;;  %v380_v38 = vadd.f32 %v379_v34, %v188_v56  ;;  %v461_v1 = vld [vmem:[#allocation2 + $0x8] sm:$0x3]  ;;  %v462_v17 = vld [vmem:[#allocation2 + $0x10] sm:$0x3] }
 0x15b   :  { %v295_v40 = vadd.f32 %v294_v37, %v176_v49  ;;  %v296_v44 = vpop.f32.mrb[5].mxu0  ;;  %392 = vst [vmem:[#allocation2 + $0x50] sm:$0xff] %v378_v33  ;;  %v463_v56 = vld [vmem:[#allocation2 + $0x18] sm:$0x3]  ;;  %v459_v34 = vld [vmem:[%s15071_s11] sm:$0x3] }
 0x15c   :  { %v297_v57 = vadd.f32 %v296_v44, %v180_v50  ;;  %393 = vst [vmem:[#allocation2 + $0x58] sm:$0xff] %v380_v38 }
 0x15d   :  { %390 = vst [vmem:[#allocation2 + $0x40] sm:$0xff] %v295_v40 }
 0x15e   :  { %391 = vst [vmem:[#allocation2 + $0x48] sm:$0xff] %v297_v57 }
 0x16f   :  { %v530_v61 = vpop.f32.mrb[6].mxu0 }
 0x170   :  { %v606_v62 = vadd.f32 %v530_v61, %v460_v59  ;;  %v601_v63 = vpop.f32.mrb[6].mxu1  ;;  %v532_v5 = vpop.f32.mrb[7].mxu0 }
 0x171   :  { %v607_v10 = vadd.f32 %v532_v5, %v461_v1  ;;  %v603_v11 = vpop.f32.mrb[7].mxu1  ;;  %v608_v50 = vadd.f32 %v601_v63, %v462_v17  ;;  %v636_v17 = vld [vmem:[#allocation2 + $0x8] sm:$0xc] }
 0x172   :  { %v8737_v51 = vmul.f32 -1.442695, %v606_v62  ;;  %v609_v49 = vadd.f32 %v603_v11, %v463_v56 }
 0x173   :  { %v8738_v12 = vmul.f32 -1.442695, %v607_v10 }
 0x174   :  { %11531 = vpow2.f32 %v8737_v51  ;;  %v8739_v18 = vmul.f32 -1.442695, %v609_v49 }
 0x175   :  { %11533 = vpow2.f32 %v8738_v12  ;;  %v635_v12 = vld [vmem:[#allocation2] sm:$0xc] }
 0x176   :  { %11535 = vpow2.f32 %v8739_v18 }
 0x177   :  { %11537 = vtanh.f32 %v608_v50 }
 0x17e   :  { %v11532_v19 = vpop.eup %11531 }
 0x17f   :  { %v11534_v21 = vpop.eup %11533  ;;  %v613_v22 = vadd.f32 1.0, %v11532_v19 }
 0x180   :  { %v619_v29 = vadd.f32 1.0, %v11534_v21  ;;  %v11536_v30 = vpop.eup %11535 }
 0x181   :  { %11539 = vrcp.f32 %v613_v22  ;;  %v11538_v33 = vpop.eup %11537  ;;  %v626_v44 = vadd.f32 1.0, %v11536_v30  ;;  %v638_v22 = vld [vmem:[#allocation2 + $0x18] sm:$0xc] }
 0x182   :  { %11541 = vrcp.f32 %v619_v29 }
 0x183   :  { %11543 = vrcp.f32 %v626_v44 }
 0x18b   :  { %v11540_v37 = vpop.eup %11539 }
 0x18c   :  { %v11542_v38 = vpop.eup %11541  ;;  %v630_v40 = vmul.f32 %v11540_v37, %v11538_v33  ;;  %v637_v33 = vld [vmem:[#allocation2 + $0x10] sm:$0xc] }
 0x18d   :  { %v629_v57 = vmul.f32 %v11542_v38, %v459_v34  ;;  %v11544_v61 = vpop.eup %11543 }
 0x18f   :  { %v12891_v59 = vadd.f32 %v630_v40, %v629_v57 }
 0x191   :  { %11545 = vtanh.f32 %v12891_v59 }
 0x19b   :  { %v11546_v62 = vpop.eup %11545 }
 0x19c   :  { %v633_v63 = vmul.f32 %v11546_v62, %v11544_v61 }
 0x19e   :  { %634 = vst [vmem:[#allocation3] sm:$0x3] %v633_v63  ;;  %704 = vmatmul.mubr.f32.vlgmr.msra.gmra.mrb[8].mxu0 %v633_v63  ;;  %775 = vmatmul.mubr.f32.vlgmr.msra.gmra.mrb[8].mxu1 %v633_v63 }
 0x19f   :  { %9089 = vmatpush1.bf16.msra.mxu0 %v12566_v2  ;;  %9121 = vmatpush1.bf16.msra.mxu1 %v12571_v3 }
 0x1a0   :  { %9091 = vmatprep.subr.bf16.mxu0 %v12573_v4  ;;  %9123 = vmatprep.subr.bf16.mxu1 %v12585_v8 }
 0x1a1   :  { %896 = vmatprep.mubr.f32.mxu0 %v12310_v0  ;;  %967 = vmatprep.mubr.f32.mxu1 %v12310_v0 }
 0x1a3   :  { %9093 = vmatpush1.bf16.msra.mxu0 %v12605_v14  ;;  %9125 = vmatpush1.bf16.msra.mxu1 %v12609_v15 }
 0x1a4   :  { %9095 = vmatprep.subr.bf16.mxu0 %v12611_v16  ;;  %9127 = vmatprep.subr.bf16.mxu1 %v12623_v20 }
 0x1a7   :  { %9097 = vmatpush1.bf16.msra.mxu0 %v12643_v26  ;;  %9129 = vmatpush1.bf16.msra.mxu1 %v12647_v27 }
 0x1a8   :  { %9099 = vmatprep.subr.bf16.mxu0 %v12649_v28  ;;  %9131 = vmatprep.subr.bf16.mxu1 %v12661_v32 }
 0x1ab   :  { %9101 = vmatpush1.bf16.msra.mxu0 %v12682_v39  ;;  %9133 = vmatpush1.bf16.msra.mxu1 %v12690_v41 }
 0x1ac   :  { %9103 = vmatprep.subr.bf16.mxu0 %v12692_v42  ;;  %9135 = vmatprep.subr.bf16.mxu1 %v12704_v46 }
 0x1af   :  { %9105 = vmatpush1.bf16.msra.mxu0 %v12725_v52  ;;  %9137 = vmatpush1.bf16.msra.mxu1 %v12730_v53 }
 0x1b0   :  { %9107 = vmatprep.subr.bf16.mxu0 %v12732_v55  ;;  %9139 = vmatprep.subr.bf16.mxu1 %v12744_v60 }
 0x1b3   :  { %9109 = vmatpush1.bf16.msra.mxu0 %v12765_v6  ;;  %9141 = vmatpush1.bf16.msra.mxu1 %v12769_v7 }
 0x1b4   :  { %9111 = vmatprep.subr.bf16.mxu0 %v12771_v9  ;;  %9143 = vmatprep.subr.bf16.mxu1 %v12783_v13 }
 0x1b7   :  { %9113 = vmatpush1.bf16.msra.mxu0 %v12801_v23  ;;  %9145 = vmatpush1.bf16.msra.mxu1 %v12805_v24 }
 0x1b8   :  { %9115 = vmatprep.subr.bf16.mxu0 %v12807_v25  ;;  %9147 = vmatprep.subr.bf16.mxu1 %v12816_v31 }
 0x1bb   :  { %9117 = vmatpush1.bf16.msra.mxu0 %v12825_v35  ;;  %9149 = vmatpush1.bf16.msra.mxu1 %v12829_v36 }
 0x1bc   :  { %9151 = vmatprep.subr.bf16.mxu0 %v12531_v54  ;;  %9183 = vmatprep.subr.bf16.mxu1 %v12544_v58 }
 0x271   :  { %v705_v1 = vpop.f32.mrb[8].mxu0  ;;  %v776_v5 = vpop.f32.mrb[8].mxu1 }
 0x272   :  { %v785_v10 = vrot.slane %v705_v1, 6  ;;  %v707_v11 = vpop.f32.mrb[9].mxu0  ;;  %v778_v51 = vpop.f32.mrb[9].mxu1  ;;  %v787_v30 = vrot.slane %v776_v5, 6  ;;  %v817_v1 = vrot.slane %v12891_v59, 6 }
 0x273   :  { %v786_v56 = vrot.slane %v707_v11, 6  ;;  %v788_v21 = vrot.slane %v778_v51, 6 }
 0x274   :  { %v793_v49 = vadd.f32 %v785_v10, %v635_v12  ;;  %v795_v37 = vadd.f32 %v787_v30, %v637_v33 }
 0x275   :  { %v794_v18 = vadd.f32 %v786_v56, %v636_v17  ;;  %v796_v29 = vadd.f32 %v788_v21, %v638_v22 }
 0x276   :  { %v8740_v50 = vmul.f32 -1.442695, %v793_v49 }
 0x277   :  { %v8741_v19 = vmul.f32 -1.442695, %v794_v18  ;;  %v8742_v34 = vmul.f32 -1.442695, %v796_v29  ;;  %v825_v29 = vld [vmem:[#allocation2] sm:$0x30] }
 0x278   :  { %11547 = vpow2.f32 %v8740_v50 }
 0x279   :  { %11549 = vpow2.f32 %v8741_v19 }
 0x27a   :  { %11551 = vpow2.f32 %v8742_v34  ;;  %v826_v34 = vld [vmem:[#allocation2 + $0x8] sm:$0x30] }
 0x27b   :  { %11553 = vtanh.f32 %v795_v37 }
 0x282   :  { %v11548_v38 = vpop.eup %11547 }
 0x283   :  { %v11550_v40 = vpop.eup %11549  ;;  %v800_v44 = vadd.f32 1.0, %v11548_v38 }
 0x284   :  { %v806_v57 = vadd.f32 1.0, %v11550_v40  ;;  %v11552_v61 = vpop.eup %11551 }
 0x285   :  { %11555 = vrcp.f32 %v800_v44  ;;  %v11554_v62 = vpop.eup %11553  ;;  %v813_v51 = vadd.f32 1.0, %v11552_v61 }
 0x286   :  { %11557 = vrcp.f32 %v806_v57  ;;  %v828_v57 = vld [vmem:[#allocation2 + $0x18] sm:$0x30] }
 0x287   :  { %11559 = vrcp.f32 %v813_v51 }
 0x28f   :  { %v11556_v63 = vpop.eup %11555 }
 0x290   :  { %v11558_v10 = vpop.eup %11557  ;;  %v820_v11 = vmul.f32 %v11556_v63, %v11554_v62  ;;  %v827_v63 = vld [vmem:[#allocation2 + $0x10] sm:$0x30] }
 0x291   :  { %v819_v5 = vmul.f32 %v11558_v10, %v817_v1  ;;  %v11560_v56 = vpop.eup %11559 }
 0x293   :  { %v12929_v12 = vadd.f32 %v820_v11, %v819_v5 }
 0x295   :  { %11561 = vtanh.f32 %v12929_v12 }
 0x29f   :  { %v11562_v49 = vpop.eup %11561 }
 0x2a0   :  { %v823_v17 = vmul.f32 %v11562_v49, %v11560_v56 }
 0x2a2   :  { %824 = vst [vmem:[#allocation3] sm:$0xc] %v823_v17  ;;  %v830_v18 = vrot.slane %v823_v17, 2 }
 0x2a4   :  { %897 = vmatmul.mubr.f32.vlgmr.msra.gmra.mrb[10].mxu0 %v830_v18  ;;  %968 = vmatmul.mubr.f32.vlgmr.msra.gmra.mrb[10].mxu1 %v830_v18 }
 0x2a5   :  { %9153 = vmatpush1.bf16.msra.mxu0 %v12566_v2  ;;  %9185 = vmatpush1.bf16.msra.mxu1 %v12571_v3 }
 0x2a6   :  { %9155 = vmatprep.subr.bf16.mxu0 %v12573_v4  ;;  %9187 = vmatprep.subr.bf16.mxu1 %v12585_v8 }
 0x2a7   :  { %1089 = vmatprep.mubr.f32.mxu0 %v12310_v0  ;;  %1160 = vmatprep.mubr.f32.mxu1 %v12310_v0 }
 0x2a9   :  { %9157 = vmatpush1.bf16.msra.mxu0 %v12605_v14  ;;  %9189 = vmatpush1.bf16.msra.mxu1 %v12609_v15 }
 0x2aa   :  { %9159 = vmatprep.subr.bf16.mxu0 %v12611_v16  ;;  %9191 = vmatprep.subr.bf16.mxu1 %v12623_v20 }
 0x2ad   :  { %9161 = vmatpush1.bf16.msra.mxu0 %v12643_v26  ;;  %9193 = vmatpush1.bf16.msra.mxu1 %v12647_v27 }
 0x2ae   :  { %9163 = vmatprep.subr.bf16.mxu0 %v12649_v28  ;;  %9195 = vmatprep.subr.bf16.mxu1 %v12661_v32 }
 0x2b1   :  { %9165 = vmatpush1.bf16.msra.mxu0 %v12682_v39  ;;  %9197 = vmatpush1.bf16.msra.mxu1 %v12690_v41 }
 0x2b2   :  { %9167 = vmatprep.subr.bf16.mxu0 %v12692_v42  ;;  %9199 = vmatprep.subr.bf16.mxu1 %v12704_v46 }
 0x2b5   :  { %9169 = vmatpush1.bf16.msra.mxu0 %v12725_v52  ;;  %9201 = vmatpush1.bf16.msra.mxu1 %v12730_v53 }
 0x2b6   :  { %9171 = vmatprep.subr.bf16.mxu0 %v12732_v55  ;;  %9203 = vmatprep.subr.bf16.mxu1 %v12744_v60 }
 0x2b9   :  { %9173 = vmatpush1.bf16.msra.mxu0 %v12765_v6  ;;  %9205 = vmatpush1.bf16.msra.mxu1 %v12769_v7 }
 0x2ba   :  { %9175 = vmatprep.subr.bf16.mxu0 %v12771_v9  ;;  %9207 = vmatprep.subr.bf16.mxu1 %v12783_v13 }
 0x2bd   :  { %9177 = vmatpush1.bf16.msra.mxu0 %v12801_v23  ;;  %9209 = vmatpush1.bf16.msra.mxu1 %v12805_v24 }
 0x2be   :  { %9179 = vmatprep.subr.bf16.mxu0 %v12807_v25  ;;  %9211 = vmatprep.subr.bf16.mxu1 %v12816_v31 }
 0x2c1   :  { %9181 = vmatpush1.bf16.msra.mxu0 %v12825_v35  ;;  %9213 = vmatpush1.bf16.msra.mxu1 %v12829_v36 }
 0x2c2   :  { %9215 = vmatprep.subr.bf16.mxu0 %v12531_v54  ;;  %9247 = vmatprep.subr.bf16.mxu1 %v12544_v58 }
 0x377   :  { %v898_v59 = vpop.f32.mrb[10].mxu0  ;;  %v969_v50 = vpop.f32.mrb[10].mxu1 }
 0x378   :  { %v978_v19 = vrot.slane %v898_v59, 4  ;;  %v900_v21 = vpop.f32.mrb[11].mxu0  ;;  %v971_v22 = vpop.f32.mrb[11].mxu1  ;;  %v980_v62 = vrot.slane %v969_v50, 4  ;;  %v1010_v59 = vrot.slane %v12929_v12, 6 }
 0x379   :  { %v979_v30 = vrot.slane %v900_v21, 4  ;;  %v981_v44 = vrot.slane %v971_v22, 4 }
 0x37a   :  { %v986_v33 = vadd.f32 %v978_v19, %v825_v29  ;;  %v988_v10 = vadd.f32 %v980_v62, %v827_v63 }
 0x37b   :  { %v987_v37 = vadd.f32 %v979_v30, %v826_v34  ;;  %v989_v61 = vadd.f32 %v981_v44, %v828_v57 }
 0x37c   :  { %v8743_v38 = vmul.f32 -1.442695, %v986_v33 }
 0x37d   :  { %v8744_v40 = vmul.f32 -1.442695, %v987_v37  ;;  %v8745_v1 = vmul.f32 -1.442695, %v989_v61  ;;  %v1018_v61 = vld [vmem:[#allocation2] sm:$0xc0] }
 0x37e   :  { %11563 = vpow2.f32 %v8743_v38 }
 0x37f   :  { %11565 = vpow2.f32 %v8744_v40 }
 0x380   :  { %11567 = vpow2.f32 %v8745_v1  ;;  %v1019_v1 = vld [vmem:[#allocation2 + $0x8] sm:$0xc0] }
 0x381   :  { %11569 = vtanh.f32 %v988_v10 }
 0x388   :  { %v11564_v11 = vpop.eup %11563 }
 0x389   :  { %v11566_v51 = vpop.eup %11565  ;;  %v993_v5 = vadd.f32 1.0, %v11564_v11 }
 0x38a   :  { %v999_v56 = vadd.f32 1.0, %v11566_v51  ;;  %v11568_v49 = vpop.eup %11567 }
 0x38b   :  { %11571 = vrcp.f32 %v993_v5  ;;  %v11570_v17 = vpop.eup %11569  ;;  %v1006_v22 = vadd.f32 1.0, %v11568_v49 }
 0x38c   :  { %11573 = vrcp.f32 %v999_v56  ;;  %v1021_v56 = vld [vmem:[#allocation2 + $0x18] sm:$0xc0] }
 0x38d   :  { %11575 = vrcp.f32 %v1006_v22 }
 0x395   :  { %v11572_v18 = vpop.eup %11571 }
 0x396   :  { %v11574_v19 = vpop.eup %11573  ;;  %v1013_v21 = vmul.f32 %v11572_v18, %v11570_v17  ;;  %v1020_v18 = vld [vmem:[#allocation2 + $0x10] sm:$0xc0] }
 0x397   :  { %v1012_v50 = vmul.f32 %v11574_v19, %v1010_v59  ;;  %v11576_v30 = vpop.eup %11575 }
 0x399   :  { %v12967_v29 = vadd.f32 %v1013_v21, %v1012_v50 }
 0x39b   :  { %11577 = vtanh.f32 %v12967_v29 }
 0x3a5   :  { %v11578_v33 = vpop.eup %11577 }
 0x3a6   :  { %v1016_v34 = vmul.f32 %v11578_v33, %v11576_v30 }
 0x3a8   :  { %1017 = vst [vmem:[#allocation3] sm:$0x30] %v1016_v34  ;;  %v1023_v37 = vrot.slane %v1016_v34, 4 }
 0x3aa   :  { %1090 = vmatmul.mubr.f32.vlgmr.msra.gmra.mrb[12].mxu0 %v1023_v37  ;;  %1161 = vmatmul.mubr.f32.vlgmr.msra.gmra.mrb[12].mxu1 %v1023_v37 }
 0x3ab   :  { %9217 = vmatpush1.bf16.msra.mxu0 %v12566_v2  ;;  %9249 = vmatpush1.bf16.msra.mxu1 %v12571_v3 }
 0x3ac   :  { %9219 = vmatprep.subr.bf16.mxu0 %v12573_v4  ;;  %9251 = vmatprep.subr.bf16.mxu1 %v12585_v8 }
 0x3ad   :  { %1282 = vmatprep.mubr.f32.mxu0 %v12310_v0  ;;  %1353 = vmatprep.mubr.f32.mxu1 %v12310_v0 }
 0x3af   :  { %9221 = vmatpush1.bf16.msra.mxu0 %v12605_v14  ;;  %9253 = vmatpush1.bf16.msra.mxu1 %v12609_v15 }
 0x3b0   :  { %9223 = vmatprep.subr.bf16.mxu0 %v12611_v16  ;;  %9255 = vmatprep.subr.bf16.mxu1 %v12623_v20 }
 0x3b3   :  { %9225 = vmatpush1.bf16.msra.mxu0 %v12643_v26  ;;  %9257 = vmatpush1.bf16.msra.mxu1 %v12647_v27 }
 0x3b4   :  { %9227 = vmatprep.subr.bf16.mxu0 %v12649_v28  ;;  %9259 = vmatprep.subr.bf16.mxu1 %v12661_v32 }
 0x3b7   :  { %9229 = vmatpush1.bf16.msra.mxu0 %v12682_v39  ;;  %9261 = vmatpush1.bf16.msra.mxu1 %v12690_v41 }
 0x3b8   :  { %9231 = vmatprep.subr.bf16.mxu0 %v12692_v42  ;;  %9263 = vmatprep.subr.bf16.mxu1 %v12704_v46 }
 0x3bb   :  { %9233 = vmatpush1.bf16.msra.mxu0 %v12725_v52  ;;  %9265 = vmatpush1.bf16.msra.mxu1 %v12730_v53 }
 0x3bc   :  { %9235 = vmatprep.subr.bf16.mxu0 %v12732_v55  ;;  %9267 = vmatprep.subr.bf16.mxu1 %v12744_v60 }
 0x3bf   :  { %9237 = vmatpush1.bf16.msra.mxu0 %v12765_v6  ;;  %9269 = vmatpush1.bf16.msra.mxu1 %v12769_v7 }
 0x3c0   :  { %9239 = vmatprep.subr.bf16.mxu0 %v12771_v9  ;;  %9271 = vmatprep.subr.bf16.mxu1 %v12783_v13 }
 0x3c3   :  { %9241 = vmatpush1.bf16.msra.mxu0 %v12801_v23  ;;  %9273 = vmatpush1.bf16.msra.mxu1 %v12805_v24 }
 0x3c4   :  { %9243 = vmatprep.subr.bf16.mxu0 %v12807_v25  ;;  %9275 = vmatprep.subr.bf16.mxu1 %v12816_v31 }
 0x3c7   :  { %9245 = vmatpush1.bf16.msra.mxu0 %v12825_v35  ;;  %9277 = vmatpush1.bf16.msra.mxu1 %v12829_v36 }
 0x3c8   :  { %9279 = vmatprep.subr.bf16.mxu0 %v12531_v54  ;;  %9311 = vmatprep.subr.bf16.mxu1 %v12544_v58 }
 0x47d   :  { %v1091_v12 = vpop.f32.mrb[12].mxu0  ;;  %v1162_v38 = vpop.f32.mrb[12].mxu1 }
 0x47e   :  { %v1171_v40 = vrot.slane %v1091_v12, 2  ;;  %v1093_v44 = vpop.f32.mrb[13].mxu0  ;;  %v1164_v57 = vpop.f32.mrb[13].mxu1  ;;  %v1173_v17 = vrot.slane %v1162_v38, 2  ;;  %v1203_v12 = vrot.slane %v12967_v29, 6 }
 0x47f   :  { %v1172_v62 = vrot.slane %v1093_v44, 2  ;;  %v1174_v5 = vrot.slane %v1164_v57, 2  ;;  %v1211_v29 = vld [vmem:[#allocation2 + $0x20] sm:$0x3] }
 0x480   :  { %v1179_v63 = vadd.f32 %v1171_v40, %v1018_v61  ;;  %v1181_v19 = vadd.f32 %v1173_v17, %v1020_v18 }
 0x481   :  { %v1180_v10 = vadd.f32 %v1172_v62, %v1019_v1  ;;  %v1182_v49 = vadd.f32 %v1174_v5, %v1021_v56  ;;  %v1212_v56 = vld [vmem:[#allocation2 + $0x28] sm:$0x3] }
 0x482   :  { %v8746_v11 = vmul.f32 -1.442695, %v1179_v63 }
 0x483   :  { %v8747_v51 = vmul.f32 -1.442695, %v1180_v10  ;;  %v8748_v59 = vmul.f32 -1.442695, %v1182_v49 }
 0x484   :  { %11579 = vpow2.f32 %v8746_v11 }
 0x485   :  { %11581 = vpow2.f32 %v8747_v51 }
 0x486   :  { %11583 = vpow2.f32 %v8748_v59 }
 0x487   :  { %11585 = vtanh.f32 %v1181_v19 }
 0x48e   :  { %v11580_v21 = vpop.eup %11579 }
 0x48f   :  { %v11582_v22 = vpop.eup %11581  ;;  %v1186_v50 = vadd.f32 1.0, %v11580_v21  ;;  %v1214_v21 = vld [vmem:[#allocation2 + $0x38] sm:$0x3] }
 0x490   :  { %v1192_v30 = vadd.f32 1.0, %v11582_v22  ;;  %v11584_v33 = vpop.eup %11583 }
 0x491   :  { %11587 = vrcp.f32 %v1186_v50  ;;  %v11586_v34 = vpop.eup %11585  ;;  %v1199_v57 = vadd.f32 1.0, %v11584_v33  ;;  %v1213_v50 = vld [vmem:[#allocation2 + $0x30] sm:$0x3] }
 0x492   :  { %11589 = vrcp.f32 %v1192_v30 }
 0x493   :  { %11591 = vrcp.f32 %v1199_v57 }
 0x49b   :  { %v11588_v37 = vpop.eup %11587 }
 0x49c   :  { %v11590_v40 = vpop.eup %11589  ;;  %v1206_v44 = vmul.f32 %v11588_v37, %v11586_v34 }
 0x49d   :  { %v1205_v38 = vmul.f32 %v11590_v40, %v1203_v12  ;;  %v11592_v62 = vpop.eup %11591 }
 0x49f   :  { %v13005_v61 = vadd.f32 %v1206_v44, %v1205_v38 }
 0x4a1   :  { %11593 = vtanh.f32 %v13005_v61 }
 0x4ab   :  { %v11594_v63 = vpop.eup %11593 }
 0x4ac   :  { %v1209_v1 = vmul.f32 %v11594_v63, %v11592_v62  ;;  %v1384_v62 = vrot.slane %v13005_v61, 6 }
 0x4ae   :  { %1210 = vst [vmem:[#allocation3] sm:$0xc0] %v1209_v1  ;;  %v1216_v10 = vrot.slane %v1209_v1, 6 }
 0x4b0   :  { %1283 = vmatmul.mubr.f32.vlgmr.msra.gmra.mrb[14].mxu0 %v1216_v10  ;;  %1354 = vmatmul.mubr.f32.vlgmr.msra.gmra.mrb[14].mxu1 %v1216_v10 }
 0x4b1   :  { %9281 = vmatpush1.bf16.msra.mxu0 %v12566_v2  ;;  %9313 = vmatpush1.bf16.msra.mxu1 %v12571_v3 }
 0x4b2   :  { %9283 = vmatprep.subr.bf16.mxu0 %v12573_v4  ;;  %9315 = vmatprep.subr.bf16.mxu1 %v12585_v8 }
 0x4b3   :  { %1460 = vmatprep.mubr.f32.mxu0 %v12310_v0  ;;  %1531 = vmatprep.mubr.f32.mxu1 %v12310_v0 }
 0x4b5   :  { %9285 = vmatpush1.bf16.msra.mxu0 %v12605_v14  ;;  %9317 = vmatpush1.bf16.msra.mxu1 %v12609_v15 }
 0x4b6   :  { %9287 = vmatprep.subr.bf16.mxu0 %v12611_v16  ;;  %9319 = vmatprep.subr.bf16.mxu1 %v12623_v20 }
 0x4b9   :  { %9289 = vmatpush1.bf16.msra.mxu0 %v12643_v26  ;;  %9321 = vmatpush1.bf16.msra.mxu1 %v12647_v27 }
 0x4ba   :  { %9291 = vmatprep.subr.bf16.mxu0 %v12649_v28  ;;  %9323 = vmatprep.subr.bf16.mxu1 %v12661_v32 }
 0x4bd   :  { %9293 = vmatpush1.bf16.msra.mxu0 %v12682_v39  ;;  %9325 = vmatpush1.bf16.msra.mxu1 %v12690_v41 }
 0x4be   :  { %9295 = vmatprep.subr.bf16.mxu0 %v12692_v42  ;;  %9327 = vmatprep.subr.bf16.mxu1 %v12704_v46 }
 0x4c1   :  { %9297 = vmatpush1.bf16.msra.mxu0 %v12725_v52  ;;  %9329 = vmatpush1.bf16.msra.mxu1 %v12730_v53 }
 0x4c2   :  { %9299 = vmatprep.subr.bf16.mxu0 %v12732_v55  ;;  %9331 = vmatprep.subr.bf16.mxu1 %v12744_v60 }
 0x4c5   :  { %9301 = vmatpush1.bf16.msra.mxu0 %v12765_v6  ;;  %9333 = vmatpush1.bf16.msra.mxu1 %v12769_v7 }
 0x4c6   :  { %9303 = vmatprep.subr.bf16.mxu0 %v12771_v9  ;;  %9335 = vmatprep.subr.bf16.mxu1 %v12783_v13 }
 0x4c9   :  { %9305 = vmatpush1.bf16.msra.mxu0 %v12801_v23  ;;  %9337 = vmatpush1.bf16.msra.mxu1 %v12805_v24 }
 0x4ca   :  { %9307 = vmatprep.subr.bf16.mxu0 %v12807_v25  ;;  %9339 = vmatprep.subr.bf16.mxu1 %v12816_v31 }
 0x4cd   :  { %9309 = vmatpush1.bf16.msra.mxu0 %v12825_v35  ;;  %9341 = vmatpush1.bf16.msra.mxu1 %v12829_v36 }
 0x4ce   :  { %9343 = vmatprep.subr.bf16.mxu0 %v12531_v54  ;;  %9375 = vmatprep.subr.bf16.mxu1 %v12544_v58 }
 0x583   :  { %v1284_v11 = vpop.f32.mrb[14].mxu0  ;;  %v1355_v51 = vpop.f32.mrb[14].mxu1 }
 0x584   :  { %v1360_v5 = vadd.f32 %v1284_v11, %v1211_v29  ;;  %v1286_v49 = vpop.f32.mrb[15].mxu0  ;;  %v1357_v17 = vpop.f32.mrb[15].mxu1  ;;  %v1362_v33 = vadd.f32 %v1355_v51, %v1213_v50  ;;  %v1393_v50 = vld [vmem:[#allocation2 + $0x28] sm:$0xc] }
 0x585   :  { %v1361_v18 = vadd.f32 %v1286_v49, %v1212_v56  ;;  %v1363_v22 = vadd.f32 %v1357_v17, %v1214_v21 }
 0x586   :  { %v8749_v59 = vmul.f32 -1.442695, %v1360_v5 }
 0x587   :  { %v8750_v19 = vmul.f32 -1.442695, %v1361_v18  ;;  %v8751_v30 = vmul.f32 -1.442695, %v1363_v22 }
 0x588   :  { %11595 = vpow2.f32 %v8749_v59 }
 0x589   :  { %11597 = vpow2.f32 %v8750_v19  ;;  %v1392_v19 = vld [vmem:[#allocation2 + $0x20] sm:$0xc] }
 0x58a   :  { %11599 = vpow2.f32 %v8751_v30 }
 0x58b   :  { %11601 = vtanh.f32 %v1362_v33 }
 0x592   :  { %v11596_v34 = vpop.eup %11595 }
 0x593   :  { %v11598_v37 = vpop.eup %11597  ;;  %v1367_v12 = vadd.f32 1.0, %v11596_v34 }
 0x594   :  { %v1373_v40 = vadd.f32 1.0, %v11598_v37  ;;  %v11600_v44 = vpop.eup %11599 }
 0x595   :  { %11603 = vrcp.f32 %v1367_v12  ;;  %v11602_v57 = vpop.eup %11601  ;;  %v1380_v10 = vadd.f32 1.0, %v11600_v44  ;;  %v1395_v12 = vld [vmem:[#allocation2 + $0x38] sm:$0xc] }
 0x596   :  { %11605 = vrcp.f32 %v1373_v40 }
 0x597   :  { %11607 = vrcp.f32 %v1380_v10 }
 0x59f   :  { %v11604_v38 = vpop.eup %11603 }
 0x5a0   :  { %v11606_v63 = vpop.eup %11605  ;;  %v1387_v1 = vmul.f32 %v11604_v38, %v11602_v57  ;;  %v1394_v57 = vld [vmem:[#allocation2 + $0x30] sm:$0xc] }
 0x5a1   :  { %v1386_v29 = vmul.f32 %v11606_v63, %v1384_v62  ;;  %v11608_v51 = vpop.eup %11607 }
 0x5a3   :  { %v13043_v11 = vadd.f32 %v1387_v1, %v1386_v29 }
 0x5a5   :  { %11609 = vtanh.f32 %v13043_v11 }
 0x5af   :  { %v11610_v5 = vpop.eup %11609 }
 0x5b0   :  { %v1390_v56 = vmul.f32 %v11610_v5, %v11608_v51 }
 0x5b2   :  { %1391 = vst [vmem:[#allocation3 + $0x8] sm:$0x3] %v1390_v56  ;;  %1461 = vmatmul.mubr.f32.vlgmr.msra.gmra.mrb[16].mxu0 %v1390_v56  ;;  %1532 = vmatmul.mubr.f32.vlgmr.msra.gmra.mrb[16].mxu1 %v1390_v56 }
 0x5b3   :  { %9345 = vmatpush1.bf16.msra.mxu0 %v12566_v2  ;;  %9377 = vmatpush1.bf16.msra.mxu1 %v12571_v3 }
 0x5b4   :  { %9347 = vmatprep.subr.bf16.mxu0 %v12573_v4  ;;  %9379 = vmatprep.subr.bf16.mxu1 %v12585_v8 }
 0x5b5   :  { %1653 = vmatprep.mubr.f32.mxu0 %v12310_v0  ;;  %1724 = vmatprep.mubr.f32.mxu1 %v12310_v0 }
 0x5b7   :  { %9349 = vmatpush1.bf16.msra.mxu0 %v12605_v14  ;;  %9381 = vmatpush1.bf16.msra.mxu1 %v12609_v15 }
 0x5b8   :  { %9351 = vmatprep.subr.bf16.mxu0 %v12611_v16  ;;  %9383 = vmatprep.subr.bf16.mxu1 %v12623_v20 }
 0x5bb   :  { %9353 = vmatpush1.bf16.msra.mxu0 %v12643_v26  ;;  %9385 = vmatpush1.bf16.msra.mxu1 %v12647_v27 }
 0x5bc   :  { %9355 = vmatprep.subr.bf16.mxu0 %v12649_v28  ;;  %9387 = vmatprep.subr.bf16.mxu1 %v12661_v32 }
 0x5bf   :  { %9357 = vmatpush1.bf16.msra.mxu0 %v12682_v39  ;;  %9389 = vmatpush1.bf16.msra.mxu1 %v12690_v41 }
 0x5c0   :  { %9359 = vmatprep.subr.bf16.mxu0 %v12692_v42  ;;  %9391 = vmatprep.subr.bf16.mxu1 %v12704_v46 }
 0x5c3   :  { %9361 = vmatpush1.bf16.msra.mxu0 %v12725_v52  ;;  %9393 = vmatpush1.bf16.msra.mxu1 %v12730_v53 }
 0x5c4   :  { %9363 = vmatprep.subr.bf16.mxu0 %v12732_v55  ;;  %9395 = vmatprep.subr.bf16.mxu1 %v12744_v60 }
 0x5c7   :  { %9365 = vmatpush1.bf16.msra.mxu0 %v12765_v6  ;;  %9397 = vmatpush1.bf16.msra.mxu1 %v12769_v7 }
 0x5c8   :  { %9367 = vmatprep.subr.bf16.mxu0 %v12771_v9  ;;  %9399 = vmatprep.subr.bf16.mxu1 %v12783_v13 }
 0x5cb   :  { %9369 = vmatpush1.bf16.msra.mxu0 %v12801_v23  ;;  %9401 = vmatpush1.bf16.msra.mxu1 %v12805_v24 }
 0x5cc   :  { %9371 = vmatprep.subr.bf16.mxu0 %v12807_v25  ;;  %9403 = vmatprep.subr.bf16.mxu1 %v12816_v31 }
 0x5cf   :  { %9373 = vmatpush1.bf16.msra.mxu0 %v12825_v35  ;;  %9405 = vmatpush1.bf16.msra.mxu1 %v12829_v36 }
 0x5d0   :  { %9407 = vmatprep.subr.bf16.mxu0 %v12531_v54  ;;  %9439 = vmatprep.subr.bf16.mxu1 %v12544_v58 }
 0x685   :  { %v1462_v61 = vpop.f32.mrb[16].mxu0  ;;  %v1533_v49 = vpop.f32.mrb[16].mxu1 }
 0x686   :  { %v1542_v17 = vrot.slane %v1462_v61, 6  ;;  %v1464_v18 = vpop.f32.mrb[17].mxu0  ;;  %v1535_v59 = vpop.f32.mrb[17].mxu1  ;;  %v1544_v44 = vrot.slane %v1533_v49, 6  ;;  %v1574_v61 = vrot.slane %v13043_v11, 6 }
 0x687   :  { %v1543_v21 = vrot.slane %v1464_v18, 6  ;;  %v1545_v37 = vrot.slane %v1535_v59, 6 }
 0x688   :  { %v1550_v22 = vadd.f32 %v1542_v17, %v1392_v19  ;;  %v1552_v62 = vadd.f32 %v1544_v44, %v1394_v57 }
 0x689   :  { %v1551_v30 = vadd.f32 %v1543_v21, %v1393_v50  ;;  %v1553_v40 = vadd.f32 %v1545_v37, %v1395_v12 }
 0x68a   :  { %v8752_v33 = vmul.f32 -1.442695, %v1550_v22 }
 0x68b   :  { %v8753_v34 = vmul.f32 -1.442695, %v1551_v30  ;;  %v8754_v38 = vmul.f32 -1.442695, %v1553_v40  ;;  %v1582_v40 = vld [vmem:[#allocation2 + $0x20] sm:$0x30] }
 0x68c   :  { %11611 = vpow2.f32 %v8752_v33 }
 0x68d   :  { %11613 = vpow2.f32 %v8753_v34 }
 0x68e   :  { %11615 = vpow2.f32 %v8754_v38  ;;  %v1583_v38 = vld [vmem:[#allocation2 + $0x28] sm:$0x30] }
 0x68f   :  { %11617 = vtanh.f32 %v1552_v62 }
 0x696   :  { %v11612_v63 = vpop.eup %11611 }
 0x697   :  { %v11614_v1 = vpop.eup %11613  ;;  %v1557_v10 = vadd.f32 1.0, %v11612_v63 }
 0x698   :  { %v1563_v29 = vadd.f32 1.0, %v11614_v1  ;;  %v11616_v51 = vpop.eup %11615 }
 0x699   :  { %11619 = vrcp.f32 %v1557_v10  ;;  %v11618_v5 = vpop.eup %11617  ;;  %v1570_v59 = vadd.f32 1.0, %v11616_v51 }
 0x69a   :  { %11621 = vrcp.f32 %v1563_v29  ;;  %v1585_v29 = vld [vmem:[#allocation2 + $0x38] sm:$0x30] }
 0x69b   :  { %11623 = vrcp.f32 %v1570_v59 }
 0x6a3   :  { %v11620_v56 = vpop.eup %11619 }
 0x6a4   :  { %v11622_v17 = vpop.eup %11621  ;;  %v1577_v18 = vmul.f32 %v11620_v56, %v11618_v5  ;;  %v1584_v56 = vld [vmem:[#allocation2 + $0x30] sm:$0x30] }
 0x6a5   :  { %v1576_v49 = vmul.f32 %v11622_v17, %v1574_v61  ;;  %v11624_v21 = vpop.eup %11623 }
 0x6a7   :  { %v13081_v19 = vadd.f32 %v1577_v18, %v1576_v49 }
 0x6a9   :  { %11625 = vtanh.f32 %v13081_v19 }
 0x6b3   :  { %v11626_v22 = vpop.eup %11625 }
 0x6b4   :  { %v1580_v50 = vmul.f32 %v11626_v22, %v11624_v21 }
 0x6b6   :  { %1581 = vst [vmem:[#allocation3 + $0x8] sm:$0xc] %v1580_v50  ;;  %v1587_v30 = vrot.slane %v1580_v50, 2 }
 0x6b8   :  { %1654 = vmatmul.mubr.f32.vlgmr.msra.gmra.mrb[18].mxu0 %v1587_v30  ;;  %1725 = vmatmul.mubr.f32.vlgmr.msra.gmra.mrb[18].mxu1 %v1587_v30 }
 0x6b9   :  { %9409 = vmatpush1.bf16.msra.mxu0 %v12566_v2  ;;  %9441 = vmatpush1.bf16.msra.mxu1 %v12571_v3 }
 0x6ba   :  { %9411 = vmatprep.subr.bf16.mxu0 %v12573_v4  ;;  %9443 = vmatprep.subr.bf16.mxu1 %v12585_v8 }
 0x6bb   :  { %1846 = vmatprep.mubr.f32.mxu0 %v12310_v0  ;;  %1917 = vmatprep.mubr.f32.mxu1 %v12310_v0 }
 0x6bd   :  { %9413 = vmatpush1.bf16.msra.mxu0 %v12605_v14  ;;  %9445 = vmatpush1.bf16.msra.mxu1 %v12609_v15 }
 0x6be   :  { %9415 = vmatprep.subr.bf16.mxu0 %v12611_v16  ;;  %9447 = vmatprep.subr.bf16.mxu1 %v12623_v20 }
 0x6c1   :  { %9417 = vmatpush1.bf16.msra.mxu0 %v12643_v26  ;;  %9449 = vmatpush1.bf16.msra.mxu1 %v12647_v27 }
 0x6c2   :  { %9419 = vmatprep.subr.bf16.mxu0 %v12649_v28  ;;  %9451 = vmatprep.subr.bf16.mxu1 %v12661_v32 }
 0x6c5   :  { %9421 = vmatpush1.bf16.msra.mxu0 %v12682_v39  ;;  %9453 = vmatpush1.bf16.msra.mxu1 %v12690_v41 }
 0x6c6   :  { %9423 = vmatprep.subr.bf16.mxu0 %v12692_v42  ;;  %9455 = vmatprep.subr.bf16.mxu1 %v12704_v46 }
 0x6c9   :  { %9425 = vmatpush1.bf16.msra.mxu0 %v12725_v52  ;;  %9457 = vmatpush1.bf16.msra.mxu1 %v12730_v53 }
 0x6ca   :  { %9427 = vmatprep.subr.bf16.mxu0 %v12732_v55  ;;  %9459 = vmatprep.subr.bf16.mxu1 %v12744_v60 }
 0x6cd   :  { %9429 = vmatpush1.bf16.msra.mxu0 %v12765_v6  ;;  %9461 = vmatpush1.bf16.msra.mxu1 %v12769_v7 }
 0x6ce   :  { %9431 = vmatprep.subr.bf16.mxu0 %v12771_v9  ;;  %9463 = vmatprep.subr.bf16.mxu1 %v12783_v13 }
 0x6d1   :  { %9433 = vmatpush1.bf16.msra.mxu0 %v12801_v23  ;;  %9465 = vmatpush1.bf16.msra.mxu1 %v12805_v24 }
 0x6d2   :  { %9435 = vmatprep.subr.bf16.mxu0 %v12807_v25  ;;  %9467 = vmatprep.subr.bf16.mxu1 %v12816_v31 }
 0x6d5   :  { %9437 = vmatpush1.bf16.msra.mxu0 %v12825_v35  ;;  %9469 = vmatpush1.bf16.msra.mxu1 %v12829_v36 }
 0x6d6   :  { %9471 = vmatprep.subr.bf16.mxu0 %v12531_v54  ;;  %9503 = vmatprep.subr.bf16.mxu1 %v12544_v58 }
 0x78b   :  { %v1655_v11 = vpop.f32.mrb[18].mxu0  ;;  %v1726_v33 = vpop.f32.mrb[18].mxu1 }
 0x78c   :  { %v1735_v34 = vrot.slane %v1655_v11, 4  ;;  %v1657_v37 = vpop.f32.mrb[19].mxu0  ;;  %v1728_v12 = vpop.f32.mrb[19].mxu1  ;;  %v1737_v5 = vrot.slane %v1726_v33, 4  ;;  %v1767_v11 = vrot.slane %v13081_v19, 6 }
 0x78d   :  { %v1736_v44 = vrot.slane %v1657_v37, 4  ;;  %v1738_v10 = vrot.slane %v1728_v12, 4 }
 0x78e   :  { %v1743_v57 = vadd.f32 %v1735_v34, %v1582_v40  ;;  %v1745_v17 = vadd.f32 %v1737_v5, %v1584_v56 }
 0x78f   :  { %v1744_v62 = vadd.f32 %v1736_v44, %v1583_v38  ;;  %v1746_v51 = vadd.f32 %v1738_v10, %v1585_v29 }
 0x790   :  { %v8755_v63 = vmul.f32 -1.442695, %v1743_v57 }
 0x791   :  { %v8756_v1 = vmul.f32 -1.442695, %v1744_v62  ;;  %v8757_v61 = vmul.f32 -1.442695, %v1746_v51  ;;  %v1775_v51 = vld [vmem:[#allocation2 + $0x20] sm:$0xc0] }
 0x792   :  { %11627 = vpow2.f32 %v8755_v63 }
 0x793   :  { %11629 = vpow2.f32 %v8756_v1 }
 0x794   :  { %11631 = vpow2.f32 %v8757_v61  ;;  %v1776_v61 = vld [vmem:[#allocation2 + $0x28] sm:$0xc0] }
 0x795   :  { %11633 = vtanh.f32 %v1745_v17 }
 0x79c   :  { %v11628_v18 = vpop.eup %11627 }
 0x79d   :  { %v11630_v59 = vpop.eup %11629  ;;  %v1750_v49 = vadd.f32 1.0, %v11628_v18 }
 0x79e   :  { %v1756_v21 = vadd.f32 1.0, %v11630_v59  ;;  %v11632_v22 = vpop.eup %11631 }
 0x79f   :  { %11635 = vrcp.f32 %v1750_v49  ;;  %v11634_v50 = vpop.eup %11633  ;;  %v1763_v12 = vadd.f32 1.0, %v11632_v22 }
 0x7a0   :  { %11637 = vrcp.f32 %v1756_v21  ;;  %v1778_v21 = vld [vmem:[#allocation2 + $0x38] sm:$0xc0] }
 0x7a1   :  { %11639 = vrcp.f32 %v1763_v12 }
 0x7a9   :  { %v11636_v30 = vpop.eup %11635 }
 0x7aa   :  { %v11638_v34 = vpop.eup %11637  ;;  %v1770_v37 = vmul.f32 %v11636_v30, %v11634_v50  ;;  %v1777_v30 = vld [vmem:[#allocation2 + $0x30] sm:$0xc0] }
 0x7ab   :  { %v1769_v33 = vmul.f32 %v11638_v34, %v1767_v11  ;;  %v11640_v44 = vpop.eup %11639 }
 0x7ad   :  { %v13119_v40 = vadd.f32 %v1770_v37, %v1769_v33 }
 0x7af   :  { %11641 = vtanh.f32 %v13119_v40 }
 0x7b9   :  { %v11642_v57 = vpop.eup %11641 }
 0x7ba   :  { %v1773_v38 = vmul.f32 %v11642_v57, %v11640_v44 }
 0x7bc   :  { %1774 = vst [vmem:[#allocation3 + $0x8] sm:$0x30] %v1773_v38  ;;  %v1780_v62 = vrot.slane %v1773_v38, 4 }
 0x7be   :  { %1847 = vmatmul.mubr.f32.vlgmr.msra.gmra.mrb[20].mxu0 %v1780_v62  ;;  %1918 = vmatmul.mubr.f32.vlgmr.msra.gmra.mrb[20].mxu1 %v1780_v62 }
 0x7bf   :  { %9473 = vmatpush1.bf16.msra.mxu0 %v12566_v2  ;;  %9505 = vmatpush1.bf16.msra.mxu1 %v12571_v3 }
 0x7c0   :  { %9475 = vmatprep.subr.bf16.mxu0 %v12573_v4  ;;  %9507 = vmatprep.subr.bf16.mxu1 %v12585_v8 }
 0x7c1   :  { %2039 = vmatprep.mubr.f32.mxu0 %v12310_v0  ;;  %2110 = vmatprep.mubr.f32.mxu1 %v12310_v0 }
 0x7c3   :  { %9477 = vmatpush1.bf16.msra.mxu0 %v12605_v14  ;;  %9509 = vmatpush1.bf16.msra.mxu1 %v12609_v15 }
 0x7c4   :  { %9479 = vmatprep.subr.bf16.mxu0 %v12611_v16  ;;  %9511 = vmatprep.subr.bf16.mxu1 %v12623_v20 }
 0x7c7   :  { %9481 = vmatpush1.bf16.msra.mxu0 %v12643_v26  ;;  %9513 = vmatpush1.bf16.msra.mxu1 %v12647_v27 }
 0x7c8   :  { %9483 = vmatprep.subr.bf16.mxu0 %v12649_v28  ;;  %9515 = vmatprep.subr.bf16.mxu1 %v12661_v32 }
 0x7cb   :  { %9485 = vmatpush1.bf16.msra.mxu0 %v12682_v39  ;;  %9517 = vmatpush1.bf16.msra.mxu1 %v12690_v41 }
 0x7cc   :  { %9487 = vmatprep.subr.bf16.mxu0 %v12692_v42  ;;  %9519 = vmatprep.subr.bf16.mxu1 %v12704_v46 }
 0x7cf   :  { %9489 = vmatpush1.bf16.msra.mxu0 %v12725_v52  ;;  %9521 = vmatpush1.bf16.msra.mxu1 %v12730_v53 }
 0x7d0   :  { %9491 = vmatprep.subr.bf16.mxu0 %v12732_v55  ;;  %9523 = vmatprep.subr.bf16.mxu1 %v12744_v60 }
 0x7d3   :  { %9493 = vmatpush1.bf16.msra.mxu0 %v12765_v6  ;;  %9525 = vmatpush1.bf16.msra.mxu1 %v12769_v7 }
 0x7d4   :  { %9495 = vmatprep.subr.bf16.mxu0 %v12771_v9  ;;  %9527 = vmatprep.subr.bf16.mxu1 %v12783_v13 }
 0x7d7   :  { %9497 = vmatpush1.bf16.msra.mxu0 %v12801_v23  ;;  %9529 = vmatpush1.bf16.msra.mxu1 %v12805_v24 }
 0x7d8   :  { %9499 = vmatprep.subr.bf16.mxu0 %v12807_v25  ;;  %9531 = vmatprep.subr.bf16.mxu1 %v12816_v31 }
 0x7db   :  { %9501 = vmatpush1.bf16.msra.mxu0 %v12825_v35  ;;  %9533 = vmatpush1.bf16.msra.mxu1 %v12829_v36 }
 0x7dc   :  { %9535 = vmatprep.subr.bf16.mxu0 %v12531_v54  ;;  %9567 = vmatprep.subr.bf16.mxu1 %v12544_v58 }
 0x891   :  { %v1848_v19 = vpop.f32.mrb[20].mxu0  ;;  %v1919_v63 = vpop.f32.mrb[20].mxu1 }
 0x892   :  { %v1928_v1 = vrot.slane %v1848_v19, 2  ;;  %v1850_v10 = vpop.f32.mrb[21].mxu0  ;;  %v1921_v29 = vpop.f32.mrb[21].mxu1  ;;  %v1930_v50 = vrot.slane %v1919_v63, 2  ;;  %v1960_v19 = vrot.slane %v13119_v40, 6 }
 0x893   :  { %v1929_v5 = vrot.slane %v1850_v10, 2  ;;  %v1931_v49 = vrot.slane %v1921_v29, 2  ;;  %v1968_v40 = vld [vmem:[#allocation2 + $0x40] sm:$0x3] }
 0x894   :  { %v1936_v56 = vadd.f32 %v1928_v1, %v1775_v51  ;;  %v1938_v34 = vadd.f32 %v1930_v50, %v1777_v30 }
 0x895   :  { %v1937_v17 = vadd.f32 %v1929_v5, %v1776_v61  ;;  %v1939_v22 = vadd.f32 %v1931_v49, %v1778_v21  ;;  %v1969_v21 = vld [vmem:[#allocation2 + $0x48] sm:$0x3] }
 0x896   :  { %v8758_v18 = vmul.f32 -1.442695, %v1936_v56 }
 0x897   :  { %v8759_v59 = vmul.f32 -1.442695, %v1937_v17  ;;  %v8760_v11 = vmul.f32 -1.442695, %v1939_v22 }
 0x898   :  { %11643 = vpow2.f32 %v8758_v18 }
 0x899   :  { %11645 = vpow2.f32 %v8759_v59 }
 0x89a   :  { %11647 = vpow2.f32 %v8760_v11 }
 0x89b   :  { %11649 = vtanh.f32 %v1938_v34 }
 0x8a2   :  { %v11644_v37 = vpop.eup %11643 }
 0x8a3   :  { %v11646_v12 = vpop.eup %11645  ;;  %v1943_v33 = vadd.f32 1.0, %v11644_v37  ;;  %v1971_v37 = vld [vmem:[#allocation2 + $0x58] sm:$0x3] }
 0x8a4   :  { %v1949_v44 = vadd.f32 1.0, %v11646_v12  ;;  %v11648_v57 = vpop.eup %11647 }
 0x8a5   :  { %11651 = vrcp.f32 %v1943_v33  ;;  %v11650_v38 = vpop.eup %11649  ;;  %v1956_v29 = vadd.f32 1.0, %v11648_v57  ;;  %v1970_v33 = vld [vmem:[#allocation2 + $0x50] sm:$0x3] }
 0x8a6   :  { %11653 = vrcp.f32 %v1949_v44 }
 0x8a7   :  { %11655 = vrcp.f32 %v1956_v29 }
 0x8af   :  { %v11652_v62 = vpop.eup %11651 }
 0x8b0   :  { %v11654_v1 = vpop.eup %11653  ;;  %v1963_v10 = vmul.f32 %v11652_v62, %v11650_v38 }
 0x8b1   :  { %v1962_v63 = vmul.f32 %v11654_v1, %v1960_v19  ;;  %v11656_v5 = vpop.eup %11655 }
 0x8b3   :  { %v13157_v51 = vadd.f32 %v1963_v10, %v1962_v63 }
 0x8b5   :  { %11657 = vtanh.f32 %v13157_v51 }
 0x8bf   :  { %v11658_v56 = vpop.eup %11657 }
 0x8c0   :  { %v1966_v61 = vmul.f32 %v11658_v56, %v11656_v5  ;;  %v2141_v5 = vrot.slane %v13157_v51, 6 }
 0x8c2   :  { %1967 = vst [vmem:[#allocation3 + $0x8] sm:$0xc0] %v1966_v61  ;;  %v1973_v17 = vrot.slane %v1966_v61, 6 }
 0x8c4   :  { %2040 = vmatmul.mubr.f32.vlgmr.msra.gmra.mrb[22].mxu0 %v1973_v17  ;;  %2111 = vmatmul.mubr.f32.vlgmr.msra.gmra.mrb[22].mxu1 %v1973_v17 }
 0x8c5   :  { %9537 = vmatpush1.bf16.msra.mxu0 %v12566_v2  ;;  %9569 = vmatpush1.bf16.msra.mxu1 %v12571_v3 }
 0x8c6   :  { %9539 = vmatprep.subr.bf16.mxu0 %v12573_v4  ;;  %9571 = vmatprep.subr.bf16.mxu1 %v12585_v8 }
 0x8c7   :  { %2217 = vmatprep.mubr.f32.mxu0 %v12310_v0  ;;  %2288 = vmatprep.mubr.f32.mxu1 %v12310_v0 }
 0x8c9   :  { %9541 = vmatpush1.bf16.msra.mxu0 %v12605_v14  ;;  %9573 = vmatpush1.bf16.msra.mxu1 %v12609_v15 }
 0x8ca   :  { %9543 = vmatprep.subr.bf16.mxu0 %v12611_v16  ;;  %9575 = vmatprep.subr.bf16.mxu1 %v12623_v20 }
 0x8cd   :  { %9545 = vmatpush1.bf16.msra.mxu0 %v12643_v26  ;;  %9577 = vmatpush1.bf16.msra.mxu1 %v12647_v27 }
 0x8ce   :  { %9547 = vmatprep.subr.bf16.mxu0 %v12649_v28  ;;  %9579 = vmatprep.subr.bf16.mxu1 %v12661_v32 }
 0x8d1   :  { %9549 = vmatpush1.bf16.msra.mxu0 %v12682_v39  ;;  %9581 = vmatpush1.bf16.msra.mxu1 %v12690_v41 }
 0x8d2   :  { %9551 = vmatprep.subr.bf16.mxu0 %v12692_v42  ;;  %9583 = vmatprep.subr.bf16.mxu1 %v12704_v46 }
 0x8d5   :  { %9553 = vmatpush1.bf16.msra.mxu0 %v12725_v52  ;;  %9585 = vmatpush1.bf16.msra.mxu1 %v12730_v53 }
 0x8d6   :  { %9555 = vmatprep.subr.bf16.mxu0 %v12732_v55  ;;  %9587 = vmatprep.subr.bf16.mxu1 %v12744_v60 }
 0x8d9   :  { %9557 = vmatpush1.bf16.msra.mxu0 %v12765_v6  ;;  %9589 = vmatpush1.bf16.msra.mxu1 %v12769_v7 }
 0x8da   :  { %9559 = vmatprep.subr.bf16.mxu0 %v12771_v9  ;;  %9591 = vmatprep.subr.bf16.mxu1 %v12783_v13 }
 0x8dd   :  { %9561 = vmatpush1.bf16.msra.mxu0 %v12801_v23  ;;  %9593 = vmatpush1.bf16.msra.mxu1 %v12805_v24 }
 0x8de   :  { %9563 = vmatprep.subr.bf16.mxu0 %v12807_v25  ;;  %9595 = vmatprep.subr.bf16.mxu1 %v12816_v31 }
 0x8e1   :  { %9565 = vmatpush1.bf16.msra.mxu0 %v12825_v35  ;;  %9597 = vmatpush1.bf16.msra.mxu1 %v12829_v36 }
 0x8e2   :  { %9599 = vmatprep.subr.bf16.mxu0 %v12531_v54  ;;  %9631 = vmatprep.subr.bf16.mxu1 %v12544_v58 }
 0x997   :  { %v2041_v18 = vpop.f32.mrb[22].mxu0  ;;  %v2112_v59 = vpop.f32.mrb[22].mxu1 }
 0x998   :  { %v2117_v49 = vadd.f32 %v2041_v18, %v1968_v40  ;;  %v2043_v22 = vpop.f32.mrb[23].mxu0  ;;  %v2114_v50 = vpop.f32.mrb[23].mxu1  ;;  %v2119_v57 = vadd.f32 %v2112_v59, %v1970_v33  ;;  %v2150_v33 = vld [vmem:[#allocation2 + $0x48] sm:$0xc] }
 0x999   :  { %v2118_v30 = vadd.f32 %v2043_v22, %v1969_v21  ;;  %v2120_v12 = vadd.f32 %v2114_v50, %v1971_v37 }
 0x99a   :  { %v8761_v11 = vmul.f32 -1.442695, %v2117_v49 }
 0x99b   :  { %v8762_v34 = vmul.f32 -1.442695, %v2118_v30  ;;  %v8763_v44 = vmul.f32 -1.442695, %v2120_v12 }
 0x99c   :  { %11659 = vpow2.f32 %v8761_v11 }
 0x99d   :  { %11661 = vpow2.f32 %v8762_v34  ;;  %v2149_v34 = vld [vmem:[#allocation2 + $0x40] sm:$0xc] }
 0x99e   :  { %11663 = vpow2.f32 %v8763_v44 }
 0x99f   :  { %11665 = vtanh.f32 %v2119_v57 }
 0x9a6   :  { %v11660_v38 = vpop.eup %11659 }
 0x9a7   :  { %v11662_v62 = vpop.eup %11661  ;;  %v2124_v19 = vadd.f32 1.0, %v11660_v38 }
 0x9a8   :  { %v2130_v1 = vadd.f32 1.0, %v11662_v62  ;;  %v11664_v10 = vpop.eup %11663 }
 0x9a9   :  { %11667 = vrcp.f32 %v2124_v19  ;;  %v11666_v29 = vpop.eup %11665  ;;  %v2137_v17 = vadd.f32 1.0, %v11664_v10  ;;  %v2152_v19 = vld [vmem:[#allocation2 + $0x58] sm:$0xc]  ;;  %v2151_v10 = vld [vmem:[#allocation2 + $0x50] sm:$0xc] }
 0x9aa   :  { %11669 = vrcp.f32 %v2130_v1 }
 0x9ab   :  { %11671 = vrcp.f32 %v2137_v17 }
 0x9b3   :  { %v11668_v63 = vpop.eup %11667 }
 0x9b4   :  { %v11670_v56 = vpop.eup %11669  ;;  %v2144_v61 = vmul.f32 %v11668_v63, %v11666_v29 }
 0x9b5   :  { %v2143_v40 = vmul.f32 %v11670_v56, %v2141_v5  ;;  %v11672_v59 = vpop.eup %11671 }
 0x9b7   :  { %v13195_v18 = vadd.f32 %v2144_v61, %v2143_v40 }
 0x9b9   :  { %11673 = vtanh.f32 %v13195_v18 }
 0x9c3   :  { %v11674_v49 = vpop.eup %11673 }
 0x9c4   :  { %v2147_v21 = vmul.f32 %v11674_v49, %v11672_v59  ;;  %v2331_v49 = vrot.slane %v13195_v18, 6 }
 0x9c6   :  { %2148 = vst [vmem:[#allocation3 + $0x10] sm:$0x3] %v2147_v21  ;;  %2218 = vmatmul.mubr.f32.vlgmr.msra.gmra.mrb[24].mxu0 %v2147_v21  ;;  %2289 = vmatmul.mubr.f32.vlgmr.msra.gmra.mrb[24].mxu1 %v2147_v21 }
 0x9c7   :  { %9601 = vmatpush1.bf16.msra.mxu0 %v12566_v2  ;;  %9633 = vmatpush1.bf16.msra.mxu1 %v12571_v3 }
 0x9c8   :  { %9603 = vmatprep.subr.bf16.mxu0 %v12573_v4  ;;  %9635 = vmatprep.subr.bf16.mxu1 %v12585_v8 }
 0x9c9   :  { %2410 = vmatprep.mubr.f32.mxu0 %v12310_v0  ;;  %2481 = vmatprep.mubr.f32.mxu1 %v12310_v0 }
 0x9cb   :  { %9605 = vmatpush1.bf16.msra.mxu0 %v12605_v14  ;;  %9637 = vmatpush1.bf16.msra.mxu1 %v12609_v15 }
 0x9cc   :  { %9607 = vmatprep.subr.bf16.mxu0 %v12611_v16  ;;  %9639 = vmatprep.subr.bf16.mxu1 %v12623_v20 }
 0x9cf   :  { %9609 = vmatpush1.bf16.msra.mxu0 %v12643_v26  ;;  %9641 = vmatpush1.bf16.msra.mxu1 %v12647_v27 }
 0x9d0   :  { %9611 = vmatprep.subr.bf16.mxu0 %v12649_v28  ;;  %9643 = vmatprep.subr.bf16.mxu1 %v12661_v32 }
 0x9d3   :  { %9613 = vmatpush1.bf16.msra.mxu0 %v12682_v39  ;;  %9645 = vmatpush1.bf16.msra.mxu1 %v12690_v41 }
 0x9d4   :  { %9615 = vmatprep.subr.bf16.mxu0 %v12692_v42  ;;  %9647 = vmatprep.subr.bf16.mxu1 %v12704_v46 }
 0x9d7   :  { %9617 = vmatpush1.bf16.msra.mxu0 %v12725_v52  ;;  %9649 = vmatpush1.bf16.msra.mxu1 %v12730_v53 }
 0x9d8   :  { %9619 = vmatprep.subr.bf16.mxu0 %v12732_v55  ;;  %9651 = vmatprep.subr.bf16.mxu1 %v12744_v60 }
 0x9db   :  { %9621 = vmatpush1.bf16.msra.mxu0 %v12765_v6  ;;  %9653 = vmatpush1.bf16.msra.mxu1 %v12769_v7 }
 0x9dc   :  { %9623 = vmatprep.subr.bf16.mxu0 %v12771_v9  ;;  %9655 = vmatprep.subr.bf16.mxu1 %v12783_v13 }
 0x9df   :  { %9625 = vmatpush1.bf16.msra.mxu0 %v12801_v23  ;;  %9657 = vmatpush1.bf16.msra.mxu1 %v12805_v24 }
 0x9e0   :  { %9627 = vmatprep.subr.bf16.mxu0 %v12807_v25  ;;  %9659 = vmatprep.subr.bf16.mxu1 %v12816_v31 }
 0x9e3   :  { %9629 = vmatpush1.bf16.msra.mxu0 %v12825_v35  ;;  %9661 = vmatpush1.bf16.msra.mxu1 %v12829_v36 }
 0x9e4   :  { %9663 = vmatprep.subr.bf16.mxu0 %v12531_v54  ;;  %9695 = vmatprep.subr.bf16.mxu1 %v12544_v58 }
 0xa99   :  { %v2219_v51 = vpop.f32.mrb[24].mxu0  ;;  %v2290_v22 = vpop.f32.mrb[24].mxu1 }
 0xa9a   :  { %v2299_v50 = vrot.slane %v2219_v51, 6  ;;  %v2221_v30 = vpop.f32.mrb[25].mxu0  ;;  %v2292_v11 = vpop.f32.mrb[25].mxu1  ;;  %v2301_v54 = vrot.slane %v2290_v22, 6 }
 0xa9b   :  { %v2300_v37 = vrot.slane %v2221_v30, 6  ;;  %v2302_v62 = vrot.slane %v2292_v11, 6 }
 0xa9c   :  { %v2307_v12 = vadd.f32 %v2299_v50, %v2149_v34  ;;  %v2309_v29 = vadd.f32 %v2301_v54, %v2151_v10  ;;  %v2730_v54 = vld [vmem:[%s15104_s26] sm:$0xff] }
 0xa9d   :  { %v2308_v44 = vadd.f32 %v2300_v37, %v2150_v33  ;;  %v2310_v1 = vadd.f32 %v2302_v62, %v2152_v19  ;;  %v2734_v10 = vld [vmem:[%s15104_s26 + $0x20] sm:$0xff] }
 0xa9e   :  { %v8764_v57 = vmul.f32 -1.442695, %v2307_v12 }
 0xa9f   :  { %v8765_v38 = vmul.f32 -1.442695, %v2308_v44  ;;  %v8766_v58 = vmul.f32 -1.442695, %v2310_v1 }
 0xaa0   :  { %11675 = vpow2.f32 %v8764_v57 }
 0xaa1   :  { %11677 = vpow2.f32 %v8765_v38 }
 0xaa2   :  { %11679 = vpow2.f32 %v8766_v58 }
 0xaa3   :  { %11681 = vtanh.f32 %v2309_v29  ;;  %v2732_v29 = vld [vmem:[%s15104_s26 + $0x10] sm:$0xff] }
 0xaaa   :  { %v11676_v63 = vpop.eup %11675 }
 0xaab   :  { %v11678_v5 = vpop.eup %11677  ;;  %v2314_v56 = vadd.f32 1.0, %v11676_v63  ;;  %v2736_v63 = vld [vmem:[%s15104_s26 + $0x30] sm:$0xff] }
 0xaac   :  { %v2320_v61 = vadd.f32 1.0, %v11678_v5  ;;  %v11680_v17 = vpop.eup %11679  ;;  %v2739_v5 = vld [vmem:[%s15104_s26 + $0x48] sm:$0xff] }
 0xaad   :  { %11683 = vrcp.f32 %v2314_v56  ;;  %v11682_v40 = vpop.eup %11681  ;;  %v2327_v50 = vadd.f32 1.0, %v11680_v17  ;;  %v2741_v17 = vld [vmem:[%s15104_s26 + $0x58] sm:$0xff] }
 0xaae   :  { %11685 = vrcp.f32 %v2320_v61  ;;  %v2743_v61 = vld [vmem:[%s15104_s26 + $0x68] sm:$0xff] }
 0xaaf   :  { %11687 = vrcp.f32 %v2327_v50  ;;  %v2742_v50 = vld [vmem:[%s15104_s26 + $0x60] sm:$0xff] }
 0xab7   :  { %v11684_v59 = vpop.eup %11683 }
 0xab8   :  { %v11686_v21 = vpop.eup %11685  ;;  %v2334_v51 = vmul.f32 %v11684_v59, %v11682_v40  ;;  %v2745_v40 = vld [vmem:[%s15104_s26 + $0x78] sm:$0xff] }
 0xab9   :  { %v2333_v22 = vmul.f32 %v11686_v21, %v2331_v49  ;;  %v11688_v11 = vpop.eup %11687  ;;  %v9728_v49 = vpack.c.bf16 %v2734_v10, %v2730_v54  ;;  %v9760_v21 = vpack.c.bf16 %v2736_v63, %v2732_v29  ;;  %v2773_v54 = vld [vmem:[%s15104_s26 + $0x158] sm:$0xff]  ;;  %v2770_v63 = vld [vmem:[%s15104_s26 + $0x140] sm:$0xff] }
 0xaba   :  { %v2777_v10 = vld [vmem:[%s15104_s26 + $0x178] sm:$0xff] }
 0xabb   :  { %v13233_v30 = vadd.f32 %v2334_v51, %v2333_v22  ;;  %v2738_v51 = vld [vmem:[%s15104_s26 + $0x40] sm:$0xff] }
 0xabd   :  { %11689 = vtanh.f32 %v13233_v30  ;;  %v2524_v44 = vrot.slane %v13233_v30, 6  ;;  %v9730_v30 = vpack.c.bf16 %v2743_v61, %v2739_v5  ;;  %v2774_v5 = vld [vmem:[%s15104_s26 + $0x160] sm:$0xff]  ;;  %v9778_v61 = vpack.c.bf16 %v2777_v10, %v2773_v54  ;;  %v3004_v10 = vld [vmem:[%s15105_s24 + $0x50] sm:$0xff] }
 0xac7   :  { %v11690_v34 = vpop.eup %11689 }
 0xac8   :  { %v2337_v37 = vmul.f32 %v11690_v34, %v11688_v11  ;;  %v9762_v11 = vpack.c.bf16 %v2745_v40, %v2741_v17  ;;  %v2740_v34 = vld [vmem:[%s15104_s26 + $0x50] sm:$0xff] }
 0xac9   :  { %v2772_v17 = vld [vmem:[%s15104_s26 + $0x150] sm:$0xff] }
 0xaca   :  { %2338 = vst [vmem:[#allocation3 + $0x10] sm:$0xc] %v2337_v37  ;;  %v2344_v12 = vrot.slane %v2337_v37, 2  ;;  %v2744_v37 = vld [vmem:[%s15104_s26 + $0x70] sm:$0xff] }
 0xacb   :  { %v2776_v40 = vld [vmem:[%s15104_s26 + $0x170] sm:$0xff] }
 0xacc   :  { %2411 = vmatmul.mubr.f32.vlgmr.msra.gmra.mrb[26].mxu0 %v2344_v12  ;;  %2482 = vmatmul.mubr.f32.vlgmr.msra.gmra.mrb[26].mxu1 %v2344_v12  ;;  %v2747_v12 = vld [vmem:[%s15104_s26 + $0x88] sm:$0xff] }
 0xacd   :  { %9665 = vmatpush1.bf16.msra.mxu0 %v12566_v2  ;;  %9697 = vmatpush1.bf16.msra.mxu1 %v12571_v3  ;;  %v2731_v2 = vld [vmem:[%s15104_s26 + $0x8] sm:$0xff] }
 0xace   :  { %9667 = vmatprep.subr.bf16.mxu0 %v12573_v4  ;;  %9699 = vmatprep.subr.bf16.mxu1 %v12585_v8  ;;  %v2735_v3 = vld [vmem:[%s15104_s26 + $0x28] sm:$0xff]  ;;  %v2733_v4 = vld [vmem:[%s15104_s26 + $0x18] sm:$0xff] }
 0xacf   :  { %2603 = vmatprep.mubr.f32.mxu0 %v12310_v0  ;;  %2674 = vmatprep.mubr.f32.mxu1 %v12310_v0  ;;  %v9726_v8 = vpack.c.bf16 %v2735_v3, %v2731_v2  ;;  %v2751_v2 = vld [vmem:[%s15104_s26 + $0xa8] sm:$0xff]  ;;  %v2749_v3 = vld [vmem:[%s15104_s26 + $0x98] sm:$0xff] }
 0xad1   :  { %9669 = vmatpush1.bf16.msra.mxu0 %v12605_v14  ;;  %9701 = vmatpush1.bf16.msra.mxu1 %v12609_v15  ;;  %v2737_v14 = vld [vmem:[%s15104_s26 + $0x38] sm:$0xff] }
 0xad2   :  { %9671 = vmatprep.subr.bf16.mxu0 %v12611_v16  ;;  %9703 = vmatprep.subr.bf16.mxu1 %v12623_v20  ;;  %v9758_v15 = vpack.c.bf16 %v2737_v14, %v2733_v4  ;;  %v2753_v4 = vld [vmem:[%s15104_s26 + $0xb8] sm:$0xff]  ;;  %v9764_v14 = vpack.c.bf16 %v2744_v37, %v2740_v34 }
 0xad5   :  { %9673 = vmatpush1.bf16.msra.mxu0 %v12643_v26  ;;  %9705 = vmatpush1.bf16.msra.mxu1 %v12647_v27 }
 0xad6   :  { %9675 = vmatprep.subr.bf16.mxu0 %v12649_v28  ;;  %9707 = vmatprep.subr.bf16.mxu1 %v12661_v32  ;;  %v2339_v32 = vld [vmem:[#allocation2 + $0x40] sm:$0x30] }
 0xad9   :  { %9677 = vmatpush1.bf16.msra.mxu0 %v12682_v39  ;;  %9709 = vmatpush1.bf16.msra.mxu1 %v12690_v41 }
 0xada   :  { %9679 = vmatprep.subr.bf16.mxu0 %v12692_v42  ;;  %9711 = vmatprep.subr.bf16.mxu1 %v12704_v46  ;;  %v2340_v42 = vld [vmem:[#allocation2 + $0x48] sm:$0x30] }
 0xadd   :  { %9681 = vmatpush1.bf16.msra.mxu0 %v12725_v52  ;;  %9713 = vmatpush1.bf16.msra.mxu1 %v12730_v53 }
 0xade   :  { %9683 = vmatprep.subr.bf16.mxu0 %v12732_v55  ;;  %9715 = vmatprep.subr.bf16.mxu1 %v12744_v60  ;;  %v2342_v60 = vld [vmem:[#allocation2 + $0x58] sm:$0x30] }
 0xae1   :  { %9685 = vmatpush1.bf16.msra.mxu0 %v12765_v6  ;;  %9717 = vmatpush1.bf16.msra.mxu1 %v12769_v7 }
 0xae2   :  { %9687 = vmatprep.subr.bf16.mxu0 %v12771_v9  ;;  %9719 = vmatprep.subr.bf16.mxu1 %v12783_v13  ;;  %v2341_v9 = vld [vmem:[#allocation2 + $0x50] sm:$0x30] }
 0xae5   :  { %9689 = vmatpush1.bf16.msra.mxu0 %v12801_v23  ;;  %9721 = vmatpush1.bf16.msra.mxu1 %v12805_v24 }
 0xae6   :  { %9691 = vmatprep.subr.bf16.mxu0 %v12807_v25  ;;  %9723 = vmatprep.subr.bf16.mxu1 %v12816_v31 }
 0xae9   :  { %9693 = vmatpush1.bf16.msra.mxu0 %v12825_v35  ;;  %9725 = vmatpush1.bf16.msra.mxu1 %v12829_v36 }
 0xaea   :  { %9727 = vmatprep.subr.bf16.mxu0 %v9726_v8  ;;  %9759 = vmatprep.subr.bf16.mxu1 %v9758_v15  ;;  %v9732_v8 = vpack.c.bf16 %v2742_v50, %v2738_v51  ;;  %v2746_v15 = vld [vmem:[%s15104_s26 + $0x80] sm:$0xff]  ;;  %v2785_v51 = vld [vmem:[%s15104_s26 + $0x1b8] sm:$0xff]  ;;  %v9748_v50 = vpack.c.bf16 %v2774_v5, %v2770_v63  ;;  %v3011_v63 = vld [vmem:[%s15105_s24 + $0x88] sm:$0xff] }
 0xaeb   :  { %v3015_v5 = vld [vmem:[%s15105_s24 + $0xa8] sm:$0xff] }
 0xb9f   :  { %v2412_v16 = vpop.f32.mrb[26].mxu0  ;;  %v2483_v20 = vpop.f32.mrb[26].mxu1 }
 0xba0   :  { %v2492_v26 = vrot.slane %v2412_v16, 4  ;;  %v2414_v27 = vpop.f32.mrb[27].mxu0  ;;  %v2485_v28 = vpop.f32.mrb[27].mxu1  ;;  %v2494_v7 = vrot.slane %v2483_v20, 4  ;;  %v2750_v16 = vld [vmem:[%s15104_s26 + $0xa0] sm:$0xff]  ;;  %v9734_v20 = vpack.c.bf16 %v2751_v2, %v2747_v12  ;;  %v2780_v12 = vld [vmem:[%s15104_s26 + $0x190] sm:$0xff] }
 0xba1   :  { %v2493_v39 = vrot.slane %v2414_v27, 4  ;;  %v2495_v55 = vrot.slane %v2485_v28, 4  ;;  %v2748_v27 = vld [vmem:[%s15104_s26 + $0x90] sm:$0xff] }
 0xba2   :  { %v2500_v41 = vadd.f32 %v2492_v26, %v2339_v32  ;;  %v2502_v23 = vadd.f32 %v2494_v7, %v2341_v9  ;;  %v9766_v26 = vpack.c.bf16 %v2753_v4, %v2749_v3  ;;  %v2752_v28 = vld [vmem:[%s15104_s26 + $0xb0] sm:$0xff]  ;;  %v2755_v32 = vld [vmem:[%s15104_s26 + $0xc8] sm:$0xff] }
 0xba3   :  { %v2501_v46 = vadd.f32 %v2493_v39, %v2340_v42  ;;  %v2503_v6 = vadd.f32 %v2495_v55, %v2342_v60  ;;  %v2759_v39 = vld [vmem:[%s15104_s26 + $0xe8] sm:$0xff]  ;;  %v2761_v42 = vld [vmem:[%s15104_s26 + $0xf8] sm:$0xff]  ;;  %v2758_v55 = vld [vmem:[%s15104_s26 + $0xe0] sm:$0xff] }
 0xba4   :  { %v8767_v52 = vmul.f32 -1.442695, %v2500_v41  ;;  %v2757_v41 = vld [vmem:[%s15104_s26 + $0xd8] sm:$0xff]  ;;  %v9738_v60 = vpack.c.bf16 %v2759_v39, %v2755_v32  ;;  %v2756_v7 = vld [vmem:[%s15104_s26 + $0xd0] sm:$0xff]  ;;  %v2787_v3 = vld [vmem:[%s15104_s26 + $0x1c8] sm:$0xff] }
 0xba5   :  { %v8768_v53 = vmul.f32 -1.442695, %v2501_v46  ;;  %v8769_v13 = vmul.f32 -1.442695, %v2503_v6  ;;  %v9736_v46 = vpack.c.bf16 %v2750_v16, %v2746_v15  ;;  %v9770_v6 = vpack.c.bf16 %v2761_v42, %v2757_v41  ;;  %v2760_v9 = vld [vmem:[%s15104_s26 + $0xf0] sm:$0xff]  ;;  %v2791_v4 = vld [vmem:[%s15104_s26 + $0x1e8] sm:$0xff] }
 0xba6   :  { %11691 = vpow2.f32 %v8767_v52  ;;  %v9768_v52 = vpack.c.bf16 %v2752_v28, %v2748_v27  ;;  %v2784_v2 = vld [vmem:[%s15104_s26 + $0x1b0] sm:$0xff]  ;;  %v2790_v28 = vld [vmem:[%s15104_s26 + $0x1e0] sm:$0xff] }
 0xba7   :  { %11693 = vpow2.f32 %v8768_v53  ;;  %v2754_v53 = vld [vmem:[%s15104_s26 + $0xc0] sm:$0xff]  ;;  %v9784_v16 = vpack.c.bf16 %v2784_v2, %v2780_v12  ;;  %v2788_v32 = vld [vmem:[%s15104_s26 + $0x1d0] sm:$0xff]  ;;  %v3025_v12 = vld [vmem:[%s15105_s24 + $0xf8] sm:$0xff] }
 0xba8   :  { %11695 = vpow2.f32 %v8769_v13  ;;  %v2763_v13 = vld [vmem:[%s15104_s26 + $0x108] sm:$0xff]  ;;  %v2792_v39 = vld [vmem:[%s15104_s26 + $0x1f0] sm:$0xff]  ;;  %v3018_v2 = vld [vmem:[%s15105_s24 + $0xc0] sm:$0xff] }
 0xba9   :  { %11697 = vtanh.f32 %v2502_v23  ;;  %v2767_v23 = vld [vmem:[%s15104_s26 + $0x128] sm:$0xff]  ;;  %v9788_v42 = vpack.c.bf16 %v2792_v39, %v2788_v32  ;;  %v3033_v32 = vld [vmem:[%s15105_s24 + $0x138] sm:$0xff]  ;;  %v3026_v39 = vld [vmem:[%s15105_s24 + $0x100] sm:$0xff] }
 0xbb0   :  { %v11692_v24 = vpop.eup %11691 }
 0xbb1   :  { %v11694_v25 = vpop.eup %11693  ;;  %v2507_v31 = vadd.f32 1.0, %v11692_v24  ;;  %v2765_v24 = vld [vmem:[%s15104_s26 + $0x118] sm:$0xff] }
 0xbb2   :  { %v2513_v35 = vadd.f32 1.0, %v11694_v25  ;;  %v11696_v36 = vpop.eup %11695  ;;  %v2769_v25 = vld [vmem:[%s15104_s26 + $0x138] sm:$0xff] }
 0xbb3   :  { %11699 = vrcp.f32 %v2507_v31  ;;  %v11698_v18 = vpop.eup %11697  ;;  %v2520_v62 = vadd.f32 1.0, %v11696_v36  ;;  %v9740_v31 = vpack.c.bf16 %v2758_v55, %v2754_v53  ;;  %v2762_v36 = vld [vmem:[%s15104_s26 + $0x100] sm:$0xff]  ;;  %v2995_v53 = vld [vmem:[%s15105_s24 + $0x8] sm:$0xff] }
 0xbb4   :  { %11701 = vrcp.f32 %v2513_v35  ;;  %v9772_v35 = vpack.c.bf16 %v2760_v9, %v2756_v7  ;;  %v2999_v55 = vld [vmem:[%s15105_s24 + $0x28] sm:$0xff]  ;;  %v3001_v7 = vld [vmem:[%s15105_s24 + $0x38] sm:$0xff]  ;;  %v2994_v9 = vld [vmem:[%s15105_s24] sm:$0xff] }
 0xbb5   :  { %11703 = vrcp.f32 %v2520_v62  ;;  %v2771_v62 = vld [vmem:[%s15104_s26 + $0x148] sm:$0xff] }
 0xbbd   :  { %v11700_v33 = vpop.eup %11699 }
 0xbbe   :  { %v11702_v57 = vpop.eup %11701  ;;  %v2527_v38 = vmul.f32 %v11700_v33, %v11698_v18  ;;  %v2766_v18 = vld [vmem:[%s15104_s26 + $0x120] sm:$0xff]  ;;  %v9742_v33 = vpack.c.bf16 %v2767_v23, %v2763_v13 }
 0xbbf   :  { %v2526_v19 = vmul.f32 %v11702_v57, %v2524_v44  ;;  %v11704_v58 = vpop.eup %11703  ;;  %v9774_v44 = vpack.c.bf16 %v2769_v25, %v2765_v24  ;;  %v2764_v57 = vld [vmem:[%s15104_s26 + $0x110] sm:$0xff]  ;;  %v2998_v13 = vld [vmem:[%s15105_s24 + $0x20] sm:$0xff] }
 0xbc0   :  { %v13492_v24 = vpack.c.bf16 %v2998_v13, %v2994_v9  ;;  %v2996_v25 = vld [vmem:[%s15105_s24 + $0x10] sm:$0xff]  ;;  %v3037_v9 = vld [vmem:[%s15105_s24 + $0x158] sm:$0xff] }
 0xbc1   :  { %v13281_v1 = vadd.f32 %v2527_v38, %v2526_v19  ;;  %v2768_v38 = vld [vmem:[%s15104_s26 + $0x130] sm:$0xff]  ;;  %v2775_v19 = vld [vmem:[%s15104_s26 + $0x168] sm:$0xff]  ;;  %v3041_v13 = vld [vmem:[%s15105_s24 + $0x178] sm:$0xff] }
 0xbc2   :  { %v9776_v29 = vpack.c.bf16 %v2768_v38, %v2764_v57  ;;  %v3009_v57 = vld [vmem:[%s15105_s24 + $0x78] sm:$0xff]  ;;  %v3002_v38 = vld [vmem:[%s15105_s24 + $0x40] sm:$0xff] }
 0xbc3   :  { %11705 = vtanh.f32 %v13281_v1 }
 0xbcd   :  { %v11706_v56 = vpop.eup %11705 }
 0xbce   :  { %v2530_v59 = vmul.f32 %v11706_v56, %v11704_v58  ;;  %v9744_v58 = vpack.c.bf16 %v2766_v18, %v2762_v36  ;;  %v9746_v56 = vpack.c.bf16 %v2775_v19, %v2771_v62  ;;  %v3003_v36 = vld [vmem:[%s15105_s24 + $0x48] sm:$0xff]  ;;  %v3006_v62 = vld [vmem:[%s15105_s24 + $0x60] sm:$0xff] }
 0xbcf   :  { %v3007_v18 = vld [vmem:[%s15105_s24 + $0x68] sm:$0xff]  ;;  %v13528_v54 = vpack.c.bf16 %v3006_v62, %v3002_v38  ;;  %v3040_v38 = vld [vmem:[%s15105_s24 + $0x170] sm:$0xff] }
 0xbd0   :  { %2531 = vst [vmem:[#allocation3 + $0x10] sm:$0x30] %v2530_v59  ;;  %v2537_v22 = vrot.slane %v2530_v59, 4  ;;  %v2779_v59 = vld [vmem:[%s15104_s26 + $0x188] sm:$0xff] }
 0xbd1   :  { %v3043_v62 = vld [vmem:[%s15105_s24 + $0x188] sm:$0xff] }
 0xbd2   :  { %2604 = vmatmul.mubr.f32.vlgmr.msra.gmra.mrb[28].mxu0 %v2537_v22  ;;  %2675 = vmatmul.mubr.f32.vlgmr.msra.gmra.mrb[28].mxu1 %v2537_v22  ;;  %v9780_v22 = vpack.c.bf16 %v2776_v40, %v2772_v17  ;;  %v3017_v17 = vld [vmem:[%s15105_s24 + $0xb8] sm:$0xff]  ;;  %v3010_v40 = vld [vmem:[%s15105_s24 + $0x80] sm:$0xff] }
 0xbd3   :  { %9729 = vmatpush1.bf16.msra.mxu0 %v9728_v49  ;;  %9761 = vmatpush1.bf16.msra.mxu1 %v9760_v21  ;;  %v2783_v49 = vld [vmem:[%s15104_s26 + $0x1a8] sm:$0xff]  ;;  %v2781_v21 = vld [vmem:[%s15104_s26 + $0x198] sm:$0xff] }
 0xbd4   :  { %9731 = vmatprep.subr.bf16.mxu0 %v9730_v30  ;;  %9763 = vmatprep.subr.bf16.mxu1 %v9762_v11  ;;  %v2778_v30 = vld [vmem:[%s15104_s26 + $0x180] sm:$0xff]  ;;  %v9750_v34 = vpack.c.bf16 %v2783_v49, %v2779_v59  ;;  %v9782_v37 = vpack.c.bf16 %v2785_v51, %v2781_v21  ;;  %v3012_v51 = vld [vmem:[%s15105_s24 + $0x90] sm:$0xff] }
 0xbd5   :  { %2880 = vmatprep.mubr.f32.mxu0 %v12310_v0  ;;  %2963 = vmatprep.mubr.f32.mxu1 %v12310_v0  ;;  %v2782_v11 = vld [vmem:[%s15104_s26 + $0x1a0] sm:$0xff] }
 0xbd6   :  { %v9752_v15 = vpack.c.bf16 %v2782_v11, %v2778_v30  ;;  %v3014_v59 = vld [vmem:[%s15105_s24 + $0xa0] sm:$0xff]  ;;  %v3019_v30 = vld [vmem:[%s15105_s24 + $0xc8] sm:$0xff] }
 0xbd7   :  { %9733 = vmatpush1.bf16.msra.mxu0 %v9732_v8  ;;  %9765 = vmatpush1.bf16.msra.mxu1 %v9764_v14  ;;  %v2789_v8 = vld [vmem:[%s15104_s26 + $0x1d8] sm:$0xff]  ;;  %v13564_v21 = vpack.c.bf16 %v3014_v59, %v3010_v40  ;;  %v3023_v11 = vld [vmem:[%s15105_s24 + $0xe8] sm:$0xff]  ;;  %v3046_v59 = vld [vmem:[%s15105_s24 + $0x1a0] sm:$0xff] }
 0xbd8   :  { %9735 = vmatprep.subr.bf16.mxu0 %v9734_v20  ;;  %9767 = vmatprep.subr.bf16.mxu1 %v9766_v26  ;;  %v2793_v14 = vld [vmem:[%s15104_s26 + $0x1f8] sm:$0xff]  ;;  %v2786_v20 = vld [vmem:[%s15104_s26 + $0x1c0] sm:$0xff]  ;;  %v9754_v26 = vpack.c.bf16 %v2791_v4, %v2787_v3 }
 0xbd9   :  { %v9786_v27 = vpack.c.bf16 %v2793_v14, %v2789_v8  ;;  %v9756_v41 = vpack.c.bf16 %v2790_v28, %v2786_v20  ;;  %v3022_v3 = vld [vmem:[%s15105_s24 + $0xe0] sm:$0xff]  ;;  %v3020_v14 = vld [vmem:[%s15105_s24 + $0xd0] sm:$0xff]  ;;  %v3027_v20 = vld [vmem:[%s15105_s24 + $0x108] sm:$0xff] }
 0xbda   :  { %v13600_v8 = vpack.c.bf16 %v3022_v3, %v3018_v2  ;;  %v3053_v2 = vld [vmem:[%s15105_s24 + $0x1d8] sm:$0xff] }
 0xbdb   :  { %9737 = vmatpush1.bf16.msra.mxu0 %v9736_v46  ;;  %9769 = vmatpush1.bf16.msra.mxu1 %v9768_v52  ;;  %v2727_v46 = vld [vmem:[#allocation3] sm:$0xff]  ;;  %v2728_v52 = vld [vmem:[#allocation3 + $0x8] sm:$0xff] }
 0xbdc   :  { %9739 = vmatprep.subr.bf16.mxu0 %v9738_v60  ;;  %9771 = vmatprep.subr.bf16.mxu1 %v9770_v6  ;;  %v2997_v60 = vld [vmem:[%s15105_s24 + $0x18] sm:$0xff]  ;;  %v13479_v6 = vpack.c.bf16 %v2999_v55, %v2995_v53  ;;  %v3032_v53 = vld [vmem:[%s15105_s24 + $0x130] sm:$0xff]  ;;  %v3035_v55 = vld [vmem:[%s15105_s24 + $0x148] sm:$0xff] }
 0xbdd   :  { %v13490_v23 = vpack.c.bf16 %v3001_v7, %v2997_v60  ;;  %v3039_v7 = vld [vmem:[%s15105_s24 + $0x168] sm:$0xff] }
 0xbdf   :  { %9741 = vmatpush1.bf16.msra.mxu0 %v9740_v31  ;;  %9773 = vmatpush1.bf16.msra.mxu1 %v9772_v35  ;;  %v3000_v31 = vld [vmem:[%s15105_s24 + $0x30] sm:$0xff] }
 0xbe0   :  { %9743 = vmatprep.subr.bf16.mxu0 %v9742_v33  ;;  %9775 = vmatprep.subr.bf16.mxu1 %v9774_v44  ;;  %v13501_v35 = vpack.c.bf16 %v3000_v31, %v2996_v25  ;;  %v3005_v33 = vld [vmem:[%s15105_s24 + $0x58] sm:$0xff]  ;;  %v13515_v44 = vpack.c.bf16 %v3007_v18, %v3003_v36  ;;  %v13661_v25 = vpack.c.bf16 %v3039_v7, %v3035_v55  ;;  %v3034_v36 = vld [vmem:[%s15105_s24 + $0x140] sm:$0xff] }
 0xbe1   :  { %v13526_v19 = vpack.c.bf16 %v3009_v57, %v3005_v33  ;;  %v13663_v31 = vpack.c.bf16 %v3041_v13, %v3037_v9  ;;  %v3038_v18 = vld [vmem:[%s15105_s24 + $0x160] sm:$0xff]  ;;  %v3036_v33 = vld [vmem:[%s15105_s24 + $0x150] sm:$0xff] }
 0xbe2   :  { %v13675_v57 = vpack.c.bf16 %v3038_v18, %v3034_v36  ;;  %v2532_v13 = vld [vmem:[#allocation2 + $0x40] sm:$0xc0] }
 0xbe3   :  { %9745 = vmatpush1.bf16.msra.mxu0 %v9744_v58  ;;  %9777 = vmatpush1.bf16.msra.mxu1 %v9776_v29  ;;  %v3008_v58 = vld [vmem:[%s15105_s24 + $0x70] sm:$0xff] }
 0xbe4   :  { %9747 = vmatprep.subr.bf16.mxu0 %v9746_v56  ;;  %9779 = vmatprep.subr.bf16.mxu1 %v9778_v61  ;;  %v13537_v29 = vpack.c.bf16 %v3008_v58, %v3004_v10  ;;  %v3013_v56 = vld [vmem:[%s15105_s24 + $0x98] sm:$0xff]  ;;  %v13551_v61 = vpack.c.bf16 %v3015_v5, %v3011_v63  ;;  %v3047_v10 = vld [vmem:[%s15105_s24 + $0x1a8] sm:$0xff]  ;;  %v13688_v58 = vpack.c.bf16 %v3040_v38, %v3036_v33 }
 0xbe5   :  { %v13562_v49 = vpack.c.bf16 %v3017_v17, %v3013_v56  ;;  %v13690_v63 = vpack.c.bf16 %v3047_v10, %v3043_v62  ;;  %v3045_v5 = vld [vmem:[%s15105_s24 + $0x198] sm:$0xff]  ;;  %v3042_v17 = vld [vmem:[%s15105_s24 + $0x180] sm:$0xff]  ;;  %v2533_v33 = vld [vmem:[#allocation2 + $0x48] sm:$0xc0] }
 0xbe6   :  { %v3049_v56 = vld [vmem:[%s15105_s24 + $0x1b8] sm:$0xff] }
 0xbe7   :  { %9749 = vmatpush1.bf16.msra.mxu0 %v9748_v50  ;;  %9781 = vmatpush1.bf16.msra.mxu1 %v9780_v22  ;;  %v3016_v50 = vld [vmem:[%s15105_s24 + $0xb0] sm:$0xff]  ;;  %v13701_v40 = vpack.c.bf16 %v3049_v56, %v3045_v5  ;;  %v2535_v56 = vld [vmem:[#allocation2 + $0x58] sm:$0xc0] }
 0xbe8   :  { %9751 = vmatprep.subr.bf16.mxu0 %v9750_v34  ;;  %9783 = vmatprep.subr.bf16.mxu1 %v9782_v37  ;;  %v13573_v22 = vpack.c.bf16 %v3016_v50, %v3012_v51  ;;  %v3021_v34 = vld [vmem:[%s15105_s24 + $0xd8] sm:$0xff]  ;;  %v13587_v37 = vpack.c.bf16 %v3023_v11, %v3019_v30  ;;  %v3044_v51 = vld [vmem:[%s15105_s24 + $0x190] sm:$0xff]  ;;  %v13713_v30 = vpack.c.bf16 %v3046_v59, %v3042_v17 }
 0xbe9   :  { %v13598_v4 = vpack.c.bf16 %v3025_v12, %v3021_v34  ;;  %v3048_v50 = vld [vmem:[%s15105_s24 + $0x1b0] sm:$0xff]  ;;  %v3051_v34 = vld [vmem:[%s15105_s24 + $0x1c8] sm:$0xff] }
 0xbea   :  { %v13717_v11 = vpack.c.bf16 %v3048_v50, %v3044_v51  ;;  %v3055_v12 = vld [vmem:[%s15105_s24 + $0x1e8] sm:$0xff]  ;;  %v2534_v51 = vld [vmem:[#allocation2 + $0x50] sm:$0xc0] }
 0xbeb   :  { %9753 = vmatpush1.bf16.msra.mxu0 %v9752_v15  ;;  %9785 = vmatpush1.bf16.msra.mxu1 %v9784_v16  ;;  %v3024_v15 = vld [vmem:[%s15105_s24 + $0xf0] sm:$0xff]  ;;  %v13729_v3 = vpack.c.bf16 %v3055_v12, %v3051_v34 }
 0xbec   :  { %9755 = vmatprep.subr.bf16.mxu0 %v9754_v26  ;;  %9787 = vmatprep.subr.bf16.mxu1 %v9786_v27  ;;  %v13609_v16 = vpack.c.bf16 %v3024_v15, %v3020_v14  ;;  %v3031_v26 = vld [vmem:[%s15105_s24 + $0x128] sm:$0xff]  ;;  %v3029_v27 = vld [vmem:[%s15105_s24 + $0x118] sm:$0xff]  ;;  %v3050_v15 = vld [vmem:[%s15105_s24 + $0x1c0] sm:$0xff] }
 0xbed   :  { %v13623_v28 = vpack.c.bf16 %v3031_v26, %v3027_v20  ;;  %v3057_v14 = vld [vmem:[%s15105_s24 + $0x1f8] sm:$0xff]  ;;  %v3054_v20 = vld [vmem:[%s15105_s24 + $0x1e0] sm:$0xff] }
 0xbee   :  { %v13740_v26 = vpack.c.bf16 %v3057_v14, %v3053_v2 }
 0xbef   :  { %9757 = vmatpush1.bf16.msra.mxu0 %v9756_v41  ;;  %9789 = vmatpush1.bf16.msra.mxu1 %v9788_v42  ;;  %v3030_v41 = vld [vmem:[%s15105_s24 + $0x120] sm:$0xff]  ;;  %v13634_v42 = vpack.c.bf16 %v3033_v32, %v3029_v27  ;;  %v3052_v27 = vld [vmem:[%s15105_s24 + $0x1d0] sm:$0xff] }
 0xbf0   :  { %9791 = vmatprep.subr.bf16.mxu0 %v13479_v6  ;;  %9823 = vmatprep.subr.bf16.mxu1 %v13490_v23  ;;  %v3056_v32 = vld [vmem:[%s15105_s24 + $0x1f0] sm:$0xff] }
 0xbf2   :  { %2881 = vmatmul.mubr.f32.vlgmr.msra.gmra.mrb[30].mxu0 %v2727_v46  ;;  %2964 = vmatmul.mubr.f32.vlgmr.msra.gmra.mrb[30].mxu1 %v2727_v46  ;;  %v13636_v46 = vpack.c.bf16 %v3030_v41, %v3026_v39  ;;  %v13749_v39 = vpack.c.bf16 %v3054_v20, %v3050_v15  ;;  %v13753_v41 = vpack.c.bf16 %v3056_v32, %v3052_v27  ;;  %v2794_v20 = vld [vmem:[%s15106_s4] sm:$0xf] }
 0xbf3   :  { %2886 = vmatprep.mubr.f32.mxu0 %v12310_v0  ;;  %2969 = vmatprep.mubr.f32.mxu1 %v12310_v0 }
 0xbf4   :  { %9793 = vmatpush1.bf16.msra.mxu0 %v13492_v24  ;;  %9825 = vmatpush1.bf16.msra.mxu1 %v13501_v35 }
 0xbf5   :  { %9795 = vmatprep.subr.bf16.mxu0 %v13515_v44  ;;  %9827 = vmatprep.subr.bf16.mxu1 %v13526_v19 }
 0xbf6   :  { %2887 = vmatmul.mubr.f32.gmra.mrb[32].mxu0 %v2728_v52  ;;  %2970 = vmatmul.mubr.f32.gmra.mrb[32].mxu1 %v2728_v52  ;;  %v3028_v52 = vld [vmem:[%s15105_s24 + $0x110] sm:$0xff] }
 0xbf7   :  { %2892 = vmatprep.mubr.f32.mxu0 %v12310_v0  ;;  %2975 = vmatprep.mubr.f32.mxu1 %v12310_v0  ;;  %v13648_v60 = vpack.c.bf16 %v3032_v53, %v3028_v52 }
 0xbf8   :  { %9797 = vmatpush1.bf16.msra.mxu0 %v13528_v54  ;;  %9829 = vmatpush1.bf16.msra.mxu1 %v13537_v29 }
 0xbf9   :  { %9799 = vmatprep.subr.bf16.mxu0 %v13551_v61  ;;  %9831 = vmatprep.subr.bf16.mxu1 %v13562_v49 }
 0xbfc   :  { %9801 = vmatpush1.bf16.msra.mxu0 %v13564_v21  ;;  %9833 = vmatpush1.bf16.msra.mxu1 %v13573_v22 }
 0xbfd   :  { %9803 = vmatprep.subr.bf16.mxu0 %v13587_v37  ;;  %9835 = vmatprep.subr.bf16.mxu1 %v13598_v4 }
 0xc00   :  { %9805 = vmatpush1.bf16.msra.mxu0 %v13600_v8  ;;  %9837 = vmatpush1.bf16.msra.mxu1 %v13609_v16 }
 0xc01   :  { %9807 = vmatprep.subr.bf16.mxu0 %v13623_v28  ;;  %9839 = vmatprep.subr.bf16.mxu1 %v13634_v42 }
 0xc04   :  { %9809 = vmatpush1.bf16.msra.mxu0 %v13636_v46  ;;  %9841 = vmatpush1.bf16.msra.mxu1 %v13648_v60 }
 0xc05   :  { %9811 = vmatprep.subr.bf16.mxu0 %v13661_v25  ;;  %9843 = vmatprep.subr.bf16.mxu1 %v13663_v31 }
 0xc08   :  { %9813 = vmatpush1.bf16.msra.mxu0 %v13675_v57  ;;  %9845 = vmatpush1.bf16.msra.mxu1 %v13688_v58 }
 0xc09   :  { %9815 = vmatprep.subr.bf16.mxu0 %v13690_v63  ;;  %9847 = vmatprep.subr.bf16.mxu1 %v13701_v40 }
 0xc0c   :  { %9817 = vmatpush1.bf16.msra.mxu0 %v13713_v30  ;;  %9849 = vmatpush1.bf16.msra.mxu1 %v13717_v11 }
 0xc0d   :  { %9819 = vmatprep.subr.bf16.mxu0 %v13729_v3  ;;  %9851 = vmatprep.subr.bf16.mxu1 %v13740_v26 }
 0xc10   :  { %9821 = vmatpush1.bf16.msra.mxu0 %v13749_v39  ;;  %9853 = vmatpush1.bf16.msra.mxu1 %v13753_v41 }
 0xc11   :  { %9855 = vmatprep.subr.bf16.mxu0 %v13479_v6  ;;  %9887 = vmatprep.subr.bf16.mxu1 %v13490_v23 }
 0xca5   :  { %v2605_v52 = vpop.f32.mrb[28].mxu0  ;;  %v2676_v53 = vpop.f32.mrb[28].mxu1 }
 0xca6   :  { %v2685_v55 = vrot.slane %v2605_v52, 2  ;;  %v2607_v7 = vpop.f32.mrb[29].mxu0  ;;  %v2678_v9 = vpop.f32.mrb[29].mxu1  ;;  %v2687_v59 = vrot.slane %v2676_v53, 2  ;;  %v13764_v52 = vrot.slane %v2794_v20, %v12873_v43  ;;  %v13767_v53 = vrot.slane %v2794_v20, %v12880_v47 }
 0xca7   :  { %v2686_v36 = vrot.slane %v2607_v7, 2  ;;  %v2688_v5 = vrot.slane %v2678_v9, 2  ;;  %v2717_v7 = vrot.slane %v13281_v1, 6  ;;  %v13771_v9 = vrot.slane %v2794_v20, %v12878_v45 }
 0xca8   :  { %v2693_v18 = vadd.f32 %v2685_v55, %v2532_v13  ;;  %v2695_v34 = vadd.f32 %v2687_v59, %v2534_v51  ;;  %v13774_v13 = vrot.slane %v2794_v20, %v12882_v48 }
 0xca9   :  { %v2694_v38 = vadd.f32 %v2686_v36, %v2533_v33  ;;  %v2696_v17 = vadd.f32 %v2688_v5, %v2535_v56 }
 0xcaa   :  { %v8770_v62 = vmul.f32 -1.442695, %v2693_v18 }
 0xcab   :  { %v8771_v10 = vmul.f32 -1.442695, %v2694_v38  ;;  %v8772_v50 = vmul.f32 -1.442695, %v2696_v17 }
 0xcac   :  { %11707 = vpow2.f32 %v8770_v62 }
 0xcad   :  { %11709 = vpow2.f32 %v8771_v10 }
 0xcae   :  { %11711 = vpow2.f32 %v8772_v50 }
 0xcaf   :  { %11713 = vtanh.f32 %v2695_v34 }
 0xcb6   :  { %v11708_v12 = vpop.eup %11707 }
 0xcb7   :  { %v11710_v2 = vpop.eup %11709  ;;  %v2700_v14 = vadd.f32 1.0, %v11708_v12 }
 0xcb8   :  { %v2706_v15 = vadd.f32 1.0, %v11710_v2  ;;  %v11712_v27 = vpop.eup %11711 }
 0xcb9   :  { %11715 = vrcp.f32 %v2700_v14  ;;  %v11714_v32 = vpop.eup %11713  ;;  %v2713_v33 = vadd.f32 1.0, %v11712_v27 }
 0xcba   :  { %11717 = vrcp.f32 %v2706_v15 }
 0xcbb   :  { %11719 = vrcp.f32 %v2713_v33  ;;  %v8773_v33 = vld [vmem:[%s15070_s10 + $0x2] sm:$0x3] }
 0xcc3   :  { %v11716_v55 = vpop.eup %11715 }
 0xcc4   :  { %v11718_v36 = vpop.eup %11717  ;;  %v2720_v18 = vmul.f32 %v11716_v55, %v11714_v32 }
 0xcc5   :  { %v2719_v38 = vmul.f32 %v11718_v36, %v2717_v7  ;;  %v2882_v62 = vpop.f32.mrb[30].mxu0  ;;  %v2965_v10 = vpop.f32.mrb[30].mxu1 }
 0xcc6   :  { %v2883_v5 = vadd.f32 %v2882_v62, %v13764_v52  ;;  %v2966_v56 = vadd.f32 %v2965_v10, %v13767_v53  ;;  %v2884_v17 = vpop.f32.mrb[31].mxu0  ;;  %v2967_v59 = vpop.f32.mrb[31].mxu1 }
 0xcc7   :  { %v2721_v51 = vadd.f32 %v2720_v18, %v2719_v38  ;;  %v2885_v1 = vadd.f32 %v2884_v17, %v13771_v9  ;;  %v2968_v50 = vadd.f32 %v2967_v59, %v13774_v13  ;;  %v11720_v55 = vpop.eup %11719 }
 0xcc8   :  { %2982 = vst [vmem:[#allocation2] sm:$0xff] %v2883_v5  ;;  %2984 = vst [vmem:[#allocation2 + $0x10] sm:$0xff] %v2966_v56 }
 0xcc9   :  { %11721 = vtanh.f32 %v2721_v51  ;;  %2726 = vst [vmem:[#allocation17 - $0x6] sm:$0xc0] %v2721_v51  ;;  %2983 = vst [vmem:[#allocation2 + $0x8] sm:$0xff] %v2885_v1  ;;  %v2888_v34 = vpop.f32.mrb[32].mxu0  ;;  %v2971_v12 = vpop.f32.mrb[32].mxu1 }
 0xcca   :  { %2985 = vst [vmem:[#allocation2 + $0x18] sm:$0xff] %v2968_v50  ;;  %v2889_v2 = vadd.f32 %v2888_v34, %v13764_v52  ;;  %v2972_v14 = vadd.f32 %v2971_v12, %v13767_v53  ;;  %v2890_v15 = vpop.f32.mrb[33].mxu0  ;;  %v2973_v20 = vpop.f32.mrb[33].mxu1 }
 0xccb   :  { %v2891_v27 = vadd.f32 %v2890_v15, %v13771_v9  ;;  %v2974_v32 = vadd.f32 %v2973_v20, %v13774_v13 }
 0xccc   :  { %2986 = vst [vmem:[#allocation2 + $0x20] sm:$0xff] %v2889_v2  ;;  %2988 = vst [vmem:[#allocation2 + $0x30] sm:$0xff] %v2972_v14 }
 0xccd   :  { %2987 = vst [vmem:[#allocation2 + $0x28] sm:$0xff] %v2891_v27  ;;  %2989 = vst [vmem:[#allocation2 + $0x38] sm:$0xff] %v2974_v32 }
 0xccf   :  { %v3062_v1 = vld [vmem:[#allocation2] sm:$0x3]  ;;  %v3064_v32 = vld [vmem:[#allocation2 + $0x10] sm:$0x3] }
 0xcd0   :  { %v3063_v2 = vld [vmem:[#allocation2 + $0x8] sm:$0x3] }
 0xcd1   :  { %v3065_v27 = vld [vmem:[#allocation2 + $0x18] sm:$0x3] }
 0xcd3   :  { %v11722_v7 = vpop.eup %11721 }
 0xcd4   :  { %v2723_v36 = vmul.f32 %v11722_v7, %v11720_v55 }
 0xcd6   :  { %2724 = vst [vmem:[#allocation3 + $0x10] sm:$0xc0] %v2723_v36  ;;  %2725 = vst [vmem:[#allocation15 - $0x6] sm:$0xc0] %v2723_v36 }
 0xcdd   :  { %v2729_v18 = vld [vmem:[#allocation3 + $0x10] sm:$0xff] }
 0xcde   :  { %2893 = vmatmul.mubr.f32.gmra.mrb[34].mxu0 %v2729_v18  ;;  %2976 = vmatmul.mubr.f32.gmra.mrb[34].mxu1 %v2729_v18 }
 0xcdf   :  { %3130 = vmatprep.mubr.f32.mxu0 %v12310_v0  ;;  %3201 = vmatprep.mubr.f32.mxu1 %v12310_v0 }
 0xce2   :  { %3131 = vmatmul.mubr.f32.vlgmr.msra.gmra.mrb[36].mxu0 %v8773_v33  ;;  %3202 = vmatmul.mubr.f32.vlgmr.msra.gmra.mrb[36].mxu1 %v8773_v33 }
 0xce3   :  { %9857 = vmatpush1.bf16.msra.mxu0 %v13492_v24  ;;  %9889 = vmatpush1.bf16.msra.mxu1 %v13501_v35 }
 0xce4   :  { %9859 = vmatprep.subr.bf16.mxu0 %v13515_v44  ;;  %9891 = vmatprep.subr.bf16.mxu1 %v13526_v19 }
 0xce5   :  { %3305 = vmatprep.mubr.f32.mxu0 %v12310_v0  ;;  %3376 = vmatprep.mubr.f32.mxu1 %v12310_v0 }
 0xce7   :  { %9861 = vmatpush1.bf16.msra.mxu0 %v13528_v54  ;;  %9893 = vmatpush1.bf16.msra.mxu1 %v13537_v29 }
 0xce8   :  { %9863 = vmatprep.subr.bf16.mxu0 %v13551_v61  ;;  %9895 = vmatprep.subr.bf16.mxu1 %v13562_v49 }
 0xceb   :  { %9865 = vmatpush1.bf16.msra.mxu0 %v13564_v21  ;;  %9897 = vmatpush1.bf16.msra.mxu1 %v13573_v22 }
 0xcec   :  { %9867 = vmatprep.subr.bf16.mxu0 %v13587_v37  ;;  %9899 = vmatprep.subr.bf16.mxu1 %v13598_v4 }
 0xcef   :  { %9869 = vmatpush1.bf16.msra.mxu0 %v13600_v8  ;;  %9901 = vmatpush1.bf16.msra.mxu1 %v13609_v16 }
 0xcf0   :  { %9871 = vmatprep.subr.bf16.mxu0 %v13623_v28  ;;  %9903 = vmatprep.subr.bf16.mxu1 %v13634_v42 }
 0xcf3   :  { %9873 = vmatpush1.bf16.msra.mxu0 %v13636_v46  ;;  %9905 = vmatpush1.bf16.msra.mxu1 %v13648_v60 }
 0xcf4   :  { %9875 = vmatprep.subr.bf16.mxu0 %v13661_v25  ;;  %9907 = vmatprep.subr.bf16.mxu1 %v13663_v31 }
 0xcf7   :  { %9877 = vmatpush1.bf16.msra.mxu0 %v13675_v57  ;;  %9909 = vmatpush1.bf16.msra.mxu1 %v13688_v58 }
 0xcf8   :  { %9879 = vmatprep.subr.bf16.mxu0 %v13690_v63  ;;  %9911 = vmatprep.subr.bf16.mxu1 %v13701_v40 }
 0xcfb   :  { %9881 = vmatpush1.bf16.msra.mxu0 %v13713_v30  ;;  %9913 = vmatpush1.bf16.msra.mxu1 %v13717_v11 }
 0xcfc   :  { %9883 = vmatprep.subr.bf16.mxu0 %v13729_v3  ;;  %9915 = vmatprep.subr.bf16.mxu1 %v13740_v26 }
 0xcff   :  { %9885 = vmatpush1.bf16.msra.mxu0 %v13749_v39  ;;  %9917 = vmatpush1.bf16.msra.mxu1 %v13753_v41 }
 0xd00   :  { %9919 = vmatprep.subr.bf16.mxu0 %v13479_v6  ;;  %9951 = vmatprep.subr.bf16.mxu1 %v13490_v23 }
 0xdb1   :  { %v2894_v38 = vpop.f32.mrb[34].mxu0  ;;  %v2977_v62 = vpop.f32.mrb[34].mxu1 }
 0xdb2   :  { %v2895_v10 = vadd.f32 %v2894_v38, %v13764_v52  ;;  %v2978_v5 = vadd.f32 %v2977_v62, %v13767_v53  ;;  %v2896_v56 = vpop.f32.mrb[35].mxu0  ;;  %v2979_v17 = vpop.f32.mrb[35].mxu1 }
 0xdb3   :  { %v2897_v59 = vadd.f32 %v2896_v56, %v13771_v9  ;;  %v2980_v51 = vadd.f32 %v2979_v17, %v13774_v13 }
 0xdb4   :  { %2990 = vst [vmem:[#allocation2 + $0x40] sm:$0xff] %v2895_v10  ;;  %2992 = vst [vmem:[#allocation2 + $0x50] sm:$0xff] %v2978_v5  ;;  %v8774_v10 = vld [vmem:[%s15071_s11 + $0x2] sm:$0x3] }
 0xdb5   :  { %2991 = vst [vmem:[#allocation2 + $0x48] sm:$0xff] %v2897_v59  ;;  %2993 = vst [vmem:[#allocation2 + $0x58] sm:$0xff] %v2980_v51  ;;  %v3132_v50 = vpop.f32.mrb[36].mxu0  ;;  %v3203_v34 = vpop.f32.mrb[36].mxu1 }
 0xdb6   :  { %v3208_v12 = vadd.f32 %v3132_v50, %v3062_v1  ;;  %v3134_v14 = vpop.f32.mrb[37].mxu0  ;;  %v3205_v15 = vpop.f32.mrb[37].mxu1  ;;  %v3210_v55 = vadd.f32 %v3203_v34, %v3064_v32  ;;  %v3238_v32 = vld [vmem:[#allocation2 + $0x8] sm:$0xc] }
 0xdb7   :  { %v3209_v52 = vadd.f32 %v3134_v14, %v3063_v2  ;;  %v3211_v9 = vadd.f32 %v3205_v15, %v3065_v27 }
 0xdb8   :  { %v8775_v20 = vmul.f32 -1.442695, %v3208_v12 }
 0xdb9   :  { %v8776_v53 = vmul.f32 -1.442695, %v3209_v52  ;;  %v8777_v13 = vmul.f32 -1.442695, %v3211_v9 }
 0xdba   :  { %11723 = vpow2.f32 %v8775_v20 }
 0xdbb   :  { %11725 = vpow2.f32 %v8776_v53  ;;  %v3237_v53 = vld [vmem:[#allocation2] sm:$0xc] }
 0xdbc   :  { %11727 = vpow2.f32 %v8777_v13 }
 0xdbd   :  { %11729 = vtanh.f32 %v3210_v55 }
 0xdc4   :  { %v11724_v7 = vpop.eup %11723 }
 0xdc5   :  { %v11726_v36 = vpop.eup %11725  ;;  %v3215_v18 = vadd.f32 1.0, %v11724_v7 }
 0xdc6   :  { %v3221_v33 = vadd.f32 1.0, %v11726_v36  ;;  %v11728_v38 = vpop.eup %11727 }
 0xdc7   :  { %11731 = vrcp.f32 %v3215_v18  ;;  %v11730_v62 = vpop.eup %11729  ;;  %v3228_v59 = vadd.f32 1.0, %v11728_v38  ;;  %v3240_v18 = vld [vmem:[#allocation2 + $0x18] sm:$0xc] }
 0xdc8   :  { %11733 = vrcp.f32 %v3221_v33 }
 0xdc9   :  { %11735 = vrcp.f32 %v3228_v59 }
 0xdd1   :  { %v11732_v5 = vpop.eup %11731 }
 0xdd2   :  { %v11734_v56 = vpop.eup %11733  ;;  %v3232_v17 = vmul.f32 %v11732_v5, %v11730_v62  ;;  %v3239_v62 = vld [vmem:[#allocation2 + $0x10] sm:$0xc] }
 0xdd3   :  { %v3231_v51 = vmul.f32 %v11734_v56, %v8774_v10  ;;  %v11736_v50 = vpop.eup %11735 }
 0xdd5   :  { %v13830_v1 = vadd.f32 %v3232_v17, %v3231_v51 }
 0xdd7   :  { %11737 = vtanh.f32 %v13830_v1 }
 0xde1   :  { %v11738_v34 = vpop.eup %11737 }
 0xde2   :  { %v3235_v12 = vmul.f32 %v11738_v34, %v11736_v50 }
 0xde4   :  { %3236 = vst [vmem:[#allocation3] sm:$0x3] %v3235_v12  ;;  %3306 = vmatmul.mubr.f32.vlgmr.msra.gmra.mrb[38].mxu0 %v3235_v12  ;;  %3377 = vmatmul.mubr.f32.vlgmr.msra.gmra.mrb[38].mxu1 %v3235_v12 }
 0xde5   :  { %9921 = vmatpush1.bf16.msra.mxu0 %v13492_v24  ;;  %9953 = vmatpush1.bf16.msra.mxu1 %v13501_v35 }
 0xde6   :  { %9923 = vmatprep.subr.bf16.mxu0 %v13515_v44  ;;  %9955 = vmatprep.subr.bf16.mxu1 %v13526_v19 }
 0xde7   :  { %3498 = vmatprep.mubr.f32.mxu0 %v12310_v0  ;;  %3569 = vmatprep.mubr.f32.mxu1 %v12310_v0 }
 0xde9   :  { %9925 = vmatpush1.bf16.msra.mxu0 %v13528_v54  ;;  %9957 = vmatpush1.bf16.msra.mxu1 %v13537_v29 }
 0xdea   :  { %9927 = vmatprep.subr.bf16.mxu0 %v13551_v61  ;;  %9959 = vmatprep.subr.bf16.mxu1 %v13562_v49 }
 0xded   :  { %9929 = vmatpush1.bf16.msra.mxu0 %v13564_v21  ;;  %9961 = vmatpush1.bf16.msra.mxu1 %v13573_v22 }
 0xdee   :  { %9931 = vmatprep.subr.bf16.mxu0 %v13587_v37  ;;  %9963 = vmatprep.subr.bf16.mxu1 %v13598_v4 }
 0xdf1   :  { %9933 = vmatpush1.bf16.msra.mxu0 %v13600_v8  ;;  %9965 = vmatpush1.bf16.msra.mxu1 %v13609_v16 }
 0xdf2   :  { %9935 = vmatprep.subr.bf16.mxu0 %v13623_v28  ;;  %9967 = vmatprep.subr.bf16.mxu1 %v13634_v42 }
 0xdf5   :  { %9937 = vmatpush1.bf16.msra.mxu0 %v13636_v46  ;;  %9969 = vmatpush1.bf16.msra.mxu1 %v13648_v60 }
 0xdf6   :  { %9939 = vmatprep.subr.bf16.mxu0 %v13661_v25  ;;  %9971 = vmatprep.subr.bf16.mxu1 %v13663_v31 }
 0xdf9   :  { %9941 = vmatpush1.bf16.msra.mxu0 %v13675_v57  ;;  %9973 = vmatpush1.bf16.msra.mxu1 %v13688_v58 }
 0xdfa   :  { %9943 = vmatprep.subr.bf16.mxu0 %v13690_v63  ;;  %9975 = vmatprep.subr.bf16.mxu1 %v13701_v40 }
 0xdfd   :  { %9945 = vmatpush1.bf16.msra.mxu0 %v13713_v30  ;;  %9977 = vmatpush1.bf16.msra.mxu1 %v13717_v11 }
 0xdfe   :  { %9947 = vmatprep.subr.bf16.mxu0 %v13729_v3  ;;  %9979 = vmatprep.subr.bf16.mxu1 %v13740_v26 }
 0xe01   :  { %9949 = vmatpush1.bf16.msra.mxu0 %v13749_v39  ;;  %9981 = vmatpush1.bf16.msra.mxu1 %v13753_v41 }
 0xe02   :  { %9983 = vmatprep.subr.bf16.mxu0 %v13479_v6  ;;  %10015 = vmatprep.subr.bf16.mxu1 %v13490_v23 }
 0xeb7   :  { %v3307_v2 = vpop.f32.mrb[38].mxu0  ;;  %v3378_v14 = vpop.f32.mrb[38].mxu1 }
 0xeb8   :  { %v3387_v15 = vrot.slane %v3307_v2, 6  ;;  %v3309_v52 = vpop.f32.mrb[39].mxu0  ;;  %v3380_v20 = vpop.f32.mrb[39].mxu1  ;;  %v3389_v38 = vrot.slane %v3378_v14, 6  ;;  %v3419_v2 = vrot.slane %v13830_v1, 6 }
 0xeb9   :  { %v3388_v27 = vrot.slane %v3309_v52, 6  ;;  %v3390_v36 = vrot.slane %v3380_v20, 6 }
 0xeba   :  { %v3395_v9 = vadd.f32 %v3387_v15, %v3237_v53  ;;  %v3397_v5 = vadd.f32 %v3389_v38, %v3239_v62 }
 0xebb   :  { %v3396_v13 = vadd.f32 %v3388_v27, %v3238_v32  ;;  %v3398_v33 = vadd.f32 %v3390_v36, %v3240_v18 }
 0xebc   :  { %v8778_v55 = vmul.f32 -1.442695, %v3395_v9 }
 0xebd   :  { %v8779_v7 = vmul.f32 -1.442695, %v3396_v13  ;;  %v8780_v10 = vmul.f32 -1.442695, %v3398_v33  ;;  %v3427_v33 = vld [vmem:[#allocation2] sm:$0x30] }
 0xebe   :  { %11739 = vpow2.f32 %v8778_v55 }
 0xebf   :  { %11741 = vpow2.f32 %v8779_v7 }
 0xec0   :  { %11743 = vpow2.f32 %v8780_v10  ;;  %v3428_v10 = vld [vmem:[#allocation2 + $0x8] sm:$0x30] }
 0xec1   :  { %11745 = vtanh.f32 %v3397_v5 }
 0xec8   :  { %v11740_v56 = vpop.eup %11739 }
 0xec9   :  { %v11742_v17 = vpop.eup %11741  ;;  %v3402_v59 = vadd.f32 1.0, %v11740_v56 }
 0xeca   :  { %v3408_v51 = vadd.f32 1.0, %v11742_v17  ;;  %v11744_v50 = vpop.eup %11743 }
 0xecb   :  { %11747 = vrcp.f32 %v3402_v59  ;;  %v11746_v34 = vpop.eup %11745  ;;  %v3415_v20 = vadd.f32 1.0, %v11744_v50 }
 0xecc   :  { %11749 = vrcp.f32 %v3408_v51  ;;  %v3430_v51 = vld [vmem:[#allocation2 + $0x18] sm:$0x30] }
 0xecd   :  { %11751 = vrcp.f32 %v3415_v20 }
 0xed5   :  { %v11748_v12 = vpop.eup %11747 }
 0xed6   :  { %v11750_v15 = vpop.eup %11749  ;;  %v3422_v52 = vmul.f32 %v11748_v12, %v11746_v34  ;;  %v3429_v12 = vld [vmem:[#allocation2 + $0x10] sm:$0x30] }
 0xed7   :  { %v3421_v14 = vmul.f32 %v11750_v15, %v3419_v2  ;;  %v11752_v27 = vpop.eup %11751 }
 0xed9   :  { %v13868_v53 = vadd.f32 %v3422_v52, %v3421_v14 }
 0xedb   :  { %11753 = vtanh.f32 %v13868_v53 }
 0xee5   :  { %v11754_v9 = vpop.eup %11753 }
 0xee6   :  { %v3425_v32 = vmul.f32 %v11754_v9, %v11752_v27 }
 0xee8   :  { %3426 = vst [vmem:[#allocation3] sm:$0xc] %v3425_v32  ;;  %v3432_v13 = vrot.slane %v3425_v32, 2 }
 0xeea   :  { %3499 = vmatmul.mubr.f32.vlgmr.msra.gmra.mrb[40].mxu0 %v3432_v13  ;;  %3570 = vmatmul.mubr.f32.vlgmr.msra.gmra.mrb[40].mxu1 %v3432_v13 }
 0xeeb   :  { %9985 = vmatpush1.bf16.msra.mxu0 %v13492_v24  ;;  %10017 = vmatpush1.bf16.msra.mxu1 %v13501_v35 }
 0xeec   :  { %9987 = vmatprep.subr.bf16.mxu0 %v13515_v44  ;;  %10019 = vmatprep.subr.bf16.mxu1 %v13526_v19 }
 0xeed   :  { %3691 = vmatprep.mubr.f32.mxu0 %v12310_v0  ;;  %3762 = vmatprep.mubr.f32.mxu1 %v12310_v0 }
 0xeef   :  { %9989 = vmatpush1.bf16.msra.mxu0 %v13528_v54  ;;  %10021 = vmatpush1.bf16.msra.mxu1 %v13537_v29 }
 0xef0   :  { %9991 = vmatprep.subr.bf16.mxu0 %v13551_v61  ;;  %10023 = vmatprep.subr.bf16.mxu1 %v13562_v49 }
 0xef3   :  { %9993 = vmatpush1.bf16.msra.mxu0 %v13564_v21  ;;  %10025 = vmatpush1.bf16.msra.mxu1 %v13573_v22 }
 0xef4   :  { %9995 = vmatprep.subr.bf16.mxu0 %v13587_v37  ;;  %10027 = vmatprep.subr.bf16.mxu1 %v13598_v4 }
 0xef7   :  { %9997 = vmatpush1.bf16.msra.mxu0 %v13600_v8  ;;  %10029 = vmatpush1.bf16.msra.mxu1 %v13609_v16 }
 0xef8   :  { %9999 = vmatprep.subr.bf16.mxu0 %v13623_v28  ;;  %10031 = vmatprep.subr.bf16.mxu1 %v13634_v42 }
 0xefb   :  { %10001 = vmatpush1.bf16.msra.mxu0 %v13636_v46  ;;  %10033 = vmatpush1.bf16.msra.mxu1 %v13648_v60 }
 0xefc   :  { %10003 = vmatprep.subr.bf16.mxu0 %v13661_v25  ;;  %10035 = vmatprep.subr.bf16.mxu1 %v13663_v31 }
 0xeff   :  { %10005 = vmatpush1.bf16.msra.mxu0 %v13675_v57  ;;  %10037 = vmatpush1.bf16.msra.mxu1 %v13688_v58 }
 0xf00   :  { %10007 = vmatprep.subr.bf16.mxu0 %v13690_v63  ;;  %10039 = vmatprep.subr.bf16.mxu1 %v13701_v40 }
 0xf03   :  { %10009 = vmatpush1.bf16.msra.mxu0 %v13713_v30  ;;  %10041 = vmatpush1.bf16.msra.mxu1 %v13717_v11 }
 0xf04   :  { %10011 = vmatprep.subr.bf16.mxu0 %v13729_v3  ;;  %10043 = vmatprep.subr.bf16.mxu1 %v13740_v26 }
 0xf07   :  { %10013 = vmatpush1.bf16.msra.mxu0 %v13749_v39  ;;  %10045 = vmatpush1.bf16.msra.mxu1 %v13753_v41 }
 0xf08   :  { %10047 = vmatprep.subr.bf16.mxu0 %v13479_v6  ;;  %10079 = vmatprep.subr.bf16.mxu1 %v13490_v23 }
 0xfbd   :  { %v3500_v1 = vpop.f32.mrb[40].mxu0  ;;  %v3571_v55 = vpop.f32.mrb[40].mxu1 }
 0xfbe   :  { %v3580_v7 = vrot.slane %v3500_v1, 4  ;;  %v3502_v36 = vpop.f32.mrb[41].mxu0  ;;  %v3573_v18 = vpop.f32.mrb[41].mxu1  ;;  %v3582_v34 = vrot.slane %v3571_v55, 4  ;;  %v3612_v1 = vrot.slane %v13868_v53, 6 }
 0xfbf   :  { %v3581_v38 = vrot.slane %v3502_v36, 4  ;;  %v3583_v59 = vrot.slane %v3573_v18, 4 }
 0xfc0   :  { %v3588_v62 = vadd.f32 %v3580_v7, %v3427_v33  ;;  %v3590_v15 = vadd.f32 %v3582_v34, %v3429_v12 }
 0xfc1   :  { %v3589_v5 = vadd.f32 %v3581_v38, %v3428_v10  ;;  %v3591_v50 = vadd.f32 %v3583_v59, %v3430_v51 }
 0xfc2   :  { %v8781_v56 = vmul.f32 -1.442695, %v3588_v62 }
 0xfc3   :  { %v8782_v17 = vmul.f32 -1.442695, %v3589_v5  ;;  %v8783_v2 = vmul.f32 -1.442695, %v3591_v50  ;;  %v3620_v50 = vld [vmem:[#allocation2] sm:$0xc0] }
 0xfc4   :  { %11755 = vpow2.f32 %v8781_v56 }
 0xfc5   :  { %11757 = vpow2.f32 %v8782_v17 }
 0xfc6   :  { %11759 = vpow2.f32 %v8783_v2  ;;  %v3621_v2 = vld [vmem:[#allocation2 + $0x8] sm:$0xc0] }
 0xfc7   :  { %11761 = vtanh.f32 %v3590_v15 }
 0xfce   :  { %v11756_v52 = vpop.eup %11755 }
 0xfcf   :  { %v11758_v20 = vpop.eup %11757  ;;  %v3595_v14 = vadd.f32 1.0, %v11756_v52 }
 0xfd0   :  { %v3601_v27 = vadd.f32 1.0, %v11758_v20  ;;  %v11760_v9 = vpop.eup %11759 }
 0xfd1   :  { %11763 = vrcp.f32 %v3595_v14  ;;  %v11762_v32 = vpop.eup %11761  ;;  %v3608_v18 = vadd.f32 1.0, %v11760_v9 }
 0xfd2   :  { %11765 = vrcp.f32 %v3601_v27  ;;  %v3623_v27 = vld [vmem:[#allocation2 + $0x18] sm:$0xc0] }
 0xfd3   :  { %11767 = vrcp.f32 %v3608_v18 }
 0xfdb   :  { %v11764_v13 = vpop.eup %11763 }
 0xfdc   :  { %v11766_v7 = vpop.eup %11765  ;;  %v3615_v36 = vmul.f32 %v11764_v13, %v11762_v32  ;;  %v3622_v13 = vld [vmem:[#allocation2 + $0x10] sm:$0xc0] }
 0xfdd   :  { %v3614_v55 = vmul.f32 %v11766_v7, %v3612_v1  ;;  %v11768_v38 = vpop.eup %11767 }
 0xfdf   :  { %v13906_v33 = vadd.f32 %v3615_v36, %v3614_v55 }
 0xfe1   :  { %11769 = vtanh.f32 %v13906_v33 }
 0xfeb   :  { %v11770_v62 = vpop.eup %11769 }
 0xfec   :  { %v3618_v10 = vmul.f32 %v11770_v62, %v11768_v38 }
 0xfee   :  { %3619 = vst [vmem:[#allocation3] sm:$0x30] %v3618_v10  ;;  %v3625_v5 = vrot.slane %v3618_v10, 4 }
 0xff0   :  { %3692 = vmatmul.mubr.f32.vlgmr.msra.gmra.mrb[42].mxu0 %v3625_v5  ;;  %3763 = vmatmul.mubr.f32.vlgmr.msra.gmra.mrb[42].mxu1 %v3625_v5 }
 0xff1   :  { %10049 = vmatpush1.bf16.msra.mxu0 %v13492_v24  ;;  %10081 = vmatpush1.bf16.msra.mxu1 %v13501_v35 }
 0xff2   :  { %10051 = vmatprep.subr.bf16.mxu0 %v13515_v44  ;;  %10083 = vmatprep.subr.bf16.mxu1 %v13526_v19 }
 0xff3   :  { %3884 = vmatprep.mubr.f32.mxu0 %v12310_v0  ;;  %3955 = vmatprep.mubr.f32.mxu1 %v12310_v0 }
 0xff5   :  { %10053 = vmatpush1.bf16.msra.mxu0 %v13528_v54  ;;  %10085 = vmatpush1.bf16.msra.mxu1 %v13537_v29 }
 0xff6   :  { %10055 = vmatprep.subr.bf16.mxu0 %v13551_v61  ;;  %10087 = vmatprep.subr.bf16.mxu1 %v13562_v49 }
 0xff9   :  { %10057 = vmatpush1.bf16.msra.mxu0 %v13564_v21  ;;  %10089 = vmatpush1.bf16.msra.mxu1 %v13573_v22 }
 0xffa   :  { %10059 = vmatprep.subr.bf16.mxu0 %v13587_v37  ;;  %10091 = vmatprep.subr.bf16.mxu1 %v13598_v4 }
 0xffd   :  { %10061 = vmatpush1.bf16.msra.mxu0 %v13600_v8  ;;  %10093 = vmatpush1.bf16.msra.mxu1 %v13609_v16 }
 0xffe   :  { %10063 = vmatprep.subr.bf16.mxu0 %v13623_v28  ;;  %10095 = vmatprep.subr.bf16.mxu1 %v13634_v42 }
0x1001   :  { %10065 = vmatpush1.bf16.msra.mxu0 %v13636_v46  ;;  %10097 = vmatpush1.bf16.msra.mxu1 %v13648_v60 }
0x1002   :  { %10067 = vmatprep.subr.bf16.mxu0 %v13661_v25  ;;  %10099 = vmatprep.subr.bf16.mxu1 %v13663_v31 }
0x1005   :  { %10069 = vmatpush1.bf16.msra.mxu0 %v13675_v57  ;;  %10101 = vmatpush1.bf16.msra.mxu1 %v13688_v58 }
0x1006   :  { %10071 = vmatprep.subr.bf16.mxu0 %v13690_v63  ;;  %10103 = vmatprep.subr.bf16.mxu1 %v13701_v40 }
0x1009   :  { %10073 = vmatpush1.bf16.msra.mxu0 %v13713_v30  ;;  %10105 = vmatpush1.bf16.msra.mxu1 %v13717_v11 }
0x100a   :  { %10075 = vmatprep.subr.bf16.mxu0 %v13729_v3  ;;  %10107 = vmatprep.subr.bf16.mxu1 %v13740_v26 }
0x100d   :  { %10077 = vmatpush1.bf16.msra.mxu0 %v13749_v39  ;;  %10109 = vmatpush1.bf16.msra.mxu1 %v13753_v41 }
0x100e   :  { %10111 = vmatprep.subr.bf16.mxu0 %v13479_v6  ;;  %10143 = vmatprep.subr.bf16.mxu1 %v13490_v23 }
0x10c3   :  { %v3693_v53 = vpop.f32.mrb[42].mxu0  ;;  %v3764_v56 = vpop.f32.mrb[42].mxu1 }
0x10c4   :  { %v3773_v17 = vrot.slane %v3693_v53, 2  ;;  %v3695_v59 = vpop.f32.mrb[43].mxu0  ;;  %v3766_v51 = vpop.f32.mrb[43].mxu1  ;;  %v3775_v32 = vrot.slane %v3764_v56, 2  ;;  %v3805_v53 = vrot.slane %v13906_v33, 6 }
0x10c5   :  { %v3774_v34 = vrot.slane %v3695_v59, 2  ;;  %v3776_v14 = vrot.slane %v3766_v51, 2  ;;  %v3813_v33 = vld [vmem:[#allocation2 + $0x20] sm:$0x3] }
0x10c6   :  { %v3781_v12 = vadd.f32 %v3773_v17, %v3620_v50  ;;  %v3783_v7 = vadd.f32 %v3775_v32, %v3622_v13 }
0x10c7   :  { %v3782_v15 = vadd.f32 %v3774_v34, %v3621_v2  ;;  %v3784_v9 = vadd.f32 %v3776_v14, %v3623_v27  ;;  %v3814_v27 = vld [vmem:[#allocation2 + $0x28] sm:$0x3] }
0x10c8   :  { %v8784_v52 = vmul.f32 -1.442695, %v3781_v12 }
0x10c9   :  { %v8785_v20 = vmul.f32 -1.442695, %v3782_v15  ;;  %v8786_v1 = vmul.f32 -1.442695, %v3784_v9 }
0x10ca   :  { %11771 = vpow2.f32 %v8784_v52 }
0x10cb   :  { %11773 = vpow2.f32 %v8785_v20 }
0x10cc   :  { %11775 = vpow2.f32 %v8786_v1 }
0x10cd   :  { %11777 = vtanh.f32 %v3783_v7 }
0x10d4   :  { %v11772_v36 = vpop.eup %11771 }
0x10d5   :  { %v11774_v18 = vpop.eup %11773  ;;  %v3788_v55 = vadd.f32 1.0, %v11772_v36  ;;  %v3816_v36 = vld [vmem:[#allocation2 + $0x38] sm:$0x3] }
0x10d6   :  { %v3794_v38 = vadd.f32 1.0, %v11774_v18  ;;  %v11776_v62 = vpop.eup %11775 }
0x10d7   :  { %11779 = vrcp.f32 %v3788_v55  ;;  %v11778_v10 = vpop.eup %11777  ;;  %v3801_v51 = vadd.f32 1.0, %v11776_v62  ;;  %v3815_v55 = vld [vmem:[#allocation2 + $0x30] sm:$0x3] }
0x10d8   :  { %11781 = vrcp.f32 %v3794_v38 }
0x10d9   :  { %11783 = vrcp.f32 %v3801_v51 }
0x10e1   :  { %v11780_v5 = vpop.eup %11779 }
0x10e2   :  { %v11782_v17 = vpop.eup %11781  ;;  %v3808_v59 = vmul.f32 %v11780_v5, %v11778_v10 }
0x10e3   :  { %v3807_v56 = vmul.f32 %v11782_v17, %v3805_v53  ;;  %v11784_v34 = vpop.eup %11783 }
0x10e5   :  { %v13944_v50 = vadd.f32 %v3808_v59, %v3807_v56 }
0x10e7   :  { %11785 = vtanh.f32 %v13944_v50 }
0x10f1   :  { %v11786_v12 = vpop.eup %11785 }
0x10f2   :  { %v3811_v2 = vmul.f32 %v11786_v12, %v11784_v34  ;;  %v3986_v34 = vrot.slane %v13944_v50, 6 }
0x10f4   :  { %3812 = vst [vmem:[#allocation3] sm:$0xc0] %v3811_v2  ;;  %v3818_v15 = vrot.slane %v3811_v2, 6 }
0x10f6   :  { %3885 = vmatmul.mubr.f32.vlgmr.msra.gmra.mrb[44].mxu0 %v3818_v15  ;;  %3956 = vmatmul.mubr.f32.vlgmr.msra.gmra.mrb[44].mxu1 %v3818_v15 }
0x10f7   :  { %10113 = vmatpush1.bf16.msra.mxu0 %v13492_v24  ;;  %10145 = vmatpush1.bf16.msra.mxu1 %v13501_v35 }
0x10f8   :  { %10115 = vmatprep.subr.bf16.mxu0 %v13515_v44  ;;  %10147 = vmatprep.subr.bf16.mxu1 %v13526_v19 }
0x10f9   :  { %4062 = vmatprep.mubr.f32.mxu0 %v12310_v0  ;;  %4133 = vmatprep.mubr.f32.mxu1 %v12310_v0 }
0x10fb   :  { %10117 = vmatpush1.bf16.msra.mxu0 %v13528_v54  ;;  %10149 = vmatpush1.bf16.msra.mxu1 %v13537_v29 }
0x10fc   :  { %10119 = vmatprep.subr.bf16.mxu0 %v13551_v61  ;;  %10151 = vmatprep.subr.bf16.mxu1 %v13562_v49 }
0x10ff   :  { %10121 = vmatpush1.bf16.msra.mxu0 %v13564_v21  ;;  %10153 = vmatpush1.bf16.msra.mxu1 %v13573_v22 }
0x1100   :  { %10123 = vmatprep.subr.bf16.mxu0 %v13587_v37  ;;  %10155 = vmatprep.subr.bf16.mxu1 %v13598_v4 }
0x1103   :  { %10125 = vmatpush1.bf16.msra.mxu0 %v13600_v8  ;;  %10157 = vmatpush1.bf16.msra.mxu1 %v13609_v16 }
0x1104   :  { %10127 = vmatprep.subr.bf16.mxu0 %v13623_v28  ;;  %10159 = vmatprep.subr.bf16.mxu1 %v13634_v42 }
0x1107   :  { %10129 = vmatpush1.bf16.msra.mxu0 %v13636_v46  ;;  %10161 = vmatpush1.bf16.msra.mxu1 %v13648_v60 }
0x1108   :  { %10131 = vmatprep.subr.bf16.mxu0 %v13661_v25  ;;  %10163 = vmatprep.subr.bf16.mxu1 %v13663_v31 }
0x110b   :  { %10133 = vmatpush1.bf16.msra.mxu0 %v13675_v57  ;;  %10165 = vmatpush1.bf16.msra.mxu1 %v13688_v58 }
0x110c   :  { %10135 = vmatprep.subr.bf16.mxu0 %v13690_v63  ;;  %10167 = vmatprep.subr.bf16.mxu1 %v13701_v40 }
0x110f   :  { %10137 = vmatpush1.bf16.msra.mxu0 %v13713_v30  ;;  %10169 = vmatpush1.bf16.msra.mxu1 %v13717_v11 }
0x1110   :  { %10139 = vmatprep.subr.bf16.mxu0 %v13729_v3  ;;  %10171 = vmatprep.subr.bf16.mxu1 %v13740_v26 }
0x1113   :  { %10141 = vmatpush1.bf16.msra.mxu0 %v13749_v39  ;;  %10173 = vmatpush1.bf16.msra.mxu1 %v13753_v41 }
0x1114   :  { %10175 = vmatprep.subr.bf16.mxu0 %v13479_v6  ;;  %10207 = vmatprep.subr.bf16.mxu1 %v13490_v23 }
0x11c9   :  { %v3886_v52 = vpop.f32.mrb[44].mxu0  ;;  %v3957_v20 = vpop.f32.mrb[44].mxu1 }
0x11ca   :  { %v3962_v14 = vadd.f32 %v3886_v52, %v3813_v33  ;;  %v3888_v9 = vpop.f32.mrb[45].mxu0  ;;  %v3959_v32 = vpop.f32.mrb[45].mxu1  ;;  %v3964_v62 = vadd.f32 %v3957_v20, %v3815_v55  ;;  %v3995_v55 = vld [vmem:[#allocation2 + $0x28] sm:$0xc] }
0x11cb   :  { %v3963_v13 = vadd.f32 %v3888_v9, %v3814_v27  ;;  %v3965_v18 = vadd.f32 %v3959_v32, %v3816_v36 }
0x11cc   :  { %v8787_v1 = vmul.f32 -1.442695, %v3962_v14 }
0x11cd   :  { %v8788_v7 = vmul.f32 -1.442695, %v3963_v13  ;;  %v8789_v38 = vmul.f32 -1.442695, %v3965_v18 }
0x11ce   :  { %11787 = vpow2.f32 %v8787_v1 }
0x11cf   :  { %11789 = vpow2.f32 %v8788_v7  ;;  %v3994_v7 = vld [vmem:[#allocation2 + $0x20] sm:$0xc] }
0x11d0   :  { %11791 = vpow2.f32 %v8789_v38 }
0x11d1   :  { %11793 = vtanh.f32 %v3964_v62 }
0x11d8   :  { %v11788_v10 = vpop.eup %11787 }
0x11d9   :  { %v11790_v5 = vpop.eup %11789  ;;  %v3969_v53 = vadd.f32 1.0, %v11788_v10 }
0x11da   :  { %v3975_v17 = vadd.f32 1.0, %v11790_v5  ;;  %v11792_v59 = vpop.eup %11791 }
0x11db   :  { %11795 = vrcp.f32 %v3969_v53  ;;  %v11794_v51 = vpop.eup %11793  ;;  %v3982_v15 = vadd.f32 1.0, %v11792_v59  ;;  %v3997_v53 = vld [vmem:[#allocation2 + $0x38] sm:$0xc] }
0x11dc   :  { %11797 = vrcp.f32 %v3975_v17 }
0x11dd   :  { %11799 = vrcp.f32 %v3982_v15 }
0x11e5   :  { %v11796_v56 = vpop.eup %11795 }
0x11e6   :  { %v11798_v12 = vpop.eup %11797  ;;  %v3989_v2 = vmul.f32 %v11796_v56, %v11794_v51  ;;  %v3996_v51 = vld [vmem:[#allocation2 + $0x30] sm:$0xc] }
0x11e7   :  { %v3988_v33 = vmul.f32 %v11798_v12, %v3986_v34  ;;  %v11800_v20 = vpop.eup %11799 }
0x11e9   :  { %v13982_v52 = vadd.f32 %v3989_v2, %v3988_v33 }
0x11eb   :  { %11801 = vtanh.f32 %v13982_v52 }
0x11f5   :  { %v11802_v14 = vpop.eup %11801 }
0x11f6   :  { %v3992_v27 = vmul.f32 %v11802_v14, %v11800_v20 }
0x11f8   :  { %3993 = vst [vmem:[#allocation3 + $0x8] sm:$0x3] %v3992_v27  ;;  %4063 = vmatmul.mubr.f32.vlgmr.msra.gmra.mrb[46].mxu0 %v3992_v27  ;;  %4134 = vmatmul.mubr.f32.vlgmr.msra.gmra.mrb[46].mxu1 %v3992_v27 }
0x11f9   :  { %10177 = vmatpush1.bf16.msra.mxu0 %v13492_v24  ;;  %10209 = vmatpush1.bf16.msra.mxu1 %v13501_v35 }
0x11fa   :  { %10179 = vmatprep.subr.bf16.mxu0 %v13515_v44  ;;  %10211 = vmatprep.subr.bf16.mxu1 %v13526_v19 }
0x11fb   :  { %4255 = vmatprep.mubr.f32.mxu0 %v12310_v0  ;;  %4326 = vmatprep.mubr.f32.mxu1 %v12310_v0 }
0x11fd   :  { %10181 = vmatpush1.bf16.msra.mxu0 %v13528_v54  ;;  %10213 = vmatpush1.bf16.msra.mxu1 %v13537_v29 }
0x11fe   :  { %10183 = vmatprep.subr.bf16.mxu0 %v13551_v61  ;;  %10215 = vmatprep.subr.bf16.mxu1 %v13562_v49 }
0x1201   :  { %10185 = vmatpush1.bf16.msra.mxu0 %v13564_v21  ;;  %10217 = vmatpush1.bf16.msra.mxu1 %v13573_v22 }
0x1202   :  { %10187 = vmatprep.subr.bf16.mxu0 %v13587_v37  ;;  %10219 = vmatprep.subr.bf16.mxu1 %v13598_v4 }
0x1205   :  { %10189 = vmatpush1.bf16.msra.mxu0 %v13600_v8  ;;  %10221 = vmatpush1.bf16.msra.mxu1 %v13609_v16 }
0x1206   :  { %10191 = vmatprep.subr.bf16.mxu0 %v13623_v28  ;;  %10223 = vmatprep.subr.bf16.mxu1 %v13634_v42 }
0x1209   :  { %10193 = vmatpush1.bf16.msra.mxu0 %v13636_v46  ;;  %10225 = vmatpush1.bf16.msra.mxu1 %v13648_v60 }
0x120a   :  { %10195 = vmatprep.subr.bf16.mxu0 %v13661_v25  ;;  %10227 = vmatprep.subr.bf16.mxu1 %v13663_v31 }
0x120d   :  { %10197 = vmatpush1.bf16.msra.mxu0 %v13675_v57  ;;  %10229 = vmatpush1.bf16.msra.mxu1 %v13688_v58 }
0x120e   :  { %10199 = vmatprep.subr.bf16.mxu0 %v13690_v63  ;;  %10231 = vmatprep.subr.bf16.mxu1 %v13701_v40 }
0x1211   :  { %10201 = vmatpush1.bf16.msra.mxu0 %v13713_v30  ;;  %10233 = vmatpush1.bf16.msra.mxu1 %v13717_v11 }
0x1212   :  { %10203 = vmatprep.subr.bf16.mxu0 %v13729_v3  ;;  %10235 = vmatprep.subr.bf16.mxu1 %v13740_v26 }
0x1215   :  { %10205 = vmatpush1.bf16.msra.mxu0 %v13749_v39  ;;  %10237 = vmatpush1.bf16.msra.mxu1 %v13753_v41 }
0x1216   :  { %10239 = vmatprep.subr.bf16.mxu0 %v13479_v6  ;;  %10271 = vmatprep.subr.bf16.mxu1 %v13490_v23 }
0x12cb   :  { %v4064_v50 = vpop.f32.mrb[46].mxu0  ;;  %v4135_v9 = vpop.f32.mrb[46].mxu1 }
0x12cc   :  { %v4144_v32 = vrot.slane %v4064_v50, 6  ;;  %v4066_v13 = vpop.f32.mrb[47].mxu0  ;;  %v4137_v1 = vpop.f32.mrb[47].mxu1  ;;  %v4146_v59 = vrot.slane %v4135_v9, 6  ;;  %v4176_v50 = vrot.slane %v13982_v52, 6 }
0x12cd   :  { %v4145_v36 = vrot.slane %v4066_v13, 6  ;;  %v4147_v5 = vrot.slane %v4137_v1, 6 }
0x12ce   :  { %v4152_v18 = vadd.f32 %v4144_v32, %v3994_v7  ;;  %v4154_v34 = vadd.f32 %v4146_v59, %v3996_v51 }
0x12cf   :  { %v4153_v38 = vadd.f32 %v4145_v36, %v3995_v55  ;;  %v4155_v17 = vadd.f32 %v4147_v5, %v3997_v53 }
0x12d0   :  { %v8790_v62 = vmul.f32 -1.442695, %v4152_v18 }
0x12d1   :  { %v8791_v10 = vmul.f32 -1.442695, %v4153_v38  ;;  %v8792_v56 = vmul.f32 -1.442695, %v4155_v17  ;;  %v4184_v17 = vld [vmem:[#allocation2 + $0x20] sm:$0x30] }
0x12d2   :  { %11803 = vpow2.f32 %v8790_v62 }
0x12d3   :  { %11805 = vpow2.f32 %v8791_v10 }
0x12d4   :  { %11807 = vpow2.f32 %v8792_v56  ;;  %v4185_v56 = vld [vmem:[#allocation2 + $0x28] sm:$0x30] }
0x12d5   :  { %11809 = vtanh.f32 %v4154_v34 }
0x12dc   :  { %v11804_v12 = vpop.eup %11803 }
0x12dd   :  { %v11806_v2 = vpop.eup %11805  ;;  %v4159_v15 = vadd.f32 1.0, %v11804_v12 }
0x12de   :  { %v4165_v33 = vadd.f32 1.0, %v11806_v2  ;;  %v11808_v20 = vpop.eup %11807 }
0x12df   :  { %11811 = vrcp.f32 %v4159_v15  ;;  %v11810_v14 = vpop.eup %11809  ;;  %v4172_v1 = vadd.f32 1.0, %v11808_v20 }
0x12e0   :  { %11813 = vrcp.f32 %v4165_v33  ;;  %v4187_v33 = vld [vmem:[#allocation2 + $0x38] sm:$0x30] }
0x12e1   :  { %11815 = vrcp.f32 %v4172_v1 }
0x12e9   :  { %v11812_v27 = vpop.eup %11811 }
0x12ea   :  { %v11814_v32 = vpop.eup %11813  ;;  %v4179_v13 = vmul.f32 %v11812_v27, %v11810_v14  ;;  %v4186_v27 = vld [vmem:[#allocation2 + $0x30] sm:$0x30] }
0x12eb   :  { %v4178_v9 = vmul.f32 %v11814_v32, %v4176_v50  ;;  %v11816_v36 = vpop.eup %11815 }
0x12ed   :  { %v14020_v7 = vadd.f32 %v4179_v13, %v4178_v9 }
0x12ef   :  { %11817 = vtanh.f32 %v14020_v7 }
0x12f9   :  { %v11818_v18 = vpop.eup %11817 }
0x12fa   :  { %v4182_v55 = vmul.f32 %v11818_v18, %v11816_v36 }
0x12fc   :  { %4183 = vst [vmem:[#allocation3 + $0x8] sm:$0xc] %v4182_v55  ;;  %v4189_v38 = vrot.slane %v4182_v55, 2 }
0x12fe   :  { %4256 = vmatmul.mubr.f32.vlgmr.msra.gmra.mrb[48].mxu0 %v4189_v38  ;;  %4327 = vmatmul.mubr.f32.vlgmr.msra.gmra.mrb[48].mxu1 %v4189_v38 }
0x12ff   :  { %10241 = vmatpush1.bf16.msra.mxu0 %v13492_v24  ;;  %10273 = vmatpush1.bf16.msra.mxu1 %v13501_v35 }
0x1300   :  { %10243 = vmatprep.subr.bf16.mxu0 %v13515_v44  ;;  %10275 = vmatprep.subr.bf16.mxu1 %v13526_v19 }
0x1301   :  { %4448 = vmatprep.mubr.f32.mxu0 %v12310_v0  ;;  %4519 = vmatprep.mubr.f32.mxu1 %v12310_v0 }
0x1303   :  { %10245 = vmatpush1.bf16.msra.mxu0 %v13528_v54  ;;  %10277 = vmatpush1.bf16.msra.mxu1 %v13537_v29 }
0x1304   :  { %10247 = vmatprep.subr.bf16.mxu0 %v13551_v61  ;;  %10279 = vmatprep.subr.bf16.mxu1 %v13562_v49 }
0x1307   :  { %10249 = vmatpush1.bf16.msra.mxu0 %v13564_v21  ;;  %10281 = vmatpush1.bf16.msra.mxu1 %v13573_v22 }
0x1308   :  { %10251 = vmatprep.subr.bf16.mxu0 %v13587_v37  ;;  %10283 = vmatprep.subr.bf16.mxu1 %v13598_v4 }
0x130b   :  { %10253 = vmatpush1.bf16.msra.mxu0 %v13600_v8  ;;  %10285 = vmatpush1.bf16.msra.mxu1 %v13609_v16 }
0x130c   :  { %10255 = vmatprep.subr.bf16.mxu0 %v13623_v28  ;;  %10287 = vmatprep.subr.bf16.mxu1 %v13634_v42 }
0x130f   :  { %10257 = vmatpush1.bf16.msra.mxu0 %v13636_v46  ;;  %10289 = vmatpush1.bf16.msra.mxu1 %v13648_v60 }
0x1310   :  { %10259 = vmatprep.subr.bf16.mxu0 %v13661_v25  ;;  %10291 = vmatprep.subr.bf16.mxu1 %v13663_v31 }
0x1313   :  { %10261 = vmatpush1.bf16.msra.mxu0 %v13675_v57  ;;  %10293 = vmatpush1.bf16.msra.mxu1 %v13688_v58 }
0x1314   :  { %10263 = vmatprep.subr.bf16.mxu0 %v13690_v63  ;;  %10295 = vmatprep.subr.bf16.mxu1 %v13701_v40 }
0x1317   :  { %10265 = vmatpush1.bf16.msra.mxu0 %v13713_v30  ;;  %10297 = vmatpush1.bf16.msra.mxu1 %v13717_v11 }
0x1318   :  { %10267 = vmatprep.subr.bf16.mxu0 %v13729_v3  ;;  %10299 = vmatprep.subr.bf16.mxu1 %v13740_v26 }
0x131b   :  { %10269 = vmatpush1.bf16.msra.mxu0 %v13749_v39  ;;  %10301 = vmatpush1.bf16.msra.mxu1 %v13753_v41 }
0x131c   :  { %10303 = vmatprep.subr.bf16.mxu0 %v13479_v6  ;;  %10335 = vmatprep.subr.bf16.mxu1 %v13490_v23 }
0x13d1   :  { %v4257_v52 = vpop.f32.mrb[48].mxu0  ;;  %v4328_v62 = vpop.f32.mrb[48].mxu1 }
0x13d2   :  { %v4337_v10 = vrot.slane %v4257_v52, 4  ;;  %v4259_v5 = vpop.f32.mrb[49].mxu0  ;;  %v4330_v53 = vpop.f32.mrb[49].mxu1  ;;  %v4339_v14 = vrot.slane %v4328_v62, 4  ;;  %v4369_v52 = vrot.slane %v14020_v7, 6 }
0x13d3   :  { %v4338_v59 = vrot.slane %v4259_v5, 4  ;;  %v4340_v15 = vrot.slane %v4330_v53, 4 }
0x13d4   :  { %v4345_v51 = vadd.f32 %v4337_v10, %v4184_v17  ;;  %v4347_v32 = vadd.f32 %v4339_v14, %v4186_v27 }
0x13d5   :  { %v4346_v34 = vadd.f32 %v4338_v59, %v4185_v56  ;;  %v4348_v20 = vadd.f32 %v4340_v15, %v4187_v33 }
0x13d6   :  { %v8793_v12 = vmul.f32 -1.442695, %v4345_v51 }
0x13d7   :  { %v8794_v2 = vmul.f32 -1.442695, %v4346_v34  ;;  %v8795_v50 = vmul.f32 -1.442695, %v4348_v20  ;;  %v4377_v20 = vld [vmem:[#allocation2 + $0x20] sm:$0xc0] }
0x13d8   :  { %11819 = vpow2.f32 %v8793_v12 }
0x13d9   :  { %11821 = vpow2.f32 %v8794_v2 }
0x13da   :  { %11823 = vpow2.f32 %v8795_v50  ;;  %v4378_v50 = vld [vmem:[#allocation2 + $0x28] sm:$0xc0] }
0x13db   :  { %11825 = vtanh.f32 %v4347_v32 }
0x13e2   :  { %v11820_v13 = vpop.eup %11819 }
0x13e3   :  { %v11822_v1 = vpop.eup %11821  ;;  %v4352_v9 = vadd.f32 1.0, %v11820_v13 }
0x13e4   :  { %v4358_v36 = vadd.f32 1.0, %v11822_v1  ;;  %v11824_v18 = vpop.eup %11823 }
0x13e5   :  { %11827 = vrcp.f32 %v4352_v9  ;;  %v11826_v55 = vpop.eup %11825  ;;  %v4365_v53 = vadd.f32 1.0, %v11824_v18 }
0x13e6   :  { %11829 = vrcp.f32 %v4358_v36  ;;  %v4380_v36 = vld [vmem:[#allocation2 + $0x38] sm:$0xc0] }
0x13e7   :  { %11831 = vrcp.f32 %v4365_v53 }
0x13ef   :  { %v11828_v38 = vpop.eup %11827 }
0x13f0   :  { %v11830_v10 = vpop.eup %11829  ;;  %v4372_v5 = vmul.f32 %v11828_v38, %v11826_v55  ;;  %v4379_v38 = vld [vmem:[#allocation2 + $0x30] sm:$0xc0] }
0x13f1   :  { %v4371_v62 = vmul.f32 %v11830_v10, %v4369_v52  ;;  %v11832_v59 = vpop.eup %11831 }
0x13f3   :  { %v14058_v17 = vadd.f32 %v4372_v5, %v4371_v62 }
0x13f5   :  { %11833 = vtanh.f32 %v14058_v17 }
0x13ff   :  { %v11834_v51 = vpop.eup %11833 }
0x1400   :  { %v4375_v56 = vmul.f32 %v11834_v51, %v11832_v59 }
0x1402   :  { %4376 = vst [vmem:[#allocation3 + $0x8] sm:$0x30] %v4375_v56  ;;  %v4382_v34 = vrot.slane %v4375_v56, 4 }
0x1404   :  { %4449 = vmatmul.mubr.f32.vlgmr.msra.gmra.mrb[50].mxu0 %v4382_v34  ;;  %4520 = vmatmul.mubr.f32.vlgmr.msra.gmra.mrb[50].mxu1 %v4382_v34 }
0x1405   :  { %10305 = vmatpush1.bf16.msra.mxu0 %v13492_v24  ;;  %10337 = vmatpush1.bf16.msra.mxu1 %v13501_v35 }
0x1406   :  { %10307 = vmatprep.subr.bf16.mxu0 %v13515_v44  ;;  %10339 = vmatprep.subr.bf16.mxu1 %v13526_v19 }
0x1407   :  { %4641 = vmatprep.mubr.f32.mxu0 %v12310_v0  ;;  %4712 = vmatprep.mubr.f32.mxu1 %v12310_v0 }
0x1409   :  { %10309 = vmatpush1.bf16.msra.mxu0 %v13528_v54  ;;  %10341 = vmatpush1.bf16.msra.mxu1 %v13537_v29 }
0x140a   :  { %10311 = vmatprep.subr.bf16.mxu0 %v13551_v61  ;;  %10343 = vmatprep.subr.bf16.mxu1 %v13562_v49 }
0x140d   :  { %10313 = vmatpush1.bf16.msra.mxu0 %v13564_v21  ;;  %10345 = vmatpush1.bf16.msra.mxu1 %v13573_v22 }
0x140e   :  { %10315 = vmatprep.subr.bf16.mxu0 %v13587_v37  ;;  %10347 = vmatprep.subr.bf16.mxu1 %v13598_v4 }
0x1411   :  { %10317 = vmatpush1.bf16.msra.mxu0 %v13600_v8  ;;  %10349 = vmatpush1.bf16.msra.mxu1 %v13609_v16 }
0x1412   :  { %10319 = vmatprep.subr.bf16.mxu0 %v13623_v28  ;;  %10351 = vmatprep.subr.bf16.mxu1 %v13634_v42 }
0x1415   :  { %10321 = vmatpush1.bf16.msra.mxu0 %v13636_v46  ;;  %10353 = vmatpush1.bf16.msra.mxu1 %v13648_v60 }
0x1416   :  { %10323 = vmatprep.subr.bf16.mxu0 %v13661_v25  ;;  %10355 = vmatprep.subr.bf16.mxu1 %v13663_v31 }
0x1419   :  { %10325 = vmatpush1.bf16.msra.mxu0 %v13675_v57  ;;  %10357 = vmatpush1.bf16.msra.mxu1 %v13688_v58 }
0x141a   :  { %10327 = vmatprep.subr.bf16.mxu0 %v13690_v63  ;;  %10359 = vmatprep.subr.bf16.mxu1 %v13701_v40 }
0x141d   :  { %10329 = vmatpush1.bf16.msra.mxu0 %v13713_v30  ;;  %10361 = vmatpush1.bf16.msra.mxu1 %v13717_v11 }
0x141e   :  { %10331 = vmatprep.subr.bf16.mxu0 %v13729_v3  ;;  %10363 = vmatprep.subr.bf16.mxu1 %v13740_v26 }
0x1421   :  { %10333 = vmatpush1.bf16.msra.mxu0 %v13749_v39  ;;  %10365 = vmatpush1.bf16.msra.mxu1 %v13753_v41 }
0x1422   :  { %10367 = vmatprep.subr.bf16.mxu0 %v13479_v6  ;;  %10399 = vmatprep.subr.bf16.mxu1 %v13490_v23 }
0x14d7   :  { %v4450_v7 = vpop.f32.mrb[50].mxu0  ;;  %v4521_v12 = vpop.f32.mrb[50].mxu1 }
0x14d8   :  { %v4530_v2 = vrot.slane %v4450_v7, 2  ;;  %v4452_v15 = vpop.f32.mrb[51].mxu0  ;;  %v4523_v33 = vpop.f32.mrb[51].mxu1  ;;  %v4532_v55 = vrot.slane %v4521_v12, 2  ;;  %v4562_v7 = vrot.slane %v14058_v17, 6 }
0x14d9   :  { %v4531_v14 = vrot.slane %v4452_v15, 2  ;;  %v4533_v9 = vrot.slane %v4523_v33, 2  ;;  %v4570_v17 = vld [vmem:[#allocation2 + $0x40] sm:$0x3] }
0x14da   :  { %v4538_v27 = vadd.f32 %v4530_v2, %v4377_v20  ;;  %v4540_v10 = vadd.f32 %v4532_v55, %v4379_v38 }
0x14db   :  { %v4539_v32 = vadd.f32 %v4531_v14, %v4378_v50  ;;  %v4541_v18 = vadd.f32 %v4533_v9, %v4380_v36  ;;  %v4571_v36 = vld [vmem:[#allocation2 + $0x48] sm:$0x3] }
0x14dc   :  { %v8796_v13 = vmul.f32 -1.442695, %v4538_v27 }
0x14dd   :  { %v8797_v1 = vmul.f32 -1.442695, %v4539_v32  ;;  %v8798_v52 = vmul.f32 -1.442695, %v4541_v18 }
0x14de   :  { %11835 = vpow2.f32 %v8796_v13 }
0x14df   :  { %11837 = vpow2.f32 %v8797_v1 }
0x14e0   :  { %11839 = vpow2.f32 %v8798_v52 }
0x14e1   :  { %11841 = vtanh.f32 %v4540_v10 }
0x14e8   :  { %v11836_v5 = vpop.eup %11835 }
0x14e9   :  { %v11838_v53 = vpop.eup %11837  ;;  %v4545_v62 = vadd.f32 1.0, %v11836_v5  ;;  %v4573_v5 = vld [vmem:[#allocation2 + $0x58] sm:$0x3] }
0x14ea   :  { %v4551_v59 = vadd.f32 1.0, %v11838_v53  ;;  %v11840_v51 = vpop.eup %11839 }
0x14eb   :  { %11843 = vrcp.f32 %v4545_v62  ;;  %v11842_v56 = vpop.eup %11841  ;;  %v4558_v33 = vadd.f32 1.0, %v11840_v51  ;;  %v4572_v62 = vld [vmem:[#allocation2 + $0x50] sm:$0x3] }
0x14ec   :  { %11845 = vrcp.f32 %v4551_v59 }
0x14ed   :  { %11847 = vrcp.f32 %v4558_v33 }
0x14f5   :  { %v11844_v34 = vpop.eup %11843 }
0x14f6   :  { %v11846_v2 = vpop.eup %11845  ;;  %v4565_v15 = vmul.f32 %v11844_v34, %v11842_v56 }
0x14f7   :  { %v4564_v12 = vmul.f32 %v11846_v2, %v4562_v7  ;;  %v11848_v14 = vpop.eup %11847 }
0x14f9   :  { %v14096_v20 = vadd.f32 %v4565_v15, %v4564_v12 }
0x14fb   :  { %11849 = vtanh.f32 %v14096_v20 }
0x1505   :  { %v11850_v27 = vpop.eup %11849 }
0x1506   :  { %v4568_v50 = vmul.f32 %v11850_v27, %v11848_v14  ;;  %v4743_v14 = vrot.slane %v14096_v20, 6 }
0x1508   :  { %4569 = vst [vmem:[#allocation3 + $0x8] sm:$0xc0] %v4568_v50  ;;  %v4575_v32 = vrot.slane %v4568_v50, 6 }
0x150a   :  { %4642 = vmatmul.mubr.f32.vlgmr.msra.gmra.mrb[52].mxu0 %v4575_v32  ;;  %4713 = vmatmul.mubr.f32.vlgmr.msra.gmra.mrb[52].mxu1 %v4575_v32 }
0x150b   :  { %10369 = vmatpush1.bf16.msra.mxu0 %v13492_v24  ;;  %10401 = vmatpush1.bf16.msra.mxu1 %v13501_v35 }
0x150c   :  { %10371 = vmatprep.subr.bf16.mxu0 %v13515_v44  ;;  %10403 = vmatprep.subr.bf16.mxu1 %v13526_v19 }
0x150d   :  { %4819 = vmatprep.mubr.f32.mxu0 %v12310_v0  ;;  %4890 = vmatprep.mubr.f32.mxu1 %v12310_v0 }
0x150f   :  { %10373 = vmatpush1.bf16.msra.mxu0 %v13528_v54  ;;  %10405 = vmatpush1.bf16.msra.mxu1 %v13537_v29 }
0x1510   :  { %10375 = vmatprep.subr.bf16.mxu0 %v13551_v61  ;;  %10407 = vmatprep.subr.bf16.mxu1 %v13562_v49 }
0x1513   :  { %10377 = vmatpush1.bf16.msra.mxu0 %v13564_v21  ;;  %10409 = vmatpush1.bf16.msra.mxu1 %v13573_v22 }
0x1514   :  { %10379 = vmatprep.subr.bf16.mxu0 %v13587_v37  ;;  %10411 = vmatprep.subr.bf16.mxu1 %v13598_v4 }
0x1517   :  { %10381 = vmatpush1.bf16.msra.mxu0 %v13600_v8  ;;  %10413 = vmatpush1.bf16.msra.mxu1 %v13609_v16 }
0x1518   :  { %10383 = vmatprep.subr.bf16.mxu0 %v13623_v28  ;;  %10415 = vmatprep.subr.bf16.mxu1 %v13634_v42 }
0x151b   :  { %10385 = vmatpush1.bf16.msra.mxu0 %v13636_v46  ;;  %10417 = vmatpush1.bf16.msra.mxu1 %v13648_v60 }
0x151c   :  { %10387 = vmatprep.subr.bf16.mxu0 %v13661_v25  ;;  %10419 = vmatprep.subr.bf16.mxu1 %v13663_v31 }
0x151f   :  { %10389 = vmatpush1.bf16.msra.mxu0 %v13675_v57  ;;  %10421 = vmatpush1.bf16.msra.mxu1 %v13688_v58 }
0x1520   :  { %10391 = vmatprep.subr.bf16.mxu0 %v13690_v63  ;;  %10423 = vmatprep.subr.bf16.mxu1 %v13701_v40 }
0x1523   :  { %10393 = vmatpush1.bf16.msra.mxu0 %v13713_v30  ;;  %10425 = vmatpush1.bf16.msra.mxu1 %v13717_v11 }
0x1524   :  { %10395 = vmatprep.subr.bf16.mxu0 %v13729_v3  ;;  %10427 = vmatprep.subr.bf16.mxu1 %v13740_v26 }
0x1527   :  { %10397 = vmatpush1.bf16.msra.mxu0 %v13749_v39  ;;  %10429 = vmatpush1.bf16.msra.mxu1 %v13753_v41 }
0x1528   :  { %10431 = vmatprep.subr.bf16.mxu0 %v13479_v6  ;;  %10463 = vmatprep.subr.bf16.mxu1 %v13490_v23 }
0x15dd   :  { %v4643_v13 = vpop.f32.mrb[52].mxu0  ;;  %v4714_v1 = vpop.f32.mrb[52].mxu1 }
0x15de   :  { %v4719_v9 = vadd.f32 %v4643_v13, %v4570_v17  ;;  %v4645_v18 = vpop.f32.mrb[53].mxu0  ;;  %v4716_v55 = vpop.f32.mrb[53].mxu1  ;;  %v4721_v51 = vadd.f32 %v4714_v1, %v4572_v62  ;;  %v4752_v62 = vld [vmem:[#allocation2 + $0x48] sm:$0xc] }
0x15df   :  { %v4720_v38 = vadd.f32 %v4645_v18, %v4571_v36  ;;  %v4722_v53 = vadd.f32 %v4716_v55, %v4573_v5 }
0x15e0   :  { %v8799_v52 = vmul.f32 -1.442695, %v4719_v9 }
0x15e1   :  { %v8800_v10 = vmul.f32 -1.442695, %v4720_v38  ;;  %v8801_v59 = vmul.f32 -1.442695, %v4722_v53 }
0x15e2   :  { %11851 = vpow2.f32 %v8799_v52 }
0x15e3   :  { %11853 = vpow2.f32 %v8800_v10  ;;  %v4751_v10 = vld [vmem:[#allocation2 + $0x40] sm:$0xc] }
0x15e4   :  { %11855 = vpow2.f32 %v8801_v59 }
0x15e5   :  { %11857 = vtanh.f32 %v4721_v51 }
0x15ec   :  { %v11852_v56 = vpop.eup %11851 }
0x15ed   :  { %v11854_v34 = vpop.eup %11853  ;;  %v4726_v7 = vadd.f32 1.0, %v11852_v56 }
0x15ee   :  { %v4732_v2 = vadd.f32 1.0, %v11854_v34  ;;  %v11856_v15 = vpop.eup %11855 }
0x15ef   :  { %11859 = vrcp.f32 %v4726_v7  ;;  %v11858_v33 = vpop.eup %11857  ;;  %v4739_v32 = vadd.f32 1.0, %v11856_v15  ;;  %v4754_v7 = vld [vmem:[#allocation2 + $0x58] sm:$0xc]  ;;  %v4753_v15 = vld [vmem:[#allocation2 + $0x50] sm:$0xc] }
0x15f0   :  { %11861 = vrcp.f32 %v4732_v2 }
0x15f1   :  { %11863 = vrcp.f32 %v4739_v32 }
0x15f9   :  { %v11860_v12 = vpop.eup %11859 }
0x15fa   :  { %v11862_v27 = vpop.eup %11861  ;;  %v4746_v50 = vmul.f32 %v11860_v12, %v11858_v33 }
0x15fb   :  { %v4745_v17 = vmul.f32 %v11862_v27, %v4743_v14  ;;  %v11864_v1 = vpop.eup %11863 }
0x15fd   :  { %v14134_v13 = vadd.f32 %v4746_v50, %v4745_v17 }
0x15ff   :  { %11865 = vtanh.f32 %v14134_v13 }
0x1609   :  { %v11866_v9 = vpop.eup %11865 }
0x160a   :  { %v4749_v36 = vmul.f32 %v11866_v9, %v11864_v1  ;;  %v4933_v9 = vrot.slane %v14134_v13, 6 }
0x160c   :  { %4750 = vst [vmem:[#allocation3 + $0x10] sm:$0x3] %v4749_v36  ;;  %4820 = vmatmul.mubr.f32.vlgmr.msra.gmra.mrb[54].mxu0 %v4749_v36  ;;  %4891 = vmatmul.mubr.f32.vlgmr.msra.gmra.mrb[54].mxu1 %v4749_v36 }
0x160d   :  { %10433 = vmatpush1.bf16.msra.mxu0 %v13492_v24  ;;  %10465 = vmatpush1.bf16.msra.mxu1 %v13501_v35 }
0x160e   :  { %10435 = vmatprep.subr.bf16.mxu0 %v13515_v44  ;;  %10467 = vmatprep.subr.bf16.mxu1 %v13526_v19 }
0x160f   :  { %5012 = vmatprep.mubr.f32.mxu0 %v12310_v0  ;;  %5083 = vmatprep.mubr.f32.mxu1 %v12310_v0 }
0x1611   :  { %10437 = vmatpush1.bf16.msra.mxu0 %v13528_v54  ;;  %10469 = vmatpush1.bf16.msra.mxu1 %v13537_v29 }
0x1612   :  { %10439 = vmatprep.subr.bf16.mxu0 %v13551_v61  ;;  %10471 = vmatprep.subr.bf16.mxu1 %v13562_v49 }
0x1615   :  { %10441 = vmatpush1.bf16.msra.mxu0 %v13564_v21  ;;  %10473 = vmatpush1.bf16.msra.mxu1 %v13573_v22 }
0x1616   :  { %10443 = vmatprep.subr.bf16.mxu0 %v13587_v37  ;;  %10475 = vmatprep.subr.bf16.mxu1 %v13598_v4 }
0x1619   :  { %10445 = vmatpush1.bf16.msra.mxu0 %v13600_v8  ;;  %10477 = vmatpush1.bf16.msra.mxu1 %v13609_v16 }
0x161a   :  { %10447 = vmatprep.subr.bf16.mxu0 %v13623_v28  ;;  %10479 = vmatprep.subr.bf16.mxu1 %v13634_v42 }
0x161d   :  { %10449 = vmatpush1.bf16.msra.mxu0 %v13636_v46  ;;  %10481 = vmatpush1.bf16.msra.mxu1 %v13648_v60 }
0x161e   :  { %10451 = vmatprep.subr.bf16.mxu0 %v13661_v25  ;;  %10483 = vmatprep.subr.bf16.mxu1 %v13663_v31 }
0x1621   :  { %10453 = vmatpush1.bf16.msra.mxu0 %v13675_v57  ;;  %10485 = vmatpush1.bf16.msra.mxu1 %v13688_v58 }
0x1622   :  { %10455 = vmatprep.subr.bf16.mxu0 %v13690_v63  ;;  %10487 = vmatprep.subr.bf16.mxu1 %v13701_v40 }
0x1625   :  { %10457 = vmatpush1.bf16.msra.mxu0 %v13713_v30  ;;  %10489 = vmatpush1.bf16.msra.mxu1 %v13717_v11 }
0x1626   :  { %10459 = vmatprep.subr.bf16.mxu0 %v13729_v3  ;;  %10491 = vmatprep.subr.bf16.mxu1 %v13740_v26 }
0x1629   :  { %10461 = vmatpush1.bf16.msra.mxu0 %v13749_v39  ;;  %10493 = vmatpush1.bf16.msra.mxu1 %v13753_v41 }
0x162a   :  { %10495 = vmatprep.subr.bf16.mxu0 %v13479_v6  ;;  %10527 = vmatprep.subr.bf16.mxu1 %v13490_v23 }
0x16df   :  { %v4821_v20 = vpop.f32.mrb[54].mxu0  ;;  %v4892_v18 = vpop.f32.mrb[54].mxu1 }
0x16e0   :  { %v4901_v55 = vrot.slane %v4821_v20, 6  ;;  %v4823_v38 = vpop.f32.mrb[55].mxu0  ;;  %v4894_v52 = vpop.f32.mrb[55].mxu1  ;;  %v4903_v6 = vrot.slane %v4892_v18, 6 }
0x16e1   :  { %v4902_v5 = vrot.slane %v4823_v38, 6  ;;  %v4904_v34 = vrot.slane %v4894_v52, 6 }
0x16e2   :  { %v4909_v53 = vadd.f32 %v4901_v55, %v4751_v10  ;;  %v4911_v33 = vadd.f32 %v4903_v6, %v4753_v15  ;;  %v5334_v6 = vld [vmem:[#allocation8] sm:$0xff] }
0x16e3   :  { %v4910_v59 = vadd.f32 %v4902_v5, %v4752_v62  ;;  %v4912_v2 = vadd.f32 %v4904_v34, %v4754_v7  ;;  %v5338_v15 = vld [vmem:[#allocation8 + $0x20] sm:$0xff] }
0x16e4   :  { %v8802_v51 = vmul.f32 -1.442695, %v4909_v53 }
0x16e5   :  { %v8803_v56 = vmul.f32 -1.442695, %v4910_v59  ;;  %v8804_v23 = vmul.f32 -1.442695, %v4912_v2 }
0x16e6   :  { %11867 = vpow2.f32 %v8802_v51 }
0x16e7   :  { %11869 = vpow2.f32 %v8803_v56 }
0x16e8   :  { %11871 = vpow2.f32 %v8804_v23 }
0x16e9   :  { %11873 = vtanh.f32 %v4911_v33  ;;  %v5336_v33 = vld [vmem:[#allocation8 + $0x10] sm:$0xff] }
0x16f0   :  { %v11868_v12 = vpop.eup %11867 }
0x16f1   :  { %v11870_v14 = vpop.eup %11869  ;;  %v4916_v27 = vadd.f32 1.0, %v11868_v12  ;;  %v5340_v12 = vld [vmem:[#allocation8 + $0x30] sm:$0xff] }
0x16f2   :  { %v4922_v50 = vadd.f32 1.0, %v11870_v14  ;;  %v11872_v32 = vpop.eup %11871  ;;  %v5343_v14 = vld [vmem:[#allocation8 + $0x48] sm:$0xff] }
0x16f3   :  { %11875 = vrcp.f32 %v4916_v27  ;;  %v11874_v17 = vpop.eup %11873  ;;  %v4929_v55 = vadd.f32 1.0, %v11872_v32  ;;  %v5345_v32 = vld [vmem:[#allocation8 + $0x58] sm:$0xff] }
0x16f4   :  { %11877 = vrcp.f32 %v4922_v50  ;;  %v5347_v50 = vld [vmem:[#allocation8 + $0x68] sm:$0xff] }
0x16f5   :  { %11879 = vrcp.f32 %v4929_v55  ;;  %v5346_v55 = vld [vmem:[#allocation8 + $0x60] sm:$0xff] }
0x16fd   :  { %v11876_v1 = vpop.eup %11875 }
0x16fe   :  { %v11878_v36 = vpop.eup %11877  ;;  %v4936_v20 = vmul.f32 %v11876_v1, %v11874_v17  ;;  %v5349_v17 = vld [vmem:[#allocation8 + $0x78] sm:$0xff] }
0x16ff   :  { %v4935_v18 = vmul.f32 %v11878_v36, %v4933_v9  ;;  %v11880_v52 = vpop.eup %11879  ;;  %v10560_v9 = vpack.c.bf16 %v5338_v15, %v5334_v6  ;;  %v10592_v36 = vpack.c.bf16 %v5340_v12, %v5336_v33  ;;  %v5377_v6 = vld [vmem:[#allocation8 + $0x158] sm:$0xff]  ;;  %v5374_v12 = vld [vmem:[#allocation8 + $0x140] sm:$0xff] }
0x1700   :  { %v5381_v15 = vld [vmem:[#allocation8 + $0x178] sm:$0xff] }
0x1701   :  { %v14172_v38 = vadd.f32 %v4936_v20, %v4935_v18  ;;  %v5342_v20 = vld [vmem:[#allocation8 + $0x40] sm:$0xff] }
0x1703   :  { %11881 = vtanh.f32 %v14172_v38  ;;  %v5126_v59 = vrot.slane %v14172_v38, 6  ;;  %v10562_v38 = vpack.c.bf16 %v5347_v50, %v5343_v14  ;;  %v5378_v14 = vld [vmem:[#allocation8 + $0x160] sm:$0xff]  ;;  %v10610_v50 = vpack.c.bf16 %v5381_v15, %v5377_v6  ;;  %v5608_v15 = vld [vmem:[#allocation10 + $0x50] sm:$0xff] }
0x170d   :  { %v11882_v10 = vpop.eup %11881 }
0x170e   :  { %v4939_v5 = vmul.f32 %v11882_v10, %v11880_v52  ;;  %v10594_v52 = vpack.c.bf16 %v5349_v17, %v5345_v32  ;;  %v5344_v10 = vld [vmem:[#allocation8 + $0x50] sm:$0xff] }
0x170f   :  { %v5376_v32 = vld [vmem:[#allocation8 + $0x150] sm:$0xff] }
0x1710   :  { %4940 = vst [vmem:[#allocation3 + $0x10] sm:$0xc] %v4939_v5  ;;  %v4946_v53 = vrot.slane %v4939_v5, 2  ;;  %v5348_v5 = vld [vmem:[#allocation8 + $0x70] sm:$0xff] }
0x1711   :  { %v5380_v17 = vld [vmem:[#allocation8 + $0x170] sm:$0xff] }
0x1712   :  { %5013 = vmatmul.mubr.f32.vlgmr.msra.gmra.mrb[56].mxu0 %v4946_v53  ;;  %5084 = vmatmul.mubr.f32.vlgmr.msra.gmra.mrb[56].mxu1 %v4946_v53  ;;  %v5351_v53 = vld [vmem:[#allocation8 + $0x88] sm:$0xff] }
0x1713   :  { %10497 = vmatpush1.bf16.msra.mxu0 %v13492_v24  ;;  %10529 = vmatpush1.bf16.msra.mxu1 %v13501_v35  ;;  %v5335_v24 = vld [vmem:[#allocation8 + $0x8] sm:$0xff] }
0x1714   :  { %10499 = vmatprep.subr.bf16.mxu0 %v13515_v44  ;;  %10531 = vmatprep.subr.bf16.mxu1 %v13526_v19  ;;  %v5339_v35 = vld [vmem:[#allocation8 + $0x28] sm:$0xff]  ;;  %v5337_v44 = vld [vmem:[#allocation8 + $0x18] sm:$0xff] }
0x1715   :  { %5205 = vmatprep.mubr.f32.mxu0 %v12310_v0  ;;  %5276 = vmatprep.mubr.f32.mxu1 %v12310_v0  ;;  %v10558_v19 = vpack.c.bf16 %v5339_v35, %v5335_v24  ;;  %v5355_v24 = vld [vmem:[#allocation8 + $0xa8] sm:$0xff]  ;;  %v5353_v35 = vld [vmem:[#allocation8 + $0x98] sm:$0xff] }
0x1717   :  { %10501 = vmatpush1.bf16.msra.mxu0 %v13528_v54  ;;  %10533 = vmatpush1.bf16.msra.mxu1 %v13537_v29  ;;  %v5341_v54 = vld [vmem:[#allocation8 + $0x38] sm:$0xff] }
0x1718   :  { %10503 = vmatprep.subr.bf16.mxu0 %v13551_v61  ;;  %10535 = vmatprep.subr.bf16.mxu1 %v13562_v49  ;;  %v10590_v29 = vpack.c.bf16 %v5341_v54, %v5337_v44  ;;  %v5357_v44 = vld [vmem:[#allocation8 + $0xb8] sm:$0xff]  ;;  %v10596_v54 = vpack.c.bf16 %v5348_v5, %v5344_v10 }
0x171b   :  { %10505 = vmatpush1.bf16.msra.mxu0 %v13564_v21  ;;  %10537 = vmatpush1.bf16.msra.mxu1 %v13573_v22 }
0x171c   :  { %10507 = vmatprep.subr.bf16.mxu0 %v13587_v37  ;;  %10539 = vmatprep.subr.bf16.mxu1 %v13598_v4  ;;  %v4941_v4 = vld [vmem:[#allocation2 + $0x40] sm:$0x30] }
0x171f   :  { %10509 = vmatpush1.bf16.msra.mxu0 %v13600_v8  ;;  %10541 = vmatpush1.bf16.msra.mxu1 %v13609_v16 }
0x1720   :  { %10511 = vmatprep.subr.bf16.mxu0 %v13623_v28  ;;  %10543 = vmatprep.subr.bf16.mxu1 %v13634_v42  ;;  %v4942_v28 = vld [vmem:[#allocation2 + $0x48] sm:$0x30] }
0x1723   :  { %10513 = vmatpush1.bf16.msra.mxu0 %v13636_v46  ;;  %10545 = vmatpush1.bf16.msra.mxu1 %v13648_v60 }
0x1724   :  { %10515 = vmatprep.subr.bf16.mxu0 %v13661_v25  ;;  %10547 = vmatprep.subr.bf16.mxu1 %v13663_v31  ;;  %v4944_v31 = vld [vmem:[#allocation2 + $0x58] sm:$0x30] }
0x1727   :  { %10517 = vmatpush1.bf16.msra.mxu0 %v13675_v57  ;;  %10549 = vmatpush1.bf16.msra.mxu1 %v13688_v58 }
0x1728   :  { %10519 = vmatprep.subr.bf16.mxu0 %v13690_v63  ;;  %10551 = vmatprep.subr.bf16.mxu1 %v13701_v40  ;;  %v4943_v63 = vld [vmem:[#allocation2 + $0x50] sm:$0x30] }
0x172b   :  { %10521 = vmatpush1.bf16.msra.mxu0 %v13713_v30  ;;  %10553 = vmatpush1.bf16.msra.mxu1 %v13717_v11 }
0x172c   :  { %10523 = vmatprep.subr.bf16.mxu0 %v13729_v3  ;;  %10555 = vmatprep.subr.bf16.mxu1 %v13740_v26 }
0x172f   :  { %10525 = vmatpush1.bf16.msra.mxu0 %v13749_v39  ;;  %10557 = vmatpush1.bf16.msra.mxu1 %v13753_v41 }
0x1730   :  { %10559 = vmatprep.subr.bf16.mxu0 %v10558_v19  ;;  %10591 = vmatprep.subr.bf16.mxu1 %v10590_v29  ;;  %v10564_v19 = vpack.c.bf16 %v5346_v55, %v5342_v20  ;;  %v5350_v29 = vld [vmem:[#allocation8 + $0x80] sm:$0xff]  ;;  %v5389_v20 = vld [vmem:[#allocation8 + $0x1b8] sm:$0xff]  ;;  %v10580_v55 = vpack.c.bf16 %v5378_v14, %v5374_v12  ;;  %v5615_v12 = vld [vmem:[#allocation10 + $0x88] sm:$0xff] }
0x1731   :  { %v5619_v14 = vld [vmem:[#allocation10 + $0xa8] sm:$0xff] }
0x17e5   :  { %v5014_v61 = vpop.f32.mrb[56].mxu0  ;;  %v5085_v49 = vpop.f32.mrb[56].mxu1 }
0x17e6   :  { %v5094_v21 = vrot.slane %v5014_v61, 4  ;;  %v5016_v22 = vpop.f32.mrb[57].mxu0  ;;  %v5087_v37 = vpop.f32.mrb[57].mxu1  ;;  %v5096_v58 = vrot.slane %v5085_v49, 4  ;;  %v5354_v61 = vld [vmem:[#allocation8 + $0xa0] sm:$0xff]  ;;  %v10566_v49 = vpack.c.bf16 %v5355_v24, %v5351_v53  ;;  %v5384_v53 = vld [vmem:[#allocation8 + $0x190] sm:$0xff] }
0x17e7   :  { %v5095_v8 = vrot.slane %v5016_v22, 4  ;;  %v5097_v25 = vrot.slane %v5087_v37, 4  ;;  %v5352_v22 = vld [vmem:[#allocation8 + $0x90] sm:$0xff] }
0x17e8   :  { %v5102_v16 = vadd.f32 %v5094_v21, %v4941_v4  ;;  %v5104_v30 = vadd.f32 %v5096_v58, %v4943_v63  ;;  %v10598_v21 = vpack.c.bf16 %v5357_v44, %v5353_v35  ;;  %v5356_v37 = vld [vmem:[#allocation8 + $0xb0] sm:$0xff]  ;;  %v5359_v4 = vld [vmem:[#allocation8 + $0xc8] sm:$0xff] }
0x17e9   :  { %v5103_v42 = vadd.f32 %v5095_v8, %v4942_v28  ;;  %v5105_v57 = vadd.f32 %v5097_v25, %v4944_v31  ;;  %v5363_v8 = vld [vmem:[#allocation8 + $0xe8] sm:$0xff]  ;;  %v5365_v28 = vld [vmem:[#allocation8 + $0xf8] sm:$0xff]  ;;  %v5362_v25 = vld [vmem:[#allocation8 + $0xe0] sm:$0xff] }
0x17ea   :  { %v8805_v46 = vmul.f32 -1.442695, %v5102_v16  ;;  %v5361_v16 = vld [vmem:[#allocation8 + $0xd8] sm:$0xff]  ;;  %v10570_v31 = vpack.c.bf16 %v5363_v8, %v5359_v4  ;;  %v5360_v58 = vld [vmem:[#allocation8 + $0xd0] sm:$0xff]  ;;  %v5391_v35 = vld [vmem:[#allocation8 + $0x1c8] sm:$0xff] }
0x17eb   :  { %v8806_v60 = vmul.f32 -1.442695, %v5103_v42  ;;  %v8807_v40 = vmul.f32 -1.442695, %v5105_v57  ;;  %v10568_v42 = vpack.c.bf16 %v5354_v61, %v5350_v29  ;;  %v10602_v57 = vpack.c.bf16 %v5365_v28, %v5361_v16  ;;  %v5364_v63 = vld [vmem:[#allocation8 + $0xf0] sm:$0xff]  ;;  %v5395_v44 = vld [vmem:[#allocation8 + $0x1e8] sm:$0xff] }
0x17ec   :  { %11883 = vpow2.f32 %v8805_v46  ;;  %v10600_v46 = vpack.c.bf16 %v5356_v37, %v5352_v22  ;;  %v5388_v24 = vld [vmem:[#allocation8 + $0x1b0] sm:$0xff]  ;;  %v5394_v37 = vld [vmem:[#allocation8 + $0x1e0] sm:$0xff] }
0x17ed   :  { %11885 = vpow2.f32 %v8806_v60  ;;  %v5358_v60 = vld [vmem:[#allocation8 + $0xc0] sm:$0xff]  ;;  %v10616_v61 = vpack.c.bf16 %v5388_v24, %v5384_v53  ;;  %v5392_v4 = vld [vmem:[#allocation8 + $0x1d0] sm:$0xff]  ;;  %v5629_v53 = vld [vmem:[#allocation10 + $0xf8] sm:$0xff] }
0x17ee   :  { %11887 = vpow2.f32 %v8807_v40  ;;  %v5367_v40 = vld [vmem:[#allocation8 + $0x108] sm:$0xff]  ;;  %v5396_v8 = vld [vmem:[#allocation8 + $0x1f0] sm:$0xff]  ;;  %v5622_v24 = vld [vmem:[#allocation10 + $0xc0] sm:$0xff] }
0x17ef   :  { %11889 = vtanh.f32 %v5104_v30  ;;  %v5371_v30 = vld [vmem:[#allocation8 + $0x128] sm:$0xff]  ;;  %v10620_v28 = vpack.c.bf16 %v5396_v8, %v5392_v4  ;;  %v5637_v4 = vld [vmem:[#allocation10 + $0x138] sm:$0xff]  ;;  %v5630_v8 = vld [vmem:[#allocation10 + $0x100] sm:$0xff] }
0x17f6   :  { %v11884_v11 = vpop.eup %11883 }
0x17f7   :  { %v11886_v3 = vpop.eup %11885  ;;  %v5109_v26 = vadd.f32 1.0, %v11884_v11  ;;  %v5369_v11 = vld [vmem:[#allocation8 + $0x118] sm:$0xff] }
0x17f8   :  { %v5115_v39 = vadd.f32 1.0, %v11886_v3  ;;  %v11888_v41 = vpop.eup %11887  ;;  %v5373_v3 = vld [vmem:[#allocation8 + $0x138] sm:$0xff] }
0x17f9   :  { %11891 = vrcp.f32 %v5109_v26  ;;  %v11890_v13 = vpop.eup %11889  ;;  %v5122_v34 = vadd.f32 1.0, %v11888_v41  ;;  %v10572_v26 = vpack.c.bf16 %v5362_v25, %v5358_v60  ;;  %v5366_v41 = vld [vmem:[#allocation8 + $0x100] sm:$0xff]  ;;  %v5599_v60 = vld [vmem:[#allocation10 + $0x8] sm:$0xff] }
0x17fa   :  { %11893 = vrcp.f32 %v5115_v39  ;;  %v10604_v39 = vpack.c.bf16 %v5364_v63, %v5360_v58  ;;  %v5603_v25 = vld [vmem:[#allocation10 + $0x28] sm:$0xff]  ;;  %v5605_v58 = vld [vmem:[#allocation10 + $0x38] sm:$0xff]  ;;  %v5598_v63 = vld [vmem:[#allocation10] sm:$0xff] }
0x17fb   :  { %11895 = vrcp.f32 %v5122_v34  ;;  %v5375_v34 = vld [vmem:[#allocation8 + $0x148] sm:$0xff] }
0x1803   :  { %v11892_v62 = vpop.eup %11891 }
0x1804   :  { %v11894_v51 = vpop.eup %11893  ;;  %v5129_v56 = vmul.f32 %v11892_v62, %v11890_v13  ;;  %v5370_v13 = vld [vmem:[#allocation8 + $0x120] sm:$0xff]  ;;  %v10574_v62 = vpack.c.bf16 %v5371_v30, %v5367_v40 }
0x1805   :  { %v5128_v7 = vmul.f32 %v11894_v51, %v5126_v59  ;;  %v11896_v23 = vpop.eup %11895  ;;  %v10606_v59 = vpack.c.bf16 %v5373_v3, %v5369_v11  ;;  %v5368_v51 = vld [vmem:[#allocation8 + $0x110] sm:$0xff]  ;;  %v5602_v40 = vld [vmem:[#allocation10 + $0x20] sm:$0xff] }
0x1806   :  { %v14221_v11 = vpack.c.bf16 %v5602_v40, %v5598_v63  ;;  %v5600_v3 = vld [vmem:[#allocation10 + $0x10] sm:$0xff]  ;;  %v5641_v63 = vld [vmem:[#allocation10 + $0x158] sm:$0xff] }
0x1807   :  { %v14208_v2 = vadd.f32 %v5129_v56, %v5128_v7  ;;  %v5372_v56 = vld [vmem:[#allocation8 + $0x130] sm:$0xff]  ;;  %v5379_v7 = vld [vmem:[#allocation8 + $0x168] sm:$0xff]  ;;  %v5645_v40 = vld [vmem:[#allocation10 + $0x178] sm:$0xff] }
0x1808   :  { %v10608_v33 = vpack.c.bf16 %v5372_v56, %v5368_v51  ;;  %v5613_v51 = vld [vmem:[#allocation10 + $0x78] sm:$0xff]  ;;  %v5606_v56 = vld [vmem:[#allocation10 + $0x40] sm:$0xff] }
0x1809   :  { %11897 = vtanh.f32 %v14208_v2 }
0x1813   :  { %v11898_v27 = vpop.eup %11897 }
0x1814   :  { %v5132_v1 = vmul.f32 %v11898_v27, %v11896_v23  ;;  %v10576_v23 = vpack.c.bf16 %v5370_v13, %v5366_v41  ;;  %v10578_v27 = vpack.c.bf16 %v5379_v7, %v5375_v34  ;;  %v5607_v41 = vld [vmem:[#allocation10 + $0x48] sm:$0xff]  ;;  %v5610_v34 = vld [vmem:[#allocation10 + $0x60] sm:$0xff] }
0x1815   :  { %v5611_v13 = vld [vmem:[#allocation10 + $0x68] sm:$0xff]  ;;  %v14233_v6 = vpack.c.bf16 %v5610_v34, %v5606_v56  ;;  %v5644_v56 = vld [vmem:[#allocation10 + $0x170] sm:$0xff] }
0x1816   :  { %5133 = vst [vmem:[#allocation3 + $0x10] sm:$0x30] %v5132_v1  ;;  %v5139_v18 = vrot.slane %v5132_v1, 4  ;;  %v5383_v1 = vld [vmem:[#allocation8 + $0x188] sm:$0xff] }
0x1817   :  { %v5647_v34 = vld [vmem:[#allocation10 + $0x188] sm:$0xff] }
0x1818   :  { %5206 = vmatmul.mubr.f32.vlgmr.msra.gmra.mrb[58].mxu0 %v5139_v18  ;;  %5277 = vmatmul.mubr.f32.vlgmr.msra.gmra.mrb[58].mxu1 %v5139_v18  ;;  %v10612_v18 = vpack.c.bf16 %v5380_v17, %v5376_v32  ;;  %v5621_v32 = vld [vmem:[#allocation10 + $0xb8] sm:$0xff]  ;;  %v5614_v17 = vld [vmem:[#allocation10 + $0x80] sm:$0xff] }
0x1819   :  { %10561 = vmatpush1.bf16.msra.mxu0 %v10560_v9  ;;  %10593 = vmatpush1.bf16.msra.mxu1 %v10592_v36  ;;  %v5387_v9 = vld [vmem:[#allocation8 + $0x1a8] sm:$0xff]  ;;  %v5385_v36 = vld [vmem:[#allocation8 + $0x198] sm:$0xff] }
0x181a   :  { %10563 = vmatprep.subr.bf16.mxu0 %v10562_v38  ;;  %10595 = vmatprep.subr.bf16.mxu1 %v10594_v52  ;;  %v5382_v38 = vld [vmem:[#allocation8 + $0x180] sm:$0xff]  ;;  %v10582_v10 = vpack.c.bf16 %v5387_v9, %v5383_v1  ;;  %v10614_v5 = vpack.c.bf16 %v5389_v20, %v5385_v36  ;;  %v5616_v20 = vld [vmem:[#allocation10 + $0x90] sm:$0xff] }
0x181b   :  { %5484 = vmatprep.mubr.f32.mxu0 %v12310_v0  ;;  %5567 = vmatprep.mubr.f32.mxu1 %v12310_v0  ;;  %v5386_v52 = vld [vmem:[#allocation8 + $0x1a0] sm:$0xff] }
0x181c   :  { %v10584_v29 = vpack.c.bf16 %v5386_v52, %v5382_v38  ;;  %v5618_v1 = vld [vmem:[#allocation10 + $0xa0] sm:$0xff]  ;;  %v5623_v38 = vld [vmem:[#allocation10 + $0xc8] sm:$0xff] }
0x181d   :  { %10565 = vmatpush1.bf16.msra.mxu0 %v10564_v19  ;;  %10597 = vmatpush1.bf16.msra.mxu1 %v10596_v54  ;;  %v5393_v19 = vld [vmem:[#allocation8 + $0x1d8] sm:$0xff]  ;;  %v14245_v36 = vpack.c.bf16 %v5618_v1, %v5614_v17  ;;  %v5627_v52 = vld [vmem:[#allocation10 + $0xe8] sm:$0xff]  ;;  %v5650_v1 = vld [vmem:[#allocation10 + $0x1a0] sm:$0xff] }
0x181e   :  { %10567 = vmatprep.subr.bf16.mxu0 %v10566_v49  ;;  %10599 = vmatprep.subr.bf16.mxu1 %v10598_v21  ;;  %v5397_v54 = vld [vmem:[#allocation8 + $0x1f8] sm:$0xff]  ;;  %v5390_v49 = vld [vmem:[#allocation8 + $0x1c0] sm:$0xff]  ;;  %v10586_v21 = vpack.c.bf16 %v5395_v44, %v5391_v35 }
0x181f   :  { %v10618_v22 = vpack.c.bf16 %v5397_v54, %v5393_v19  ;;  %v10588_v16 = vpack.c.bf16 %v5394_v37, %v5390_v49  ;;  %v5626_v35 = vld [vmem:[#allocation10 + $0xe0] sm:$0xff]  ;;  %v5624_v54 = vld [vmem:[#allocation10 + $0xd0] sm:$0xff]  ;;  %v5631_v49 = vld [vmem:[#allocation10 + $0x108] sm:$0xff] }
0x1820   :  { %v14257_v19 = vpack.c.bf16 %v5626_v35, %v5622_v24  ;;  %v5657_v24 = vld [vmem:[#allocation10 + $0x1d8] sm:$0xff] }
0x1821   :  { %10569 = vmatpush1.bf16.msra.mxu0 %v10568_v42  ;;  %10601 = vmatpush1.bf16.msra.mxu1 %v10600_v46  ;;  %v5331_v42 = vld [vmem:[#allocation3] sm:$0xff]  ;;  %v5332_v46 = vld [vmem:[#allocation3 + $0x8] sm:$0xff] }
0x1822   :  { %10571 = vmatprep.subr.bf16.mxu0 %v10570_v31  ;;  %10603 = vmatprep.subr.bf16.mxu1 %v10602_v57  ;;  %v5601_v31 = vld [vmem:[#allocation10 + $0x18] sm:$0xff]  ;;  %v14217_v57 = vpack.c.bf16 %v5603_v25, %v5599_v60  ;;  %v5636_v60 = vld [vmem:[#allocation10 + $0x130] sm:$0xff]  ;;  %v5639_v25 = vld [vmem:[#allocation10 + $0x148] sm:$0xff] }
0x1823   :  { %v14219_v30 = vpack.c.bf16 %v5605_v58, %v5601_v31  ;;  %v5643_v58 = vld [vmem:[#allocation10 + $0x168] sm:$0xff] }
0x1825   :  { %10573 = vmatpush1.bf16.msra.mxu0 %v10572_v26  ;;  %10605 = vmatpush1.bf16.msra.mxu1 %v10604_v39  ;;  %v5604_v26 = vld [vmem:[#allocation10 + $0x30] sm:$0xff] }
0x1826   :  { %10575 = vmatprep.subr.bf16.mxu0 %v10574_v62  ;;  %10607 = vmatprep.subr.bf16.mxu1 %v10606_v59  ;;  %v14224_v39 = vpack.c.bf16 %v5604_v26, %v5600_v3  ;;  %v5609_v62 = vld [vmem:[#allocation10 + $0x58] sm:$0xff]  ;;  %v14229_v59 = vpack.c.bf16 %v5611_v13, %v5607_v41  ;;  %v14276_v3 = vpack.c.bf16 %v5643_v58, %v5639_v25  ;;  %v5638_v41 = vld [vmem:[#allocation10 + $0x140] sm:$0xff] }
0x1827   :  { %v14231_v7 = vpack.c.bf16 %v5613_v51, %v5609_v62  ;;  %v14278_v26 = vpack.c.bf16 %v5645_v40, %v5641_v63  ;;  %v5642_v13 = vld [vmem:[#allocation10 + $0x160] sm:$0xff]  ;;  %v5640_v62 = vld [vmem:[#allocation10 + $0x150] sm:$0xff]  ;;  %v5134_v40 = vld [vmem:[#allocation2 + $0x40] sm:$0xc0] }
0x1828   :  { %v14281_v51 = vpack.c.bf16 %v5642_v13, %v5638_v41 }
0x1829   :  { %10577 = vmatpush1.bf16.msra.mxu0 %v10576_v23  ;;  %10609 = vmatpush1.bf16.msra.mxu1 %v10608_v33  ;;  %v5612_v23 = vld [vmem:[#allocation10 + $0x70] sm:$0xff] }
0x182a   :  { %10579 = vmatprep.subr.bf16.mxu0 %v10578_v27  ;;  %10611 = vmatprep.subr.bf16.mxu1 %v10610_v50  ;;  %v14236_v33 = vpack.c.bf16 %v5612_v23, %v5608_v15  ;;  %v5617_v27 = vld [vmem:[#allocation10 + $0x98] sm:$0xff]  ;;  %v14241_v50 = vpack.c.bf16 %v5619_v14, %v5615_v12  ;;  %v5651_v15 = vld [vmem:[#allocation10 + $0x1a8] sm:$0xff]  ;;  %v14285_v23 = vpack.c.bf16 %v5644_v56, %v5640_v62  ;;  %v5135_v62 = vld [vmem:[#allocation2 + $0x48] sm:$0xc0] }
0x182b   :  { %v14243_v9 = vpack.c.bf16 %v5621_v32, %v5617_v27  ;;  %v14287_v12 = vpack.c.bf16 %v5651_v15, %v5647_v34  ;;  %v5649_v14 = vld [vmem:[#allocation10 + $0x198] sm:$0xff]  ;;  %v5646_v32 = vld [vmem:[#allocation10 + $0x180] sm:$0xff] }
0x182c   :  { %v5653_v27 = vld [vmem:[#allocation10 + $0x1b8] sm:$0xff] }
0x182d   :  { %10581 = vmatpush1.bf16.msra.mxu0 %v10580_v55  ;;  %10613 = vmatpush1.bf16.msra.mxu1 %v10612_v18  ;;  %v5620_v55 = vld [vmem:[#allocation10 + $0xb0] sm:$0xff]  ;;  %v14289_v17 = vpack.c.bf16 %v5653_v27, %v5649_v14  ;;  %v5137_v27 = vld [vmem:[#allocation2 + $0x58] sm:$0xc0] }
0x182e   :  { %10583 = vmatprep.subr.bf16.mxu0 %v10582_v10  ;;  %10615 = vmatprep.subr.bf16.mxu1 %v10614_v5  ;;  %v14248_v18 = vpack.c.bf16 %v5620_v55, %v5616_v20  ;;  %v5625_v10 = vld [vmem:[#allocation10 + $0xd8] sm:$0xff]  ;;  %v14253_v5 = vpack.c.bf16 %v5627_v52, %v5623_v38  ;;  %v5648_v20 = vld [vmem:[#allocation10 + $0x190] sm:$0xff]  ;;  %v14292_v38 = vpack.c.bf16 %v5650_v1, %v5646_v32 }
0x182f   :  { %v14255_v44 = vpack.c.bf16 %v5629_v53, %v5625_v10  ;;  %v5652_v55 = vld [vmem:[#allocation10 + $0x1b0] sm:$0xff]  ;;  %v5655_v10 = vld [vmem:[#allocation10 + $0x1c8] sm:$0xff] }
0x1830   :  { %v14296_v52 = vpack.c.bf16 %v5652_v55, %v5648_v20  ;;  %v5659_v53 = vld [vmem:[#allocation10 + $0x1e8] sm:$0xff]  ;;  %v5136_v20 = vld [vmem:[#allocation2 + $0x50] sm:$0xc0] }
0x1831   :  { %10585 = vmatpush1.bf16.msra.mxu0 %v10584_v29  ;;  %10617 = vmatpush1.bf16.msra.mxu1 %v10616_v61  ;;  %v5628_v29 = vld [vmem:[#allocation10 + $0xf0] sm:$0xff]  ;;  %v14299_v35 = vpack.c.bf16 %v5659_v53, %v5655_v10 }
0x1832   :  { %10587 = vmatprep.subr.bf16.mxu0 %v10586_v21  ;;  %10619 = vmatprep.subr.bf16.mxu1 %v10618_v22  ;;  %v14260_v61 = vpack.c.bf16 %v5628_v29, %v5624_v54  ;;  %v5635_v21 = vld [vmem:[#allocation10 + $0x128] sm:$0xff]  ;;  %v5633_v22 = vld [vmem:[#allocation10 + $0x118] sm:$0xff]  ;;  %v5654_v29 = vld [vmem:[#allocation10 + $0x1c0] sm:$0xff] }
0x1833   :  { %v14265_v37 = vpack.c.bf16 %v5635_v21, %v5631_v49  ;;  %v5661_v54 = vld [vmem:[#allocation10 + $0x1f8] sm:$0xff]  ;;  %v5658_v49 = vld [vmem:[#allocation10 + $0x1e0] sm:$0xff] }
0x1834   :  { %v14301_v21 = vpack.c.bf16 %v5661_v54, %v5657_v24 }
0x1835   :  { %10589 = vmatpush1.bf16.msra.mxu0 %v10588_v16  ;;  %10621 = vmatpush1.bf16.msra.mxu1 %v10620_v28  ;;  %v5634_v16 = vld [vmem:[#allocation10 + $0x120] sm:$0xff]  ;;  %v14267_v28 = vpack.c.bf16 %v5637_v4, %v5633_v22  ;;  %v5656_v22 = vld [vmem:[#allocation10 + $0x1d0] sm:$0xff] }
0x1836   :  { %10623 = vmatprep.subr.bf16.mxu0 %v14217_v57  ;;  %10655 = vmatprep.subr.bf16.mxu1 %v14219_v30  ;;  %v5660_v4 = vld [vmem:[#allocation10 + $0x1f0] sm:$0xff] }
0x1838   :  { %5485 = vmatmul.mubr.f32.vlgmr.msra.gmra.mrb[60].mxu0 %v5331_v42  ;;  %5568 = vmatmul.mubr.f32.vlgmr.msra.gmra.mrb[60].mxu1 %v5331_v42  ;;  %v14269_v42 = vpack.c.bf16 %v5634_v16, %v5630_v8  ;;  %v14304_v8 = vpack.c.bf16 %v5658_v49, %v5654_v29  ;;  %v14308_v16 = vpack.c.bf16 %v5660_v4, %v5656_v22  ;;  %v5398_v49 = vld [vmem:[#allocation11] sm:$0xf] }
0x1839   :  { %5490 = vmatprep.mubr.f32.mxu0 %v12310_v0  ;;  %5573 = vmatprep.mubr.f32.mxu1 %v12310_v0 }
0x183a   :  { %10625 = vmatpush1.bf16.msra.mxu0 %v14221_v11  ;;  %10657 = vmatpush1.bf16.msra.mxu1 %v14224_v39 }
0x183b   :  { %10627 = vmatprep.subr.bf16.mxu0 %v14229_v59  ;;  %10659 = vmatprep.subr.bf16.mxu1 %v14231_v7 }
0x183c   :  { %5491 = vmatmul.mubr.f32.gmra.mrb[62].mxu0 %v5332_v46  ;;  %5574 = vmatmul.mubr.f32.gmra.mrb[62].mxu1 %v5332_v46  ;;  %v5632_v46 = vld [vmem:[#allocation10 + $0x110] sm:$0xff] }
0x183d   :  { %5496 = vmatprep.mubr.f32.mxu0 %v12310_v0  ;;  %5579 = vmatprep.mubr.f32.mxu1 %v12310_v0  ;;  %v14272_v31 = vpack.c.bf16 %v5636_v60, %v5632_v46 }
0x183e   :  { %10629 = vmatpush1.bf16.msra.mxu0 %v14233_v6  ;;  %10661 = vmatpush1.bf16.msra.mxu1 %v14236_v33 }
0x183f   :  { %10631 = vmatprep.subr.bf16.mxu0 %v14241_v50  ;;  %10663 = vmatprep.subr.bf16.mxu1 %v14243_v9 }
0x1842   :  { %10633 = vmatpush1.bf16.msra.mxu0 %v14245_v36  ;;  %10665 = vmatpush1.bf16.msra.mxu1 %v14248_v18 }
0x1843   :  { %10635 = vmatprep.subr.bf16.mxu0 %v14253_v5  ;;  %10667 = vmatprep.subr.bf16.mxu1 %v14255_v44 }
0x1846   :  { %10637 = vmatpush1.bf16.msra.mxu0 %v14257_v19  ;;  %10669 = vmatpush1.bf16.msra.mxu1 %v14260_v61 }
0x1847   :  { %10639 = vmatprep.subr.bf16.mxu0 %v14265_v37  ;;  %10671 = vmatprep.subr.bf16.mxu1 %v14267_v28 }
0x184a   :  { %10641 = vmatpush1.bf16.msra.mxu0 %v14269_v42  ;;  %10673 = vmatpush1.bf16.msra.mxu1 %v14272_v31 }
0x184b   :  { %10643 = vmatprep.subr.bf16.mxu0 %v14276_v3  ;;  %10675 = vmatprep.subr.bf16.mxu1 %v14278_v26 }
0x184e   :  { %10645 = vmatpush1.bf16.msra.mxu0 %v14281_v51  ;;  %10677 = vmatpush1.bf16.msra.mxu1 %v14285_v23 }
0x184f   :  { %10647 = vmatprep.subr.bf16.mxu0 %v14287_v12  ;;  %10679 = vmatprep.subr.bf16.mxu1 %v14289_v17 }
0x1852   :  { %10649 = vmatpush1.bf16.msra.mxu0 %v14292_v38  ;;  %10681 = vmatpush1.bf16.msra.mxu1 %v14296_v52 }
0x1853   :  { %10651 = vmatprep.subr.bf16.mxu0 %v14299_v35  ;;  %10683 = vmatprep.subr.bf16.mxu1 %v14301_v21 }
0x1856   :  { %10653 = vmatpush1.bf16.msra.mxu0 %v14304_v8  ;;  %10685 = vmatpush1.bf16.msra.mxu1 %v14308_v16 }
0x1857   :  { %10687 = vmatprep.subr.bf16.mxu0 %v14217_v57  ;;  %10719 = vmatprep.subr.bf16.mxu1 %v14219_v30 }
0x18eb   :  { %v5207_v46 = vpop.f32.mrb[58].mxu0  ;;  %v5278_v60 = vpop.f32.mrb[58].mxu1 }
0x18ec   :  { %v5287_v25 = vrot.slane %v5207_v46, 2  ;;  %v5209_v58 = vpop.f32.mrb[59].mxu0  ;;  %v5280_v63 = vpop.f32.mrb[59].mxu1  ;;  %v5289_v1 = vrot.slane %v5278_v60, 2  ;;  %v14316_v46 = vrot.slane %v5398_v49, %v12873_v43 }
0x18ed   :  { %v5288_v41 = vrot.slane %v5209_v58, 2  ;;  %v5290_v14 = vrot.slane %v5280_v63, 2  ;;  %v5319_v58 = vrot.slane %v14208_v2, 6  ;;  %v14323_v63 = vrot.slane %v5398_v49, %v12878_v45 }
0x18ee   :  { %v5295_v13 = vadd.f32 %v5287_v25, %v5134_v40  ;;  %v5297_v10 = vadd.f32 %v5289_v1, %v5136_v20  ;;  %v14319_v25 = vrot.slane %v5398_v49, %v12880_v47  ;;  %v14326_v40 = vrot.slane %v5398_v49, %v12882_v48 }
0x18ef   :  { %v5296_v56 = vadd.f32 %v5288_v41, %v5135_v62  ;;  %v5298_v32 = vadd.f32 %v5290_v14, %v5137_v27 }
0x18f0   :  { %v8808_v34 = vmul.f32 -1.442695, %v5295_v13 }
0x18f1   :  { %v8809_v15 = vmul.f32 -1.442695, %v5296_v56  ;;  %v8810_v55 = vmul.f32 -1.442695, %v5298_v32 }
0x18f2   :  { %11899 = vpow2.f32 %v8808_v34 }
0x18f3   :  { %11901 = vpow2.f32 %v8809_v15 }
0x18f4   :  { %11903 = vpow2.f32 %v8810_v55 }
0x18f5   :  { %11905 = vtanh.f32 %v5297_v10 }
0x18fc   :  { %v11900_v53 = vpop.eup %11899 }
0x18fd   :  { %v11902_v24 = vpop.eup %11901  ;;  %v5302_v54 = vadd.f32 1.0, %v11900_v53 }
0x18fe   :  { %v5308_v29 = vadd.f32 1.0, %v11902_v24  ;;  %v11904_v22 = vpop.eup %11903 }
0x18ff   :  { %11907 = vrcp.f32 %v5302_v54  ;;  %v11906_v4 = vpop.eup %11905  ;;  %v5315_v62 = vadd.f32 1.0, %v11904_v22 }
0x1900   :  { %11909 = vrcp.f32 %v5308_v29 }
0x1901   :  { %11911 = vrcp.f32 %v5315_v62  ;;  %v8811_v62 = vld [vmem:[%s15070_s10 + $0x4] sm:$0x3] }
0x1909   :  { %v11908_v60 = vpop.eup %11907 }
0x190a   :  { %v11910_v41 = vpop.eup %11909  ;;  %v5322_v13 = vmul.f32 %v11908_v60, %v11906_v4 }
0x190b   :  { %v5321_v56 = vmul.f32 %v11910_v41, %v5319_v58  ;;  %v5486_v34 = vpop.f32.mrb[60].mxu0  ;;  %v5569_v15 = vpop.f32.mrb[60].mxu1 }
0x190c   :  { %v5487_v14 = vadd.f32 %v5486_v34, %v14316_v46  ;;  %v5570_v27 = vadd.f32 %v5569_v15, %v14319_v25  ;;  %v5488_v32 = vpop.f32.mrb[61].mxu0  ;;  %v5571_v1 = vpop.f32.mrb[61].mxu1 }
0x190d   :  { %v5323_v20 = vadd.f32 %v5322_v13, %v5321_v56  ;;  %v5489_v2 = vadd.f32 %v5488_v32, %v14323_v63  ;;  %v5572_v55 = vadd.f32 %v5571_v1, %v14326_v40  ;;  %v11912_v60 = vpop.eup %11911 }
0x190e   :  { %5586 = vst [vmem:[#allocation2] sm:$0xff] %v5487_v14  ;;  %5588 = vst [vmem:[#allocation2 + $0x10] sm:$0xff] %v5570_v27 }
0x190f   :  { %11913 = vtanh.f32 %v5323_v20  ;;  %5330 = vst [vmem:[#allocation17 - $0x4] sm:$0xc0] %v5323_v20  ;;  %5587 = vst [vmem:[#allocation2 + $0x8] sm:$0xff] %v5489_v2  ;;  %v5492_v10 = vpop.f32.mrb[62].mxu0  ;;  %v5575_v53 = vpop.f32.mrb[62].mxu1 }
0x1910   :  { %5589 = vst [vmem:[#allocation2 + $0x18] sm:$0xff] %v5572_v55  ;;  %v5493_v24 = vadd.f32 %v5492_v10, %v14316_v46  ;;  %v5576_v54 = vadd.f32 %v5575_v53, %v14319_v25  ;;  %v5494_v29 = vpop.f32.mrb[63].mxu0  ;;  %v5577_v49 = vpop.f32.mrb[63].mxu1 }
0x1911   :  { %v5495_v22 = vadd.f32 %v5494_v29, %v14323_v63  ;;  %v5578_v4 = vadd.f32 %v5577_v49, %v14326_v40 }
0x1912   :  { %5590 = vst [vmem:[#allocation2 + $0x20] sm:$0xff] %v5493_v24  ;;  %5592 = vst [vmem:[#allocation2 + $0x30] sm:$0xff] %v5576_v54 }
0x1913   :  { %5591 = vst [vmem:[#allocation2 + $0x28] sm:$0xff] %v5495_v22  ;;  %5593 = vst [vmem:[#allocation2 + $0x38] sm:$0xff] %v5578_v4 }
0x1915   :  { %v5666_v2 = vld [vmem:[#allocation2] sm:$0x3]  ;;  %v5668_v4 = vld [vmem:[#allocation2 + $0x10] sm:$0x3] }
0x1916   :  { %v5667_v24 = vld [vmem:[#allocation2 + $0x8] sm:$0x3] }
0x1917   :  { %v5669_v22 = vld [vmem:[#allocation2 + $0x18] sm:$0x3] }
0x1919   :  { %v11914_v58 = vpop.eup %11913 }
0x191a   :  { %v5325_v41 = vmul.f32 %v11914_v58, %v11912_v60 }
0x191c   :  { %5326 = vst [vmem:[#allocation3 + $0x10] sm:$0xc0] %v5325_v41  ;;  %5328 = vst [vmem:[#allocation15 - $0x4] sm:$0xc0] %v5325_v41 }
0x1923   :  { %v5333_v13 = vld [vmem:[#allocation3 + $0x10] sm:$0xff] }
0x1924   :  { %5497 = vmatmul.mubr.f32.gmra.mrb[64].mxu0 %v5333_v13  ;;  %5580 = vmatmul.mubr.f32.gmra.mrb[64].mxu1 %v5333_v13 }
0x1925   :  { %5734 = vmatprep.mubr.f32.mxu0 %v12310_v0  ;;  %5805 = vmatprep.mubr.f32.mxu1 %v12310_v0 }
0x1928   :  { %5735 = vmatmul.mubr.f32.vlgmr.msra.gmra.mrb[66].mxu0 %v8811_v62  ;;  %5806 = vmatmul.mubr.f32.vlgmr.msra.gmra.mrb[66].mxu1 %v8811_v62 }
0x1929   :  { %10689 = vmatpush1.bf16.msra.mxu0 %v14221_v11  ;;  %10721 = vmatpush1.bf16.msra.mxu1 %v14224_v39 }
0x192a   :  { %10691 = vmatprep.subr.bf16.mxu0 %v14229_v59  ;;  %10723 = vmatprep.subr.bf16.mxu1 %v14231_v7 }
0x192b   :  { %5909 = vmatprep.mubr.f32.mxu0 %v12310_v0  ;;  %5980 = vmatprep.mubr.f32.mxu1 %v12310_v0 }
0x192d   :  { %10693 = vmatpush1.bf16.msra.mxu0 %v14233_v6  ;;  %10725 = vmatpush1.bf16.msra.mxu1 %v14236_v33 }
0x192e   :  { %10695 = vmatprep.subr.bf16.mxu0 %v14241_v50  ;;  %10727 = vmatprep.subr.bf16.mxu1 %v14243_v9 }
0x1931   :  { %10697 = vmatpush1.bf16.msra.mxu0 %v14245_v36  ;;  %10729 = vmatpush1.bf16.msra.mxu1 %v14248_v18 }
0x1932   :  { %10699 = vmatprep.subr.bf16.mxu0 %v14253_v5  ;;  %10731 = vmatprep.subr.bf16.mxu1 %v14255_v44 }
0x1935   :  { %10701 = vmatpush1.bf16.msra.mxu0 %v14257_v19  ;;  %10733 = vmatpush1.bf16.msra.mxu1 %v14260_v61 }
0x1936   :  { %10703 = vmatprep.subr.bf16.mxu0 %v14265_v37  ;;  %10735 = vmatprep.subr.bf16.mxu1 %v14267_v28 }
0x1939   :  { %10705 = vmatpush1.bf16.msra.mxu0 %v14269_v42  ;;  %10737 = vmatpush1.bf16.msra.mxu1 %v14272_v31 }
0x193a   :  { %10707 = vmatprep.subr.bf16.mxu0 %v14276_v3  ;;  %10739 = vmatprep.subr.bf16.mxu1 %v14278_v26 }
0x193d   :  { %10709 = vmatpush1.bf16.msra.mxu0 %v14281_v51  ;;  %10741 = vmatpush1.bf16.msra.mxu1 %v14285_v23 }
0x193e   :  { %10711 = vmatprep.subr.bf16.mxu0 %v14287_v12  ;;  %10743 = vmatprep.subr.bf16.mxu1 %v14289_v17 }
0x1941   :  { %10713 = vmatpush1.bf16.msra.mxu0 %v14292_v38  ;;  %10745 = vmatpush1.bf16.msra.mxu1 %v14296_v52 }
0x1942   :  { %10715 = vmatprep.subr.bf16.mxu0 %v14299_v35  ;;  %10747 = vmatprep.subr.bf16.mxu1 %v14301_v21 }
0x1945   :  { %10717 = vmatpush1.bf16.msra.mxu0 %v14304_v8  ;;  %10749 = vmatpush1.bf16.msra.mxu1 %v14308_v16 }
0x1946   :  { %10751 = vmatprep.subr.bf16.mxu0 %v14217_v57  ;;  %10783 = vmatprep.subr.bf16.mxu1 %v14219_v30 }
0x19f7   :  { %v5498_v56 = vpop.f32.mrb[64].mxu0  ;;  %v5581_v34 = vpop.f32.mrb[64].mxu1 }
0x19f8   :  { %v5499_v15 = vadd.f32 %v5498_v56, %v14316_v46  ;;  %v5582_v14 = vadd.f32 %v5581_v34, %v14319_v25  ;;  %v5500_v27 = vpop.f32.mrb[65].mxu0  ;;  %v5583_v32 = vpop.f32.mrb[65].mxu1 }
0x19f9   :  { %v5501_v1 = vadd.f32 %v5500_v27, %v14323_v63  ;;  %v5584_v20 = vadd.f32 %v5583_v32, %v14326_v40 }
0x19fa   :  { %5594 = vst [vmem:[#allocation2 + $0x40] sm:$0xff] %v5499_v15  ;;  %5596 = vst [vmem:[#allocation2 + $0x50] sm:$0xff] %v5582_v14  ;;  %v8812_v15 = vld [vmem:[%s15071_s11 + $0x4] sm:$0x3] }
0x19fb   :  { %5595 = vst [vmem:[#allocation2 + $0x48] sm:$0xff] %v5501_v1  ;;  %5597 = vst [vmem:[#allocation2 + $0x58] sm:$0xff] %v5584_v20  ;;  %v5736_v55 = vpop.f32.mrb[66].mxu0  ;;  %v5807_v10 = vpop.f32.mrb[66].mxu1 }
0x19fc   :  { %v5812_v53 = vadd.f32 %v5736_v55, %v5666_v2  ;;  %v5738_v54 = vpop.f32.mrb[67].mxu0  ;;  %v5809_v29 = vpop.f32.mrb[67].mxu1  ;;  %v5814_v60 = vadd.f32 %v5807_v10, %v5668_v4  ;;  %v5842_v4 = vld [vmem:[#allocation2 + $0x8] sm:$0xc] }
0x19fd   :  { %v5813_v46 = vadd.f32 %v5738_v54, %v5667_v24  ;;  %v5815_v63 = vadd.f32 %v5809_v29, %v5669_v22 }
0x19fe   :  { %v8813_v49 = vmul.f32 -1.442695, %v5812_v53 }
0x19ff   :  { %v8814_v25 = vmul.f32 -1.442695, %v5813_v46  ;;  %v8815_v40 = vmul.f32 -1.442695, %v5815_v63 }
0x1a00   :  { %11915 = vpow2.f32 %v8813_v49 }
0x1a01   :  { %11917 = vpow2.f32 %v8814_v25  ;;  %v5841_v25 = vld [vmem:[#allocation2] sm:$0xc] }
0x1a02   :  { %11919 = vpow2.f32 %v8815_v40 }
0x1a03   :  { %11921 = vtanh.f32 %v5814_v60 }
0x1a0a   :  { %v11916_v58 = vpop.eup %11915 }
0x1a0b   :  { %v11918_v41 = vpop.eup %11917  ;;  %v5819_v13 = vadd.f32 1.0, %v11916_v58 }
0x1a0c   :  { %v5825_v62 = vadd.f32 1.0, %v11918_v41  ;;  %v11920_v56 = vpop.eup %11919 }
0x1a0d   :  { %11923 = vrcp.f32 %v5819_v13  ;;  %v11922_v34 = vpop.eup %11921  ;;  %v5832_v1 = vadd.f32 1.0, %v11920_v56  ;;  %v5844_v13 = vld [vmem:[#allocation2 + $0x18] sm:$0xc] }
0x1a0e   :  { %11925 = vrcp.f32 %v5825_v62 }
0x1a0f   :  { %11927 = vrcp.f32 %v5832_v1 }
0x1a17   :  { %v11924_v14 = vpop.eup %11923 }
0x1a18   :  { %v11926_v27 = vpop.eup %11925  ;;  %v5836_v32 = vmul.f32 %v11924_v14, %v11922_v34  ;;  %v5843_v34 = vld [vmem:[#allocation2 + $0x10] sm:$0xc] }
0x1a19   :  { %v5835_v20 = vmul.f32 %v11926_v27, %v8812_v15  ;;  %v11928_v55 = vpop.eup %11927 }
0x1a1b   :  { %v14382_v2 = vadd.f32 %v5836_v32, %v5835_v20 }
0x1a1d   :  { %11929 = vtanh.f32 %v14382_v2 }
0x1a27   :  { %v11930_v10 = vpop.eup %11929 }
0x1a28   :  { %v5839_v53 = vmul.f32 %v11930_v10, %v11928_v55 }
0x1a2a   :  { %5840 = vst [vmem:[#allocation3] sm:$0x3] %v5839_v53  ;;  %5910 = vmatmul.mubr.f32.vlgmr.msra.gmra.mrb[68].mxu0 %v5839_v53  ;;  %5981 = vmatmul.mubr.f32.vlgmr.msra.gmra.mrb[68].mxu1 %v5839_v53 }
0x1a2b   :  { %10753 = vmatpush1.bf16.msra.mxu0 %v14221_v11  ;;  %10785 = vmatpush1.bf16.msra.mxu1 %v14224_v39 }
0x1a2c   :  { %10755 = vmatprep.subr.bf16.mxu0 %v14229_v59  ;;  %10787 = vmatprep.subr.bf16.mxu1 %v14231_v7 }
0x1a2d   :  { %6102 = vmatprep.mubr.f32.mxu0 %v12310_v0  ;;  %6173 = vmatprep.mubr.f32.mxu1 %v12310_v0 }
0x1a2f   :  { %10757 = vmatpush1.bf16.msra.mxu0 %v14233_v6  ;;  %10789 = vmatpush1.bf16.msra.mxu1 %v14236_v33 }
0x1a30   :  { %10759 = vmatprep.subr.bf16.mxu0 %v14241_v50  ;;  %10791 = vmatprep.subr.bf16.mxu1 %v14243_v9 }
0x1a33   :  { %10761 = vmatpush1.bf16.msra.mxu0 %v14245_v36  ;;  %10793 = vmatpush1.bf16.msra.mxu1 %v14248_v18 }
0x1a34   :  { %10763 = vmatprep.subr.bf16.mxu0 %v14253_v5  ;;  %10795 = vmatprep.subr.bf16.mxu1 %v14255_v44 }
0x1a37   :  { %10765 = vmatpush1.bf16.msra.mxu0 %v14257_v19  ;;  %10797 = vmatpush1.bf16.msra.mxu1 %v14260_v61 }
0x1a38   :  { %10767 = vmatprep.subr.bf16.mxu0 %v14265_v37  ;;  %10799 = vmatprep.subr.bf16.mxu1 %v14267_v28 }
0x1a3b   :  { %10769 = vmatpush1.bf16.msra.mxu0 %v14269_v42  ;;  %10801 = vmatpush1.bf16.msra.mxu1 %v14272_v31 }
0x1a3c   :  { %10771 = vmatprep.subr.bf16.mxu0 %v14276_v3  ;;  %10803 = vmatprep.subr.bf16.mxu1 %v14278_v26 }
0x1a3f   :  { %10773 = vmatpush1.bf16.msra.mxu0 %v14281_v51  ;;  %10805 = vmatpush1.bf16.msra.mxu1 %v14285_v23 }
0x1a40   :  { %10775 = vmatprep.subr.bf16.mxu0 %v14287_v12  ;;  %10807 = vmatprep.subr.bf16.mxu1 %v14289_v17 }
0x1a43   :  { %10777 = vmatpush1.bf16.msra.mxu0 %v14292_v38  ;;  %10809 = vmatpush1.bf16.msra.mxu1 %v14296_v52 }
0x1a44   :  { %10779 = vmatprep.subr.bf16.mxu0 %v14299_v35  ;;  %10811 = vmatprep.subr.bf16.mxu1 %v14301_v21 }
0x1a47   :  { %10781 = vmatpush1.bf16.msra.mxu0 %v14304_v8  ;;  %10813 = vmatpush1.bf16.msra.mxu1 %v14308_v16 }
0x1a48   :  { %10815 = vmatprep.subr.bf16.mxu0 %v14217_v57  ;;  %10847 = vmatprep.subr.bf16.mxu1 %v14219_v30 }
0x1afd   :  { %v5911_v24 = vpop.f32.mrb[68].mxu0  ;;  %v5982_v54 = vpop.f32.mrb[68].mxu1 }
0x1afe   :  { %v5991_v29 = vrot.slane %v5911_v24, 6  ;;  %v5913_v46 = vpop.f32.mrb[69].mxu0  ;;  %v5984_v49 = vpop.f32.mrb[69].mxu1  ;;  %v5993_v56 = vrot.slane %v5982_v54, 6  ;;  %v6023_v24 = vrot.slane %v14382_v2, 6 }
0x1aff   :  { %v5992_v22 = vrot.slane %v5913_v46, 6  ;;  %v5994_v41 = vrot.slane %v5984_v49, 6 }
0x1b00   :  { %v5999_v63 = vadd.f32 %v5991_v29, %v5841_v25  ;;  %v6001_v14 = vadd.f32 %v5993_v56, %v5843_v34 }
0x1b01   :  { %v6000_v40 = vadd.f32 %v5992_v22, %v5842_v4  ;;  %v6002_v62 = vadd.f32 %v5994_v41, %v5844_v13 }
0x1b02   :  { %v8816_v60 = vmul.f32 -1.442695, %v5999_v63 }
0x1b03   :  { %v8817_v58 = vmul.f32 -1.442695, %v6000_v40  ;;  %v8818_v15 = vmul.f32 -1.442695, %v6002_v62  ;;  %v6031_v62 = vld [vmem:[#allocation2] sm:$0x30] }
0x1b04   :  { %11931 = vpow2.f32 %v8816_v60 }
0x1b05   :  { %11933 = vpow2.f32 %v8817_v58 }
0x1b06   :  { %11935 = vpow2.f32 %v8818_v15  ;;  %v6032_v15 = vld [vmem:[#allocation2 + $0x8] sm:$0x30] }
0x1b07   :  { %11937 = vtanh.f32 %v6001_v14 }
0x1b0e   :  { %v11932_v27 = vpop.eup %11931 }
0x1b0f   :  { %v11934_v32 = vpop.eup %11933  ;;  %v6006_v1 = vadd.f32 1.0, %v11932_v27 }
0x1b10   :  { %v6012_v20 = vadd.f32 1.0, %v11934_v32  ;;  %v11936_v55 = vpop.eup %11935 }
0x1b11   :  { %11939 = vrcp.f32 %v6006_v1  ;;  %v11938_v10 = vpop.eup %11937  ;;  %v6019_v49 = vadd.f32 1.0, %v11936_v55 }
0x1b12   :  { %11941 = vrcp.f32 %v6012_v20  ;;  %v6034_v20 = vld [vmem:[#allocation2 + $0x18] sm:$0x30] }
0x1b13   :  { %11943 = vrcp.f32 %v6019_v49 }
0x1b1b   :  { %v11940_v53 = vpop.eup %11939 }
0x1b1c   :  { %v11942_v29 = vpop.eup %11941  ;;  %v6026_v46 = vmul.f32 %v11940_v53, %v11938_v10  ;;  %v6033_v53 = vld [vmem:[#allocation2 + $0x10] sm:$0x30] }
0x1b1d   :  { %v6025_v54 = vmul.f32 %v11942_v29, %v6023_v24  ;;  %v11944_v22 = vpop.eup %11943 }
0x1b1f   :  { %v14420_v25 = vadd.f32 %v6026_v46, %v6025_v54 }
0x1b21   :  { %11945 = vtanh.f32 %v14420_v25 }
0x1b2b   :  { %v11946_v63 = vpop.eup %11945 }
0x1b2c   :  { %v6029_v4 = vmul.f32 %v11946_v63, %v11944_v22 }
0x1b2e   :  { %6030 = vst [vmem:[#allocation3] sm:$0xc] %v6029_v4  ;;  %v6036_v40 = vrot.slane %v6029_v4, 2 }
0x1b30   :  { %6103 = vmatmul.mubr.f32.vlgmr.msra.gmra.mrb[70].mxu0 %v6036_v40  ;;  %6174 = vmatmul.mubr.f32.vlgmr.msra.gmra.mrb[70].mxu1 %v6036_v40 }
0x1b31   :  { %10817 = vmatpush1.bf16.msra.mxu0 %v14221_v11  ;;  %10849 = vmatpush1.bf16.msra.mxu1 %v14224_v39 }
0x1b32   :  { %10819 = vmatprep.subr.bf16.mxu0 %v14229_v59  ;;  %10851 = vmatprep.subr.bf16.mxu1 %v14231_v7 }
0x1b33   :  { %6295 = vmatprep.mubr.f32.mxu0 %v12310_v0  ;;  %6366 = vmatprep.mubr.f32.mxu1 %v12310_v0 }
0x1b35   :  { %10821 = vmatpush1.bf16.msra.mxu0 %v14233_v6  ;;  %10853 = vmatpush1.bf16.msra.mxu1 %v14236_v33 }
0x1b36   :  { %10823 = vmatprep.subr.bf16.mxu0 %v14241_v50  ;;  %10855 = vmatprep.subr.bf16.mxu1 %v14243_v9 }
0x1b39   :  { %10825 = vmatpush1.bf16.msra.mxu0 %v14245_v36  ;;  %10857 = vmatpush1.bf16.msra.mxu1 %v14248_v18 }
0x1b3a   :  { %10827 = vmatprep.subr.bf16.mxu0 %v14253_v5  ;;  %10859 = vmatprep.subr.bf16.mxu1 %v14255_v44 }
0x1b3d   :  { %10829 = vmatpush1.bf16.msra.mxu0 %v14257_v19  ;;  %10861 = vmatpush1.bf16.msra.mxu1 %v14260_v61 }
0x1b3e   :  { %10831 = vmatprep.subr.bf16.mxu0 %v14265_v37  ;;  %10863 = vmatprep.subr.bf16.mxu1 %v14267_v28 }
0x1b41   :  { %10833 = vmatpush1.bf16.msra.mxu0 %v14269_v42  ;;  %10865 = vmatpush1.bf16.msra.mxu1 %v14272_v31 }
0x1b42   :  { %10835 = vmatprep.subr.bf16.mxu0 %v14276_v3  ;;  %10867 = vmatprep.subr.bf16.mxu1 %v14278_v26 }
0x1b45   :  { %10837 = vmatpush1.bf16.msra.mxu0 %v14281_v51  ;;  %10869 = vmatpush1.bf16.msra.mxu1 %v14285_v23 }
0x1b46   :  { %10839 = vmatprep.subr.bf16.mxu0 %v14287_v12  ;;  %10871 = vmatprep.subr.bf16.mxu1 %v14289_v17 }
0x1b49   :  { %10841 = vmatpush1.bf16.msra.mxu0 %v14292_v38  ;;  %10873 = vmatpush1.bf16.msra.mxu1 %v14296_v52 }
0x1b4a   :  { %10843 = vmatprep.subr.bf16.mxu0 %v14299_v35  ;;  %10875 = vmatprep.subr.bf16.mxu1 %v14301_v21 }
0x1b4d   :  { %10845 = vmatpush1.bf16.msra.mxu0 %v14304_v8  ;;  %10877 = vmatpush1.bf16.msra.mxu1 %v14308_v16 }
0x1b4e   :  { %10879 = vmatprep.subr.bf16.mxu0 %v14217_v57  ;;  %10911 = vmatprep.subr.bf16.mxu1 %v14219_v30 }
0x1c03   :  { %v6104_v2 = vpop.f32.mrb[70].mxu0  ;;  %v6175_v60 = vpop.f32.mrb[70].mxu1 }
0x1c04   :  { %v6184_v58 = vrot.slane %v6104_v2, 4  ;;  %v6106_v41 = vpop.f32.mrb[71].mxu0  ;;  %v6177_v13 = vpop.f32.mrb[71].mxu1  ;;  %v6186_v10 = vrot.slane %v6175_v60, 4  ;;  %v6216_v2 = vrot.slane %v14420_v25, 6 }
0x1c05   :  { %v6185_v56 = vrot.slane %v6106_v41, 4  ;;  %v6187_v1 = vrot.slane %v6177_v13, 4 }
0x1c06   :  { %v6192_v34 = vadd.f32 %v6184_v58, %v6031_v62  ;;  %v6194_v29 = vadd.f32 %v6186_v10, %v6033_v53 }
0x1c07   :  { %v6193_v14 = vadd.f32 %v6185_v56, %v6032_v15  ;;  %v6195_v55 = vadd.f32 %v6187_v1, %v6034_v20 }
0x1c08   :  { %v8819_v27 = vmul.f32 -1.442695, %v6192_v34 }
0x1c09   :  { %v8820_v32 = vmul.f32 -1.442695, %v6193_v14  ;;  %v8821_v24 = vmul.f32 -1.442695, %v6195_v55  ;;  %v6224_v55 = vld [vmem:[#allocation2] sm:$0xc0] }
0x1c0a   :  { %11947 = vpow2.f32 %v8819_v27 }
0x1c0b   :  { %11949 = vpow2.f32 %v8820_v32 }
0x1c0c   :  { %11951 = vpow2.f32 %v8821_v24  ;;  %v6225_v24 = vld [vmem:[#allocation2 + $0x8] sm:$0xc0] }
0x1c0d   :  { %11953 = vtanh.f32 %v6194_v29 }
0x1c14   :  { %v11948_v46 = vpop.eup %11947 }
0x1c15   :  { %v11950_v49 = vpop.eup %11949  ;;  %v6199_v54 = vadd.f32 1.0, %v11948_v46 }
0x1c16   :  { %v6205_v22 = vadd.f32 1.0, %v11950_v49  ;;  %v11952_v63 = vpop.eup %11951 }
0x1c17   :  { %11955 = vrcp.f32 %v6199_v54  ;;  %v11954_v4 = vpop.eup %11953  ;;  %v6212_v13 = vadd.f32 1.0, %v11952_v63 }
0x1c18   :  { %11957 = vrcp.f32 %v6205_v22  ;;  %v6227_v22 = vld [vmem:[#allocation2 + $0x18] sm:$0xc0] }
0x1c19   :  { %11959 = vrcp.f32 %v6212_v13 }
0x1c21   :  { %v11956_v40 = vpop.eup %11955 }
0x1c22   :  { %v11958_v58 = vpop.eup %11957  ;;  %v6219_v41 = vmul.f32 %v11956_v40, %v11954_v4  ;;  %v6226_v40 = vld [vmem:[#allocation2 + $0x10] sm:$0xc0] }
0x1c23   :  { %v6218_v60 = vmul.f32 %v11958_v58, %v6216_v2  ;;  %v11960_v56 = vpop.eup %11959 }
0x1c25   :  { %v14458_v62 = vadd.f32 %v6219_v41, %v6218_v60 }
0x1c27   :  { %11961 = vtanh.f32 %v14458_v62 }
0x1c31   :  { %v11962_v34 = vpop.eup %11961 }
0x1c32   :  { %v6222_v15 = vmul.f32 %v11962_v34, %v11960_v56 }
0x1c34   :  { %6223 = vst [vmem:[#allocation3] sm:$0x30] %v6222_v15  ;;  %v6229_v14 = vrot.slane %v6222_v15, 4 }
0x1c36   :  { %6296 = vmatmul.mubr.f32.vlgmr.msra.gmra.mrb[72].mxu0 %v6229_v14  ;;  %6367 = vmatmul.mubr.f32.vlgmr.msra.gmra.mrb[72].mxu1 %v6229_v14 }
0x1c37   :  { %10881 = vmatpush1.bf16.msra.mxu0 %v14221_v11  ;;  %10913 = vmatpush1.bf16.msra.mxu1 %v14224_v39 }
0x1c38   :  { %10883 = vmatprep.subr.bf16.mxu0 %v14229_v59  ;;  %10915 = vmatprep.subr.bf16.mxu1 %v14231_v7 }
0x1c39   :  { %6488 = vmatprep.mubr.f32.mxu0 %v12310_v0  ;;  %6559 = vmatprep.mubr.f32.mxu1 %v12310_v0 }
0x1c3b   :  { %10885 = vmatpush1.bf16.msra.mxu0 %v14233_v6  ;;  %10917 = vmatpush1.bf16.msra.mxu1 %v14236_v33 }
0x1c3c   :  { %10887 = vmatprep.subr.bf16.mxu0 %v14241_v50  ;;  %10919 = vmatprep.subr.bf16.mxu1 %v14243_v9 }
0x1c3f   :  { %10889 = vmatpush1.bf16.msra.mxu0 %v14245_v36  ;;  %10921 = vmatpush1.bf16.msra.mxu1 %v14248_v18 }
0x1c40   :  { %10891 = vmatprep.subr.bf16.mxu0 %v14253_v5  ;;  %10923 = vmatprep.subr.bf16.mxu1 %v14255_v44 }
0x1c43   :  { %10893 = vmatpush1.bf16.msra.mxu0 %v14257_v19  ;;  %10925 = vmatpush1.bf16.msra.mxu1 %v14260_v61 }
0x1c44   :  { %10895 = vmatprep.subr.bf16.mxu0 %v14265_v37  ;;  %10927 = vmatprep.subr.bf16.mxu1 %v14267_v28 }
0x1c47   :  { %10897 = vmatpush1.bf16.msra.mxu0 %v14269_v42  ;;  %10929 = vmatpush1.bf16.msra.mxu1 %v14272_v31 }
0x1c48   :  { %10899 = vmatprep.subr.bf16.mxu0 %v14276_v3  ;;  %10931 = vmatprep.subr.bf16.mxu1 %v14278_v26 }
0x1c4b   :  { %10901 = vmatpush1.bf16.msra.mxu0 %v14281_v51  ;;  %10933 = vmatpush1.bf16.msra.mxu1 %v14285_v23 }
0x1c4c   :  { %10903 = vmatprep.subr.bf16.mxu0 %v14287_v12  ;;  %10935 = vmatprep.subr.bf16.mxu1 %v14289_v17 }
0x1c4f   :  { %10905 = vmatpush1.bf16.msra.mxu0 %v14292_v38  ;;  %10937 = vmatpush1.bf16.msra.mxu1 %v14296_v52 }
0x1c50   :  { %10907 = vmatprep.subr.bf16.mxu0 %v14299_v35  ;;  %10939 = vmatprep.subr.bf16.mxu1 %v14301_v21 }
0x1c53   :  { %10909 = vmatpush1.bf16.msra.mxu0 %v14304_v8  ;;  %10941 = vmatpush1.bf16.msra.mxu1 %v14308_v16 }
0x1c54   :  { %10943 = vmatprep.subr.bf16.mxu0 %v14217_v57  ;;  %10975 = vmatprep.subr.bf16.mxu1 %v14219_v30 }
0x1d09   :  { %v6297_v25 = vpop.f32.mrb[72].mxu0  ;;  %v6368_v27 = vpop.f32.mrb[72].mxu1 }
0x1d0a   :  { %v6377_v32 = vrot.slane %v6297_v25, 2  ;;  %v6299_v1 = vpop.f32.mrb[73].mxu0  ;;  %v6370_v20 = vpop.f32.mrb[73].mxu1  ;;  %v6379_v4 = vrot.slane %v6368_v27, 2  ;;  %v6409_v25 = vrot.slane %v14458_v62, 6 }
0x1d0b   :  { %v6378_v10 = vrot.slane %v6299_v1, 2  ;;  %v6380_v54 = vrot.slane %v6370_v20, 2  ;;  %v6417_v62 = vld [vmem:[#allocation2 + $0x20] sm:$0x3] }
0x1d0c   :  { %v6385_v53 = vadd.f32 %v6377_v32, %v6224_v55  ;;  %v6387_v58 = vadd.f32 %v6379_v4, %v6226_v40 }
0x1d0d   :  { %v6386_v29 = vadd.f32 %v6378_v10, %v6225_v24  ;;  %v6388_v63 = vadd.f32 %v6380_v54, %v6227_v22  ;;  %v6418_v22 = vld [vmem:[#allocation2 + $0x28] sm:$0x3] }
0x1d0e   :  { %v8822_v46 = vmul.f32 -1.442695, %v6385_v53 }
0x1d0f   :  { %v8823_v49 = vmul.f32 -1.442695, %v6386_v29  ;;  %v8824_v2 = vmul.f32 -1.442695, %v6388_v63 }
0x1d10   :  { %11963 = vpow2.f32 %v8822_v46 }
0x1d11   :  { %11965 = vpow2.f32 %v8823_v49 }
0x1d12   :  { %11967 = vpow2.f32 %v8824_v2 }
0x1d13   :  { %11969 = vtanh.f32 %v6387_v58 }
0x1d1a   :  { %v11964_v41 = vpop.eup %11963 }
0x1d1b   :  { %v11966_v13 = vpop.eup %11965  ;;  %v6392_v60 = vadd.f32 1.0, %v11964_v41  ;;  %v6420_v41 = vld [vmem:[#allocation2 + $0x38] sm:$0x3] }
0x1d1c   :  { %v6398_v56 = vadd.f32 1.0, %v11966_v13  ;;  %v11968_v34 = vpop.eup %11967 }
0x1d1d   :  { %11971 = vrcp.f32 %v6392_v60  ;;  %v11970_v15 = vpop.eup %11969  ;;  %v6405_v20 = vadd.f32 1.0, %v11968_v34  ;;  %v6419_v60 = vld [vmem:[#allocation2 + $0x30] sm:$0x3] }
0x1d1e   :  { %11973 = vrcp.f32 %v6398_v56 }
0x1d1f   :  { %11975 = vrcp.f32 %v6405_v20 }
0x1d27   :  { %v11972_v14 = vpop.eup %11971 }
0x1d28   :  { %v11974_v32 = vpop.eup %11973  ;;  %v6412_v1 = vmul.f32 %v11972_v14, %v11970_v15 }
0x1d29   :  { %v6411_v27 = vmul.f32 %v11974_v32, %v6409_v25  ;;  %v11976_v10 = vpop.eup %11975 }
0x1d2b   :  { %v14496_v55 = vadd.f32 %v6412_v1, %v6411_v27 }
0x1d2d   :  { %11977 = vtanh.f32 %v14496_v55 }
0x1d37   :  { %v11978_v53 = vpop.eup %11977 }
0x1d38   :  { %v6415_v24 = vmul.f32 %v11978_v53, %v11976_v10  ;;  %v6590_v10 = vrot.slane %v14496_v55, 6 }
0x1d3a   :  { %6416 = vst [vmem:[#allocation3] sm:$0xc0] %v6415_v24  ;;  %v6422_v29 = vrot.slane %v6415_v24, 6 }
0x1d3c   :  { %6489 = vmatmul.mubr.f32.vlgmr.msra.gmra.mrb[74].mxu0 %v6422_v29  ;;  %6560 = vmatmul.mubr.f32.vlgmr.msra.gmra.mrb[74].mxu1 %v6422_v29 }
0x1d3d   :  { %10945 = vmatpush1.bf16.msra.mxu0 %v14221_v11  ;;  %10977 = vmatpush1.bf16.msra.mxu1 %v14224_v39 }
0x1d3e   :  { %10947 = vmatprep.subr.bf16.mxu0 %v14229_v59  ;;  %10979 = vmatprep.subr.bf16.mxu1 %v14231_v7 }
0x1d3f   :  { %6666 = vmatprep.mubr.f32.mxu0 %v12310_v0  ;;  %6737 = vmatprep.mubr.f32.mxu1 %v12310_v0 }
0x1d41   :  { %10949 = vmatpush1.bf16.msra.mxu0 %v14233_v6  ;;  %10981 = vmatpush1.bf16.msra.mxu1 %v14236_v33 }
0x1d42   :  { %10951 = vmatprep.subr.bf16.mxu0 %v14241_v50  ;;  %10983 = vmatprep.subr.bf16.mxu1 %v14243_v9 }
0x1d45   :  { %10953 = vmatpush1.bf16.msra.mxu0 %v14245_v36  ;;  %10985 = vmatpush1.bf16.msra.mxu1 %v14248_v18 }
0x1d46   :  { %10955 = vmatprep.subr.bf16.mxu0 %v14253_v5  ;;  %10987 = vmatprep.subr.bf16.mxu1 %v14255_v44 }
0x1d49   :  { %10957 = vmatpush1.bf16.msra.mxu0 %v14257_v19  ;;  %10989 = vmatpush1.bf16.msra.mxu1 %v14260_v61 }
0x1d4a   :  { %10959 = vmatprep.subr.bf16.mxu0 %v14265_v37  ;;  %10991 = vmatprep.subr.bf16.mxu1 %v14267_v28 }
0x1d4d   :  { %10961 = vmatpush1.bf16.msra.mxu0 %v14269_v42  ;;  %10993 = vmatpush1.bf16.msra.mxu1 %v14272_v31 }
0x1d4e   :  { %10963 = vmatprep.subr.bf16.mxu0 %v14276_v3  ;;  %10995 = vmatprep.subr.bf16.mxu1 %v14278_v26 }
0x1d51   :  { %10965 = vmatpush1.bf16.msra.mxu0 %v14281_v51  ;;  %10997 = vmatpush1.bf16.msra.mxu1 %v14285_v23 }
0x1d52   :  { %10967 = vmatprep.subr.bf16.mxu0 %v14287_v12  ;;  %10999 = vmatprep.subr.bf16.mxu1 %v14289_v17 }
0x1d55   :  { %10969 = vmatpush1.bf16.msra.mxu0 %v14292_v38  ;;  %11001 = vmatpush1.bf16.msra.mxu1 %v14296_v52 }
0x1d56   :  { %10971 = vmatprep.subr.bf16.mxu0 %v14299_v35  ;;  %11003 = vmatprep.subr.bf16.mxu1 %v14301_v21 }
0x1d59   :  { %10973 = vmatpush1.bf16.msra.mxu0 %v14304_v8  ;;  %11005 = vmatpush1.bf16.msra.mxu1 %v14308_v16 }
0x1d5a   :  { %11007 = vmatprep.subr.bf16.mxu0 %v14217_v57  ;;  %11039 = vmatprep.subr.bf16.mxu1 %v14219_v30 }
0x1e0f   :  { %v6490_v46 = vpop.f32.mrb[74].mxu0  ;;  %v6561_v49 = vpop.f32.mrb[74].mxu1 }
0x1e10   :  { %v6566_v54 = vadd.f32 %v6490_v46, %v6417_v62  ;;  %v6492_v63 = vpop.f32.mrb[75].mxu0  ;;  %v6563_v4 = vpop.f32.mrb[75].mxu1  ;;  %v6568_v34 = vadd.f32 %v6561_v49, %v6419_v60  ;;  %v6599_v60 = vld [vmem:[#allocation2 + $0x28] sm:$0xc] }
0x1e11   :  { %v6567_v40 = vadd.f32 %v6492_v63, %v6418_v22  ;;  %v6569_v13 = vadd.f32 %v6563_v4, %v6420_v41 }
0x1e12   :  { %v8825_v2 = vmul.f32 -1.442695, %v6566_v54 }
0x1e13   :  { %v8826_v58 = vmul.f32 -1.442695, %v6567_v40  ;;  %v8827_v56 = vmul.f32 -1.442695, %v6569_v13 }
0x1e14   :  { %11979 = vpow2.f32 %v8825_v2 }
0x1e15   :  { %11981 = vpow2.f32 %v8826_v58  ;;  %v6598_v58 = vld [vmem:[#allocation2 + $0x20] sm:$0xc] }
0x1e16   :  { %11983 = vpow2.f32 %v8827_v56 }
0x1e17   :  { %11985 = vtanh.f32 %v6568_v34 }
0x1e1e   :  { %v11980_v15 = vpop.eup %11979 }
0x1e1f   :  { %v11982_v14 = vpop.eup %11981  ;;  %v6573_v25 = vadd.f32 1.0, %v11980_v15 }
0x1e20   :  { %v6579_v32 = vadd.f32 1.0, %v11982_v14  ;;  %v11984_v1 = vpop.eup %11983 }
0x1e21   :  { %11987 = vrcp.f32 %v6573_v25  ;;  %v11986_v20 = vpop.eup %11985  ;;  %v6586_v29 = vadd.f32 1.0, %v11984_v1  ;;  %v6601_v25 = vld [vmem:[#allocation2 + $0x38] sm:$0xc] }
0x1e22   :  { %11989 = vrcp.f32 %v6579_v32 }
0x1e23   :  { %11991 = vrcp.f32 %v6586_v29 }
0x1e2b   :  { %v11988_v27 = vpop.eup %11987 }
0x1e2c   :  { %v11990_v53 = vpop.eup %11989  ;;  %v6593_v24 = vmul.f32 %v11988_v27, %v11986_v20  ;;  %v6600_v20 = vld [vmem:[#allocation2 + $0x30] sm:$0xc] }
0x1e2d   :  { %v6592_v62 = vmul.f32 %v11990_v53, %v6590_v10  ;;  %v11992_v49 = vpop.eup %11991 }
0x1e2f   :  { %v14534_v46 = vadd.f32 %v6593_v24, %v6592_v62 }
0x1e31   :  { %11993 = vtanh.f32 %v14534_v46 }
0x1e3b   :  { %v11994_v54 = vpop.eup %11993 }
0x1e3c   :  { %v6596_v22 = vmul.f32 %v11994_v54, %v11992_v49 }
0x1e3e   :  { %6597 = vst [vmem:[#allocation3 + $0x8] sm:$0x3] %v6596_v22  ;;  %6667 = vmatmul.mubr.f32.vlgmr.msra.gmra.mrb[76].mxu0 %v6596_v22  ;;  %6738 = vmatmul.mubr.f32.vlgmr.msra.gmra.mrb[76].mxu1 %v6596_v22 }
0x1e3f   :  { %11009 = vmatpush1.bf16.msra.mxu0 %v14221_v11  ;;  %11041 = vmatpush1.bf16.msra.mxu1 %v14224_v39 }
0x1e40   :  { %11011 = vmatprep.subr.bf16.mxu0 %v14229_v59  ;;  %11043 = vmatprep.subr.bf16.mxu1 %v14231_v7 }
0x1e41   :  { %6859 = vmatprep.mubr.f32.mxu0 %v12310_v0  ;;  %6930 = vmatprep.mubr.f32.mxu1 %v12310_v0 }
0x1e43   :  { %11013 = vmatpush1.bf16.msra.mxu0 %v14233_v6  ;;  %11045 = vmatpush1.bf16.msra.mxu1 %v14236_v33 }
0x1e44   :  { %11015 = vmatprep.subr.bf16.mxu0 %v14241_v50  ;;  %11047 = vmatprep.subr.bf16.mxu1 %v14243_v9 }
0x1e47   :  { %11017 = vmatpush1.bf16.msra.mxu0 %v14245_v36  ;;  %11049 = vmatpush1.bf16.msra.mxu1 %v14248_v18 }
0x1e48   :  { %11019 = vmatprep.subr.bf16.mxu0 %v14253_v5  ;;  %11051 = vmatprep.subr.bf16.mxu1 %v14255_v44 }
0x1e4b   :  { %11021 = vmatpush1.bf16.msra.mxu0 %v14257_v19  ;;  %11053 = vmatpush1.bf16.msra.mxu1 %v14260_v61 }
0x1e4c   :  { %11023 = vmatprep.subr.bf16.mxu0 %v14265_v37  ;;  %11055 = vmatprep.subr.bf16.mxu1 %v14267_v28 }
0x1e4f   :  { %11025 = vmatpush1.bf16.msra.mxu0 %v14269_v42  ;;  %11057 = vmatpush1.bf16.msra.mxu1 %v14272_v31 }
0x1e50   :  { %11027 = vmatprep.subr.bf16.mxu0 %v14276_v3  ;;  %11059 = vmatprep.subr.bf16.mxu1 %v14278_v26 }
0x1e53   :  { %11029 = vmatpush1.bf16.msra.mxu0 %v14281_v51  ;;  %11061 = vmatpush1.bf16.msra.mxu1 %v14285_v23 }
0x1e54   :  { %11031 = vmatprep.subr.bf16.mxu0 %v14287_v12  ;;  %11063 = vmatprep.subr.bf16.mxu1 %v14289_v17 }
0x1e57   :  { %11033 = vmatpush1.bf16.msra.mxu0 %v14292_v38  ;;  %11065 = vmatpush1.bf16.msra.mxu1 %v14296_v52 }
0x1e58   :  { %11035 = vmatprep.subr.bf16.mxu0 %v14299_v35  ;;  %11067 = vmatprep.subr.bf16.mxu1 %v14301_v21 }
0x1e5b   :  { %11037 = vmatpush1.bf16.msra.mxu0 %v14304_v8  ;;  %11069 = vmatpush1.bf16.msra.mxu1 %v14308_v16 }
0x1e5c   :  { %11071 = vmatprep.subr.bf16.mxu0 %v14217_v57  ;;  %11103 = vmatprep.subr.bf16.mxu1 %v14219_v30 }
0x1f11   :  { %v6668_v55 = vpop.f32.mrb[76].mxu0  ;;  %v6739_v63 = vpop.f32.mrb[76].mxu1 }
0x1f12   :  { %v6748_v4 = vrot.slane %v6668_v55, 6  ;;  %v6670_v40 = vpop.f32.mrb[77].mxu0  ;;  %v6741_v2 = vpop.f32.mrb[77].mxu1  ;;  %v6750_v1 = vrot.slane %v6739_v63, 6  ;;  %v6780_v55 = vrot.slane %v14534_v46, 6 }
0x1f13   :  { %v6749_v41 = vrot.slane %v6670_v40, 6  ;;  %v6751_v14 = vrot.slane %v6741_v2, 6 }
0x1f14   :  { %v6756_v13 = vadd.f32 %v6748_v4, %v6598_v58  ;;  %v6758_v10 = vadd.f32 %v6750_v1, %v6600_v20 }
0x1f15   :  { %v6757_v56 = vadd.f32 %v6749_v41, %v6599_v60  ;;  %v6759_v32 = vadd.f32 %v6751_v14, %v6601_v25 }
0x1f16   :  { %v8828_v34 = vmul.f32 -1.442695, %v6756_v13 }
0x1f17   :  { %v8829_v15 = vmul.f32 -1.442695, %v6757_v56  ;;  %v8830_v27 = vmul.f32 -1.442695, %v6759_v32  ;;  %v6788_v32 = vld [vmem:[#allocation2 + $0x20] sm:$0x30] }
0x1f18   :  { %11995 = vpow2.f32 %v8828_v34 }
0x1f19   :  { %11997 = vpow2.f32 %v8829_v15 }
0x1f1a   :  { %11999 = vpow2.f32 %v8830_v27  ;;  %v6789_v27 = vld [vmem:[#allocation2 + $0x28] sm:$0x30] }
0x1f1b   :  { %12001 = vtanh.f32 %v6758_v10 }
0x1f22   :  { %v11996_v53 = vpop.eup %11995 }
0x1f23   :  { %v11998_v24 = vpop.eup %11997  ;;  %v6763_v29 = vadd.f32 1.0, %v11996_v53 }
0x1f24   :  { %v6769_v62 = vadd.f32 1.0, %v11998_v24  ;;  %v12000_v49 = vpop.eup %11999 }
0x1f25   :  { %12003 = vrcp.f32 %v6763_v29  ;;  %v12002_v54 = vpop.eup %12001  ;;  %v6776_v2 = vadd.f32 1.0, %v12000_v49 }
0x1f26   :  { %12005 = vrcp.f32 %v6769_v62  ;;  %v6791_v62 = vld [vmem:[#allocation2 + $0x38] sm:$0x30] }
0x1f27   :  { %12007 = vrcp.f32 %v6776_v2 }
0x1f2f   :  { %v12004_v22 = vpop.eup %12003 }
0x1f30   :  { %v12006_v4 = vpop.eup %12005  ;;  %v6783_v40 = vmul.f32 %v12004_v22, %v12002_v54  ;;  %v6790_v22 = vld [vmem:[#allocation2 + $0x30] sm:$0x30] }
0x1f31   :  { %v6782_v63 = vmul.f32 %v12006_v4, %v6780_v55  ;;  %v12008_v41 = vpop.eup %12007 }
0x1f33   :  { %v14572_v58 = vadd.f32 %v6783_v40, %v6782_v63 }
0x1f35   :  { %12009 = vtanh.f32 %v14572_v58 }
0x1f3f   :  { %v12010_v13 = vpop.eup %12009 }
0x1f40   :  { %v6786_v60 = vmul.f32 %v12010_v13, %v12008_v41 }
0x1f42   :  { %6787 = vst [vmem:[#allocation3 + $0x8] sm:$0xc] %v6786_v60  ;;  %v6793_v56 = vrot.slane %v6786_v60, 2 }
0x1f44   :  { %6860 = vmatmul.mubr.f32.vlgmr.msra.gmra.mrb[78].mxu0 %v6793_v56  ;;  %6931 = vmatmul.mubr.f32.vlgmr.msra.gmra.mrb[78].mxu1 %v6793_v56 }
0x1f45   :  { %11073 = vmatpush1.bf16.msra.mxu0 %v14221_v11  ;;  %11105 = vmatpush1.bf16.msra.mxu1 %v14224_v39 }
0x1f46   :  { %11075 = vmatprep.subr.bf16.mxu0 %v14229_v59  ;;  %11107 = vmatprep.subr.bf16.mxu1 %v14231_v7 }
0x1f47   :  { %7052 = vmatprep.mubr.f32.mxu0 %v12310_v0  ;;  %7123 = vmatprep.mubr.f32.mxu1 %v12310_v0 }
0x1f49   :  { %11077 = vmatpush1.bf16.msra.mxu0 %v14233_v6  ;;  %11109 = vmatpush1.bf16.msra.mxu1 %v14236_v33 }
0x1f4a   :  { %11079 = vmatprep.subr.bf16.mxu0 %v14241_v50  ;;  %11111 = vmatprep.subr.bf16.mxu1 %v14243_v9 }
0x1f4d   :  { %11081 = vmatpush1.bf16.msra.mxu0 %v14245_v36  ;;  %11113 = vmatpush1.bf16.msra.mxu1 %v14248_v18 }
0x1f4e   :  { %11083 = vmatprep.subr.bf16.mxu0 %v14253_v5  ;;  %11115 = vmatprep.subr.bf16.mxu1 %v14255_v44 }
0x1f51   :  { %11085 = vmatpush1.bf16.msra.mxu0 %v14257_v19  ;;  %11117 = vmatpush1.bf16.msra.mxu1 %v14260_v61 }
0x1f52   :  { %11087 = vmatprep.subr.bf16.mxu0 %v14265_v37  ;;  %11119 = vmatprep.subr.bf16.mxu1 %v14267_v28 }
0x1f55   :  { %11089 = vmatpush1.bf16.msra.mxu0 %v14269_v42  ;;  %11121 = vmatpush1.bf16.msra.mxu1 %v14272_v31 }
0x1f56   :  { %11091 = vmatprep.subr.bf16.mxu0 %v14276_v3  ;;  %11123 = vmatprep.subr.bf16.mxu1 %v14278_v26 }
0x1f59   :  { %11093 = vmatpush1.bf16.msra.mxu0 %v14281_v51  ;;  %11125 = vmatpush1.bf16.msra.mxu1 %v14285_v23 }
0x1f5a   :  { %11095 = vmatprep.subr.bf16.mxu0 %v14287_v12  ;;  %11127 = vmatprep.subr.bf16.mxu1 %v14289_v17 }
0x1f5d   :  { %11097 = vmatpush1.bf16.msra.mxu0 %v14292_v38  ;;  %11129 = vmatpush1.bf16.msra.mxu1 %v14296_v52 }
0x1f5e   :  { %11099 = vmatprep.subr.bf16.mxu0 %v14299_v35  ;;  %11131 = vmatprep.subr.bf16.mxu1 %v14301_v21 }
0x1f61   :  { %11101 = vmatpush1.bf16.msra.mxu0 %v14304_v8  ;;  %11133 = vmatpush1.bf16.msra.mxu1 %v14308_v16 }
0x1f62   :  { %11135 = vmatprep.subr.bf16.mxu0 %v14217_v57  ;;  %11167 = vmatprep.subr.bf16.mxu1 %v14219_v30 }
0x2017   :  { %v6861_v46 = vpop.f32.mrb[78].mxu0  ;;  %v6932_v34 = vpop.f32.mrb[78].mxu1 }
0x2018   :  { %v6941_v15 = vrot.slane %v6861_v46, 4  ;;  %v6863_v14 = vpop.f32.mrb[79].mxu0  ;;  %v6934_v25 = vpop.f32.mrb[79].mxu1  ;;  %v6943_v54 = vrot.slane %v6932_v34, 4  ;;  %v6973_v46 = vrot.slane %v14572_v58, 6 }
0x2019   :  { %v6942_v1 = vrot.slane %v6863_v14, 4  ;;  %v6944_v29 = vrot.slane %v6934_v25, 4 }
0x201a   :  { %v6949_v20 = vadd.f32 %v6941_v15, %v6788_v32  ;;  %v6951_v4 = vadd.f32 %v6943_v54, %v6790_v22 }
0x201b   :  { %v6950_v10 = vadd.f32 %v6942_v1, %v6789_v27  ;;  %v6952_v49 = vadd.f32 %v6944_v29, %v6791_v62 }
0x201c   :  { %v8831_v53 = vmul.f32 -1.442695, %v6949_v20 }
0x201d   :  { %v8832_v24 = vmul.f32 -1.442695, %v6950_v10  ;;  %v8833_v55 = vmul.f32 -1.442695, %v6952_v49  ;;  %v6981_v49 = vld [vmem:[#allocation2 + $0x20] sm:$0xc0] }
0x201e   :  { %12011 = vpow2.f32 %v8831_v53 }
0x201f   :  { %12013 = vpow2.f32 %v8832_v24 }
0x2020   :  { %12015 = vpow2.f32 %v8833_v55  ;;  %v6982_v55 = vld [vmem:[#allocation2 + $0x28] sm:$0xc0] }
0x2021   :  { %12017 = vtanh.f32 %v6951_v4 }
0x2028   :  { %v12012_v40 = vpop.eup %12011 }
0x2029   :  { %v12014_v2 = vpop.eup %12013  ;;  %v6956_v63 = vadd.f32 1.0, %v12012_v40 }
0x202a   :  { %v6962_v41 = vadd.f32 1.0, %v12014_v2  ;;  %v12016_v13 = vpop.eup %12015 }
0x202b   :  { %12019 = vrcp.f32 %v6956_v63  ;;  %v12018_v60 = vpop.eup %12017  ;;  %v6969_v25 = vadd.f32 1.0, %v12016_v13 }
0x202c   :  { %12021 = vrcp.f32 %v6962_v41  ;;  %v6984_v41 = vld [vmem:[#allocation2 + $0x38] sm:$0xc0] }
0x202d   :  { %12023 = vrcp.f32 %v6969_v25 }
0x2035   :  { %v12020_v56 = vpop.eup %12019 }
0x2036   :  { %v12022_v15 = vpop.eup %12021  ;;  %v6976_v14 = vmul.f32 %v12020_v56, %v12018_v60  ;;  %v6983_v56 = vld [vmem:[#allocation2 + $0x30] sm:$0xc0] }
0x2037   :  { %v6975_v34 = vmul.f32 %v12022_v15, %v6973_v46  ;;  %v12024_v1 = vpop.eup %12023 }
0x2039   :  { %v14610_v32 = vadd.f32 %v6976_v14, %v6975_v34 }
0x203b   :  { %12025 = vtanh.f32 %v14610_v32 }
0x2045   :  { %v12026_v20 = vpop.eup %12025 }
0x2046   :  { %v6979_v27 = vmul.f32 %v12026_v20, %v12024_v1 }
0x2048   :  { %6980 = vst [vmem:[#allocation3 + $0x8] sm:$0x30] %v6979_v27  ;;  %v6986_v10 = vrot.slane %v6979_v27, 4 }
0x204a   :  { %7053 = vmatmul.mubr.f32.vlgmr.msra.gmra.mrb[80].mxu0 %v6986_v10  ;;  %7124 = vmatmul.mubr.f32.vlgmr.msra.gmra.mrb[80].mxu1 %v6986_v10 }
0x204b   :  { %11137 = vmatpush1.bf16.msra.mxu0 %v14221_v11  ;;  %11169 = vmatpush1.bf16.msra.mxu1 %v14224_v39 }
0x204c   :  { %11139 = vmatprep.subr.bf16.mxu0 %v14229_v59  ;;  %11171 = vmatprep.subr.bf16.mxu1 %v14231_v7 }
0x204d   :  { %7245 = vmatprep.mubr.f32.mxu0 %v12310_v0  ;;  %7316 = vmatprep.mubr.f32.mxu1 %v12310_v0 }
0x204f   :  { %11141 = vmatpush1.bf16.msra.mxu0 %v14233_v6  ;;  %11173 = vmatpush1.bf16.msra.mxu1 %v14236_v33 }
0x2050   :  { %11143 = vmatprep.subr.bf16.mxu0 %v14241_v50  ;;  %11175 = vmatprep.subr.bf16.mxu1 %v14243_v9 }
0x2053   :  { %11145 = vmatpush1.bf16.msra.mxu0 %v14245_v36  ;;  %11177 = vmatpush1.bf16.msra.mxu1 %v14248_v18 }
0x2054   :  { %11147 = vmatprep.subr.bf16.mxu0 %v14253_v5  ;;  %11179 = vmatprep.subr.bf16.mxu1 %v14255_v44 }
0x2057   :  { %11149 = vmatpush1.bf16.msra.mxu0 %v14257_v19  ;;  %11181 = vmatpush1.bf16.msra.mxu1 %v14260_v61 }
0x2058   :  { %11151 = vmatprep.subr.bf16.mxu0 %v14265_v37  ;;  %11183 = vmatprep.subr.bf16.mxu1 %v14267_v28 }
0x205b   :  { %11153 = vmatpush1.bf16.msra.mxu0 %v14269_v42  ;;  %11185 = vmatpush1.bf16.msra.mxu1 %v14272_v31 }
0x205c   :  { %11155 = vmatprep.subr.bf16.mxu0 %v14276_v3  ;;  %11187 = vmatprep.subr.bf16.mxu1 %v14278_v26 }
0x205f   :  { %11157 = vmatpush1.bf16.msra.mxu0 %v14281_v51  ;;  %11189 = vmatpush1.bf16.msra.mxu1 %v14285_v23 }
0x2060   :  { %11159 = vmatprep.subr.bf16.mxu0 %v14287_v12  ;;  %11191 = vmatprep.subr.bf16.mxu1 %v14289_v17 }
0x2063   :  { %11161 = vmatpush1.bf16.msra.mxu0 %v14292_v38  ;;  %11193 = vmatpush1.bf16.msra.mxu1 %v14296_v52 }
0x2064   :  { %11163 = vmatprep.subr.bf16.mxu0 %v14299_v35  ;;  %11195 = vmatprep.subr.bf16.mxu1 %v14301_v21 }
0x2067   :  { %11165 = vmatpush1.bf16.msra.mxu0 %v14304_v8  ;;  %11197 = vmatpush1.bf16.msra.mxu1 %v14308_v16 }
0x2068   :  { %11199 = vmatprep.subr.bf16.mxu0 %v14217_v57  ;;  %11231 = vmatprep.subr.bf16.mxu1 %v14219_v30 }
0x211d   :  { %v7054_v58 = vpop.f32.mrb[80].mxu0  ;;  %v7125_v53 = vpop.f32.mrb[80].mxu1 }
0x211e   :  { %v7134_v24 = vrot.slane %v7054_v58, 2  ;;  %v7056_v29 = vpop.f32.mrb[81].mxu0  ;;  %v7127_v62 = vpop.f32.mrb[81].mxu1  ;;  %v7136_v60 = vrot.slane %v7125_v53, 2  ;;  %v7166_v58 = vrot.slane %v14610_v32, 6 }
0x211f   :  { %v7135_v54 = vrot.slane %v7056_v29, 2  ;;  %v7137_v63 = vrot.slane %v7127_v62, 2  ;;  %v7174_v32 = vld [vmem:[#allocation2 + $0x40] sm:$0x3] }
0x2120   :  { %v7142_v22 = vadd.f32 %v7134_v24, %v6981_v49  ;;  %v7144_v15 = vadd.f32 %v7136_v60, %v6983_v56 }
0x2121   :  { %v7143_v4 = vadd.f32 %v7135_v54, %v6982_v55  ;;  %v7145_v13 = vadd.f32 %v7137_v63, %v6984_v41  ;;  %v7175_v41 = vld [vmem:[#allocation2 + $0x48] sm:$0x3] }
0x2122   :  { %v8834_v40 = vmul.f32 -1.442695, %v7142_v22 }
0x2123   :  { %v8835_v2 = vmul.f32 -1.442695, %v7143_v4  ;;  %v8836_v46 = vmul.f32 -1.442695, %v7145_v13 }
0x2124   :  { %12027 = vpow2.f32 %v8834_v40 }
0x2125   :  { %12029 = vpow2.f32 %v8835_v2 }
0x2126   :  { %12031 = vpow2.f32 %v8836_v46 }
0x2127   :  { %12033 = vtanh.f32 %v7144_v15 }
0x212e   :  { %v12028_v14 = vpop.eup %12027 }
0x212f   :  { %v12030_v25 = vpop.eup %12029  ;;  %v7149_v34 = vadd.f32 1.0, %v12028_v14  ;;  %v7177_v14 = vld [vmem:[#allocation2 + $0x58] sm:$0x3] }
0x2130   :  { %v7155_v1 = vadd.f32 1.0, %v12030_v25  ;;  %v12032_v20 = vpop.eup %12031 }
0x2131   :  { %12035 = vrcp.f32 %v7149_v34  ;;  %v12034_v27 = vpop.eup %12033  ;;  %v7162_v62 = vadd.f32 1.0, %v12032_v20  ;;  %v7176_v34 = vld [vmem:[#allocation2 + $0x50] sm:$0x3] }
0x2132   :  { %12037 = vrcp.f32 %v7155_v1 }
0x2133   :  { %12039 = vrcp.f32 %v7162_v62 }
0x213b   :  { %v12036_v10 = vpop.eup %12035 }
0x213c   :  { %v12038_v24 = vpop.eup %12037  ;;  %v7169_v29 = vmul.f32 %v12036_v10, %v12034_v27 }
0x213d   :  { %v7168_v53 = vmul.f32 %v12038_v24, %v7166_v58  ;;  %v12040_v54 = vpop.eup %12039 }
0x213f   :  { %v14648_v49 = vadd.f32 %v7169_v29, %v7168_v53 }
0x2141   :  { %12041 = vtanh.f32 %v14648_v49 }
0x214b   :  { %v12042_v22 = vpop.eup %12041 }
0x214c   :  { %v7172_v55 = vmul.f32 %v12042_v22, %v12040_v54  ;;  %v7347_v54 = vrot.slane %v14648_v49, 6 }
0x214e   :  { %7173 = vst [vmem:[#allocation3 + $0x8] sm:$0xc0] %v7172_v55  ;;  %v7179_v4 = vrot.slane %v7172_v55, 6 }
0x2150   :  { %7246 = vmatmul.mubr.f32.vlgmr.msra.gmra.mrb[82].mxu0 %v7179_v4  ;;  %7317 = vmatmul.mubr.f32.vlgmr.msra.gmra.mrb[82].mxu1 %v7179_v4 }
0x2151   :  { %11201 = vmatpush1.bf16.msra.mxu0 %v14221_v11  ;;  %11233 = vmatpush1.bf16.msra.mxu1 %v14224_v39 }
0x2152   :  { %11203 = vmatprep.subr.bf16.mxu0 %v14229_v59  ;;  %11235 = vmatprep.subr.bf16.mxu1 %v14231_v7 }
0x2153   :  { %7423 = vmatprep.mubr.f32.mxu0 %v12310_v0  ;;  %7494 = vmatprep.mubr.f32.mxu1 %v12310_v0 }
0x2155   :  { %11205 = vmatpush1.bf16.msra.mxu0 %v14233_v6  ;;  %11237 = vmatpush1.bf16.msra.mxu1 %v14236_v33 }
0x2156   :  { %11207 = vmatprep.subr.bf16.mxu0 %v14241_v50  ;;  %11239 = vmatprep.subr.bf16.mxu1 %v14243_v9 }
0x2159   :  { %11209 = vmatpush1.bf16.msra.mxu0 %v14245_v36  ;;  %11241 = vmatpush1.bf16.msra.mxu1 %v14248_v18 }
0x215a   :  { %11211 = vmatprep.subr.bf16.mxu0 %v14253_v5  ;;  %11243 = vmatprep.subr.bf16.mxu1 %v14255_v44 }
0x215d   :  { %11213 = vmatpush1.bf16.msra.mxu0 %v14257_v19  ;;  %11245 = vmatpush1.bf16.msra.mxu1 %v14260_v61 }
0x215e   :  { %11215 = vmatprep.subr.bf16.mxu0 %v14265_v37  ;;  %11247 = vmatprep.subr.bf16.mxu1 %v14267_v28 }
0x2161   :  { %11217 = vmatpush1.bf16.msra.mxu0 %v14269_v42  ;;  %11249 = vmatpush1.bf16.msra.mxu1 %v14272_v31 }
0x2162   :  { %11219 = vmatprep.subr.bf16.mxu0 %v14276_v3  ;;  %11251 = vmatprep.subr.bf16.mxu1 %v14278_v26 }
0x2165   :  { %11221 = vmatpush1.bf16.msra.mxu0 %v14281_v51  ;;  %11253 = vmatpush1.bf16.msra.mxu1 %v14285_v23 }
0x2166   :  { %11223 = vmatprep.subr.bf16.mxu0 %v14287_v12  ;;  %11255 = vmatprep.subr.bf16.mxu1 %v14289_v17 }
0x2169   :  { %11225 = vmatpush1.bf16.msra.mxu0 %v14292_v38  ;;  %11257 = vmatpush1.bf16.msra.mxu1 %v14296_v52 }
0x216a   :  { %11227 = vmatprep.subr.bf16.mxu0 %v14299_v35  ;;  %11259 = vmatprep.subr.bf16.mxu1 %v14301_v21 }
0x216d   :  { %11229 = vmatpush1.bf16.msra.mxu0 %v14304_v8  ;;  %11261 = vmatpush1.bf16.msra.mxu1 %v14308_v16 }
0x216e   :  { %11263 = vmatprep.subr.bf16.mxu0 %v14217_v57  ;;  %11295 = vmatprep.subr.bf16.mxu1 %v14219_v30 }
0x2223   :  { %v7247_v40 = vpop.f32.mrb[82].mxu0  ;;  %v7318_v2 = vpop.f32.mrb[82].mxu1 }
0x2224   :  { %v7323_v63 = vadd.f32 %v7247_v40, %v7174_v32  ;;  %v7249_v13 = vpop.f32.mrb[83].mxu0  ;;  %v7320_v60 = vpop.f32.mrb[83].mxu1  ;;  %v7325_v20 = vadd.f32 %v7318_v2, %v7176_v34  ;;  %v7356_v34 = vld [vmem:[#allocation2 + $0x48] sm:$0xc] }
0x2225   :  { %v7324_v56 = vadd.f32 %v7249_v13, %v7175_v41  ;;  %v7326_v25 = vadd.f32 %v7320_v60, %v7177_v14 }
0x2226   :  { %v8837_v46 = vmul.f32 -1.442695, %v7323_v63 }
0x2227   :  { %v8838_v15 = vmul.f32 -1.442695, %v7324_v56  ;;  %v8839_v1 = vmul.f32 -1.442695, %v7326_v25 }
0x2228   :  { %12043 = vpow2.f32 %v8837_v46 }
0x2229   :  { %12045 = vpow2.f32 %v8838_v15  ;;  %v7355_v15 = vld [vmem:[#allocation2 + $0x40] sm:$0xc] }
0x222a   :  { %12047 = vpow2.f32 %v8839_v1 }
0x222b   :  { %12049 = vtanh.f32 %v7325_v20 }
0x2232   :  { %v12044_v27 = vpop.eup %12043 }
0x2233   :  { %v12046_v10 = vpop.eup %12045  ;;  %v7330_v58 = vadd.f32 1.0, %v12044_v27 }
0x2234   :  { %v7336_v24 = vadd.f32 1.0, %v12046_v10  ;;  %v12048_v29 = vpop.eup %12047 }
0x2235   :  { %12051 = vrcp.f32 %v7330_v58  ;;  %v12050_v62 = vpop.eup %12049  ;;  %v7343_v4 = vadd.f32 1.0, %v12048_v29  ;;  %v7358_v58 = vld [vmem:[#allocation2 + $0x58] sm:$0xc]  ;;  %v7357_v29 = vld [vmem:[#allocation2 + $0x50] sm:$0xc] }
0x2236   :  { %12053 = vrcp.f32 %v7336_v24 }
0x2237   :  { %12055 = vrcp.f32 %v7343_v4 }
0x223f   :  { %v12052_v53 = vpop.eup %12051 }
0x2240   :  { %v12054_v22 = vpop.eup %12053  ;;  %v7350_v55 = vmul.f32 %v12052_v53, %v12050_v62 }
0x2241   :  { %v7349_v32 = vmul.f32 %v12054_v22, %v7347_v54  ;;  %v12056_v2 = vpop.eup %12055 }
0x2243   :  { %v14686_v40 = vadd.f32 %v7350_v55, %v7349_v32 }
0x2245   :  { %12057 = vtanh.f32 %v14686_v40 }
0x224f   :  { %v12058_v63 = vpop.eup %12057 }
0x2250   :  { %v7353_v41 = vmul.f32 %v12058_v63, %v12056_v2  ;;  %v7537_v63 = vrot.slane %v14686_v40, 6 }
0x2252   :  { %7354 = vst [vmem:[#allocation3 + $0x10] sm:$0x3] %v7353_v41  ;;  %7424 = vmatmul.mubr.f32.vlgmr.msra.gmra.mrb[84].mxu0 %v7353_v41  ;;  %7495 = vmatmul.mubr.f32.vlgmr.msra.gmra.mrb[84].mxu1 %v7353_v41 }
0x2253   :  { %11265 = vmatpush1.bf16.msra.mxu0 %v14221_v11  ;;  %11297 = vmatpush1.bf16.msra.mxu1 %v14224_v39 }
0x2254   :  { %11267 = vmatprep.subr.bf16.mxu0 %v14229_v59  ;;  %11299 = vmatprep.subr.bf16.mxu1 %v14231_v7 }
0x2255   :  { %7616 = vmatprep.mubr.f32.mxu0 %v12310_v0  ;;  %7687 = vmatprep.mubr.f32.mxu1 %v12310_v0 }
0x2257   :  { %11269 = vmatpush1.bf16.msra.mxu0 %v14233_v6  ;;  %11301 = vmatpush1.bf16.msra.mxu1 %v14236_v33 }
0x2258   :  { %11271 = vmatprep.subr.bf16.mxu0 %v14241_v50  ;;  %11303 = vmatprep.subr.bf16.mxu1 %v14243_v9 }
0x225b   :  { %11273 = vmatpush1.bf16.msra.mxu0 %v14245_v36  ;;  %11305 = vmatpush1.bf16.msra.mxu1 %v14248_v18 }
0x225c   :  { %11275 = vmatprep.subr.bf16.mxu0 %v14253_v5  ;;  %11307 = vmatprep.subr.bf16.mxu1 %v14255_v44 }
0x225f   :  { %11277 = vmatpush1.bf16.msra.mxu0 %v14257_v19  ;;  %11309 = vmatpush1.bf16.msra.mxu1 %v14260_v61 }
0x2260   :  { %11279 = vmatprep.subr.bf16.mxu0 %v14265_v37  ;;  %11311 = vmatprep.subr.bf16.mxu1 %v14267_v28 }
0x2263   :  { %11281 = vmatpush1.bf16.msra.mxu0 %v14269_v42  ;;  %11313 = vmatpush1.bf16.msra.mxu1 %v14272_v31 }
0x2264   :  { %11283 = vmatprep.subr.bf16.mxu0 %v14276_v3  ;;  %11315 = vmatprep.subr.bf16.mxu1 %v14278_v26 }
0x2267   :  { %11285 = vmatpush1.bf16.msra.mxu0 %v14281_v51  ;;  %11317 = vmatpush1.bf16.msra.mxu1 %v14285_v23 }
0x2268   :  { %11287 = vmatprep.subr.bf16.mxu0 %v14287_v12  ;;  %11319 = vmatprep.subr.bf16.mxu1 %v14289_v17 }
0x226b   :  { %11289 = vmatpush1.bf16.msra.mxu0 %v14292_v38  ;;  %11321 = vmatpush1.bf16.msra.mxu1 %v14296_v52 }
0x226c   :  { %11291 = vmatprep.subr.bf16.mxu0 %v14299_v35  ;;  %11323 = vmatprep.subr.bf16.mxu1 %v14301_v21 }
0x226f   :  { %11293 = vmatpush1.bf16.msra.mxu0 %v14304_v8  ;;  %11325 = vmatpush1.bf16.msra.mxu1 %v14308_v16 }
0x2270   :  { %11327 = vmatprep.subr.bf16.mxu0 %v14217_v57  ;;  %11359 = vmatprep.subr.bf16.mxu1 %v14219_v30 }
0x2325   :  { %v7425_v49 = vpop.f32.mrb[84].mxu0  ;;  %v7496_v13 = vpop.f32.mrb[84].mxu1 }
0x2326   :  { %v7505_v60 = vrot.slane %v7425_v49, 6  ;;  %v7427_v56 = vpop.f32.mrb[85].mxu0  ;;  %v7498_v46 = vpop.f32.mrb[85].mxu1  ;;  %v7507_v57 = vrot.slane %v7496_v13, 6 }
0x2327   :  { %v7506_v14 = vrot.slane %v7427_v56, 6  ;;  %v7508_v10 = vrot.slane %v7498_v46, 6 }
0x2328   :  { %v7513_v25 = vadd.f32 %v7505_v60, %v7355_v15  ;;  %v7515_v62 = vadd.f32 %v7507_v57, %v7357_v29  ;;  %v7994_v57 = vld [vmem:[#allocation13 + $0x18] sm:$0xff] }
0x2329   :  { %v7514_v1 = vadd.f32 %v7506_v14, %v7356_v34  ;;  %v7516_v24 = vadd.f32 %v7508_v10, %v7358_v58  ;;  %v7992_v58 = vld [vmem:[#allocation13 + $0x8] sm:$0xff] }
0x232a   :  { %v8840_v20 = vmul.f32 -1.442695, %v7513_v25 }
0x232b   :  { %v8841_v27 = vmul.f32 -1.442695, %v7514_v1  ;;  %v8842_v30 = vmul.f32 -1.442695, %v7516_v24  ;;  %v7996_v24 = vld [vmem:[#allocation13 + $0x28] sm:$0xff] }
0x232c   :  { %12059 = vpow2.f32 %v8840_v20  ;;  %v11390_v29 = vpack.c.bf16 %v7996_v24, %v7992_v58  ;;  %v8032_v58 = vld [vmem:[#allocation13 + $0x148] sm:$0xff] }
0x232d   :  { %12061 = vpow2.f32 %v8841_v27  ;;  %v8036_v24 = vld [vmem:[#allocation13 + $0x168] sm:$0xff] }
0x232e   :  { %12063 = vpow2.f32 %v8842_v30  ;;  %v7998_v30 = vld [vmem:[#allocation13 + $0x38] sm:$0xff] }
0x232f   :  { %12065 = vtanh.f32 %v7515_v62  ;;  %v7991_v62 = vld [vmem:[#allocation13] sm:$0xff] }
0x2336   :  { %v12060_v53 = vpop.eup %12059 }
0x2337   :  { %v12062_v54 = vpop.eup %12061  ;;  %v7520_v22 = vadd.f32 1.0, %v12060_v53  ;;  %v7995_v53 = vld [vmem:[#allocation13 + $0x20] sm:$0xff] }
0x2338   :  { %v7526_v55 = vadd.f32 1.0, %v12062_v54  ;;  %v12064_v4 = vpop.eup %12063  ;;  %v11422_v54 = vpack.c.bf16 %v7998_v30, %v7994_v57  ;;  %v8034_v57 = vld [vmem:[#allocation13 + $0x158] sm:$0xff] }
0x2339   :  { %12067 = vrcp.f32 %v7520_v22  ;;  %v12066_v32 = vpop.eup %12065  ;;  %v7533_v60 = vadd.f32 1.0, %v12064_v4  ;;  %v11392_v22 = vpack.c.bf16 %v7995_v53, %v7991_v62  ;;  %v7997_v4 = vld [vmem:[#allocation13 + $0x30] sm:$0xff]  ;;  %v11410_v53 = vpack.c.bf16 %v8036_v24, %v8032_v58 }
0x233a   :  { %12069 = vrcp.f32 %v7526_v55  ;;  %v7993_v55 = vld [vmem:[#allocation13 + $0x10] sm:$0xff] }
0x233b   :  { %12071 = vrcp.f32 %v7533_v60 }
0x2343   :  { %v12068_v2 = vpop.eup %12067 }
0x2344   :  { %v12070_v41 = vpop.eup %12069  ;;  %v7540_v49 = vmul.f32 %v12068_v2, %v12066_v32  ;;  %v8000_v32 = vld [vmem:[#allocation13 + $0x48] sm:$0xff]  ;;  %v11424_v2 = vpack.c.bf16 %v7997_v4, %v7993_v55  ;;  %v8033_v55 = vld [vmem:[#allocation13 + $0x150] sm:$0xff] }
0x2345   :  { %v7539_v13 = vmul.f32 %v12070_v41, %v7537_v63  ;;  %v12072_v46 = vpop.eup %12071  ;;  %v8004_v63 = vld [vmem:[#allocation13 + $0x68] sm:$0xff]  ;;  %v8002_v41 = vld [vmem:[#allocation13 + $0x58] sm:$0xff] }
0x2346   :  { %v11394_v60 = vpack.c.bf16 %v8004_v63, %v8000_v32  ;;  %v8037_v32 = vld [vmem:[#allocation13 + $0x170] sm:$0xff]  ;;  %v8044_v63 = vld [vmem:[#allocation13 + $0x1a8] sm:$0xff] }
0x2347   :  { %v14724_v56 = vadd.f32 %v7540_v49, %v7539_v13  ;;  %v8006_v49 = vld [vmem:[#allocation13 + $0x78] sm:$0xff] }
0x2348   :  { %v11426_v13 = vpack.c.bf16 %v8006_v49, %v8002_v41  ;;  %v8042_v41 = vld [vmem:[#allocation13 + $0x198] sm:$0xff] }
0x2349   :  { %12073 = vtanh.f32 %v14724_v56  ;;  %v8046_v49 = vld [vmem:[#allocation13 + $0x1b8] sm:$0xff] }
0x2353   :  { %v12074_v15 = vpop.eup %12073 }
0x2354   :  { %v7543_v14 = vmul.f32 %v12074_v15, %v12072_v46  ;;  %v8003_v46 = vld [vmem:[#allocation13 + $0x60] sm:$0xff]  ;;  %v8001_v15 = vld [vmem:[#allocation13 + $0x50] sm:$0xff] }
0x2356   :  { %7544 = vst [vmem:[#allocation3 + $0x10] sm:$0xc] %v7543_v14  ;;  %v7550_v25 = vrot.slane %v7543_v14, 2 }
0x2358   :  { %7617 = vmatmul.mubr.f32.vlgmr.msra.gmra.mrb[86].mxu0 %v7550_v25  ;;  %7688 = vmatmul.mubr.f32.vlgmr.msra.gmra.mrb[86].mxu1 %v7550_v25  ;;  %v8005_v25 = vld [vmem:[#allocation13 + $0x70] sm:$0xff] }
0x2359   :  { %11329 = vmatpush1.bf16.msra.mxu0 %v14221_v11  ;;  %11361 = vmatpush1.bf16.msra.mxu1 %v14224_v39 }
0x235a   :  { %11331 = vmatprep.subr.bf16.mxu0 %v14229_v59  ;;  %11363 = vmatprep.subr.bf16.mxu1 %v14231_v7 }
0x235b   :  { %7809 = vmatprep.mubr.f32.mxu0 %v12310_v0  ;;  %7880 = vmatprep.mubr.f32.mxu1 %v12310_v0 }
0x235d   :  { %11333 = vmatpush1.bf16.msra.mxu0 %v14233_v6  ;;  %11365 = vmatpush1.bf16.msra.mxu1 %v14236_v33  ;;  %v7545_v33 = vld [vmem:[#allocation2 + $0x40] sm:$0x30] }
0x235e   :  { %11335 = vmatprep.subr.bf16.mxu0 %v14241_v50  ;;  %11367 = vmatprep.subr.bf16.mxu1 %v14243_v9 }
0x2361   :  { %11337 = vmatpush1.bf16.msra.mxu0 %v14245_v36  ;;  %11369 = vmatpush1.bf16.msra.mxu1 %v14248_v18  ;;  %v7546_v36 = vld [vmem:[#allocation2 + $0x48] sm:$0x30] }
0x2362   :  { %11339 = vmatprep.subr.bf16.mxu0 %v14253_v5  ;;  %11371 = vmatprep.subr.bf16.mxu1 %v14255_v44 }
0x2365   :  { %11341 = vmatpush1.bf16.msra.mxu0 %v14257_v19  ;;  %11373 = vmatpush1.bf16.msra.mxu1 %v14260_v61  ;;  %v7548_v61 = vld [vmem:[#allocation2 + $0x58] sm:$0x30] }
0x2366   :  { %11343 = vmatprep.subr.bf16.mxu0 %v14265_v37  ;;  %11375 = vmatprep.subr.bf16.mxu1 %v14267_v28 }
0x2369   :  { %11345 = vmatpush1.bf16.msra.mxu0 %v14269_v42  ;;  %11377 = vmatpush1.bf16.msra.mxu1 %v14272_v31  ;;  %v7547_v42 = vld [vmem:[#allocation2 + $0x50] sm:$0x30] }
0x236a   :  { %11347 = vmatprep.subr.bf16.mxu0 %v14276_v3  ;;  %11379 = vmatprep.subr.bf16.mxu1 %v14278_v26 }
0x236d   :  { %11349 = vmatpush1.bf16.msra.mxu0 %v14281_v51  ;;  %11381 = vmatpush1.bf16.msra.mxu1 %v14285_v23 }
0x236e   :  { %11351 = vmatprep.subr.bf16.mxu0 %v14287_v12  ;;  %11383 = vmatprep.subr.bf16.mxu1 %v14289_v17 }
0x2371   :  { %11353 = vmatpush1.bf16.msra.mxu0 %v14292_v38  ;;  %11385 = vmatpush1.bf16.msra.mxu1 %v14296_v52 }
0x2372   :  { %11355 = vmatprep.subr.bf16.mxu0 %v14299_v35  ;;  %11387 = vmatprep.subr.bf16.mxu1 %v14301_v21  ;;  %v7730_v35 = vrot.slane %v14724_v56, 6  ;;  %v7999_v56 = vld [vmem:[#allocation13 + $0x40] sm:$0xff] }
0x2373   :  { %v11396_v14 = vpack.c.bf16 %v8003_v46, %v7999_v56  ;;  %v8039_v46 = vld [vmem:[#allocation13 + $0x180] sm:$0xff] }
0x2375   :  { %11357 = vmatpush1.bf16.msra.mxu0 %v14304_v8  ;;  %11389 = vmatpush1.bf16.msra.mxu1 %v14308_v16 }
0x2376   :  { %11391 = vmatprep.subr.bf16.mxu0 %v11390_v29  ;;  %11423 = vmatprep.subr.bf16.mxu1 %v11422_v54  ;;  %v8038_v29 = vld [vmem:[#allocation13 + $0x178] sm:$0xff]  ;;  %v8031_v54 = vld [vmem:[#allocation13 + $0x140] sm:$0xff] }
0x2377   :  { %v11442_v4 = vpack.c.bf16 %v8038_v29, %v8034_v57 }
0x242b   :  { %v7618_v11 = vpop.f32.mrb[86].mxu0  ;;  %v7689_v39 = vpop.f32.mrb[86].mxu1 }
0x242c   :  { %v7698_v59 = vrot.slane %v7618_v11, 4  ;;  %v7620_v7 = vpop.f32.mrb[87].mxu0  ;;  %v7691_v6 = vpop.f32.mrb[87].mxu1  ;;  %v7700_v28 = vrot.slane %v7689_v39, 4  ;;  %v8008_v11 = vld [vmem:[#allocation13 + $0x88] sm:$0xff] }
0x242d   :  { %v7699_v50 = vrot.slane %v7620_v7, 4  ;;  %v7701_v19 = vrot.slane %v7691_v6, 4  ;;  %v8012_v39 = vld [vmem:[#allocation13 + $0xa8] sm:$0xff]  ;;  %v8010_v6 = vld [vmem:[#allocation13 + $0x98] sm:$0xff] }
0x242e   :  { %v7706_v9 = vadd.f32 %v7698_v59, %v7545_v33  ;;  %v7708_v3 = vadd.f32 %v7700_v28, %v7547_v42  ;;  %v11428_v59 = vpack.c.bf16 %v8005_v25, %v8001_v15  ;;  %v11398_v7 = vpack.c.bf16 %v8012_v39, %v8008_v11  ;;  %v8014_v33 = vld [vmem:[#allocation13 + $0xb8] sm:$0xff]  ;;  %v8043_v15 = vld [vmem:[#allocation13 + $0x1a0] sm:$0xff]  ;;  %v8045_v11 = vld [vmem:[#allocation13 + $0x1b0] sm:$0xff] }
0x242f   :  { %v7707_v18 = vadd.f32 %v7699_v50, %v7546_v36  ;;  %v7709_v37 = vadd.f32 %v7701_v19, %v7548_v61  ;;  %v8007_v50 = vld [vmem:[#allocation13 + $0x80] sm:$0xff]  ;;  %v8016_v19 = vld [vmem:[#allocation13 + $0xc8] sm:$0xff]  ;;  %v11446_v25 = vpack.c.bf16 %v8046_v49, %v8042_v41 }
0x2430   :  { %v8843_v5 = vmul.f32 -1.442695, %v7706_v9  ;;  %v11430_v9 = vpack.c.bf16 %v8014_v33, %v8010_v6  ;;  %v8011_v36 = vld [vmem:[#allocation13 + $0xa0] sm:$0xff]  ;;  %v8020_v61 = vld [vmem:[#allocation13 + $0xe8] sm:$0xff]  ;;  %v8054_v6 = vld [vmem:[#allocation13 + $0x1f8] sm:$0xff]  ;;  %v11416_v33 = vpack.c.bf16 %v8043_v15, %v8039_v46 }
0x2431   :  { %v8844_v44 = vmul.f32 -1.442695, %v7707_v18  ;;  %v8845_v31 = vmul.f32 -1.442695, %v7709_v37  ;;  %v8009_v18 = vld [vmem:[#allocation13 + $0x90] sm:$0xff]  ;;  %v8018_v37 = vld [vmem:[#allocation13 + $0xd8] sm:$0xff]  ;;  %v11402_v42 = vpack.c.bf16 %v8020_v61, %v8016_v19 }
0x2432   :  { %12075 = vpow2.f32 %v8843_v5  ;;  %v8013_v5 = vld [vmem:[#allocation13 + $0xb0] sm:$0xff]  ;;  %v8048_v39 = vld [vmem:[#allocation13 + $0x1c8] sm:$0xff] }
0x2433   :  { %12077 = vpow2.f32 %v8844_v44  ;;  %v11400_v44 = vpack.c.bf16 %v8011_v36, %v8007_v50  ;;  %v11432_v28 = vpack.c.bf16 %v8013_v5, %v8009_v18  ;;  %v8047_v36 = vld [vmem:[#allocation13 + $0x1c0] sm:$0xff]  ;;  %v8053_v19 = vld [vmem:[#allocation13 + $0x1f0] sm:$0xff] }
0x2434   :  { %12079 = vpow2.f32 %v8845_v31  ;;  %v8022_v31 = vld [vmem:[#allocation13 + $0xf8] sm:$0xff]  ;;  %v8051_v18 = vld [vmem:[#allocation13 + $0x1e0] sm:$0xff]  ;;  %v7936_v49 = vld [vmem:[#allocation3 + $0x8] sm:$0xff] }
0x2435   :  { %12081 = vtanh.f32 %v7708_v3  ;;  %v8015_v3 = vld [vmem:[#allocation13 + $0xc0] sm:$0xff]  ;;  %v11420_v61 = vpack.c.bf16 %v8051_v18, %v8047_v36 }
0x243c   :  { %v12076_v26 = vpop.eup %12075 }
0x243d   :  { %v12078_v51 = vpop.eup %12077  ;;  %v7713_v23 = vadd.f32 1.0, %v12076_v26  ;;  %v8019_v26 = vld [vmem:[#allocation13 + $0xe0] sm:$0xff] }
0x243e   :  { %v7719_v12 = vadd.f32 1.0, %v12078_v51  ;;  %v12080_v17 = vpop.eup %12079  ;;  %v11434_v51 = vpack.c.bf16 %v8022_v31, %v8018_v37 }
0x243f   :  { %12083 = vrcp.f32 %v7713_v23  ;;  %v12082_v38 = vpop.eup %12081  ;;  %v7726_v16 = vadd.f32 1.0, %v12080_v17  ;;  %v8017_v23 = vld [vmem:[#allocation13 + $0xd0] sm:$0xff]  ;;  %v8024_v17 = vld [vmem:[#allocation13 + $0x108] sm:$0xff] }
0x2440   :  { %12085 = vrcp.f32 %v7719_v12  ;;  %v8021_v12 = vld [vmem:[#allocation13 + $0xf0] sm:$0xff] }
0x2441   :  { %12087 = vrcp.f32 %v7726_v16 }
0x2449   :  { %v12084_v52 = vpop.eup %12083 }
0x244a   :  { %v12086_v21 = vpop.eup %12085  ;;  %v7733_v8 = vmul.f32 %v12084_v52, %v12082_v38  ;;  %v8028_v38 = vld [vmem:[#allocation13 + $0x128] sm:$0xff]  ;;  %v8026_v52 = vld [vmem:[#allocation13 + $0x118] sm:$0xff] }
0x244b   :  { %v7732_v40 = vmul.f32 %v12086_v21, %v7730_v35  ;;  %v12088_v1 = vpop.eup %12087  ;;  %v8030_v35 = vld [vmem:[#allocation13 + $0x138] sm:$0xff]  ;;  %v11404_v21 = vpack.c.bf16 %v8019_v26, %v8015_v3  ;;  %v11406_v16 = vpack.c.bf16 %v8028_v38, %v8024_v17  ;;  %v7739_v17 = vld [vmem:[#allocation2 + $0x48] sm:$0xc0] }
0x244d   :  { %v14760_v34 = vadd.f32 %v7733_v8, %v7732_v40  ;;  %v11436_v8 = vpack.c.bf16 %v8021_v12, %v8017_v23  ;;  %v8023_v40 = vld [vmem:[#allocation13 + $0x100] sm:$0xff] }
0x244f   :  { %12089 = vtanh.f32 %v14760_v34 }
0x2459   :  { %v12090_v20 = vpop.eup %12089 }
0x245a   :  { %v7736_v27 = vmul.f32 %v12090_v20, %v12088_v1  ;;  %v8027_v1 = vld [vmem:[#allocation13 + $0x120] sm:$0xff]  ;;  %v8025_v20 = vld [vmem:[#allocation13 + $0x110] sm:$0xff] }
0x245b   :  { %v11408_v30 = vpack.c.bf16 %v8027_v1, %v8023_v40  ;;  %v7740_v1 = vld [vmem:[#allocation2 + $0x50] sm:$0xc0] }
0x245c   :  { %7737 = vst [vmem:[#allocation3 + $0x10] sm:$0x30] %v7736_v27  ;;  %v7743_v10 = vrot.slane %v7736_v27, 4  ;;  %v11438_v27 = vpack.c.bf16 %v8030_v35, %v8026_v52 }
0x245e   :  { %7810 = vmatmul.mubr.f32.vlgmr.msra.gmra.mrb[88].mxu0 %v7743_v10  ;;  %7881 = vmatmul.mubr.f32.vlgmr.msra.gmra.mrb[88].mxu1 %v7743_v10  ;;  %v8029_v10 = vld [vmem:[#allocation13 + $0x130] sm:$0xff] }
0x245f   :  { %8141 = vmatprep.mubr.f32.mxu0 %v12310_v0  ;;  %8224 = vmatprep.mubr.f32.mxu1 %v12310_v0  ;;  %v11440_v62 = vpack.c.bf16 %v8029_v10, %v8025_v20 }
0x2460   :  { %11393 = vmatpush1.bf16.msra.mxu0 %v11392_v22  ;;  %11425 = vmatpush1.bf16.msra.mxu1 %v11424_v2  ;;  %v8035_v22 = vld [vmem:[#allocation13 + $0x160] sm:$0xff]  ;;  %v8040_v2 = vld [vmem:[#allocation13 + $0x188] sm:$0xff] }
0x2461   :  { %11395 = vmatprep.subr.bf16.mxu0 %v11394_v60  ;;  %11427 = vmatprep.subr.bf16.mxu1 %v11426_v13  ;;  %v11412_v60 = vpack.c.bf16 %v8035_v22, %v8031_v54  ;;  %v11444_v13 = vpack.c.bf16 %v8037_v32, %v8033_v55  ;;  %v11414_v56 = vpack.c.bf16 %v8044_v63, %v8040_v2 }
0x2464   :  { %11397 = vmatpush1.bf16.msra.mxu0 %v11396_v14  ;;  %11429 = vmatpush1.bf16.msra.mxu1 %v11428_v59  ;;  %v8041_v14 = vld [vmem:[#allocation13 + $0x190] sm:$0xff]  ;;  %v8052_v59 = vld [vmem:[#allocation13 + $0x1e8] sm:$0xff] }
0x2465   :  { %11399 = vmatprep.subr.bf16.mxu0 %v11398_v7  ;;  %11431 = vmatprep.subr.bf16.mxu1 %v11430_v9  ;;  %v8050_v7 = vld [vmem:[#allocation13 + $0x1d8] sm:$0xff]  ;;  %v11448_v50 = vpack.c.bf16 %v8045_v11, %v8041_v14  ;;  %v11418_v9 = vpack.c.bf16 %v8052_v59, %v8048_v39 }
0x2466   :  { %v11450_v5 = vpack.c.bf16 %v8054_v6, %v8050_v7 }
0x2468   :  { %11401 = vmatpush1.bf16.msra.mxu0 %v11400_v44  ;;  %11433 = vmatpush1.bf16.msra.mxu1 %v11432_v28  ;;  %v8049_v44 = vld [vmem:[#allocation13 + $0x1d0] sm:$0xff] }
0x2469   :  { %11403 = vmatprep.subr.bf16.mxu0 %v11402_v42  ;;  %11435 = vmatprep.subr.bf16.mxu1 %v11434_v51  ;;  %v11452_v37 = vpack.c.bf16 %v8053_v19, %v8049_v44  ;;  %v7738_v51 = vld [vmem:[#allocation2 + $0x40] sm:$0xc0] }
0x246c   :  { %11405 = vmatpush1.bf16.msra.mxu0 %v11404_v21  ;;  %11437 = vmatpush1.bf16.msra.mxu1 %v11436_v8  ;;  %v7741_v8 = vld [vmem:[#allocation2 + $0x58] sm:$0xc0] }
0x246d   :  { %11407 = vmatprep.subr.bf16.mxu0 %v11406_v16  ;;  %11439 = vmatprep.subr.bf16.mxu1 %v11438_v27 }
0x2470   :  { %11409 = vmatpush1.bf16.msra.mxu0 %v11408_v30  ;;  %11441 = vmatpush1.bf16.msra.mxu1 %v11440_v62 }
0x2471   :  { %11411 = vmatprep.subr.bf16.mxu0 %v11410_v53  ;;  %11443 = vmatprep.subr.bf16.mxu1 %v11442_v4  ;;  %v7923_v53 = vrot.slane %v14760_v34, 6 }
0x2474   :  { %11413 = vmatpush1.bf16.msra.mxu0 %v11412_v60  ;;  %11445 = vmatpush1.bf16.msra.mxu1 %v11444_v13  ;;  %v7935_v60 = vld [vmem:[#allocation3] sm:$0xff] }
0x2475   :  { %11415 = vmatprep.subr.bf16.mxu0 %v11414_v56  ;;  %11447 = vmatprep.subr.bf16.mxu1 %v11446_v25  ;;  %v7938_v13 = vadd.f32 %v7936_v49, %v7935_v60 }
0x2478   :  { %11417 = vmatpush1.bf16.msra.mxu0 %v11416_v33  ;;  %11449 = vmatpush1.bf16.msra.mxu1 %v11448_v50 }
0x2479   :  { %11419 = vmatprep.subr.bf16.mxu0 %v11418_v9  ;;  %11451 = vmatprep.subr.bf16.mxu1 %v11450_v5 }
0x247c   :  { %11421 = vmatpush1.bf16.msra.mxu0 %v11420_v61  ;;  %11453 = vmatpush1.bf16.msra.mxu1 %v11452_v37 }
0x2531   :  { %v7811_v28 = vpop.f32.mrb[88].mxu0  ;;  %v7882_v42 = vpop.f32.mrb[88].mxu1 }
0x2532   :  { %v7891_v31 = vrot.slane %v7811_v28, 2  ;;  %v7813_v3 = vpop.f32.mrb[89].mxu0  ;;  %v7884_v26 = vpop.f32.mrb[89].mxu1  ;;  %v7893_v40 = vrot.slane %v7882_v42, 2 }
0x2533   :  { %v7892_v23 = vrot.slane %v7813_v3, 2  ;;  %v7894_v21 = vrot.slane %v7884_v26, 2 }
0x2534   :  { %v7899_v12 = vadd.f32 %v7891_v31, %v7738_v51  ;;  %v7901_v27 = vadd.f32 %v7893_v40, %v7740_v1  ;;  %v8849_v51 = vld [vmem:[%s15072_s12] ss:$0 sm:$0xff] }
0x2535   :  { %v7900_v38 = vadd.f32 %v7892_v23, %v7739_v17  ;;  %v7902_v16 = vadd.f32 %v7894_v21, %v7741_v8  ;;  %v8850_v17 = vld [vmem:[%s15073_s13] ss:$0 sm:$0xff] }
0x2536   :  { %v8846_v52 = vmul.f32 -1.442695, %v7899_v12 }
0x2537   :  { %v8847_v35 = vmul.f32 -1.442695, %v7900_v38  ;;  %v8848_v20 = vmul.f32 -1.442695, %v7902_v16 }
0x2538   :  { %12091 = vpow2.f32 %v8846_v52 }
0x2539   :  { %12093 = vpow2.f32 %v8847_v35 }
0x253a   :  { %12095 = vpow2.f32 %v8848_v20 }
0x253b   :  { %12097 = vtanh.f32 %v7901_v27 }
0x2542   :  { %v12092_v10 = vpop.eup %12091 }
0x2543   :  { %v12094_v58 = vpop.eup %12093  ;;  %v7906_v24 = vadd.f32 1.0, %v12092_v10  ;;  %v8471_v10 = vld [vmem:[%s15078_s18 + $0x80] sm:$0xff] }
0x2544   :  { %v7912_v57 = vadd.f32 1.0, %v12094_v58  ;;  %v12096_v29 = vpop.eup %12095  ;;  %v8472_v58 = vld [vmem:[%s15078_s18 + $0x88] sm:$0xff] }
0x2545   :  { %12099 = vrcp.f32 %v7906_v24  ;;  %v12098_v30 = vpop.eup %12097  ;;  %v7919_v55 = vadd.f32 1.0, %v12096_v29  ;;  %v8503_v24 = vld [vmem:[%s15078_s18 + $0x180] sm:$0xff] }
0x2546   :  { %12101 = vrcp.f32 %v7912_v57  ;;  %v11454_v57 = vpack.c.bf16 %v8472_v58, %v8471_v10  ;;  %v8455_v29 = vld [vmem:[%s15078_s18] sm:$0xff]  ;;  %v8481_v10 = vld [vmem:[%s15078_s18 + $0xd0] sm:$0xff]  ;;  %v8482_v58 = vld [vmem:[%s15078_s18 + $0xd8] sm:$0xff] }
0x2547   :  { %12103 = vrcp.f32 %v7919_v55 }
0x2548   :  { %11455 = vmatprep.subr.bf16.mxu0 %v11454_v57  ;;  %v11474_v57 = vpack.c.bf16 %v8482_v58, %v8481_v10 }
0x254f   :  { %v12100_v62 = vpop.eup %12099 }
0x2550   :  { %v12102_v54 = vpop.eup %12101  ;;  %v7926_v22 = vmul.f32 %v12100_v62, %v12098_v30  ;;  %v8456_v30 = vld [vmem:[%s15078_s18 + $0x8] sm:$0xff] }
0x2551   :  { %v7925_v4 = vmul.f32 %v12102_v54, %v7923_v53  ;;  %v12104_v2 = vpop.eup %12103  ;;  %v11456_v53 = vpack.c.bf16 %v8456_v30, %v8455_v29  ;;  %v8487_v54 = vld [vmem:[%s15078_s18 + $0x100] sm:$0xff]  ;;  %v8465_v29 = vld [vmem:[%s15078_s18 + $0x50] sm:$0xff]  ;;  %v8466_v30 = vld [vmem:[%s15078_s18 + $0x58] sm:$0xff] }
0x2553   :  { %v7927_v32 = vadd.f32 %v7926_v22, %v7925_v4  ;;  %v8488_v22 = vld [vmem:[%s15078_s18 + $0x108] sm:$0xff]  ;;  %v8473_v4 = vld [vmem:[%s15078_s18 + $0x90] sm:$0xff] }
0x2554   :  { %v11488_v55 = vpack.c.bf16 %v8488_v22, %v8487_v54  ;;  %v8497_v54 = vld [vmem:[%s15078_s18 + $0x150] sm:$0xff]  ;;  %v8498_v22 = vld [vmem:[%s15078_s18 + $0x158] sm:$0xff] }
0x2555   :  { %12105 = vtanh.f32 %v7927_v32  ;;  %7934 = vst [vmem:[#allocation17 - $0x2] sm:$0xc0] %v7927_v32  ;;  %v8474_v32 = vld [vmem:[%s15078_s18 + $0x98] sm:$0xff] }
0x255f   :  { %v12106_v63 = vpop.eup %12105 }
0x2560   :  { %v7929_v41 = vmul.f32 %v12106_v63, %v12104_v2  ;;  %v8505_v2 = vld [vmem:[%s15078_s18 + $0x190] sm:$0xff]  ;;  %v11458_v63 = vpack.c.bf16 %v8474_v32, %v8473_v4  ;;  %v8483_v4 = vld [vmem:[%s15078_s18 + $0xe0] sm:$0xff]  ;;  %v8484_v32 = vld [vmem:[%s15078_s18 + $0xe8] sm:$0xff] }
0x2562   :  { %7930 = vst [vmem:[#allocation3 + $0x10] sm:$0xc0] %v7929_v41  ;;  %7932 = vst [vmem:[#allocation15 - $0x2] sm:$0xc0] %v7929_v41  ;;  %v8506_v41 = vld [vmem:[%s15078_s18 + $0x198] sm:$0xff] }
0x2569   :  { %v7937_v56 = vld [vmem:[#allocation3 + $0x10] sm:$0xff] }
0x256a   :  { %v7939_v46 = vadd.f32 %v7938_v13, %v7937_v56  ;;  %v11490_v13 = vpack.c.bf16 %v8506_v41, %v8505_v2  ;;  %v8515_v2 = vld [vmem:[%s15078_s18 + $0x1e0] sm:$0xff]  ;;  %v8516_v41 = vld [vmem:[%s15078_s18 + $0x1e8] sm:$0xff] }
0x256c   :  { %v7940_v15 = vrot.slane %v7939_v46, 4 }
0x256e   :  { %v7941_v34 = vadd.f32 %v7940_v15, %v7939_v46  ;;  %v8489_v46 = vld [vmem:[%s15078_s18 + $0x110] sm:$0xff]  ;;  %v8490_v15 = vld [vmem:[%s15078_s18 + $0x118] sm:$0xff] }
0x2570   :  { %v7942_v14 = vrot.slane %v7941_v34, 2 }
0x2572   :  { %v7943_v25 = vadd.f32 %v7942_v14, %v7941_v34  ;;  %v11492_v34 = vpack.c.bf16 %v8490_v15, %v8489_v46  ;;  %v8475_v14 = vld [vmem:[%s15078_s18 + $0xa0] sm:$0xff]  ;;  %v8500_v15 = vld [vmem:[%s15078_s18 + $0x168] sm:$0xff] }
0x2573   :  { %v8499_v46 = vld [vmem:[%s15078_s18 + $0x160] sm:$0xff] }
0x2574   :  { %v7944_v11 = vrot.slane %v7943_v25, 1 }
0x2576   :  { %v7945_v39 = vadd.f32 %v7944_v11, %v7943_v25  ;;  %v8476_v25 = vld [vmem:[%s15078_s18 + $0xa8] sm:$0xff]  ;;  %v8507_v11 = vld [vmem:[%s15078_s18 + $0x1a0] sm:$0xff] }
0x2578   :  { %v7947_v59 = vmul.f32 0.041666668, %v7945_v39  ;;  %v11462_v39 = vpack.c.bf16 %v8476_v25, %v8475_v14  ;;  %v11512_v14 = vpack.c.bf16 %v8500_v15, %v8499_v46  ;;  %v8486_v25 = vld [vmem:[%s15078_s18 + $0xf8] sm:$0xff] }
0x257a   :  { %v7948_v7 = vsub.f32 %v7935_v60, %v7947_v59  ;;  %v7949_v6 = vsub.f32 %v7936_v49, %v7947_v59  ;;  %v7950_v33 = vsub.f32 %v7937_v56, %v7947_v59  ;;  %v8457_v49 = vld [vmem:[%s15078_s18 + $0x10] sm:$0xff]  ;;  %v8458_v60 = vld [vmem:[%s15078_s18 + $0x18] sm:$0xff]  ;;  %v8508_v59 = vld [vmem:[%s15078_s18 + $0x1a8] sm:$0xff] }
0x257b   :  { %v11460_v56 = vpack.c.bf16 %v8458_v60, %v8457_v49  ;;  %v8467_v49 = vld [vmem:[%s15078_s18 + $0x60] sm:$0xff]  ;;  %v8468_v60 = vld [vmem:[%s15078_s18 + $0x68] sm:$0xff] }
0x257c   :  { %v7951_v50 = vmul.f32 %v7948_v7, %v7948_v7  ;;  %v7952_v9 = vmul.f32 %v7949_v6, %v7949_v6  ;;  %v7953_v36 = vmul.f32 %v7950_v33, %v7950_v33 }
0x257e   :  { %v7954_v18 = vadd.f32 %v7952_v9, %v7951_v50  ;;  %v8491_v50 = vld [vmem:[%s15078_s18 + $0x120] sm:$0xff]  ;;  %v8492_v9 = vld [vmem:[%s15078_s18 + $0x128] sm:$0xff] }
0x2580   :  { %v7955_v5 = vadd.f32 %v7954_v18, %v7953_v36  ;;  %v11496_v18 = vpack.c.bf16 %v8492_v9, %v8491_v50  ;;  %v8501_v50 = vld [vmem:[%s15078_s18 + $0x170] sm:$0xff] }
0x2582   :  { %v7956_v44 = vrot.slane %v7955_v5, 4 }
0x2584   :  { %v7957_v19 = vadd.f32 %v7956_v44, %v7955_v5  ;;  %v8477_v5 = vld [vmem:[%s15078_s18 + $0xb0] sm:$0xff]  ;;  %v8478_v44 = vld [vmem:[%s15078_s18 + $0xb8] sm:$0xff] }
0x2586   :  { %v7958_v61 = vrot.slane %v7957_v19, 2 }
0x2588   :  { %v7959_v37 = vadd.f32 %v7958_v61, %v7957_v19  ;;  %v8509_v19 = vld [vmem:[%s15078_s18 + $0x1b0] sm:$0xff]  ;;  %v11466_v61 = vpack.c.bf16 %v8478_v44, %v8477_v5  ;;  %v8055_v5 = vld [vmem:[%s15075_s15] sm:$0xf] }
0x258a   :  { %v7960_v28 = vrot.slane %v7959_v37, 1 }
0x258c   :  { %v7961_v42 = vadd.f32 %v7960_v28, %v7959_v37  ;;  %v8510_v37 = vld [vmem:[%s15078_s18 + $0x1b8] sm:$0xff]  ;;  %v8461_v28 = vld [vmem:[%s15078_s18 + $0x30] sm:$0xff] }
0x258e   :  { %v7962_v31 = vmul.f32 0.041666668, %v7961_v42  ;;  %v8462_v42 = vld [vmem:[%s15078_s18 + $0x38] sm:$0xff] }
0x2590   :  { %v7963_v3 = vadd.f32 1e-05, %v7962_v31  ;;  %v11498_v31 = vpack.c.bf16 %v8510_v37, %v8509_v19  ;;  %v8068_v37 = vrot.slane %v8055_v5, %v12880_v47 }
0x2592   :  { %12107 = vrsqrt.f32 %v7963_v3  ;;  %v11468_v3 = vpack.c.bf16 %v8462_v42, %v8461_v28 }
0x259c   :  { %v12108_v26 = vpop.eup %12107 }
0x259d   :  { %v7965_v23 = vmul.f32 %v12108_v26, %v7948_v7  ;;  %v7966_v12 = vmul.f32 %v12108_v26, %v7949_v6  ;;  %v7967_v35 = vmul.f32 %v12108_v26, %v7950_v33  ;;  %v8459_v7 = vld [vmem:[%s15078_s18 + $0x20] sm:$0xff]  ;;  %v11494_v6 = vpack.c.bf16 %v8508_v59, %v8507_v11  ;;  %v8460_v33 = vld [vmem:[%s15078_s18 + $0x28] sm:$0xff]  ;;  %v8493_v26 = vld [vmem:[%s15078_s18 + $0x130] sm:$0xff] }
0x259e   :  { %v11464_v36 = vpack.c.bf16 %v8460_v33, %v8459_v7  ;;  %v8517_v11 = vld [vmem:[%s15078_s18 + $0x1f0] sm:$0xff]  ;;  %v8470_v33 = vld [vmem:[%s15078_s18 + $0x78] sm:$0xff] }
0x259f   :  { %v7975_v38 = vmul.f32 %v8849_v51, %v7965_v23  ;;  %v7976_v52 = vmul.f32 %v8849_v51, %v7966_v12  ;;  %v7977_v40 = vmul.f32 %v8849_v51, %v7967_v35  ;;  %v8494_v51 = vld [vmem:[%s15078_s18 + $0x138] sm:$0xff]  ;;  %v8479_v12 = vld [vmem:[%s15078_s18 + $0xc0] sm:$0xff]  ;;  %v8512_v35 = vld [vmem:[%s15078_s18 + $0x1c8] sm:$0xff] }
0x25a0   :  { %v11500_v23 = vpack.c.bf16 %v8494_v51, %v8493_v26 }
0x25a1   :  { %v7985_v21 = vadd.f32 %v8850_v17, %v7975_v38  ;;  %v7986_v16 = vadd.f32 %v8850_v17, %v7976_v52  ;;  %v7987_v20 = vadd.f32 %v8850_v17, %v7977_v40  ;;  %v8480_v17 = vld [vmem:[%s15078_s18 + $0xc8] sm:$0xff]  ;;  %v8511_v38 = vld [vmem:[%s15078_s18 + $0x1c0] sm:$0xff] }
0x25a2   :  { %v11470_v52 = vpack.c.bf16 %v8480_v17, %v8479_v12 }
0x25a3   :  { %v7988_v8 = vmax.f32 %v7985_v21, 0.0  ;;  %v7989_v1 = vmax.f32 %v7986_v16, 0.0  ;;  %v7990_v27 = vmax.f32 %v7987_v20, 0.0  ;;  %v8463_v21 = vld [vmem:[%s15078_s18 + $0x40] sm:$0xff]  ;;  %v11502_v16 = vpack.c.bf16 %v8512_v35, %v8511_v38  ;;  %v8496_v20 = vld [vmem:[%s15078_s18 + $0x148] sm:$0xff] }
0x25a5   :  { %8142 = vmatmul.mubr.f32.vlgmr.msra.gmra.mrb[90].mxu0 %v7988_v8  ;;  %8225 = vmatmul.mubr.f32.vlgmr.msra.gmra.mrb[90].mxu1 %v7988_v8  ;;  %v8464_v8 = vld [vmem:[%s15078_s18 + $0x48] sm:$0xff] }
0x25a6   :  { %8147 = vmatprep.mubr.f32.mxu0 %v12310_v0  ;;  %8230 = vmatprep.mubr.f32.mxu1 %v12310_v0  ;;  %v11472_v40 = vpack.c.bf16 %v8464_v8, %v8463_v21 }
0x25a7   :  { %11457 = vmatpush3.bf16.msra.mxu0 %v11456_v53  ;;  %v11476_v53 = vpack.c.bf16 %v8466_v30, %v8465_v29 }
0x25a8   :  { %11459 = vmatprep.subr.bf16.mxu0 %v11458_v63  ;;  %v11478_v63 = vpack.c.bf16 %v8484_v32, %v8483_v4 }
0x25a9   :  { %8148 = vmatmul.mubr.f32.gmra.mrb[92].mxu0 %v7989_v1  ;;  %8231 = vmatmul.mubr.f32.gmra.mrb[92].mxu1 %v7989_v1  ;;  %v8495_v1 = vld [vmem:[%s15078_s18 + $0x140] sm:$0xff] }
0x25aa   :  { %8153 = vmatprep.mubr.f32.mxu0 %v12310_v0  ;;  %8236 = vmatprep.mubr.f32.mxu1 %v12310_v0  ;;  %v8504_v0 = vld [vmem:[%s15078_s18 + $0x188] sm:$0xff] }
0x25ab   :  { %v11486_v62 = vpack.c.bf16 %v8504_v0, %v8503_v24  ;;  %11461 = vmatpush3.bf16.msra.mxu0 %v11460_v56  ;;  %v8513_v24 = vld [vmem:[%s15078_s18 + $0x1d0] sm:$0xff]  ;;  %v8514_v0 = vld [vmem:[%s15078_s18 + $0x1d8] sm:$0xff]  ;;  %v11480_v56 = vpack.c.bf16 %v8468_v60, %v8467_v49 }
0x25ac   :  { %11463 = vmatprep.subr.bf16.mxu0 %v11462_v39  ;;  %v8518_v39 = vld [vmem:[%s15078_s18 + $0x1f8] sm:$0xff] }
0x25ad   :  { %8154 = vmatmul.mubr.f32.gmra.mrb[94].mxu0 %v7990_v27  ;;  %8237 = vmatmul.mubr.f32.gmra.mrb[94].mxu1 %v7990_v27  ;;  %v11504_v27 = vpack.c.bf16 %v8496_v20, %v8495_v1  ;;  %v11514_v7 = vpack.c.bf16 %v8518_v39, %v8517_v11 }
0x25ae   :  { %11487 = vmatprep.subr.bf16.mxu1 %v11486_v62  ;;  %v11506_v62 = vpack.c.bf16 %v8514_v0, %v8513_v24 }
0x25af   :  { %11489 = vmatpush3.bf16.msra.mxu1 %v11488_v55  ;;  %11465 = vmatpush3.bf16.msra.mxu0 %v11464_v36  ;;  %v11508_v55 = vpack.c.bf16 %v8498_v22, %v8497_v54  ;;  %v8502_v36 = vld [vmem:[%s15078_s18 + $0x178] sm:$0xff] }
0x25b0   :  { %11491 = vmatprep.subr.bf16.mxu1 %v11490_v13  ;;  %11467 = vmatprep.subr.bf16.mxu0 %v11466_v61  ;;  %v11510_v13 = vpack.c.bf16 %v8516_v41, %v8515_v2  ;;  %v8060_v61 = vrot.slane %v8055_v5, %v12873_v43 }
0x25b3   :  { %11493 = vmatpush3.bf16.msra.mxu1 %v11492_v34  ;;  %11469 = vmatpush3.bf16.msra.mxu0 %v11468_v3  ;;  %v8485_v34 = vld [vmem:[%s15078_s18 + $0xf0] sm:$0xff]  ;;  %v8072_v3 = vrot.slane %v8055_v5, %v12882_v48 }
0x25b4   :  { %11495 = vmatprep.subr.bf16.mxu1 %v11494_v6  ;;  %11471 = vmatprep.subr.bf16.mxu0 %v11470_v52  ;;  %v11482_v59 = vpack.c.bf16 %v8486_v25, %v8485_v34  ;;  %v8469_v6 = vld [vmem:[%s15078_s18 + $0x70] sm:$0xff] }
0x25b5   :  { %v11484_v9 = vpack.c.bf16 %v8470_v33, %v8469_v6 }
0x25b7   :  { %11497 = vmatpush3.bf16.msra.mxu1 %v11496_v18  ;;  %11473 = vmatpush3.bf16.msra.mxu0 %v11472_v40  ;;  %v11516_v18 = vpack.c.bf16 %v8502_v36, %v8501_v50 }
0x25b8   :  { %11499 = vmatprep.subr.bf16.mxu1 %v11498_v31  ;;  %11475 = vmatprep.subr.bf16.mxu0 %v11474_v57  ;;  %v8064_v31 = vrot.slane %v8055_v5, %v12878_v45 }
0x25bb   :  { %11501 = vmatpush3.bf16.msra.mxu1 %v11500_v23  ;;  %11477 = vmatpush3.bf16.msra.mxu0 %v11476_v53 }
0x25bc   :  { %11503 = vmatprep.subr.bf16.mxu1 %v11502_v16  ;;  %11479 = vmatprep.subr.bf16.mxu0 %v11478_v63 }
0x25bf   :  { %11505 = vmatpush3.bf16.msra.mxu1 %v11504_v27  ;;  %11481 = vmatpush3.bf16.msra.mxu0 %v11480_v56 }
0x25c0   :  { %11507 = vmatprep.subr.bf16.mxu1 %v11506_v62  ;;  %11483 = vmatprep.subr.bf16.mxu0 %v11482_v59 }
0x25c3   :  { %11509 = vmatpush3.bf16.msra.mxu1 %v11508_v55  ;;  %11485 = vmatpush3.bf16.msra.mxu0 %v11484_v9 }
0x25c4   :  { %11511 = vmatprep.subr.bf16.mxu1 %v11510_v13 }
0x25c7   :  { %11513 = vmatpush3.bf16.msra.mxu1 %v11512_v14 }
0x25c8   :  { %11515 = vmatprep.subr.bf16.mxu1 %v11514_v7 }
0x25cb   :  { %11517 = vmatpush3.bf16.msra.mxu1 %v11516_v18 }
0x2678   :  { %v8143_v44 = vpop.f32.mrb[90].mxu0  ;;  %v8226_v19 = vpop.f32.mrb[90].mxu1 }
0x2679   :  { %v8145_v28 = vpop.f32.mrb[91].mxu0  ;;  %v8228_v42 = vpop.f32.mrb[91].mxu1  ;;  %v8144_v23 = vadd.f32 %v8143_v44, %v8060_v61  ;;  %v8227_v12 = vadd.f32 %v8226_v19, %v8068_v37 }
0x267a   :  { %v8146_v21 = vadd.f32 %v8145_v28, %v8064_v31  ;;  %v14975_v8 = vadd.f32 %v8228_v42, %v8072_v3 }
0x267c   :  { %v8149_v26 = vpop.f32.mrb[92].mxu0  ;;  %v8232_v51 = vpop.f32.mrb[92].mxu1 }
0x267d   :  { %v8150_v17 = vadd.f32 %v8149_v26, %v8060_v61  ;;  %v8233_v38 = vadd.f32 %v8232_v51, %v8068_v37  ;;  %v8151_v52 = vpop.f32.mrb[93].mxu0  ;;  %v8234_v35 = vpop.f32.mrb[93].mxu1 }
0x267e   :  { %v8152_v16 = vadd.f32 %v8151_v52, %v8064_v31  ;;  %v14977_v40 = vadd.f32 %v8234_v35, %v8072_v3 }
0x267f   :  { %v8243_v1 = vadd.f32 %v8150_v17, %v8144_v23  ;;  %v8259_v20 = vadd.f32 %v8233_v38, %v8227_v12 }
0x2680   :  { %v8251_v27 = vadd.f32 %v8152_v16, %v8146_v21  ;;  %v8267_v10 = vadd.f32 %v14977_v40, %v14975_v8  ;;  %v8155_v58 = vpop.f32.mrb[94].mxu0  ;;  %v8238_v24 = vpop.f32.mrb[94].mxu1 }
0x2681   :  { %v8156_v57 = vadd.f32 %v8155_v58, %v8060_v61  ;;  %v8239_v0 = vadd.f32 %v8238_v24, %v8068_v37  ;;  %v8157_v29 = vpop.f32.mrb[95].mxu0  ;;  %v8240_v30 = vpop.f32.mrb[95].mxu1 }
0x2682   :  { %v8158_v62 = vadd.f32 %v8157_v29, %v8064_v31  ;;  %v8241_v53 = vadd.f32 %v8240_v30, %v8072_v3 }
0x2683   :  { %v8244_v54 = vadd.f32 %v8243_v1, %v8156_v57  ;;  %v8260_v22 = vadd.f32 %v8259_v20, %v8239_v0 }
0x2684   :  { %v8252_v55 = vadd.f32 %v8251_v27, %v8158_v62  ;;  %v8268_v4 = vadd.f32 %v8267_v10, %v8241_v53 }
0x2685   :  { %v8245_v32 = vrot.slane %v8244_v54, 4  ;;  %v8261_v2 = vrot.slane %v8260_v22, 4 }
0x2686   :  { %v8253_v63 = vrot.slane %v8252_v55, 4  ;;  %v8269_v41 = vrot.slane %v8268_v4, 4 }
0x2687   :  { %v8246_v49 = vadd.f32 %v8245_v32, %v8244_v54  ;;  %v8262_v60 = vadd.f32 %v8261_v2, %v8260_v22 }
0x2688   :  { %v8254_v13 = vadd.f32 %v8253_v63, %v8252_v55  ;;  %v8270_v56 = vadd.f32 %v8269_v41, %v8268_v4 }
0x2689   :  { %v8247_v46 = vrot.slane %v8246_v49, 2  ;;  %v8263_v15 = vrot.slane %v8262_v60, 2 }
0x268a   :  { %v8255_v34 = vrot.slane %v8254_v13, 2  ;;  %v8271_v14 = vrot.slane %v8270_v56, 2 }
0x268b   :  { %v8248_v25 = vadd.f32 %v8247_v46, %v8246_v49  ;;  %v8264_v11 = vadd.f32 %v8263_v15, %v8262_v60 }
0x268c   :  { %v8256_v39 = vadd.f32 %v8255_v34, %v8254_v13  ;;  %v8272_v59 = vadd.f32 %v8271_v14, %v8270_v56 }
0x268d   :  { %v8249_v7 = vrot.slane %v8248_v25, 1  ;;  %v8265_v6 = vrot.slane %v8264_v11, 1 }
0x268e   :  { %v8257_v33 = vrot.slane %v8256_v39, 1  ;;  %v8273_v50 = vrot.slane %v8272_v59, 1 }
0x268f   :  { %v8250_v9 = vadd.f32 %v8249_v7, %v8248_v25  ;;  %v8266_v36 = vadd.f32 %v8265_v6, %v8264_v11 }
0x2690   :  { %v8258_v18 = vadd.f32 %v8257_v33, %v8256_v39  ;;  %v8274_v5 = vadd.f32 %v8273_v50, %v8272_v59 }
0x2691   :  { %v8275_v44 = vmul.f32 0.041666668, %v8250_v9  ;;  %v8277_v19 = vmul.f32 0.041666668, %v8266_v36 }
0x2692   :  { %v8276_v61 = vmul.f32 0.041666668, %v8258_v18  ;;  %v8278_v37 = vmul.f32 0.041666668, %v8274_v5 }
0x2693   :  { %v8279_v28 = vsub.f32 %v8144_v23, %v8275_v44  ;;  %v8283_v42 = vsub.f32 %v8150_v17, %v8275_v44  ;;  %v14981_v31 = vsub.f32 %v8156_v57, %v8275_v44  ;;  %v8281_v3 = vsub.f32 %v8227_v12, %v8277_v19 }
0x2694   :  { %v8285_v26 = vsub.f32 %v8233_v38, %v8277_v19  ;;  %v14983_v51 = vsub.f32 %v8239_v0, %v8277_v19  ;;  %v8280_v52 = vsub.f32 %v8146_v21, %v8276_v61  ;;  %v8284_v35 = vsub.f32 %v8152_v16, %v8276_v61 }
0x2695   :  { %v8291_v1 = vmul.f32 %v8279_v28, %v8279_v28  ;;  %v8295_v20 = vmul.f32 %v8283_v42, %v8283_v42  ;;  %v8293_v27 = vmul.f32 %v8281_v3, %v8281_v3  ;;  %v8299_v10 = vmul.f32 %v14981_v31, %v14981_v31 }
0x2696   :  { %v8297_v58 = vmul.f32 %v8285_v26, %v8285_v26  ;;  %v14987_v24 = vsub.f32 %v8158_v62, %v8276_v61  ;;  %v8292_v29 = vmul.f32 %v8280_v52, %v8280_v52  ;;  %v8296_v17 = vmul.f32 %v8284_v35, %v8284_v35  ;;  %v8359_v52 = vld [vmem:[%s15076_s16] sm:$0xf]  ;;  %s12312_s16 = smov [#allocation15]  }
0x2697   :  { %v8303_v23 = vadd.f32 %v8295_v20, %v8291_v1  ;;  %v8282_v57 = vsub.f32 %v14975_v8, %v8278_v37  ;;  %v8286_v12 = vsub.f32 %v14977_v40, %v8278_v37  ;;  %v8301_v38 = vmul.f32 %v14983_v51, %v14983_v51  ;;  %v8393_v35 = vld [vmem:[%s15077_s17] sm:$0xf]  ;;  %s8694_s17 = sshll.u32 %s12312_s16, 4  ;;  %s8695_s17 = int_to_ptr.vmem [resolvable:$true] %s8694_s17 }
0x2698   :  { %v8319_v21 = vadd.f32 %v8297_v58, %v8293_v27  ;;  %v8300_v16 = vmul.f32 %v14987_v24, %v14987_v24  ;;  %v14995_v0 = vsub.f32 %v8241_v53, %v8278_v37  ;;  %v8311_v54 = vadd.f32 %v8296_v17, %v8292_v29  ;;  %s12227_s12 = scalar_lea.vmem %s8695_s17, 96  ;;  %p12232_p13 = scmp.lt.s32.totalorder %s8695_s17, %s8695_s17 }
0x2699   :  { %v8304_v30 = vadd.f32 %v8303_v23, %v8299_v10  ;;  %v8294_v62 = vmul.f32 %v8282_v57, %v8282_v57  ;;  %v8298_v22 = vmul.f32 %v8286_v12, %v8286_v12  ;;  %v8364_v1 = vrot.slane %v8359_v52, %v12873_v43  ;;  %p12228_p12 = scmp.ne.s32.totalorder %s8695_s17, %s12227_s12  ;;  %p12233_p0 = scmp.lt.s32.totalorder %s12227_s12, %s12227_s12 }
0x269a   :  { %v8320_v55 = vadd.f32 %v8319_v21, %v8301_v38  ;;  %v8312_v32 = vadd.f32 %v8311_v54, %v8300_v16  ;;  %v8302_v8 = vmul.f32 %v14995_v0, %v14995_v0  ;;  %v8398_v20 = vrot.slane %v8393_v35, %v12873_v43 }
0x269b   :  { %v8305_v4 = vrot.slane %v8304_v30, 4  ;;  %v8327_v40 = vadd.f32 %v8298_v22, %v8294_v62  ;;  %v8372_v10 = vrot.slane %v8359_v52, %v12880_v47  ;;  %v8406_v58 = vrot.slane %v8393_v35, %v12880_v47  ;;  %p12234_p1 = por %p12233_p0, %p12232_p13 }
0x269c   :  { %v8321_v2 = vrot.slane %v8320_v55, 4  ;;  %v8313_v41 = vrot.slane %v8312_v32, 4  ;;  %v8368_v29 = vrot.slane %v8359_v52, %v12878_v45  ;;  %v8402_v23 = vrot.slane %v8393_v35, %v12878_v45 }
0x269d   :  { %v8306_v63 = vadd.f32 %v8305_v4, %v8304_v30  ;;  %v8328_v49 = vadd.f32 %v8327_v40, %v8302_v8  ;;  %v8376_v12 = vrot.slane %v8359_v52, %v12882_v48  ;;  %v8410_v16 = vrot.slane %v8393_v35, %v12882_v48  ;;  %p12235_p2 = pnand %p12234_p1, %p12228_p12 }
0x269e   :  { %v8322_v60 = vadd.f32 %v8321_v2, %v8320_v55  ;;  %v8314_v56 = vadd.f32 %v8313_v41, %v8312_v32 }
0x269f   :  { %v8307_v13 = vrot.slane %v8306_v63, 2  ;;  %v8329_v53 = vrot.slane %v8328_v49, 4 }
0x26a0   :  { %v8323_v46 = vrot.slane %v8322_v60, 2  ;;  %v8315_v34 = vrot.slane %v8314_v56, 2 }
0x26a1   :  { %v8308_v15 = vadd.f32 %v8307_v13, %v8306_v63  ;;  %v8330_v14 = vadd.f32 %v8329_v53, %v8328_v49 }
0x26a2   :  { %v8324_v25 = vadd.f32 %v8323_v46, %v8322_v60  ;;  %v8316_v39 = vadd.f32 %v8315_v34, %v8314_v56 }
0x26a3   :  { %v8309_v11 = vrot.slane %v8308_v15, 1  ;;  %v8331_v59 = vrot.slane %v8330_v14, 2 }
0x26a4   :  { %v8325_v7 = vrot.slane %v8324_v25, 1  ;;  %v8317_v33 = vrot.slane %v8316_v39, 1 }
0x26a5   :  { %v8310_v6 = vadd.f32 %v8309_v11, %v8308_v15  ;;  %v8332_v50 = vadd.f32 %v8331_v59, %v8330_v14 }
0x26a6   :  { %v8326_v9 = vadd.f32 %v8325_v7, %v8324_v25  ;;  %v8318_v18 = vadd.f32 %v8317_v33, %v8316_v39 }
0x26a7   :  { %v8335_v36 = vmul.f32 0.041666668, %v8310_v6  ;;  %v8333_v5 = vrot.slane %v8332_v50, 1 }
0x26a8   :  { %v8337_v44 = vmul.f32 0.041666668, %v8326_v9  ;;  %v8336_v61 = vmul.f32 0.041666668, %v8318_v18 }
0x26a9   :  { %v8339_v19 = vadd.f32 1e-05, %v8335_v36  ;;  %v8334_v37 = vadd.f32 %v8333_v5, %v8332_v50 }
0x26aa   :  { %v8341_v28 = vadd.f32 1e-05, %v8337_v44  ;;  %v8340_v42 = vadd.f32 1e-05, %v8336_v61 }
0x26ab   :  { %12109 = vrsqrt.f32 %v8339_v19  ;;  %v8338_v3 = vmul.f32 0.041666668, %v8334_v37 }
0x26ac   :  { %12111 = vrsqrt.f32 %v8341_v28 }
0x26ad   :  { %12113 = vrsqrt.f32 %v8340_v42  ;;  %v8342_v26 = vadd.f32 1e-05, %v8338_v3 }
0x26af   :  { %12115 = vrsqrt.f32 %v8342_v26 }
0x26b5   :  { %v12110_v27 = vpop.eup %12109 }
0x26b6   :  { %v12112_v17 = vpop.eup %12111  ;;  %v8355_v57 = vmul.f32 %v12110_v27, %v14981_v31 }
0x26b7   :  { %v12114_v38 = vpop.eup %12113  ;;  %v8357_v21 = vmul.f32 %v12112_v17, %v14983_v51 }
0x26b8   :  { %v8389_v43 = vmul.f32 %v8364_v1, %v8355_v57  ;;  %v8356_v62 = vmul.f32 %v12114_v38, %v14987_v24 }
0x26b9   :  { %v8391_v30 = vmul.f32 %v8372_v10, %v8357_v21  ;;  %v12116_v47 = vpop.eup %12115 }
0x26ba   :  { %v8423_v54 = vadd.f32 %v8398_v20, %v8389_v43  ;;  %v8390_v45 = vmul.f32 %v8368_v29, %v8356_v62  ;;  %v8358_v32 = vmul.f32 %v12116_v47, %v14995_v0 }
0x26bb   :  { %v8425_v22 = vadd.f32 %v8406_v58, %v8391_v30 }
0x26bc   :  { %v8435_v55 = vmax.f32 %v8423_v54, 0.0  ;;  %v8424_v31 = vadd.f32 %v8402_v23, %v8390_v45  ;;  %v8392_v40 = vmul.f32 %v8376_v12, %v8358_v32 }
0x26bd   :  { %v8437_v4 = vmax.f32 %v8425_v22, 0.0 }
0x26be   :  { %8447 = vst [vmem:[#allocation4 + $0x40] sm:$0xff] %v8435_v55  ;;  %v8436_v8 = vmax.f32 %v8424_v31, 0.0  ;;  %v8426_v51 = vadd.f32 %v8410_v16, %v8392_v40 }
0x26bf   :  { %8449 = vst [vmem:[#allocation4 + $0x50] sm:$0xff] %v8437_v4 }
0x26c0   :  { %8448 = vst [vmem:[#allocation4 + $0x48] sm:$0xff] %v8436_v8  ;;  %v8438_v48 = vmax.f32 %v8426_v51, 0.0 }
0x26c2   :  { %8450 = vst [vmem:[#allocation4 + $0x58] sm:$0xff] %v8438_v48 }
0x26c5   :  { %v8451_v2 = vld [vmem:[#allocation4 + $0x40] sm:$0xc0] }
0x26c6   :  { %v8530_v24 = vrot.slane %v8451_v2, 6  ;;  %v8453_v49 = vld [vmem:[#allocation4 + $0x50] sm:$0xc0] }
0x26c7   :  { %v8452_v63 = vld [vmem:[#allocation4 + $0x48] sm:$0xc0]  ;;  %v8532_v56 = vrot.slane %v8453_v49, 6 }
0x26c8   :  { %v8531_v41 = vrot.slane %v8452_v63, 6 }
0x26c9   :  { %v8454_v60 = vld [vmem:[#allocation4 + $0x58] sm:$0xc0] }
0x26ca   :  { %8602 = vmatprep.mubr.f32.mxu0 %v8531_v41  ;;  %v8533_v13 = vrot.slane %v8454_v60, 6 }
0x26cb   :  { %8603 = vmatmul.mubr.f32.vlgmr.msra.gmra.mrb[96].mxu0 %v8530_v24 }
0x26cc   :  { %8672 = vmatprep.mubr.f32.mxu1 %v8533_v13 }
0x26cd   :  { %8673 = vmatmul.mubr.f32.vlgmr.msra.gmra.mrb[96].mxu1 %v8532_v56 }
0x26ce   :  { %12238 = shalt.err (!%p12235_p2)
}
0x26cf   :  { %s12239_s6 = scalar_lea.hbm %s15081_s21, 96 }
0x26d0   :  { %p12240_p3 = scmp.ne.s32.totalorder %s15081_s21, %s12239_s6  ;;  %p12243_p4 = scmp.lt.u32.totalorder %s12239_s6, %s15081_s21 }
0x26d2   :  { %p12245_p5 = pnand %p12243_p4, %p12240_p3 }
0x26d4   :  { %12248 = shalt.err (!%p12245_p5)
}
0x26d5   :  { %s12313_s3 = smov 2   ;;  %s12314_s25 = smov [#allocation17]  }
0x26d6   :  { %8700 = dma.vmem_to_hbm [thread:$0]  %s8695_s17, 96, %s15081_s21, [#allocation16], %s12306_s2, %s12306_s2, %s12313_s3  }
0x26d7   :  { %s8706_s1 = sshll.u32 %s12314_s25, 4  ;;  %s8707_s1 = int_to_ptr.vmem [resolvable:$true] %s8706_s1 }
0x26d8   :  { %s12249_s8 = scalar_lea.vmem %s8707_s1, 96  ;;  %p12254_p7 = scmp.lt.s32.totalorder %s8707_s1, %s8707_s1 }
0x26d9   :  { %p12250_p6 = scmp.ne.s32.totalorder %s8707_s1, %s12249_s8  ;;  %p12255_p8 = scmp.lt.s32.totalorder %s12249_s8, %s12249_s8 }
0x26db   :  { %p12256_p9 = por %p12255_p8, %p12254_p7 }
0x26dd   :  { %p12257_p10 = pnand %p12256_p9, %p12250_p6 }
0x26df   :  { %12260 = shalt.err (!%p12257_p10)
}
0x26e0   :  { %s12261_s10 = scalar_lea.hbm %s15082_s22, 96 }
0x26e1   :  { %p12262_p11 = scmp.ne.s32.totalorder %s15082_s22, %s12261_s10  ;;  %p12265_p12 = scmp.lt.u32.totalorder %s12261_s10, %s15082_s22 }
0x26e3   :  { %p12267_p13 = pnand %p12265_p12, %p12262_p11 }
0x26e5   :  { %12270 = shalt.err (!%p12267_p13)
}
0x26e6   :  { %8712 = dma.vmem_to_hbm [thread:$0]  %s8707_s1, 96, %s15082_s22, [#allocation16], %s12306_s2, %s12306_s2, %s12313_s3  }
0x26e7   :  { %v8851_v53 = vld [vmem:[%s15079_s19] ss:$0 sm:$0xff]  ;;  %s12315_s16 = smov [#allocation14]  }
0x26e8   :  { %s8685_s17 = sshll.u32 %s12315_s16, 4  ;;  %s8686_s17 = int_to_ptr.vmem [resolvable:$true] %s8685_s17 }
0x26e9   :  { %s12271_s12 = scalar_lea.vmem %s8686_s17, 32  ;;  %p12276_p1 = scmp.lt.s32.totalorder %s8686_s17, %s8686_s17 }
0x26ea   :  { %p12272_p0 = scmp.ne.s32.totalorder %s8686_s17, %s12271_s12  ;;  %p12277_p2 = scmp.lt.s32.totalorder %s12271_s12, %s12271_s12 }
0x26ec   :  { %p12278_p3 = por %p12277_p2, %p12276_p1 }
0x26ee   :  { %p12279_p4 = pnand %p12278_p3, %p12272_p0 }
0x279e   :  { %v8884_v0 = vpop.f32.mrb[96].mxu0 }
0x279f   :  { %v8885_v46 = vpop.f32.mrb[97].mxu0 }
0x27a0   :  { %v8886_v15 = vadd.f32 %v8885_v46, %v8884_v0  ;;  %v8919_v34 = vpop.f32.mrb[96].mxu1 }
0x27a1   :  { %v8920_v25 = vpop.f32.mrb[97].mxu1 }
0x27a2   :  { %v8605_v14 = vadd.f32 %v8886_v15, %v8851_v53  ;;  %v8921_v11 = vadd.f32 %v8920_v25, %v8919_v34 }
0x27a4   :  { %v8675_v39 = vadd.f32 %v8921_v11, %v8605_v14 }
0x27a6   :  { %8678 = vst [vmem:[#allocation14] sm:$0x3] %v8675_v39 }
0x27a7   :  { %12282 = shalt.err (!%p12279_p4)
}
0x27a8   :  { %s12283_s2 = scalar_lea.hbm %s15080_s20, 32 }
0x27a9   :  { %p12284_p5 = scmp.ne.s32.totalorder %s15080_s20, %s12283_s2  ;;  %p12287_p6 = scmp.lt.u32.totalorder %s12283_s2, %s15080_s20 }
0x27ab   :  { %p12289_p7 = pnand %p12287_p6, %p12284_p5 }
0x27ad   :  { %12292 = shalt.err (!%p12289_p7)
}
0x27ae   :  { %8688 = dma.vmem_to_hbm [thread:$0]  %s8686_s17, 32, %s15080_s20, [#allocation7]  }
0x27af   :  { %12299 = dma.done.wait [#allocation7], 32  }
0x27b0   :  { %12300 = vsyncadd [#allocation7], 4294967264 }
0x27b1   :  { %12301 = dma.done.wait [#allocation16], 192  }
0x27b2   :  { %12302 = vsyncadd [#allocation16], 4294967104 }
0x27b3   :  { %8722 = vsyncpa [#allocation6], 1 }
0x27b4   :  { %8723 = vsyncpa [#allocation9], 1 }
0x27b5   :  { %8724 = vsyncpa [#allocation12], 1 }
0x27b6   :  { %8725 = vsyncpa [#allocation7], 1 }
0x27b7   :  { %8726 = vsyncpa [#allocation16], 1 }

</bundles_post_ra>
